<compile_context>
chip_gen: v6e
topology: v6e:2x2x1
jax: 0.10.0
libtpu: 0.0.40
codegen_flags: <defaults>
</compile_context>

<pallas_src>
import math

import jax
import jax.numpy as jnp
from jax.experimental import pallas as pl
from jax.experimental.pallas import tpu as pltpu

COMPUTE_DTYPE = jnp.bfloat16   # MXU operand dtype; accumulation stays f32
BN_EPS = 1e-5


def residual_block_kernel(x_ref, w1_ref, w2_ref, b1_ref, b2_ref, out_ref,
                          pad_ref, col_ref):
    # x_ref  : (1, H, W, C)   unpadded input tile (one batch element), f32
    # w1_ref : (9*C, C)       conv1 weights, im2col layout, BN1 scale folded, bf16
    # w2_ref : (9*C, C)       conv2 weights, im2col layout, BN2 scale folded, bf16
    # b1_ref : (1, C)         folded BN1 shift, f32
    # b2_ref : (1, C)         folded BN2 shift, f32
    # out_ref: (1, H, W, C)
    # pad_ref: (H+2, W+2, C)  zero-bordered scratch (bf16), reused by both convs
    # col_ref: (H, W, 9*C)    im2col slab scratch (bf16), reused by both convs
    H = out_ref.shape[1]
    W = out_ref.shape[2]
    C = out_ref.shape[3]
    cdt = pad_ref.dtype

    x32 = x_ref[0].astype(jnp.float32)            # (H, W, C), f32 for the skip add

    # Zero the two border rows every grid step (no cross-iteration scratch
    # state, so the "parallel" batch axis stays safe across TensorCores).
    zrow = jnp.zeros((W + 2, C), cdt)
    pad_ref[0] = zrow
    pad_ref[H + 1] = zrow

    # W padding is folded into the interior store (one full-width slab store
    # instead of 2*H masked column stores per grid step).
    zcol = jnp.zeros((H, 1, C), jnp.float32)

    def set_interior(v_hwc_f32):
        pad_ref[1:H + 1] = jnp.concatenate(
            [zcol, v_hwc_f32, zcol], axis=1).astype(cdt)

    def conv3x3(w_ref):
        # im2col: gather the 9 shifted windows into one (H*W, 9C) slab and do
        # a single K=9C MXU contraction (instead of 9 K=C dots + 8 VPU adds).
        for t in range(9):
            dy, dx = divmod(t, 3)
            col_ref[:, :, t * C:(t + 1) * C] = pad_ref[dy:dy + H, dx:dx + W, :]
        slab = col_ref[...].reshape(H * W, 9 * C)
        return jnp.dot(slab, w_ref[...], preferred_element_type=jnp.float32)

    # --- conv1 (BN1 scale folded into weights) + shift + ReLU ----------------
    set_interior(x32)
    y1 = jnp.maximum(conv3x3(w1_ref) + b1_ref[...], 0.0)      # (H*W, C) f32

    # --- conv2 (BN2 scale folded into weights) + shift ------------------------
    set_interior(y1.reshape(H, W, C))
    y2 = conv3x3(w2_ref) + b2_ref[...]                          # (H*W, C) f32

    # --- residual add (f32, from the unpadded input) + final ReLU -------------
    out = jnp.maximum(x32 + y2.reshape(H, W, C), 0.0)
    out_ref[0] = out.astype(out_ref.dtype)


def _fold_bn(w_hwio, gamma, beta, mean, var):
    """Fold inference-mode BN: scale -> conv weights, shift -> per-channel bias.

    Returns weights in im2col layout (9*C_in, C_out) cast to COMPUTE_DTYPE and
    an f32 (1, C_out) shift.
    """
    s = gamma * jax.lax.rsqrt(var + jnp.float32(BN_EPS))
    wf = w_hwio * s[None, None, None, :]                       # fold in f32
    kh, kw, ci, co = w_hwio.shape
    wf = wf.reshape(kh * kw * ci, co).astype(COMPUTE_DTYPE)
    b = (beta - mean * s).reshape(1, co).astype(jnp.float32)
    return wf, b


@jax.jit
def residual_block_forward_nhwc(x_nhwc, w1, w2, g1, be1, m1, v1,
                                g2, be2, m2, v2):
    """NHWC entry point (no layout transposes). Conv weights in HWIO (3,3,C,C)."""
    w1f, b1 = _fold_bn(w1, g1, be1, m1, v1)
    w2f, b2 = _fold_bn(w2, g2, be2, m2, v2)
    N, H, W, C = x_nhwc.shape

    return pl.pallas_call(
        residual_block_kernel,
        out_shape=jax.ShapeDtypeStruct((N, H, W, C), x_nhwc.dtype),
        grid_spec=pltpu.PrefetchScalarGridSpec(
            num_scalar_prefetch=0,
            grid=(N,),
            in_specs=[
                pl.BlockSpec((1, H, W, C), lambda n: (n, 0, 0, 0)),
                pl.BlockSpec((9 * C, C), lambda n: (0, 0)),
                pl.BlockSpec((9 * C, C), lambda n: (0, 0)),
                pl.BlockSpec((1, C), lambda n: (0, 0)),
                pl.BlockSpec((1, C), lambda n: (0, 0)),
            ],
            out_specs=pl.BlockSpec((1, H, W, C), lambda n: (n, 0, 0, 0)),
            scratch_shapes=[
                pltpu.VMEM((H + 2, W + 2, C), COMPUTE_DTYPE),
                pltpu.VMEM((H, W, 9 * C), COMPUTE_DTYPE),
            ],
        ),
        compiler_params=pltpu.CompilerParams(
            dimension_semantics=("parallel",),
            vmem_limit_bytes=48 * 1024 * 1024,
        ),
    )(x_nhwc, w1f, w2f, b1, b2)


@jax.jit
def residual_block_forward(x_nchw, w1, w2, g1, be1, m1, v1, g2, be2, m2, v2):
    """NCHW (PyTorch-layout) adapter around the NHWC kernel.

    Callers that can supply/consume NHWC should use residual_block_forward_nhwc
    directly and skip the two full-tensor layout transposes.
    """
    x = jnp.transpose(x_nchw, (0, 2, 3, 1))                    # NCHW -> NHWC
    out = residual_block_forward_nhwc(x, w1, w2, g1, be1, m1, v1,
                                      g2, be2, m2, v2)
    return jnp.transpose(out, (0, 3, 1, 2))                    # NHWC -> NCHW


def init_params(key, C):
    ks = jax.random.split(key, 10)
    fan_in = C * 3 * 3
    bound = 1.0 / math.sqrt(fan_in)
    params = dict(
        # conv weights stored directly in HWIO (kh, kw, Cin, Cout)
        w1=jax.random.uniform(ks[0], (3, 3, C, C), jnp.float32, -bound, bound),
        w2=jax.random.uniform(ks[1], (3, 3, C, C), jnp.float32, -bound, bound),
        g1=jax.random.uniform(ks[2], (C,), jnp.float32, 0.5, 1.5),
        be1=jax.random.uniform(ks[3], (C,), jnp.float32, -0.5, 0.5),
        m1=jax.random.uniform(ks[4], (C,), jnp.float32, -0.3, 0.3),
        v1=jax.random.uniform(ks[5], (C,), jnp.float32, 0.5, 1.5),
        g2=jax.random.uniform(ks[6], (C,), jnp.float32, 0.5, 1.5),
        be2=jax.random.uniform(ks[7], (C,), jnp.float32, -0.5, 0.5),
        m2=jax.random.uniform(ks[8], (C,), jnp.float32, -0.3, 0.3),
        v2=jax.random.uniform(ks[9], (C,), jnp.float32, 0.5, 1.5),
    )
    return params


def reference_forward(x_nchw, p):
    """Pure-JAX f32 reference (XLA conv) matching the PyTorch module (eval mode)."""
    eps = BN_EPS
    dn = ('NHWC', 'HWIO', 'NHWC')
    x = jnp.transpose(x_nchw, (0, 2, 3, 1))
    y = jax.lax.conv_general_dilated(x, p['w1'], (1, 1), 'SAME',
                                     dimension_numbers=dn)
    y = (y - p['m1']) / jnp.sqrt(p['v1'] + eps) * p['g1'] + p['be1']
    y = jnp.maximum(y, 0.0)
    y = jax.lax.conv_general_dilated(y, p['w2'], (1, 1), 'SAME',
                                     dimension_numbers=dn)
    y = (y - p['m2']) / jnp.sqrt(p['v2'] + eps) * p['g2'] + p['be2']
    out = jnp.maximum(x + y, 0.0)
    return jnp.transpose(out, (0, 3, 1, 2))


def reference_forward_matched(x_nchw, p):
    """Reference that reproduces the kernel's exact quantization points:
    BN folded in f32, weights/activations cast to COMPUTE_DTYPE for the convs,
    f32 accumulation, f32 shift/residual.  Isolates structural errors from the
    expected bf16 quantization error."""
    dn = ('NHWC', 'HWIO', 'NHWC')
    eps = jnp.float32(BN_EPS)
    s1 = p['g1'] * jax.lax.rsqrt(p['v1'] + eps)
    s2 = p['g2'] * jax.lax.rsqrt(p['v2'] + eps)
    w1f = (p['w1'] * s1[None, None, None, :]).astype(COMPUTE_DTYPE)
    w2f = (p['w2'] * s2[None, None, None, :]).astype(COMPUTE_DTYPE)
    b1 = p['be1'] - p['m1'] * s1
    b2 = p['be2'] - p['m2'] * s2
    x = jnp.transpose(x_nchw, (0, 2, 3, 1))
    y = jax.lax.conv_general_dilated(
        x.astype(COMPUTE_DTYPE), w1f, (1, 1), 'SAME', dimension_numbers=dn,
        preferred_element_type=jnp.float32) + b1
    y = jnp.maximum(y, 0.0)
    y = jax.lax.conv_general_dilated(
        y.astype(COMPUTE_DTYPE), w2f, (1, 1), 'SAME', dimension_numbers=dn,
        preferred_element_type=jnp.float32) + b2
    out = jnp.maximum(x + y, 0.0)
    return jnp.transpose(out, (0, 3, 1, 2))


if __name__ == "__main__":
    key = jax.random.PRNGKey(0)
    kx, kp = jax.random.split(key)

    # NOTE: C=4 wastes most of every 128-wide lane vreg; real deployments
    # should use C that is a multiple of 128 for meaningful MXU utilization.
    N, C, H, W = 2, 4, 16, 16
    x = jax.random.normal(kx, (N, C, H, W), dtype=jnp.float32)
    p = init_params(kp, C)

    out = residual_block_forward(
        x, p['w1'], p['w2'],
        p['g1'], p['be1'], p['m1'], p['v1'],
        p['g2'], p['be2'], p['m2'], p['v2'])
    out = jax.block_until_ready(out)
    assert out.shape == (N, C, H, W)

    # Structural correctness: compare against a reference with identical
    # bf16 quantization points (any remaining diff is f32 accumulation order).
    ref_m = reference_forward_matched(x, p)
    err_m = float(jnp.max(jnp.abs(out - ref_m)))
    assert err_m < 5e-3, f"structural mismatch vs matched reference: {err_m}"

    # Sanity vs the exact f32 module semantics: only bf16 quantization error.
    ref = reference_forward(x, p)
    err = float(jnp.max(jnp.abs(out - ref)))
    assert err < 2e-1, f"unexpectedly large bf16 quantization error: {err}"

    print("KERNEL_OK")
</pallas_src>

<mosaic_0001>
module attributes {stable_mosaic.version = 11 : i64} {
  func.func @residual_block_kernel(%arg0: i32, %arg1: memref<1x16x16x4xf32, #tpu.memory_space<vmem>>, %arg2: memref<36x4xbf16, #tpu.memory_space<vmem>>, %arg3: memref<36x4xbf16, #tpu.memory_space<vmem>>, %arg4: memref<1x4xf32, #tpu.memory_space<vmem>>, %arg5: memref<1x4xf32, #tpu.memory_space<vmem>>, %arg6: memref<1x16x16x4xf32, #tpu.memory_space<vmem>>, %arg7: memref<18x18x4xbf16, #tpu.memory_space<vmem>>, %arg8: memref<16x16x36xbf16, #tpu.memory_space<vmem>>) attributes {dimension_semantics = [#tpu.dimension_semantics<parallel>], iteration_bounds = array<i64: 2>, scalar_prefetch = 0 : i64, scratch_operands = 2 : i64, tpu.core_type = #tpu.core_type<tc>, window_params = [{transform_indices = @transform_0, window_bounds = array<i64: 1, 16, 16, 4>}, {pipeline_mode = #tpu.pipeline_mode<synchronous>, transform_indices = @transform_1, window_bounds = array<i64: 36, 4>}, {pipeline_mode = #tpu.pipeline_mode<synchronous>, transform_indices = @transform_2, window_bounds = array<i64: 36, 4>}, {pipeline_mode = #tpu.pipeline_mode<synchronous>, transform_indices = @transform_3, window_bounds = array<i64: 1, 4>}, {pipeline_mode = #tpu.pipeline_mode<synchronous>, transform_indices = @transform_4, window_bounds = array<i64: 1, 4>}, {transform_indices = @transform_5, window_bounds = array<i64: 1, 16, 16, 4>}]} {
    %c0 = arith.constant 0 : index
    %c0_0 = arith.constant 0 : index
    %c0_1 = arith.constant 0 : index
    %c0_2 = arith.constant 0 : index
    %0 = vector.load %arg1[%c0, %c0_0, %c0_1, %c0_2] : memref<1x16x16x4xf32, #tpu.memory_space<vmem>>, vector<1x16x16x4xf32>
    %1 = vector.shape_cast %0 : vector<1x16x16x4xf32> to vector<16x16x4xf32>
    %cst = arith.constant 0.000000e+00 : bf16
    %2 = vector.broadcast %cst : bf16 to vector<18x4xbf16>
    %c0_3 = arith.constant 0 : index
    %c0_4 = arith.constant 0 : index
    %c0_5 = arith.constant 0 : index
    %3 = vector.load %arg7[%c0_3, %c0_4, %c0_5] : memref<18x18x4xbf16, #tpu.memory_space<vmem>>, vector<1x18x4xbf16>
    %4 = vector.shape_cast %3 : vector<1x18x4xbf16> to vector<18x4xbf16>
    %5 = vector.shape_cast %2 : vector<18x4xbf16> to vector<1x18x4xbf16>
    tpu.vector_store %arg7[%c0_3, %c0_4, %c0_5], %5 {strides = array<i32>} : memref<18x18x4xbf16, #tpu.memory_space<vmem>>, vector<1x18x4xbf16>,
    %c17 = arith.constant 17 : index
    %c0_6 = arith.constant 0 : index
    %c0_7 = arith.constant 0 : index
    %6 = vector.load %arg7[%c17, %c0_6, %c0_7] : memref<18x18x4xbf16, #tpu.memory_space<vmem>>, vector<1x18x4xbf16>
    %7 = vector.shape_cast %6 : vector<1x18x4xbf16> to vector<18x4xbf16>
    %8 = vector.shape_cast %2 : vector<18x4xbf16> to vector<1x18x4xbf16>
    tpu.vector_store %arg7[%c17, %c0_6, %c0_7], %8 {strides = array<i32>} : memref<18x18x4xbf16, #tpu.memory_space<vmem>>, vector<1x18x4xbf16>,
    %cst_8 = arith.constant 0.000000e+00 : f32
    %9 = vector.broadcast %cst_8 : f32 to vector<16x1x4xf32>
    %10 = tpu.concatenate %9, %1, %9 in 1 : vector<16x1x4xf32>, vector<16x16x4xf32>, vector<16x1x4xf32> -> vector<16x18x4xf32>
    %11 = arith.truncf %10 : vector<16x18x4xf32> to vector<16x18x4xbf16>
    %c1 = arith.constant 1 : index
    %c0_9 = arith.constant 0 : index
    %c0_10 = arith.constant 0 : index
    %12 = vector.load %arg7[%c1, %c0_9, %c0_10] : memref<18x18x4xbf16, #tpu.memory_space<vmem>>, vector<16x18x4xbf16>
    tpu.vector_store %arg7[%c1, %c0_9, %c0_10], %11 {strides = array<i32>} : memref<18x18x4xbf16, #tpu.memory_space<vmem>>, vector<16x18x4xbf16>,
    %c0_11 = arith.constant 0 : index
    %c0_12 = arith.constant 0 : index
    %c0_13 = arith.constant 0 : index
    %13 = vector.load %arg7[%c0_11, %c0_12, %c0_13] : memref<18x18x4xbf16, #tpu.memory_space<vmem>>, vector<16x16x4xbf16>
    %c0_14 = arith.constant 0 : index
    %c0_15 = arith.constant 0 : index
    %c0_16 = arith.constant 0 : index
    %14 = vector.load %arg8[%c0_14, %c0_15, %c0_16] : memref<16x16x36xbf16, #tpu.memory_space<vmem>>, vector<16x16x4xbf16>
    tpu.vector_store %arg8[%c0_14, %c0_15, %c0_16], %13 {strides = array<i32>} : memref<16x16x36xbf16, #tpu.memory_space<vmem>>, vector<16x16x4xbf16>,
    %c0_17 = arith.constant 0 : index
    %c1_18 = arith.constant 1 : index
    %c0_19 = arith.constant 0 : index
    %15 = vector.load %arg7[%c0_17, %c1_18, %c0_19] : memref<18x18x4xbf16, #tpu.memory_space<vmem>>, vector<16x16x4xbf16>
    %c0_20 = arith.constant 0 : index
    %c0_21 = arith.constant 0 : index
    %c4 = arith.constant 4 : index
    %16 = vector.load %arg8[%c0_20, %c0_21, %c4] : memref<16x16x36xbf16, #tpu.memory_space<vmem>>, vector<16x16x4xbf16>
    tpu.vector_store %arg8[%c0_20, %c0_21, %c4], %15 {strides = array<i32>} : memref<16x16x36xbf16, #tpu.memory_space<vmem>>, vector<16x16x4xbf16>,
    %c0_22 = arith.constant 0 : index
    %c2 = arith.constant 2 : index
    %c0_23 = arith.constant 0 : index
    %17 = vector.load %arg7[%c0_22, %c2, %c0_23] : memref<18x18x4xbf16, #tpu.memory_space<vmem>>, vector<16x16x4xbf16>
    %c0_24 = arith.constant 0 : index
    %c0_25 = arith.constant 0 : index
    %c8 = arith.constant 8 : index
    %18 = vector.load %arg8[%c0_24, %c0_25, %c8] : memref<16x16x36xbf16, #tpu.memory_space<vmem>>, vector<16x16x4xbf16>
    tpu.vector_store %arg8[%c0_24, %c0_25, %c8], %17 {strides = array<i32>} : memref<16x16x36xbf16, #tpu.memory_space<vmem>>, vector<16x16x4xbf16>,
    %c1_26 = arith.constant 1 : index
    %c0_27 = arith.constant 0 : index
    %c0_28 = arith.constant 0 : index
    %19 = vector.load %arg7[%c1_26, %c0_27, %c0_28] : memref<18x18x4xbf16, #tpu.memory_space<vmem>>, vector<16x16x4xbf16>
    %c0_29 = arith.constant 0 : index
    %c0_30 = arith.constant 0 : index
    %c12 = arith.constant 12 : index
    %20 = vector.load %arg8[%c0_29, %c0_30, %c12] : memref<16x16x36xbf16, #tpu.memory_space<vmem>>, vector<16x16x4xbf16>
    tpu.vector_store %arg8[%c0_29, %c0_30, %c12], %19 {strides = array<i32>} : memref<16x16x36xbf16, #tpu.memory_space<vmem>>, vector<16x16x4xbf16>,
    %c1_31 = arith.constant 1 : index
    %c1_32 = arith.constant 1 : index
    %c0_33 = arith.constant 0 : index
    %21 = vector.load %arg7[%c1_31, %c1_32, %c0_33] : memref<18x18x4xbf16, #tpu.memory_space<vmem>>, vector<16x16x4xbf16>
    %c0_34 = arith.constant 0 : index
    %c0_35 = arith.constant 0 : index
    %c16 = arith.constant 16 : index
    %22 = vector.load %arg8[%c0_34, %c0_35, %c16] : memref<16x16x36xbf16, #tpu.memory_space<vmem>>, vector<16x16x4xbf16>
    tpu.vector_store %arg8[%c0_34, %c0_35, %c16], %21 {strides = array<i32>} : memref<16x16x36xbf16, #tpu.memory_space<vmem>>, vector<16x16x4xbf16>,
    %c1_36 = arith.constant 1 : index
    %c2_37 = arith.constant 2 : index
    %c0_38 = arith.constant 0 : index
    %23 = vector.load %arg7[%c1_36, %c2_37, %c0_38] : memref<18x18x4xbf16, #tpu.memory_space<vmem>>, vector<16x16x4xbf16>
    %c0_39 = arith.constant 0 : index
    %c0_40 = arith.constant 0 : index
    %c20 = arith.constant 20 : index
    %24 = vector.load %arg8[%c0_39, %c0_40, %c20] : memref<16x16x36xbf16, #tpu.memory_space<vmem>>, vector<16x16x4xbf16>
    tpu.vector_store %arg8[%c0_39, %c0_40, %c20], %23 {strides = array<i32>} : memref<16x16x36xbf16, #tpu.memory_space<vmem>>, vector<16x16x4xbf16>,
    %c2_41 = arith.constant 2 : index
    %c0_42 = arith.constant 0 : index
    %c0_43 = arith.constant 0 : index
    %25 = vector.load %arg7[%c2_41, %c0_42, %c0_43] : memref<18x18x4xbf16, #tpu.memory_space<vmem>>, vector<16x16x4xbf16>
    %c0_44 = arith.constant 0 : index
    %c0_45 = arith.constant 0 : index
    %c24 = arith.constant 24 : index
    %26 = vector.load %arg8[%c0_44, %c0_45, %c24] : memref<16x16x36xbf16, #tpu.memory_space<vmem>>, vector<16x16x4xbf16>
    tpu.vector_store %arg8[%c0_44, %c0_45, %c24], %25 {strides = array<i32>} : memref<16x16x36xbf16, #tpu.memory_space<vmem>>, vector<16x16x4xbf16>,
    %c2_46 = arith.constant 2 : index
    %c1_47 = arith.constant 1 : index
    %c0_48 = arith.constant 0 : index
    %27 = vector.load %arg7[%c2_46, %c1_47, %c0_48] : memref<18x18x4xbf16, #tpu.memory_space<vmem>>, vector<16x16x4xbf16>
    %c0_49 = arith.constant 0 : index
    %c0_50 = arith.constant 0 : index
    %c28 = arith.constant 28 : index
    %28 = vector.load %arg8[%c0_49, %c0_50, %c28] : memref<16x16x36xbf16, #tpu.memory_space<vmem>>, vector<16x16x4xbf16>
    tpu.vector_store %arg8[%c0_49, %c0_50, %c28], %27 {strides = array<i32>} : memref<16x16x36xbf16, #tpu.memory_space<vmem>>, vector<16x16x4xbf16>,
    %c2_51 = arith.constant 2 : index
    %c2_52 = arith.constant 2 : index
    %c0_53 = arith.constant 0 : index
    %29 = vector.load %arg7[%c2_51, %c2_52, %c0_53] : memref<18x18x4xbf16, #tpu.memory_space<vmem>>, vector<16x16x4xbf16>
    %c0_54 = arith.constant 0 : index
    %c0_55 = arith.constant 0 : index
    %c32 = arith.constant 32 : index
    %30 = vector.load %arg8[%c0_54, %c0_55, %c32] : memref<16x16x36xbf16, #tpu.memory_space<vmem>>, vector<16x16x4xbf16>
    tpu.vector_store %arg8[%c0_54, %c0_55, %c32], %29 {strides = array<i32>} : memref<16x16x36xbf16, #tpu.memory_space<vmem>>, vector<16x16x4xbf16>,
    %c0_56 = arith.constant 0 : index
    %c0_57 = arith.constant 0 : index
    %c0_58 = arith.constant 0 : index
    %31 = vector.load %arg8[%c0_56, %c0_57, %c0_58] : memref<16x16x36xbf16, #tpu.memory_space<vmem>>, vector<16x16x36xbf16>
    %32 = vector.shape_cast %31 : vector<16x16x36xbf16> to vector<256x36xbf16>
    %c0_59 = arith.constant 0 : index
    %c0_60 = arith.constant 0 : index
    %33 = vector.load %arg2[%c0_59, %c0_60] : memref<36x4xbf16, #tpu.memory_space<vmem>>, vector<36x4xbf16>
    %cst_61 = arith.constant dense<0.000000e+00> : vector<256x4xf32>
    %34 = tpu.matmul %32, %33, %cst_61 {dimension_numbers = #tpu.dot_dimension_numbers<[1], [0], [0], [1], [0, 0, 1, 1], [], []>} : vector<256x36xbf16>, vector<36x4xbf16>, vector<256x4xf32> -> vector<256x4xf32>
    %c0_62 = arith.constant 0 : index
    %c0_63 = arith.constant 0 : index
    %35 = vector.load %arg4[%c0_62, %c0_63] : memref<1x4xf32, #tpu.memory_space<vmem>>, vector<1x4xf32>
    %36 = vector.broadcast %35 : vector<1x4xf32> to vector<256x4xf32>
    %37 = arith.addf %34, %36 : vector<256x4xf32>
    %cst_64 = arith.constant 0.000000e+00 : f32
    %38 = vector.broadcast %cst_64 : f32 to vector<256x4xf32>
    %39 = arith.maximumf %37, %38 : vector<256x4xf32>
    %40 = vector.shape_cast %39 : vector<256x4xf32> to vector<16x16x4xf32>
    %41 = tpu.concatenate %9, %40, %9 in 1 : vector<16x1x4xf32>, vector<16x16x4xf32>, vector<16x1x4xf32> -> vector<16x18x4xf32>
    %42 = arith.truncf %41 : vector<16x18x4xf32> to vector<16x18x4xbf16>
    %c1_65 = arith.constant 1 : index
    %c0_66 = arith.constant 0 : index
    %c0_67 = arith.constant 0 : index
    %43 = vector.load %arg7[%c1_65, %c0_66, %c0_67] : memref<18x18x4xbf16, #tpu.memory_space<vmem>>, vector<16x18x4xbf16>
    tpu.vector_store %arg7[%c1_65, %c0_66, %c0_67], %42 {strides = array<i32>} : memref<18x18x4xbf16, #tpu.memory_space<vmem>>, vector<16x18x4xbf16>,
    %c0_68 = arith.constant 0 : index
    %c0_69 = arith.constant 0 : index
    %c0_70 = arith.constant 0 : index
    %44 = vector.load %arg7[%c0_68, %c0_69, %c0_70] : memref<18x18x4xbf16, #tpu.memory_space<vmem>>, vector<16x16x4xbf16>
    %c0_71 = arith.constant 0 : index
    %c0_72 = arith.constant 0 : index
    %c0_73 = arith.constant 0 : index
    %45 = vector.load %arg8[%c0_71, %c0_72, %c0_73] : memref<16x16x36xbf16, #tpu.memory_space<vmem>>, vector<16x16x4xbf16>
    tpu.vector_store %arg8[%c0_71, %c0_72, %c0_73], %44 {strides = array<i32>} : memref<16x16x36xbf16, #tpu.memory_space<vmem>>, vector<16x16x4xbf16>,
    %c0_74 = arith.constant 0 : index
    %c1_75 = arith.constant 1 : index
    %c0_76 = arith.constant 0 : index
    %46 = vector.load %arg7[%c0_74, %c1_75, %c0_76] : memref<18x18x4xbf16, #tpu.memory_space<vmem>>, vector<16x16x4xbf16>
    %c0_77 = arith.constant 0 : index
    %c0_78 = arith.constant 0 : index
    %c4_79 = arith.constant 4 : index
    %47 = vector.load %arg8[%c0_77, %c0_78, %c4_79] : memref<16x16x36xbf16, #tpu.memory_space<vmem>>, vector<16x16x4xbf16>
    tpu.vector_store %arg8[%c0_77, %c0_78, %c4_79], %46 {strides = array<i32>} : memref<16x16x36xbf16, #tpu.memory_space<vmem>>, vector<16x16x4xbf16>,
    %c0_80 = arith.constant 0 : index
    %c2_81 = arith.constant 2 : index
    %c0_82 = arith.constant 0 : index
    %48 = vector.load %arg7[%c0_80, %c2_81, %c0_82] : memref<18x18x4xbf16, #tpu.memory_space<vmem>>, vector<16x16x4xbf16>
    %c0_83 = arith.constant 0 : index
    %c0_84 = arith.constant 0 : index
    %c8_85 = arith.constant 8 : index
    %49 = vector.load %arg8[%c0_83, %c0_84, %c8_85] : memref<16x16x36xbf16, #tpu.memory_space<vmem>>, vector<16x16x4xbf16>
    tpu.vector_store %arg8[%c0_83, %c0_84, %c8_85], %48 {strides = array<i32>} : memref<16x16x36xbf16, #tpu.memory_space<vmem>>, vector<16x16x4xbf16>,
    %c1_86 = arith.constant 1 : index
    %c0_87 = arith.constant 0 : index
    %c0_88 = arith.constant 0 : index
    %50 = vector.load %arg7[%c1_86, %c0_87, %c0_88] : memref<18x18x4xbf16, #tpu.memory_space<vmem>>, vector<16x16x4xbf16>
    %c0_89 = arith.constant 0 : index
    %c0_90 = arith.constant 0 : index
    %c12_91 = arith.constant 12 : index
    %51 = vector.load %arg8[%c0_89, %c0_90, %c12_91] : memref<16x16x36xbf16, #tpu.memory_space<vmem>>, vector<16x16x4xbf16>
    tpu.vector_store %arg8[%c0_89, %c0_90, %c12_91], %50 {strides = array<i32>} : memref<16x16x36xbf16, #tpu.memory_space<vmem>>, vector<16x16x4xbf16>,
    %c1_92 = arith.constant 1 : index
    %c1_93 = arith.constant 1 : index
    %c0_94 = arith.constant 0 : index
    %52 = vector.load %arg7[%c1_92, %c1_93, %c0_94] : memref<18x18x4xbf16, #tpu.memory_space<vmem>>, vector<16x16x4xbf16>
    %c0_95 = arith.constant 0 : index
    %c0_96 = arith.constant 0 : index
    %c16_97 = arith.constant 16 : index
    %53 = vector.load %arg8[%c0_95, %c0_96, %c16_97] : memref<16x16x36xbf16, #tpu.memory_space<vmem>>, vector<16x16x4xbf16>
    tpu.vector_store %arg8[%c0_95, %c0_96, %c16_97], %52 {strides = array<i32>} : memref<16x16x36xbf16, #tpu.memory_space<vmem>>, vector<16x16x4xbf16>,
    %c1_98 = arith.constant 1 : index
    %c2_99 = arith.constant 2 : index
    %c0_100 = arith.constant 0 : index
    %54 = vector.load %arg7[%c1_98, %c2_99, %c0_100] : memref<18x18x4xbf16, #tpu.memory_space<vmem>>, vector<16x16x4xbf16>
    %c0_101 = arith.constant 0 : index
    %c0_102 = arith.constant 0 : index
    %c20_103 = arith.constant 20 : index
    %55 = vector.load %arg8[%c0_101, %c0_102, %c20_103] : memref<16x16x36xbf16, #tpu.memory_space<vmem>>, vector<16x16x4xbf16>
    tpu.vector_store %arg8[%c0_101, %c0_102, %c20_103], %54 {strides = array<i32>} : memref<16x16x36xbf16, #tpu.memory_space<vmem>>, vector<16x16x4xbf16>,
    %c2_104 = arith.constant 2 : index
    %c0_105 = arith.constant 0 : index
    %c0_106 = arith.constant 0 : index
    %56 = vector.load %arg7[%c2_104, %c0_105, %c0_106] : memref<18x18x4xbf16, #tpu.memory_space<vmem>>, vector<16x16x4xbf16>
    %c0_107 = arith.constant 0 : index
    %c0_108 = arith.constant 0 : index
    %c24_109 = arith.constant 24 : index
    %57 = vector.load %arg8[%c0_107, %c0_108, %c24_109] : memref<16x16x36xbf16, #tpu.memory_space<vmem>>, vector<16x16x4xbf16>
    tpu.vector_store %arg8[%c0_107, %c0_108, %c24_109], %56 {strides = array<i32>} : memref<16x16x36xbf16, #tpu.memory_space<vmem>>, vector<16x16x4xbf16>,
    %c2_110 = arith.constant 2 : index
    %c1_111 = arith.constant 1 : index
    %c0_112 = arith.constant 0 : index
    %58 = vector.load %arg7[%c2_110, %c1_111, %c0_112] : memref<18x18x4xbf16, #tpu.memory_space<vmem>>, vector<16x16x4xbf16>
    %c0_113 = arith.constant 0 : index
    %c0_114 = arith.constant 0 : index
    %c28_115 = arith.constant 28 : index
    %59 = vector.load %arg8[%c0_113, %c0_114, %c28_115] : memref<16x16x36xbf16, #tpu.memory_space<vmem>>, vector<16x16x4xbf16>
    tpu.vector_store %arg8[%c0_113, %c0_114, %c28_115], %58 {strides = array<i32>} : memref<16x16x36xbf16, #tpu.memory_space<vmem>>, vector<16x16x4xbf16>,
    %c2_116 = arith.constant 2 : index
    %c2_117 = arith.constant 2 : index
    %c0_118 = arith.constant 0 : index
    %60 = vector.load %arg7[%c2_116, %c2_117, %c0_118] : memref<18x18x4xbf16, #tpu.memory_space<vmem>>, vector<16x16x4xbf16>
    %c0_119 = arith.constant 0 : index
    %c0_120 = arith.constant 0 : index
    %c32_121 = arith.constant 32 : index
    %61 = vector.load %arg8[%c0_119, %c0_120, %c32_121] : memref<16x16x36xbf16, #tpu.memory_space<vmem>>, vector<16x16x4xbf16>
    tpu.vector_store %arg8[%c0_119, %c0_120, %c32_121], %60 {strides = array<i32>} : memref<16x16x36xbf16, #tpu.memory_space<vmem>>, vector<16x16x4xbf16>,
    %c0_122 = arith.constant 0 : index
    %c0_123 = arith.constant 0 : index
    %c0_124 = arith.constant 0 : index
    %62 = vector.load %arg8[%c0_122, %c0_123, %c0_124] : memref<16x16x36xbf16, #tpu.memory_space<vmem>>, vector<16x16x36xbf16>
    %63 = vector.shape_cast %62 : vector<16x16x36xbf16> to vector<256x36xbf16>
    %c0_125 = arith.constant 0 : index
    %c0_126 = arith.constant 0 : index
    %64 = vector.load %arg3[%c0_125, %c0_126] : memref<36x4xbf16, #tpu.memory_space<vmem>>, vector<36x4xbf16>
    %cst_127 = arith.constant dense<0.000000e+00> : vector<256x4xf32>
    %65 = tpu.matmul %63, %64, %cst_127 {dimension_numbers = #tpu.dot_dimension_numbers<[1], [0], [0], [1], [0, 0, 1, 1], [], []>} : vector<256x36xbf16>, vector<36x4xbf16>, vector<256x4xf32> -> vector<256x4xf32>
    %c0_128 = arith.constant 0 : index
    %c0_129 = arith.constant 0 : index
    %66 = vector.load %arg5[%c0_128, %c0_129] : memref<1x4xf32, #tpu.memory_space<vmem>>, vector<1x4xf32>
    %67 = vector.broadcast %66 : vector<1x4xf32> to vector<256x4xf32>
    %68 = arith.addf %65, %67 : vector<256x4xf32>
    %69 = vector.shape_cast %68 : vector<256x4xf32> to vector<16x16x4xf32>
    %70 = arith.addf %1, %69 : vector<16x16x4xf32>
    %cst_130 = arith.constant 0.000000e+00 : f32
    %71 = vector.broadcast %cst_130 : f32 to vector<16x16x4xf32>
    %72 = arith.maximumf %70, %71 : vector<16x16x4xf32>
    %c0_131 = arith.constant 0 : index
    %c0_132 = arith.constant 0 : index
    %c0_133 = arith.constant 0 : index
    %c0_134 = arith.constant 0 : index
    %73 = vector.load %arg6[%c0_131, %c0_132, %c0_133, %c0_134] : memref<1x16x16x4xf32, #tpu.memory_space<vmem>>, vector<1x16x16x4xf32>
    %74 = vector.shape_cast %73 : vector<1x16x16x4xf32> to vector<16x16x4xf32>
    %75 = vector.shape_cast %72 : vector<16x16x4xf32> to vector<1x16x16x4xf32>
    tpu.vector_store %arg6[%c0_131, %c0_132, %c0_133, %c0_134], %75 {strides = array<i32>} : memref<1x16x16x4xf32, #tpu.memory_space<vmem>>, vector<1x16x16x4xf32>,
    return
  }
  func.func @transform_0(%arg0: i32) -> (i32, i32, i32, i32) {
    %c0_i32 = arith.constant 0 : i32
    %c0_i32_0 = arith.constant 0 : i32
    %c0_i32_1 = arith.constant 0 : i32
    %c0_i32_2 = arith.constant 0 : i32
    return %arg0, %c0_i32, %c0_i32_0, %c0_i32_1 : i32, i32, i32, i32
  }
  func.func @transform_1(%arg0: i32) -> (i32, i32) {
    %c0_i32 = arith.constant 0 : i32
    %c0_i32_0 = arith.constant 0 : i32
    %c0_i32_1 = arith.constant 0 : i32
    return %c0_i32, %c0_i32_0 : i32, i32
  }
  func.func @transform_2(%arg0: i32) -> (i32, i32) {
    %c0_i32 = arith.constant 0 : i32
    %c0_i32_0 = arith.constant 0 : i32
    %c0_i32_1 = arith.constant 0 : i32
    return %c0_i32, %c0_i32_0 : i32, i32
  }
  func.func @transform_3(%arg0: i32) -> (i32, i32) {
    %c0_i32 = arith.constant 0 : i32
    %c0_i32_0 = arith.constant 0 : i32
    %c0_i32_1 = arith.constant 0 : i32
    return %c0_i32, %c0_i32_0 : i32, i32
  }
  func.func @transform_4(%arg0: i32) -> (i32, i32) {
    %c0_i32 = arith.constant 0 : i32
    %c0_i32_0 = arith.constant 0 : i32
    %c0_i32_1 = arith.constant 0 : i32
    return %c0_i32, %c0_i32_0 : i32, i32
  }
  func.func @transform_5(%arg0: i32) -> (i32, i32, i32, i32) {
    %c0_i32 = arith.constant 0 : i32
    %c0_i32_0 = arith.constant 0 : i32
    %c0_i32_1 = arith.constant 0 : i32
    %c0_i32_2 = arith.constant 0 : i32
    return %arg0, %c0_i32, %c0_i32_0, %c0_i32_1 : i32, i32, i32, i32
  }
}

</mosaic_0001>

<bundles_post_ra>
// kernel: residual_block_forward_nhwc.1
= control target key start
LH: loop header
LB: loop body
LE: loop exit
PB: predicated region body
PF: predicated region fallthrough
CT: control target
= control target key end

     0   :  { %s8899_s18 = smov 0   ;;  %s11407_s0 = inlined_call_operand.vmem [shape: f32[2,16,16,4], index: 0, kind: input, shape index: {}]   ;;  %s11408_s1 = inlined_call_operand.vmem [shape: bf16[36,4], index: 1, kind: input, shape index: {}]   ;;  %s11409_s2 = inlined_call_operand.vmem [shape: bf16[36,4], index: 2, kind: input, shape index: {}]   ;;  %s11410_s3 = inlined_call_operand.vmem [shape: f32[1,4], index: 3, kind: input, shape index: {}]   ;;  %s11411_s4 = inlined_call_operand.vmem [shape: f32[1,4], index: 4, kind: input, shape index: {}]   ;;  %s11412_s5 = inlined_call_operand.vmem [shape: f32[2,16,16,4], index: 5, kind: output, shape index: {}]  }
   0x1 LB: > { %s8276_s19 = sadd.s32 4294967295, %s8858_s18   ;;  %p8280_p0 = scmp.ge.s32.totalorder %s8858_s18, 1  ;;  %s8858_s18 = sphi %s8899_s18, %s15_s18  }
   0x2   : > { %p187_p1 = scmp.lt.s32.totalorder %s8858_s18, 3 }
   0x4   : > { %p188_p2 = pnand %p8280_p0, %p187_p1 }
   0x5   : > { %p215_p3 = scmp.lt.s32.totalorder (!%p188_p2), %s8276_s19, 1  ;;  %s8861_s24 = smov (!%p188_p2), 4  }
   0x6   : > { %191 = sbr.rel (%p188_p2) target bundleno = 1694 (0x69e), region = 40  ;;  %s8862_s25 = smov (!%p188_p2), 8  }
   0x7   : > { %s8863_s26 = smov (!%p188_p2), 12   ;;  %s8864_s27 = smov (!%p188_p2), 16  }
   0x8   : > { %s8865_s28 = smov (!%p188_p2), 20   ;;  %s8866_s29 = smov (!%p188_p2), 24  }
   0x9   : > { %s8867_s7 = smov (!%p188_p2), 28   ;;  %s8868_s12 = smov (!%p188_p2), 32  }
   0xb   : > { %vm258_vm0 = vcmask 27648   ;;  %v8860_v0 = vmov 0   ;;  %vm261_vm1 = vcmask 24576   ;;  %s11418_s19 = smov (!%p215_p3, %s8276_s19), 1  ;;  %vm797_vm2 = vsmask.f32 3328 }
   0xc   : > { %259 = vst.msk [vmem:[#allocation2] sm:$0xf] %vm258_vm0, %v8860_v0  ;;  %260 = vst.msk [vmem:[#allocation2 + $0x4] sm:$0xf] %vm258_vm0, %v8860_v0  ;;  %s8551_s20 = sshll.u32 %s11418_s19, 8  ;;  %vm299_vm4 = vcmask 1040384  }
   0xd   : > { %264 = vst.msk [vmem:[#allocation2 + $0xcc] sm:$0xf] %vm258_vm0, %v8860_v0  ;;  %265 = vst.msk [vmem:[#allocation2 + $0xd0] sm:$0xf] %vm258_vm0, %v8860_v0  ;;  %s8921_s23 = scalar_lea.vmem %s11407_s0, %s8551_s20  ;;  %vm798_vm3 = vsmask.f32 7440  ;;  %s11227_s6 = scalar_lea.vmem %s11412_s5, %s8551_s20 }
   0xe   : > { %262 = vst.msk [vmem:[#allocation2 + $0x8] sm:$0x1] %vm261_vm1, %v8860_v0  ;;  %266 = vst.msk [vmem:[#allocation2 + $0xd4] sm:$0x1] %vm261_vm1, %v8860_v0  ;;  %v226_v1 = vld [vmem:[%s8921_s23] sm:$0xff]  ;;  %v227_v2 = vld [vmem:[%s8921_s23 + $0x8] sm:$0xff] }
   0xf   : > { %v300_v5 = vrot.slane %v226_v1, 7  ;;  %v301_v6 = vrot.slane %v227_v2, 7  ;;  %v228_v7 = vld [vmem:[%s8921_s23 + $0x10] sm:$0xff]  ;;  %v229_v17 = vld [vmem:[%s8921_s23 + $0x18] sm:$0xff]  ;;  %v230_v18 = vld [vmem:[%s8921_s23 + $0x20] sm:$0xff]  ;;  %vm1409_vm6 = vcmask 1042432  }
  0x10   : > { %v231_v19 = vld [vmem:[%s8921_s23 + $0x28] sm:$0xff]  ;;  %v232_v24 = vld [vmem:[%s8921_s23 + $0x30] sm:$0xff]  ;;  %v233_v25 = vld [vmem:[%s8921_s23 + $0x38] sm:$0xff]  ;;  %v303_v32 = vrot.slane %v228_v7, 7  ;;  %v304_v33 = vrot.slane %v229_v17, 7  ;;  %v306_v35 = vrot.slane %v230_v18, 7 }
  0x11   : > { %v302_v13 = vsel %vm299_vm4, %v300_v5, %v301_v6  ;;  %v396_v14 = vsel %vm299_vm4, 0.0, %v300_v5  ;;  %v412_v16 = vsel %vm299_vm4, %v301_v6, 0.0  ;;  %vm8936_vm5 = vmor %vm797_vm2, %vm798_vm3  ;;  %v307_v36 = vrot.slane %v231_v19, 7  ;;  %v234_v51 = vld [vmem:[%s8921_s23 + $0x40] sm:$0xff]  ;;  %v235_v52 = vld [vmem:[%s8921_s23 + $0x48] sm:$0xff] }
  0x12   : > { %v8553_v26 = vpack.c.bf16 %v396_v14, %v396_v14  ;;  %v8554_v27 = vpack.c.bf16 %v302_v13, %v302_v13  ;;  %v8555_v29 = vpack.c.bf16 %v412_v16, %v412_v16  ;;  %v309_v37 = vrot.slane %v232_v24, 7  ;;  %v8973_v16 = vld [vmem:[%s8921_s23 + $0x50] sm:$0xff] }
  0x13   : > { %v749_v3 = vld [vmem:[#allocation2] sm:$0xf]  ;;  %v750_v4 = vld [vmem:[#allocation2 + $0x4] sm:$0xf]  ;;  %v310_v38 = vrot.slane %v233_v25, 7  ;;  %v305_v41 = vsel %vm299_vm4, %v303_v32, %v304_v33  ;;  %v397_v42 = vsel %vm299_vm4, 0.0, %v303_v32  ;;  %v308_v46 = vsel %vm299_vm4, %v306_v35, %v307_v36 }
  0x14   : > { %v801_v8 = vshrl.u32 %v749_v3, 16  ;;  %v804_v9 = vshll.u32 %v749_v3, 16  ;;  %v810_v10 = vshll.u32 %v750_v4, 16  ;;  %v814_v11 = vshrl.u32 %v750_v4, 16  ;;  %637 = vst.msk [vmem:[#allocation2 + $0xc] sm:$0xf] %vm258_vm0, %v8553_v26 }
  0x15   : > { %v751_v12 = vld [vmem:[#allocation2 + $0x8] sm:$0x1]  ;;  %638 = vst.msk [vmem:[#allocation2 + $0x10] sm:$0xf] %vm258_vm0, %v8554_v27  ;;  %v8556_v43 = vpack.c.bf16 %v397_v42, %v397_v42  ;;  %v8557_v44 = vpack.c.bf16 %v305_v41, %v305_v41  ;;  %v413_v45 = vsel %vm299_vm4, %v304_v33, 0.0  ;;  %v398_v50 = vsel %vm299_vm4, 0.0, %v306_v35 }
  0x16   : > { %v820_v15 = vshll.u32 %v751_v12, 16  ;;  %v803_v20 = vrot.slane %v801_v8, 4  ;;  %v806_v21 = vrot.slane %v804_v9, 5  ;;  %v812_v22 = vrot.slane %v810_v10, 5  ;;  %639 = vst.msk [vmem:[#allocation2 + $0x14] sm:$0x1] %vm261_vm1, %v8555_v29 }
  0x17   : > { %v816_v23 = vrot.slane %v814_v11, 4  ;;  %v8558_v49 = vpack.c.bf16 %v413_v45, %v413_v45  ;;  %640 = vst.msk [vmem:[#allocation2 + $0x18] sm:$0xf] %vm258_vm0, %v8556_v43  ;;  %641 = vst.msk [vmem:[#allocation2 + $0x1c] sm:$0xf] %vm258_vm0, %v8557_v44  ;;  %v8559_v53 = vpack.c.bf16 %v398_v50, %v398_v50  ;;  %v8560_v54 = vpack.c.bf16 %v308_v46, %v308_v46 }
  0x18   : > { %v822_v28 = vrot.slane %v820_v15, 5  ;;  %v807_v30 = vor.u32 %v806_v21, %v803_v20  ;;  %v414_v55 = vsel %vm299_vm4, %v307_v36, 0.0  ;;  %v311_v56 = vsel %vm299_vm4, %v309_v37, %v310_v38 }
  0x19   : > { %v817_v31 = vor.u32 %v816_v23, %v812_v22  ;;  %642 = vst.msk [vmem:[#allocation2 + $0x20] sm:$0x1] %vm261_vm1, %v8558_v49  ;;  %v8561_v57 = vpack.c.bf16 %v414_v55, %v414_v55  ;;  %v399_v58 = vsel %vm299_vm4, 0.0, %v309_v37  ;;  %v8563_v59 = vpack.c.bf16 %v311_v56, %v311_v56 }
  0x1a   : > { %v808_v39 = vrot.slane %v807_v30, 4  ;;  %v415_v60 = vsel %vm299_vm4, %v310_v38, 0.0  ;;  %643 = vst.msk [vmem:[#allocation2 + $0x24] sm:$0xf] %vm258_vm0, %v8559_v53  ;;  %644 = vst.msk [vmem:[#allocation2 + $0x28] sm:$0xf] %vm258_vm0, %v8560_v54  ;;  %v8562_v61 = vpack.c.bf16 %v399_v58, %v399_v58 }
  0x1b   : > { %v818_v40 = vrot.slane %v817_v31, 4  ;;  %v8564_v62 = vpack.c.bf16 %v415_v60, %v415_v60  ;;  %v312_v63 = vrot.slane %v234_v51, 7  ;;  %v313_v0 = vrot.slane %v235_v52, 7  ;;  %v752_v1 = vld [vmem:[#allocation2 + $0xc] sm:$0xf] }
  0x1c   : > { %v813_v47 = vsel %vm8936_vm5, %v808_v39, %v812_v22  ;;  %v753_v2 = vld [vmem:[#allocation2 + $0x10] sm:$0xf]  ;;  %645 = vst.msk [vmem:[#allocation2 + $0x2c] sm:$0x1] %vm261_vm1, %v8561_v57  ;;  %v825_v4 = vshrl.u32 %v752_v1, 16  ;;  %v828_v5 = vshll.u32 %v752_v1, 16 }
  0x1d   : > { %v823_v48 = vsel %vm8936_vm5, %v818_v40, %v822_v28  ;;  %1184 = vrot.lane.b32.xlu0 %v813_v47, %s8861_s24  ;;  %v754_v3 = vld [vmem:[#allocation2 + $0x14] sm:$0x1]  ;;  %647 = vst.msk [vmem:[#allocation2 + $0x34] sm:$0xf] %vm258_vm0, %v8563_v59  ;;  %v834_v6 = vshll.u32 %v753_v2, 16  ;;  %v838_v7 = vshrl.u32 %v753_v2, 16  ;;  %v314_v9 = vsel %vm299_vm4, %v312_v63, %v313_v0 }
  0x1e   : > { %646 = vst.msk [vmem:[#allocation2 + $0x30] sm:$0xf] %vm258_vm0, %v8562_v61  ;;  %v844_v8 = vshll.u32 %v754_v3, 16  ;;  %v400_v10 = vsel %vm299_vm4, 0.0, %v312_v63  ;;  %v416_v11 = vsel %vm299_vm4, %v313_v0, 0.0  ;;  %v827_v12 = vrot.slane %v825_v4, 4 }
  0x1f   : > { %648 = vst.msk [vmem:[#allocation2 + $0x38] sm:$0x1] %vm261_vm1, %v8564_v62  ;;  %v830_v13 = vrot.slane %v828_v5, 5  ;;  %v836_v14 = vrot.slane %v834_v6, 5  ;;  %v840_v15 = vrot.slane %v838_v7, 4  ;;  %v8565_v20 = vpack.c.bf16 %v400_v10, %v400_v10 }
  0x20   : > { %v846_v17 = vrot.slane %v844_v8, 5  ;;  %v755_v18 = vld [vmem:[#allocation2 + $0x18] sm:$0xf]  ;;  %v756_v19 = vld [vmem:[#allocation2 + $0x1c] sm:$0xf]  ;;  %v8566_v21 = vpack.c.bf16 %v314_v9, %v314_v9  ;;  %v8567_v22 = vpack.c.bf16 %v416_v11, %v416_v11  ;;  %v315_v32 = vrot.slane %v8973_v16, 7 }
  0x21   : > { %1186 = vrot.lane.b32.xlu0 %v823_v48, %s8861_s24  ;;  %v831_v23 = vor.u32 %v830_v13, %v827_v12  ;;  %v841_v24 = vor.u32 %v840_v15, %v836_v14  ;;  %v849_v25 = vshrl.u32 %v755_v18, 16  ;;  %v852_v26 = vshll.u32 %v755_v18, 16  ;;  %v757_v27 = vld [vmem:[#allocation2 + $0x20] sm:$0x1]  ;;  %v758_v31 = vld [vmem:[#allocation2 + $0x24] sm:$0xf] }
  0x22   : > { %v858_v28 = vshll.u32 %v756_v19, 16  ;;  %v862_v29 = vshrl.u32 %v756_v19, 16  ;;  %v868_v30 = vshll.u32 %v757_v27, 16  ;;  %649 = vst.msk [vmem:[#allocation2 + $0x3c] sm:$0xf] %vm258_vm0, %v8565_v20  ;;  %v873_v42 = vshrl.u32 %v758_v31, 16 }
  0x23   : > { %650 = vst.msk [vmem:[#allocation2 + $0x40] sm:$0xf] %vm258_vm0, %v8566_v21  ;;  %v832_v33 = vrot.slane %v831_v23, 4  ;;  %v842_v35 = vrot.slane %v841_v24, 4  ;;  %v851_v36 = vrot.slane %v849_v25, 4  ;;  %v854_v37 = vrot.slane %v852_v26, 5 }
  0x24   : > { %651 = vst.msk [vmem:[#allocation2 + $0x44] sm:$0x1] %vm261_vm1, %v8567_v22  ;;  %v759_v38 = vld [vmem:[#allocation2 + $0x28] sm:$0xf]  ;;  %v860_v39 = vrot.slane %v858_v28, 5  ;;  %v864_v40 = vrot.slane %v862_v29, 4 }
  0x25   : > { %v870_v41 = vrot.slane %v868_v30, 5  ;;  %v760_v43 = vld [vmem:[#allocation2 + $0x2c] sm:$0x1]  ;;  %v837_v44 = vsel %vm8936_vm5, %v832_v33, %v836_v14  ;;  %v847_v45 = vsel %vm8936_vm5, %v842_v35, %v846_v17  ;;  %v855_v46 = vor.u32 %v854_v37, %v851_v36  ;;  %v761_v48 = vld [vmem:[#allocation2 + $0x30] sm:$0xf]  ;;  %v237_v19 = vld [vmem:[%s8921_s23 + $0x58] sm:$0xff] }
  0x26   : > { %v876_v47 = vshll.u32 %v758_v31, 16  ;;  %1188 = vrot.lane.b32.xlu1 %v837_v44, %s8861_s24  ;;  %v865_v49 = vor.u32 %v864_v40, %v860_v39  ;;  %v875_v50 = vrot.slane %v873_v42, 4  ;;  %v882_v51 = vshll.u32 %v759_v38, 16  ;;  %v762_v56 = vld [vmem:[#allocation2 + $0x34] sm:$0xf] }
  0x27   : > { %v886_v52 = vshrl.u32 %v759_v38, 16  ;;  %v856_v53 = vrot.slane %v855_v46, 4  ;;  %v892_v55 = vshll.u32 %v760_v43, 16  ;;  %v897_v57 = vshrl.u32 %v761_v48, 16  ;;  %v763_v62 = vld [vmem:[#allocation2 + $0x38] sm:$0x1] }
  0x28   : > { %v878_v54 = vrot.slane %v876_v47, 5  ;;  %v866_v58 = vrot.slane %v865_v49, 4  ;;  %v884_v59 = vrot.slane %v882_v51, 5  ;;  %v900_v61 = vshll.u32 %v761_v48, 16  ;;  %v238_v38 = vld [vmem:[%s8921_s23 + $0x60] sm:$0xff]  ;;  %v240_v40 = vld [vmem:[%s8921_s23 + $0x70] sm:$0xff] }
  0x29   : > { %v888_v60 = vrot.slane %v886_v52, 4  ;;  %v861_v63 = vsel %vm8936_vm5, %v856_v53, %v860_v39  ;;  %v894_v1 = vrot.slane %v892_v55, 5  ;;  %v899_v2 = vrot.slane %v897_v57, 4  ;;  %v764_v3 = vld [vmem:[#allocation2 + $0x3c] sm:$0xf]  ;;  %v239_v39 = vld [vmem:[%s8921_s23 + $0x68] sm:$0xff] }
  0x2a   : > { %v879_v0 = vor.u32 %v878_v54, %v875_v50  ;;  %1190 = vrot.lane.b32.xlu1 %v847_v45, %s8861_s24  ;;  %1192 = vrot.lane.b32.xlu0 %v861_v63, %s8861_s24  ;;  %v871_v4 = vsel %vm8936_vm5, %v866_v58, %v870_v41  ;;  %v902_v6 = vrot.slane %v900_v61, 5  ;;  %v906_v7 = vshll.u32 %v762_v56, 16  ;;  %v765_v11 = vld [vmem:[#allocation2 + $0x40] sm:$0xf]  ;;  %v241_v45 = vld [vmem:[%s8921_s23 + $0x78] sm:$0xff]  ;;  %v9013_v47 = vld [vmem:[%s8921_s23 + $0x88] sm:$0xff] }
  0x2b   : > { %v889_v5 = vor.u32 %v888_v60, %v884_v59  ;;  %v910_v9 = vshrl.u32 %v762_v56, 16  ;;  %v916_v10 = vshll.u32 %v763_v62, 16  ;;  %v921_v12 = vshrl.u32 %v764_v3, 16  ;;  %v766_v18 = vld [vmem:[#allocation2 + $0x44] sm:$0x1] }
  0x2c   : > { %v880_v8 = vrot.slane %v879_v0, 4  ;;  %v903_v14 = vor.u32 %v902_v6, %v899_v2  ;;  %v908_v15 = vrot.slane %v906_v7, 5  ;;  %v924_v17 = vshll.u32 %v764_v3, 16  ;;  %v242_v46 = vld [vmem:[%s8921_s23 + $0x80] sm:$0xff]  ;;  %v687_v53 = vld [vmem:[#allocation2 + $0xc] sm:$0xf] }
  0x2d   : > { %v890_v13 = vrot.slane %v889_v5, 4  ;;  %v912_v21 = vrot.slane %v910_v9, 4  ;;  %v918_v22 = vrot.slane %v916_v10, 5  ;;  %v923_v23 = vrot.slane %v921_v12, 4  ;;  %v685_v52 = vld [vmem:[#allocation2] sm:$0xf] }
  0x2e   : > { %v885_v20 = vsel %vm8936_vm5, %v880_v8, %v884_v59  ;;  %1194 = vrot.lane.b32.xlu1 %v871_v4, %s8861_s24  ;;  %v904_v25 = vrot.slane %v903_v14, 4  ;;  %v926_v26 = vrot.slane %v924_v17, 5  ;;  %v930_v27 = vshll.u32 %v765_v11, 16  ;;  %717 = vst.msk [vmem:[#allocation3] sm:$0xf] %vm258_vm0, %v685_v52  ;;  %v244_v14 = vld [vmem:[%s8921_s23 + $0x90] sm:$0xff] }
  0x2f   : > { %1196 = vrot.lane.b32.xlu0 %v885_v20, %s8861_s24  ;;  %v895_v24 = vsel %vm8936_vm5, %v890_v13, %v894_v1  ;;  %v913_v28 = vor.u32 %v912_v21, %v908_v15  ;;  %v934_v29 = vshrl.u32 %v765_v11, 16  ;;  %v940_v30 = vshll.u32 %v766_v18, 16  ;;  %719 = vst.msk [vmem:[#allocation3 + $0x8] sm:$0xf] %vm258_vm0, %v687_v53  ;;  %v686_v56 = vld [vmem:[#allocation2 + $0x4] sm:$0xf] }
  0x30   : > { %v316_v31 = vrot.slane %v237_v19, 7  ;;  %v909_v33 = vsel %vm8936_vm5, %v904_v25, %v908_v15  ;;  %v927_v35 = vor.u32 %v926_v26, %v923_v23  ;;  %v932_v36 = vrot.slane %v930_v27, 5  ;;  %v688_v57 = vld [vmem:[#allocation2 + $0x10] sm:$0xf]  ;;  %718 = vst.msk [vmem:[#allocation3 + $0x4] sm:$0xf] %vm258_vm0, %v686_v56 }
  0x31   : > { %v401_v37 = vsel %vm299_vm4, 0.0, %v315_v32  ;;  %v914_v41 = vrot.slane %v913_v28, 4  ;;  %v936_v42 = vrot.slane %v934_v29, 4  ;;  %v9005_v43 = vrot.slane %v940_v30, 5  ;;  %720 = vst.msk [vmem:[#allocation3 + $0xc] sm:$0xf] %vm258_vm0, %v688_v57 }
  0x32   : > { %v317_v44 = vsel %vm299_vm4, %v315_v32, %v316_v31  ;;  %1198 = vrot.lane.b32.xlu1 %v895_v24, %s8861_s24  ;;  %v928_v48 = vrot.slane %v927_v35, 4  ;;  %v8568_v49 = vpack.c.bf16 %v401_v37, %v401_v37  ;;  %v417_v51 = vsel %vm299_vm4, %v316_v31, 0.0  ;;  %v689_v62 = vld [vmem:[#allocation2 + $0x18] sm:$0xf]  ;;  %v690_v3 = vld [vmem:[#allocation2 + $0x1c] sm:$0xf] }
  0x33   : > { %1200 = vrot.lane.b32.xlu0 %v909_v33, %s8861_s24  ;;  %v8569_v50 = vpack.c.bf16 %v317_v44, %v317_v44  ;;  %v919_v16 = vsel %vm8936_vm5, %v914_v41, %v918_v22  ;;  %v937_v54 = vor.u32 %v936_v42, %v932_v36  ;;  %v8570_v32 = vpack.c.bf16 %v417_v51, %v417_v51  ;;  %v691_v8 = vld [vmem:[#allocation2 + $0x24] sm:$0xf]  ;;  %v692_v9 = vld [vmem:[#allocation2 + $0x28] sm:$0xf]  ;;  %v245_v15 = vld [vmem:[%s8921_s23 + $0x98] sm:$0xff] }
  0x34   : > { %v318_v55 = vrot.slane %v238_v38, 7  ;;  %v933_v58 = vsel %vm8936_vm5, %v928_v48, %v932_v36  ;;  %652 = vst.msk [vmem:[#allocation2 + $0x48] sm:$0xf] %vm258_vm0, %v8568_v49  ;;  %v319_v59 = vrot.slane %v239_v39, 7  ;;  %v321_v60 = vrot.slane %v240_v40, 7  ;;  %v9050_v21 = vld [vmem:[%s8921_s23 + $0xa0] sm:$0xff] }
  0x35   : > { %653 = vst.msk [vmem:[#allocation2 + $0x4c] sm:$0xf] %vm258_vm0, %v8569_v50  ;;  %v322_v61 = vrot.slane %v241_v45, 7  ;;  %v938_v63 = vrot.slane %v937_v54, 4  ;;  %v324_v1 = vrot.slane %v242_v46, 7  ;;  %v325_v2 = vrot.slane %v9013_v47, 7 }
  0x36   : > { %654 = vst.msk [vmem:[#allocation2 + $0x50] sm:$0x1] %vm261_vm1, %v8570_v32  ;;  %v402_v0 = vsel %vm299_vm4, 0.0, %v318_v55  ;;  %1202 = vrot.lane.b32.xlu1 %v919_v16, %s8861_s24  ;;  %v320_v4 = vsel %vm299_vm4, %v318_v55, %v319_v59  ;;  %v418_v6 = vsel %vm299_vm4, %v319_v59, 0.0  ;;  %v403_v13 = vsel %vm299_vm4, 0.0, %v321_v60  ;;  %v9053_v22 = vld [vmem:[%s8921_s23 + $0xa8] sm:$0xff] }
  0x37   : > { %721 = vst.msk [vmem:[#allocation3 + $0x10] sm:$0xf] %vm258_vm0, %v689_v62  ;;  %1204 = vrot.lane.b32.xlu0 %v933_v58, %s8861_s24  ;;  %v8571_v5 = vpack.c.bf16 %v402_v0, %v402_v0  ;;  %v323_v7 = vsel %vm299_vm4, %v321_v60, %v322_v61  ;;  %722 = vst.msk [vmem:[#allocation3 + $0x14] sm:$0xf] %vm258_vm0, %v690_v3  ;;  %v943_v10 = vsel %vm8936_vm5, %v938_v63, %v9005_v43  ;;  %v693_v27 = vld [vmem:[#allocation2 + $0x30] sm:$0xf] }
  0x38   : > { %v8572_v11 = vpack.c.bf16 %v320_v4, %v320_v4  ;;  %v8573_v12 = vpack.c.bf16 %v418_v6, %v418_v6  ;;  %723 = vst.msk [vmem:[#allocation3 + $0x18] sm:$0xf] %vm258_vm0, %v691_v8  ;;  %724 = vst.msk [vmem:[#allocation3 + $0x1c] sm:$0xf] %vm258_vm0, %v692_v9  ;;  %v8574_v17 = vpack.c.bf16 %v403_v13, %v403_v13  ;;  %v419_v19 = vsel %vm299_vm4, %v322_v61, 0.0 }
  0x39   : > { %655 = vst.msk [vmem:[#allocation2 + $0x54] sm:$0xf] %vm258_vm0, %v8571_v5  ;;  %v8575_v18 = vpack.c.bf16 %v323_v7, %v323_v7  ;;  %v326_v20 = vsel %vm299_vm4, %v324_v1, %v325_v2  ;;  %v8576_v23 = vpack.c.bf16 %v419_v19, %v419_v19  ;;  %v404_v24 = vsel %vm299_vm4, 0.0, %v324_v1  ;;  %v694_v28 = vld [vmem:[#allocation2 + $0x34] sm:$0xf] }
  0x3a   : > { %656 = vst.msk [vmem:[#allocation2 + $0x58] sm:$0xf] %vm258_vm0, %v8572_v11  ;;  %v8578_v25 = vpack.c.bf16 %v326_v20, %v326_v20  ;;  %v420_v26 = vsel %vm299_vm4, %v325_v2, 0.0  ;;  %1206 = vrot.lane.b32.xlu1 %v943_v10, %s8861_s24  ;;  %658 = vst.msk [vmem:[#allocation2 + $0x60] sm:$0xf] %vm258_vm0, %v8574_v17  ;;  %v8577_v29 = vpack.c.bf16 %v404_v24, %v404_v24  ;;  %v327_v31 = vrot.slane %v244_v14, 7 }
  0x3b   : > { %657 = vst.msk [vmem:[#allocation2 + $0x5c] sm:$0x1] %vm261_vm1, %v8573_v12  ;;  %v8579_v30 = vpack.c.bf16 %v420_v26, %v420_v26  ;;  %v328_v33 = vrot.slane %v245_v15, 7  ;;  %v767_v35 = vld [vmem:[#allocation2 + $0x48] sm:$0xf]  ;;  %v330_v37 = vrot.slane %v9050_v21, 7 }
  0x3c   : > { %659 = vst.msk [vmem:[#allocation2 + $0x64] sm:$0xf] %vm258_vm0, %v8575_v18  ;;  %725 = vst.msk [vmem:[#allocation3 + $0x20] sm:$0xf] %vm258_vm0, %v693_v27  ;;  %v768_v36 = vld [vmem:[#allocation2 + $0x4c] sm:$0xf] }
  0x3d   : > { %726 = vst.msk [vmem:[#allocation3 + $0x24] sm:$0xf] %vm258_vm0, %v694_v28  ;;  %662 = vst.msk [vmem:[#allocation2 + $0x70] sm:$0xf] %vm258_vm0, %v8578_v25  ;;  %v331_v38 = vrot.slane %v9053_v22, 7  ;;  %v945_v39 = vshrl.u32 %v767_v35, 16  ;;  %v329_v45 = vsel %vm299_vm4, %v327_v31, %v328_v33 }
  0x3e   : > { %660 = vst.msk [vmem:[#allocation2 + $0x68] sm:$0x1] %vm261_vm1, %v8576_v23  ;;  %v948_v40 = vshll.u32 %v767_v35, 16  ;;  %v954_v41 = vshll.u32 %v768_v36, 16  ;;  %v769_v42 = vld [vmem:[#allocation2 + $0x50] sm:$0x1]  ;;  %v8581_v54 = vpack.c.bf16 %v329_v45, %v329_v45 }
  0x3f   : > { %v958_v43 = vshrl.u32 %v768_v36, 16  ;;  %661 = vst.msk [vmem:[#allocation2 + $0x6c] sm:$0xf] %vm258_vm0, %v8577_v29  ;;  %v964_v44 = vshll.u32 %v769_v42, 16  ;;  %v405_v46 = vsel %vm299_vm4, 0.0, %v327_v31  ;;  %v421_v47 = vsel %vm299_vm4, %v328_v33, 0.0 }
  0x40   : > { %663 = vst.msk [vmem:[#allocation2 + $0x74] sm:$0x1] %vm261_vm1, %v8579_v30  ;;  %v947_v48 = vrot.slane %v945_v39, 4  ;;  %v950_v49 = vrot.slane %v948_v40, 5  ;;  %v956_v50 = vrot.slane %v954_v41, 5  ;;  %v8580_v16 = vpack.c.bf16 %v405_v46, %v405_v46 }
  0x41   : > { %v960_v51 = vrot.slane %v958_v43, 4  ;;  %v966_v52 = vrot.slane %v964_v44, 5  ;;  %v770_v53 = vld [vmem:[#allocation2 + $0x54] sm:$0xf]  ;;  %v8582_v32 = vpack.c.bf16 %v421_v47, %v421_v47  ;;  %v771_v57 = vld [vmem:[#allocation2 + $0x58] sm:$0xf]  ;;  %v9081_v1 = vsel %vm299_vm4, %v330_v37, %v331_v38 }
  0x42   : > { %v951_v55 = vor.u32 %v950_v49, %v947_v48  ;;  %v969_v58 = vshrl.u32 %v770_v53, 16  ;;  %v972_v59 = vshll.u32 %v770_v53, 16  ;;  %v772_v60 = vld [vmem:[#allocation2 + $0x5c] sm:$0x1]  ;;  %v978_v61 = vshll.u32 %v771_v57, 16 }
  0x43   : > { %v961_v56 = vor.u32 %v960_v51, %v956_v50  ;;  %v982_v62 = vshrl.u32 %v771_v57, 16  ;;  %v988_v63 = vshll.u32 %v772_v60, 16  ;;  %v773_v0 = vld [vmem:[#allocation2 + $0x60] sm:$0xf]  ;;  %664 = vst.msk [vmem:[#allocation2 + $0x78] sm:$0xf] %vm258_vm0, %v8580_v16  ;;  %v8584_v21 = vpack.c.bf16 %v9081_v1, %v9081_v1 }
  0x44   : > { %665 = vst.msk [vmem:[#allocation2 + $0x7c] sm:$0xf] %vm258_vm0, %v8581_v54  ;;  %v952_v2 = vrot.slane %v951_v55, 4  ;;  %v971_v4 = vrot.slane %v969_v58, 4  ;;  %v974_v5 = vrot.slane %v972_v59, 5  ;;  %v980_v7 = vrot.slane %v978_v61, 5 }
  0x45   : > { %666 = vst.msk [vmem:[#allocation2 + $0x80] sm:$0x1] %vm261_vm1, %v8582_v32  ;;  %v962_v3 = vrot.slane %v961_v56, 4  ;;  %v774_v6 = vld [vmem:[#allocation2 + $0x64] sm:$0xf]  ;;  %v984_v8 = vrot.slane %v982_v62, 4 }
  0x46   : > { %v990_v9 = vrot.slane %v988_v63, 5  ;;  %v993_v10 = vshrl.u32 %v773_v0, 16  ;;  %v775_v11 = vld [vmem:[#allocation2 + $0x68] sm:$0x1]  ;;  %v957_v12 = vsel %vm8936_vm5, %v952_v2, %v956_v50  ;;  %v975_v14 = vor.u32 %v974_v5, %v971_v4  ;;  %v776_v17 = vld [vmem:[#allocation2 + $0x6c] sm:$0xf] }
  0x47   : > { %v967_v13 = vsel %vm8936_vm5, %v962_v3, %v966_v52  ;;  %v996_v15 = vshll.u32 %v773_v0, 16  ;;  %1208 = vrot.lane.b32.xlu0 %v957_v12, %s8861_s24  ;;  %v985_v18 = vor.u32 %v984_v8, %v980_v7  ;;  %v1002_v20 = vshll.u32 %v774_v6, 16  ;;  %v777_v27 = vld [vmem:[#allocation2 + $0x70] sm:$0xf]  ;;  %v778_v35 = vld [vmem:[#allocation2 + $0x74] sm:$0x1] }
  0x48   : > { %1210 = vrot.lane.b32.xlu1 %v967_v13, %s8861_s24  ;;  %v995_v19 = vrot.slane %v993_v10, 4  ;;  %v1006_v23 = vshrl.u32 %v774_v6, 16  ;;  %v976_v24 = vrot.slane %v975_v14, 4  ;;  %v1012_v26 = vshll.u32 %v775_v11, 16  ;;  %v248_v4 = vld [vmem:[%s8921_s23 + $0xb0] sm:$0xff]  ;;  %v249_v5 = vld [vmem:[%s8921_s23 + $0xb8] sm:$0xff] }
  0x49   : > { %v998_v25 = vrot.slane %v996_v15, 5  ;;  %v1017_v28 = vshrl.u32 %v776_v17, 16  ;;  %v986_v29 = vrot.slane %v985_v18, 4  ;;  %v1004_v30 = vrot.slane %v1002_v20, 5  ;;  %v250_v10 = vld [vmem:[%s8921_s23 + $0xc0] sm:$0xff]  ;;  %v251_v18 = vld [vmem:[%s8921_s23 + $0xc8] sm:$0xff] }
  0x4a   : > { %v1008_v31 = vrot.slane %v1006_v23, 4  ;;  %v1020_v33 = vshll.u32 %v776_v17, 16  ;;  %v981_v36 = vsel %vm8936_vm5, %v976_v24, %v980_v7  ;;  %v1014_v40 = vrot.slane %v1012_v26, 5  ;;  %v779_v42 = vld [vmem:[#allocation2 + $0x78] sm:$0xf]  ;;  %v252_v24 = vld [vmem:[%s8921_s23 + $0xd0] sm:$0xff] }
  0x4b   : > { %v999_v39 = vor.u32 %v998_v25, %v995_v19  ;;  %v1019_v41 = vrot.slane %v1017_v28, 4  ;;  %1212 = vrot.lane.b32.xlu0 %v981_v36, %s8861_s24  ;;  %v991_v43 = vsel %vm8936_vm5, %v986_v29, %v990_v9  ;;  %v1026_v46 = vshll.u32 %v777_v27, 16  ;;  %v780_v50 = vld [vmem:[#allocation2 + $0x7c] sm:$0xf]  ;;  %668 = vst.msk [vmem:[#allocation2 + $0x88] sm:$0xf] %vm258_vm0, %v8584_v21 }
  0x4c   : > { %v1009_v44 = vor.u32 %v1008_v31, %v1004_v30  ;;  %v1022_v45 = vrot.slane %v1020_v33, 5  ;;  %1214 = vrot.lane.b32.xlu1 %v991_v43, %s8861_s24  ;;  %v1030_v48 = vshrl.u32 %v777_v27, 16  ;;  %v1036_v49 = vshll.u32 %v778_v35, 16  ;;  %v781_v32 = vld [vmem:[#allocation2 + $0x80] sm:$0x1]  ;;  %v253_v25 = vld [vmem:[%s8921_s23 + $0xd8] sm:$0xff] }
  0x4d   : > { %v1000_v47 = vrot.slane %v999_v39, 4  ;;  %v1041_v51 = vshrl.u32 %v779_v42, 16  ;;  %v1028_v16 = vrot.slane %v1026_v46, 5  ;;  %v1044_v54 = vshll.u32 %v779_v42, 16  ;;  %v695_v26 = vld [vmem:[#allocation2 + $0x3c] sm:$0xf] }
  0x4e   : > { %v1010_v52 = vrot.slane %v1009_v44, 4  ;;  %v1023_v53 = vor.u32 %v1022_v45, %v1019_v41  ;;  %v1032_v56 = vrot.slane %v1030_v48, 4  ;;  %v1038_v57 = vrot.slane %v1036_v49, 5  ;;  %v254_v29 = vld [vmem:[%s8921_s23 + $0xe0] sm:$0xff]  ;;  %727 = vst.msk [vmem:[#allocation3 + $0x28] sm:$0xf] %vm258_vm0, %v695_v26 }
  0x4f   : > { %v1005_v55 = vsel %vm8936_vm5, %v1000_v47, %v1004_v30  ;;  %v1043_v58 = vrot.slane %v1041_v51, 4  ;;  %v1046_v61 = vrot.slane %v1044_v54, 5  ;;  %v1050_v62 = vshll.u32 %v780_v50, 16  ;;  %v9130_v30 = vld [vmem:[%s8921_s23 + $0xe8] sm:$0xff]  ;;  %v696_v31 = vld [vmem:[#allocation2 + $0x40] sm:$0xf] }
  0x50   : > { %1216 = vrot.lane.b32.xlu0 %v1005_v55, %s8861_s24  ;;  %v1015_v59 = vsel %vm8936_vm5, %v1010_v52, %v1014_v40  ;;  %v1024_v60 = vrot.slane %v1023_v53, 4  ;;  %v1033_v63 = vor.u32 %v1032_v56, %v1028_v16  ;;  %v1054_v0 = vshrl.u32 %v780_v50, 16  ;;  %728 = vst.msk [vmem:[#allocation3 + $0x2c] sm:$0xf] %vm258_vm0, %v696_v31  ;;  %v697_v40 = vld [vmem:[#allocation2 + $0x48] sm:$0xf] }
  0x51   : > { %1218 = vrot.lane.b32.xlu1 %v1015_v59, %s8861_s24  ;;  %v1060_v2 = vshll.u32 %v781_v32, 16  ;;  %v406_v3 = vsel %vm299_vm4, 0.0, %v330_v37  ;;  %v1047_v7 = vor.u32 %v1046_v61, %v1043_v58  ;;  %v1052_v8 = vrot.slane %v1050_v62, 5  ;;  %729 = vst.msk [vmem:[#allocation3 + $0x30] sm:$0xf] %vm258_vm0, %v697_v40 }
  0x52   : > { %v1029_v6 = vsel %vm8936_vm5, %v1024_v60, %v1028_v16  ;;  %v8583_v9 = vpack.c.bf16 %v406_v3, %v406_v3  ;;  %v1034_v11 = vrot.slane %v1033_v63, 4  ;;  %v1056_v12 = vrot.slane %v1054_v0, 4  ;;  %v698_v45 = vld [vmem:[#allocation2 + $0x4c] sm:$0xf]  ;;  %v699_v16 = vld [vmem:[#allocation2 + $0x54] sm:$0xf] }
  0x53   : > { %v1062_v13 = vrot.slane %v1060_v2, 5  ;;  %v1048_v37 = vrot.slane %v1047_v7, 4  ;;  %v422_v14 = vsel %vm299_vm4, %v331_v38, 0.0  ;;  %v333_v15 = vrot.slane %v248_v4, 7  ;;  %730 = vst.msk [vmem:[#allocation3 + $0x34] sm:$0xf] %vm258_vm0, %v698_v45 }
  0x54   : > { %1220 = vrot.lane.b32.xlu0 %v1029_v6, %s8861_s24  ;;  %667 = vst.msk [vmem:[#allocation2 + $0x84] sm:$0xf] %vm258_vm0, %v8583_v9  ;;  %v334_v17 = vrot.slane %v249_v5, 7  ;;  %v1039_v19 = vsel %vm8936_vm5, %v1034_v11, %v1038_v57  ;;  %v1057_v20 = vor.u32 %v1056_v12, %v1052_v8  ;;  %v8585_v1 = vpack.c.bf16 %v422_v14, %v422_v14  ;;  %v700_v54 = vld [vmem:[#allocation2 + $0x58] sm:$0xf] }
  0x55   : > { %v336_v23 = vrot.slane %v250_v10, 7  ;;  %1222 = vrot.lane.b32.xlu1 %v1039_v19, %s8861_s24  ;;  %v1053_v22 = vsel %vm8936_vm5, %v1048_v37, %v1052_v8  ;;  %v407_v27 = vsel %vm299_vm4, 0.0, %v333_v15  ;;  %v337_v41 = vrot.slane %v251_v18, 7  ;;  %731 = vst.msk [vmem:[#allocation3 + $0x38] sm:$0xf] %vm258_vm0, %v699_v16 }
  0x56   : > { %v335_v38 = vsel %vm299_vm4, %v333_v15, %v334_v17  ;;  %v423_v28 = vsel %vm299_vm4, %v334_v17, 0.0  ;;  %v1058_v33 = vrot.slane %v1057_v20, 4  ;;  %669 = vst.msk [vmem:[#allocation2 + $0x8c] sm:$0x1] %vm261_vm1, %v8585_v1  ;;  %v8586_v35 = vpack.c.bf16 %v407_v27, %v407_v27  ;;  %v783_v59 = vld [vmem:[#allocation2 + $0x88] sm:$0xf] }
  0x57   : > { %v8587_v36 = vpack.c.bf16 %v335_v38, %v335_v38  ;;  %v8588_v39 = vpack.c.bf16 %v423_v28, %v423_v28  ;;  %v408_v42 = vsel %vm299_vm4, 0.0, %v336_v23  ;;  %v339_v43 = vrot.slane %v252_v24, 7  ;;  %732 = vst.msk [vmem:[#allocation3 + $0x3c] sm:$0xf] %vm258_vm0, %v700_v54 }
  0x58   : > { %1224 = vrot.lane.b32.xlu0 %v1053_v22, %s8861_s24  ;;  %v340_v44 = vrot.slane %v253_v25, 7  ;;  %v1063_v46 = vsel %vm8936_vm5, %v1058_v33, %v1062_v13  ;;  %670 = vst.msk [vmem:[#allocation2 + $0x90] sm:$0xf] %vm258_vm0, %v8586_v35  ;;  %v8589_v47 = vpack.c.bf16 %v408_v42, %v408_v42  ;;  %v342_v48 = vrot.slane %v254_v29, 7 }
  0x59   : > { %671 = vst.msk [vmem:[#allocation2 + $0x94] sm:$0xf] %vm258_vm0, %v8587_v36  ;;  %v343_v49 = vrot.slane %v9130_v30, 7  ;;  %1226 = vrot.lane.b32.xlu1 %v1063_v46, %s8861_s24  ;;  %v338_v50 = vsel %vm299_vm4, %v336_v23, %v337_v41  ;;  %v424_v51 = vsel %vm299_vm4, %v337_v41, 0.0  ;;  %v409_v53 = vsel %vm299_vm4, 0.0, %v339_v43 }
  0x5a   : > { %672 = vst.msk [vmem:[#allocation2 + $0x98] sm:$0x1] %vm261_vm1, %v8588_v39  ;;  %v341_v52 = vsel %vm299_vm4, %v339_v43, %v340_v44  ;;  %v8590_v55 = vpack.c.bf16 %v338_v50, %v338_v50  ;;  %v8591_v56 = vpack.c.bf16 %v424_v51, %v424_v51  ;;  %v8592_v57 = vpack.c.bf16 %v409_v53, %v409_v53 }
  0x5b   : > { %v782_v32 = vld [vmem:[#allocation2 + $0x84] sm:$0xf]  ;;  %673 = vst.msk [vmem:[#allocation2 + $0x9c] sm:$0xf] %vm258_vm0, %v8589_v47  ;;  %v8593_v58 = vpack.c.bf16 %v341_v52, %v341_v52  ;;  %v425_v62 = vsel %vm299_vm4, %v340_v44, 0.0  ;;  %v344_v63 = vsel %vm299_vm4, %v342_v48, %v343_v49  ;;  %v1074_v0 = vshll.u32 %v783_v59, 16 }
  0x5c   : > { %v1065_v60 = vshrl.u32 %v782_v32, 16  ;;  %v1068_v61 = vshll.u32 %v782_v32, 16  ;;  %v1078_v2 = vshrl.u32 %v783_v59, 16  ;;  %674 = vst.msk [vmem:[#allocation2 + $0xa0] sm:$0xf] %vm258_vm0, %v8590_v55  ;;  %v8594_v3 = vpack.c.bf16 %v425_v62, %v425_v62 }
  0x5d   : > { %675 = vst.msk [vmem:[#allocation2 + $0xa4] sm:$0x1] %vm261_vm1, %v8591_v56  ;;  %v410_v4 = vsel %vm299_vm4, 0.0, %v342_v48  ;;  %v784_v7 = vld [vmem:[#allocation2 + $0x8c] sm:$0x1]  ;;  %v8596_v9 = vpack.c.bf16 %v344_v63, %v344_v63  ;;  %v1076_v10 = vrot.slane %v1074_v0, 5 }
  0x5e   : > { %676 = vst.msk [vmem:[#allocation2 + $0xa8] sm:$0xf] %vm258_vm0, %v8592_v57  ;;  %677 = vst.msk [vmem:[#allocation2 + $0xac] sm:$0xf] %vm258_vm0, %v8593_v58  ;;  %v1067_v5 = vrot.slane %v1065_v60, 4  ;;  %v1070_v6 = vrot.slane %v1068_v61, 5  ;;  %v8595_v8 = vpack.c.bf16 %v410_v4, %v410_v4 }
  0x5f   : > { %v1080_v11 = vrot.slane %v1078_v2, 4  ;;  %v1084_v12 = vshll.u32 %v784_v7, 16  ;;  %678 = vst.msk [vmem:[#allocation2 + $0xb0] sm:$0x1] %vm261_vm1, %v8594_v3  ;;  %v426_v13 = vsel %vm299_vm4, %v343_v49, 0.0  ;;  %vm1410_vm7 = vcmask 1046532  }
  0x60   : > { %v1071_v21 = vor.u32 %v1070_v6, %v1067_v5  ;;  %v785_v37 = vld [vmem:[#allocation2 + $0x90] sm:$0xf]  ;;  %v786_v14 = vld [vmem:[#allocation2 + $0x94] sm:$0xf]  ;;  %679 = vst.msk [vmem:[#allocation2 + $0xb4] sm:$0xf] %vm258_vm0, %v8595_v8  ;;  %v8597_v17 = vpack.c.bf16 %v426_v13, %v426_v13  ;;  %vm9195_vm8 = vmor %vm1409_vm6, %vm1410_vm7 }
  0x61   : > { %v787_v15 = vld [vmem:[#allocation2 + $0x98] sm:$0x1]  ;;  %680 = vst.msk [vmem:[#allocation2 + $0xb8] sm:$0xf] %vm258_vm0, %v8596_v9  ;;  %v1081_v18 = vor.u32 %v1080_v11, %v1076_v10  ;;  %v1086_v19 = vrot.slane %v1084_v12, 5  ;;  %v1089_v20 = vshrl.u32 %v785_v37, 16 }
  0x62   : > { %v1092_v1 = vshll.u32 %v785_v37, 16  ;;  %v1072_v23 = vrot.slane %v1071_v21, 4  ;;  %v1098_v24 = vshll.u32 %v786_v14, 16  ;;  %v1102_v25 = vshrl.u32 %v786_v14, 16  ;;  %v788_v22 = vld [vmem:[#allocation2 + $0x9c] sm:$0xf] }
  0x63   : > { %v1108_v26 = vshll.u32 %v787_v15, 16  ;;  %681 = vst.msk [vmem:[#allocation2 + $0xbc] sm:$0x1] %vm261_vm1, %v8597_v17  ;;  %v1082_v38 = vrot.slane %v1081_v18, 4  ;;  %v1091_v27 = vrot.slane %v1089_v20, 4  ;;  %v1113_v29 = vshrl.u32 %v788_v22, 16 }
  0x64   : > { %v1094_v28 = vrot.slane %v1092_v1, 5  ;;  %v1077_v30 = vsel %vm8936_vm5, %v1072_v23, %v1076_v10  ;;  %v1100_v31 = vrot.slane %v1098_v24, 5  ;;  %v1104_v33 = vrot.slane %v1102_v25, 4  ;;  %v789_v36 = vld [vmem:[#allocation2 + $0xa0] sm:$0xf] }
  0x65   : > { %v1110_v35 = vrot.slane %v1108_v26, 5  ;;  %1228 = vrot.lane.b32.xlu0 %v1077_v30, %s8861_s24  ;;  %v1087_v39 = vsel %vm8936_vm5, %v1082_v38, %v1086_v19  ;;  %v1115_v41 = vrot.slane %v1113_v29, 4  ;;  %v1116_v42 = vshll.u32 %v788_v22, 16  ;;  %v790_v43 = vld [vmem:[#allocation2 + $0xa4] sm:$0x1] }
  0x66   : > { %v1095_v40 = vor.u32 %v1094_v28, %v1091_v27  ;;  %v791_v44 = vld [vmem:[#allocation2 + $0xa8] sm:$0xf]  ;;  %1230 = vrot.lane.b32.xlu1 %v1087_v39, %s8861_s24  ;;  %v1105_v45 = vor.u32 %v1104_v33, %v1100_v31  ;;  %v1122_v46 = vshll.u32 %v789_v36, 16  ;;  %v1126_v47 = vshrl.u32 %v789_v36, 16  ;;  %v792_v49 = vld [vmem:[#allocation2 + $0xac] sm:$0xf] }
  0x67   : > { %v1132_v48 = vshll.u32 %v790_v43, 16  ;;  %v1118_v51 = vrot.slane %v1116_v42, 5  ;;  %v1137_v52 = vshrl.u32 %v791_v44, 16  ;;  %v1140_v53 = vshll.u32 %v791_v44, 16  ;;  %v793_v16 = vld [vmem:[#allocation2 + $0xb0] sm:$0x1] }
  0x68   : > { %v1096_v50 = vrot.slane %v1095_v40, 4  ;;  %v1106_v54 = vrot.slane %v1105_v45, 4  ;;  %v1124_v32 = vrot.slane %v1122_v46, 5  ;;  %v1128_v55 = vrot.slane %v1126_v47, 4  ;;  %v794_v57 = vld [vmem:[#allocation2 + $0xb4] sm:$0xf] }
  0x69   : > { %v1134_v56 = vrot.slane %v1132_v48, 5  ;;  %v1119_v59 = vor.u32 %v1118_v51, %v1115_v41  ;;  %v1139_v60 = vrot.slane %v1137_v52, 4  ;;  %v1142_v61 = vrot.slane %v1140_v53, 5  ;;  %v795_v6 = vld [vmem:[#allocation2 + $0xb8] sm:$0xf] }
  0x6a   : > { %v1101_v58 = vsel %vm8936_vm5, %v1096_v50, %v1100_v31  ;;  %v1111_v62 = vsel %vm8936_vm5, %v1106_v54, %v1110_v35  ;;  %v1129_v63 = vor.u32 %v1128_v55, %v1124_v32  ;;  %v1146_v0 = vshll.u32 %v792_v49, 16  ;;  %v796_v12 = vld [vmem:[#allocation2 + $0xbc] sm:$0x1]  ;;  %v1314_v20 = vld [vmem:[#allocation2 + $0x4] sm:$0xf] }
  0x6b   : > { %1232 = vrot.lane.b32.xlu0 %v1101_v58, %s8861_s24  ;;  %v1150_v2 = vshrl.u32 %v792_v49, 16  ;;  %1234 = vrot.lane.b32.xlu1 %v1111_v62, %s8861_s24  ;;  %v1120_v3 = vrot.slane %v1119_v59, 4  ;;  %v1143_v4 = vor.u32 %v1142_v61, %v1139_v60  ;;  %v1156_v5 = vshll.u32 %v793_v16, 16  ;;  %v1313_v38 = vld [vmem:[#allocation2] sm:$0xe] }
  0x6c   : > { %v1161_v7 = vshrl.u32 %v794_v57, 16  ;;  %v1130_v8 = vrot.slane %v1129_v63, 4  ;;  %v1148_v9 = vrot.slane %v1146_v0, 5  ;;  %v1164_v11 = vshll.u32 %v794_v57, 16  ;;  %v1315_v29 = vld [vmem:[#allocation2 + $0x8] sm:$0x1] }
  0x6d   : > { %v1152_v10 = vrot.slane %v1150_v2, 4  ;;  %v1125_v13 = vsel %vm8936_vm5, %v1120_v3, %v1124_v32  ;;  %v1144_v21 = vrot.slane %v1143_v4, 4  ;;  %v1158_v37 = vrot.slane %v1156_v5, 5  ;;  %v1317_v30 = vld [vmem:[#allocation2 + $0x10] sm:$0xf] }
  0x6e   : > { %v1163_v14 = vrot.slane %v1161_v7, 4  ;;  %v1135_v15 = vsel %vm8936_vm5, %v1130_v8, %v1134_v56  ;;  %v1166_v18 = vrot.slane %v1164_v11, 5  ;;  %v1170_v19 = vshll.u32 %v795_v6, 16  ;;  %v701_v35 = vld [vmem:[#allocation2 + $0x60] sm:$0xf] }
  0x6f   : > { %1236 = vrot.lane.b32.xlu0 %v1125_v13, %s8861_s24  ;;  %v1153_v17 = vor.u32 %v1152_v10, %v1148_v9  ;;  %1238 = vrot.lane.b32.xlu1 %v1135_v15, %s8861_s24  ;;  %v1149_v1 = vsel %vm8936_vm5, %v1144_v21, %v1148_v9  ;;  %v1174_v23 = vshrl.u32 %v795_v6, 16  ;;  %v1180_v24 = vshll.u32 %v796_v12, 16  ;;  %v702_v36 = vld [vmem:[#allocation2 + $0x64] sm:$0xf]  ;;  %733 = vst.msk [vmem:[#allocation3 + $0x40] sm:$0xf] %vm258_vm0, %v701_v35 }
  0x70   : > { %v1167_v26 = vor.u32 %v1166_v18, %v1163_v14  ;;  %v1172_v22 = vrot.slane %v1170_v19, 5  ;;  %v1414_v28 = vrot.slane %v1314_v20, 5  ;;  %v8333_v41 = vrot.slane %v1313_v38, 9  ;;  %734 = vst.msk [vmem:[#allocation3 + $0x44] sm:$0xf] %vm258_vm0, %v702_v36 }
  0x71   : > { %v1154_v25 = vrot.slane %v1153_v17, 4  ;;  %v1176_v27 = vrot.slane %v1174_v23, 4  ;;  %v1182_v40 = vrot.slane %v1180_v24, 5  ;;  %v1316_v44 = vld [vmem:[#allocation2 + $0xc] sm:$0xe]  ;;  %v1417_v48 = vrot.slane %v1315_v29, 5 }
  0x72   : > { %v1168_v33 = vrot.slane %v1167_v26, 4  ;;  %v703_v45 = vld [vmem:[#allocation2 + $0x6c] sm:$0xf]  ;;  %v1416_v47 = vrot.slane %v1414_v28, 4  ;;  %v1421_v49 = vrot.slane %v1317_v30, 5  ;;  %v1415_v16 = vsel %vm9195_vm8, %v8333_v41, %v1414_v28  ;;  %v256_v41 = vld [vmem:[%s8921_s23 + $0xf0] sm:$0xff] }
  0x73   : > { %1240 = vrot.lane.b32.xlu0 %v1149_v1, %s8861_s24  ;;  %v1159_v31 = vsel %vm8936_vm5, %v1154_v25, %v1158_v37  ;;  %v1177_v39 = vor.u32 %v1176_v27, %v1172_v22  ;;  %735 = vst.msk [vmem:[#allocation3 + $0x48] sm:$0xf] %vm258_vm0, %v703_v45  ;;  %v704_v50 = vld [vmem:[#allocation2 + $0x70] sm:$0xf]  ;;  %v1318_v51 = vld [vmem:[#allocation2 + $0x14] sm:$0x1] }
  0x74   : > { %1242 = vrot.lane.b32.xlu1 %v1159_v31, %s8861_s24  ;;  %v1173_v42 = vsel %vm8936_vm5, %v1168_v33, %v1172_v22  ;;  %v1320_v52 = vld [vmem:[#allocation2 + $0x1c] sm:$0xf]  ;;  %736 = vst.msk [vmem:[#allocation3 + $0x4c] sm:$0xf] %vm258_vm0, %v704_v50  ;;  %v8334_v54 = vrot.slane %v1316_v44, 9  ;;  %v1418_v57 = vsel %vm9195_vm8, %v1416_v47, %v1417_v48  ;;  %v1423_v58 = vrot.slane %v1421_v49, 4 }
  0x75   : > { %v1178_v46 = vrot.slane %v1177_v39, 4  ;;  %v705_v32 = vld [vmem:[#allocation2 + $0x78] sm:$0xf]  ;;  %v706_v56 = vld [vmem:[#allocation2 + $0x7c] sm:$0xf]  ;;  %v1424_v59 = vrot.slane %v1318_v51, 5 }
  0x76   : > { %v1319_v55 = vld [vmem:[#allocation2 + $0x18] sm:$0xe]  ;;  %737 = vst.msk [vmem:[#allocation3 + $0x50] sm:$0xf] %vm258_vm0, %v705_v32  ;;  %v1428_v60 = vrot.slane %v1320_v52, 5  ;;  %v1422_v0 = vsel %vm9195_vm8, %v8334_v54, %v1421_v49  ;;  %v345_v51 = vrot.slane %v256_v41, 7 }
  0x77   : > { %1244 = vrot.lane.b32.xlu0 %v1173_v42, %s8861_s24  ;;  %v1183_v53 = vsel %vm8936_vm5, %v1178_v46, %v1182_v40  ;;  %738 = vst.msk [vmem:[#allocation3 + $0x54] sm:$0xf] %vm258_vm0, %v706_v56  ;;  %v1321_v61 = vld [vmem:[#allocation2 + $0x20] sm:$0x1]  ;;  %v1323_v62 = vld [vmem:[#allocation2 + $0x28] sm:$0xf]  ;;  %v1425_v5 = vsel %vm9195_vm8, %v1423_v58, %v1424_v59 }
  0x78   : > { %1246 = vrot.lane.b32.xlu1 %v1183_v53, %s8861_s24  ;;  %v707_v63 = vld [vmem:[#allocation2 + $0x84] sm:$0xf]  ;;  %v8335_v2 = vrot.slane %v1319_v55, 9  ;;  %v708_v3 = vld [vmem:[#allocation2 + $0x88] sm:$0xf]  ;;  %v1430_v6 = vrot.slane %v1428_v60, 4 }
  0x79   : > { %739 = vst.msk [vmem:[#allocation3 + $0x58] sm:$0xf] %vm258_vm0, %v707_v63  ;;  %v1322_v4 = vld [vmem:[#allocation2 + $0x24] sm:$0xe]  ;;  %740 = vst.msk [vmem:[#allocation3 + $0x5c] sm:$0xf] %vm258_vm0, %v708_v3 }
  0x7a   : > { %v1431_v7 = vrot.slane %v1321_v61, 5  ;;  %v1435_v8 = vrot.slane %v1323_v62, 5  ;;  %v709_v9 = vld [vmem:[#allocation2 + $0x90] sm:$0xf]  ;;  %v1324_v10 = vld [vmem:[#allocation2 + $0x2c] sm:$0x1]  ;;  %v1429_v13 = vsel %vm9195_vm8, %v8335_v2, %v1428_v60 }
  0x7b   : > { %1524 = vrot.lane.b32.xlu0 %v1415_v16, %s8862_s25  ;;  %v1326_v11 = vld [vmem:[#allocation2 + $0x34] sm:$0xf]  ;;  %741 = vst.msk [vmem:[#allocation3 + $0x60] sm:$0xf] %vm258_vm0, %v709_v9  ;;  %v8336_v21 = vrot.slane %v1322_v4, 9  ;;  %v1438_v18 = vrot.slane %v1324_v10, 5 }
  0x7c   : > { %1526 = vrot.lane.b32.xlu1 %v1418_v57, %s8862_s25  ;;  %v710_v12 = vld [vmem:[#allocation2 + $0x94] sm:$0xf]  ;;  %v1325_v37 = vld [vmem:[#allocation2 + $0x30] sm:$0xe]  ;;  %v711_v14 = vld [vmem:[#allocation2 + $0x9c] sm:$0xf]  ;;  %v1432_v15 = vsel %vm9195_vm8, %v1430_v6, %v1431_v7 }
  0x7d   : > { %742 = vst.msk [vmem:[#allocation3 + $0x64] sm:$0xf] %vm258_vm0, %v710_v12  ;;  %v1437_v17 = vrot.slane %v1435_v8, 4  ;;  %v1442_v19 = vrot.slane %v1326_v11, 5  ;;  %743 = vst.msk [vmem:[#allocation3 + $0x68] sm:$0xf] %vm258_vm0, %v711_v14  ;;  %v1436_v24 = vsel %vm9195_vm8, %v8336_v21, %v1435_v8 }
  0x7e   : > { %v712_v20 = vld [vmem:[#allocation2 + $0xa0] sm:$0xf]  ;;  %v1327_v1 = vld [vmem:[#allocation2 + $0x38] sm:$0x1]  ;;  %v8337_v25 = vrot.slane %v1325_v37, 9  ;;  %vm1280_vm9 = vcmask 60448  }
  0x7f   : > { %1528 = vrot.lane.b32.xlu0 %v1422_v0, %s8862_s25  ;;  %v1329_v23 = vld [vmem:[#allocation2 + $0x40] sm:$0xf]  ;;  %744 = vst.msk [vmem:[#allocation3 + $0x6c] sm:$0xf] %vm258_vm0, %v712_v20  ;;  %v713_v26 = vld [vmem:[#allocation2 + $0xa8] sm:$0xf]  ;;  %v1439_v27 = vsel %vm9195_vm8, %v1437_v17, %v1438_v18 }
  0x80   : > { %1530 = vrot.lane.b32.xlu1 %v1425_v5, %s8862_s25  ;;  %v1328_v22 = vld [vmem:[#allocation2 + $0x3c] sm:$0xe]  ;;  %745 = vst.msk [vmem:[#allocation3 + $0x70] sm:$0xf] %vm258_vm0, %v713_v26  ;;  %v714_v38 = vld [vmem:[#allocation2 + $0xac] sm:$0xf]  ;;  %v1443_v36 = vsel %vm9195_vm8, %v8337_v25, %v1442_v19 }
  0x81   : > { %v1444_v28 = vrot.slane %v1442_v19, 4  ;;  %v1445_v29 = vrot.slane %v1327_v1, 5  ;;  %v1449_v30 = vrot.slane %v1329_v23, 5  ;;  %v1332_v31 = vld [vmem:[#allocation2 + $0x4c] sm:$0xf]  ;;  %v8338_v39 = vrot.slane %v1328_v22, 9 }
  0x82   : > { %746 = vst.msk [vmem:[#allocation3 + $0x74] sm:$0xf] %vm258_vm0, %v714_v38  ;;  %v1330_v33 = vld [vmem:[#allocation2 + $0x44] sm:$0x1]  ;;  %v715_v35 = vld [vmem:[#allocation2 + $0xb4] sm:$0xf] }
  0x83   : > { %1532 = vrot.lane.b32.xlu0 %v1429_v13, %s8862_s25  ;;  %747 = vst.msk [vmem:[#allocation3 + $0x78] sm:$0xf] %vm258_vm0, %v715_v35  ;;  %v716_v40 = vld [vmem:[#allocation2 + $0xb8] sm:$0xf]  ;;  %v1331_v42 = vld [vmem:[#allocation2 + $0x48] sm:$0xe]  ;;  %v1446_v47 = vsel %vm9195_vm8, %v1444_v28, %v1445_v29  ;;  %v1450_v52 = vsel %vm9195_vm8, %v8338_v39, %v1449_v30 }
  0x84   : > { %1534 = vrot.lane.b32.xlu1 %v1432_v15, %s8862_s25  ;;  %v1456_v44 = vrot.slane %v1332_v31, 5  ;;  %v1333_v45 = vld [vmem:[#allocation2 + $0x50] sm:$0x1]  ;;  %748 = vst.msk [vmem:[#allocation3 + $0x7c] sm:$0xf] %vm258_vm0, %v716_v40  ;;  %v257_v46 = vld [vmem:[%s8921_s23 + $0xf8] sm:$0xff] }
  0x85   : > { %v1451_v48 = vrot.slane %v1449_v30, 4  ;;  %v1452_v49 = vrot.slane %v1330_v33, 5  ;;  %v1335_v50 = vld [vmem:[#allocation2 + $0x58] sm:$0xf]  ;;  %v8339_v53 = vrot.slane %v1331_v42, 9  ;;  %v1459_v16 = vrot.slane %v1333_v45, 5 }
  0x86   : > { %v346_v54 = vrot.slane %v257_v46, 7  ;;  %v1458_v32 = vrot.slane %v1456_v44, 4  ;;  %v1334_v55 = vld [vmem:[#allocation2 + $0x54] sm:$0xe]  ;;  %v1463_v56 = vrot.slane %v1335_v50, 5  ;;  %v411_v57 = vsel %vm299_vm4, 0.0, %v345_v51 }
  0x87   : > { %1536 = vrot.lane.b32.xlu0 %v1436_v24, %s8862_s25  ;;  %v1453_v58 = vsel %vm9195_vm8, %v1451_v48, %v1452_v49  ;;  %v8598_v59 = vpack.c.bf16 %v411_v57, %v411_v57  ;;  %v1336_v62 = vld [vmem:[#allocation2 + $0x5c] sm:$0x1]  ;;  %v1338_v63 = vld [vmem:[#allocation2 + $0x64] sm:$0xf]  ;;  %v1457_v4 = vsel %vm9195_vm8, %v8339_v53, %v1456_v44  ;;  %v8340_v5 = vrot.slane %v1334_v55, 9 }
  0x88   : > { %1538 = vrot.lane.b32.xlu1 %v1439_v27, %s8862_s25  ;;  %v347_v60 = vsel %vm299_vm4, %v345_v51, %v346_v54  ;;  %v427_v61 = vsel %vm299_vm4, %v346_v54, 0.0  ;;  %v1337_v6 = vld [vmem:[#allocation2 + $0x60] sm:$0xe]  ;;  %v1460_v7 = vsel %vm9195_vm8, %v1458_v32, %v1459_v16  ;;  %v1465_v8 = vrot.slane %v1463_v56, 4  ;;  %v1339_v11 = vld [vmem:[#allocation2 + $0x68] sm:$0x1] }
  0x89   : > { %v8599_v2 = vpack.c.bf16 %v347_v60, %v347_v60  ;;  %v8600_v3 = vpack.c.bf16 %v427_v61, %v427_v61  ;;  %682 = vst.msk [vmem:[#allocation2 + $0xc0] sm:$0xf] %vm258_vm0, %v8598_v59  ;;  %v1466_v9 = vrot.slane %v1336_v62, 5  ;;  %v1470_v10 = vrot.slane %v1338_v63, 5  ;;  %v1341_v12 = vld [vmem:[#allocation2 + $0x70] sm:$0xf] }
  0x8a   : > { %v1464_v21 = vsel %vm9195_vm8, %v8340_v5, %v1463_v56  ;;  %v8341_v37 = vrot.slane %v1337_v6, 9  ;;  %v1340_v14 = vld [vmem:[#allocation2 + $0x6c] sm:$0xe]  ;;  %v1473_v18 = vrot.slane %v1339_v11, 5  ;;  %v1477_v19 = vrot.slane %v1341_v12, 5 }
  0x8b   : > { %1540 = vrot.lane.b32.xlu0 %v1443_v36, %s8862_s25  ;;  %683 = vst.msk [vmem:[#allocation2 + $0xc4] sm:$0xf] %vm258_vm0, %v8599_v2  ;;  %v1467_v15 = vsel %vm9195_vm8, %v1465_v8, %v1466_v9  ;;  %v1472_v17 = vrot.slane %v1470_v10, 4  ;;  %v1342_v20 = vld [vmem:[#allocation2 + $0x74] sm:$0x1]  ;;  %v8342_v24 = vrot.slane %v1340_v14, 9 }
  0x8c   : > { %1542 = vrot.lane.b32.xlu1 %v1446_v47, %s8862_s25  ;;  %684 = vst.msk [vmem:[#allocation2 + $0xc8] sm:$0x1] %vm261_vm1, %v8600_v3  ;;  %v1344_v1 = vld [vmem:[#allocation2 + $0x7c] sm:$0xf]  ;;  %v1471_v23 = vsel %vm9195_vm8, %v8341_v37, %v1470_v10  ;;  %v1343_v25 = vld [vmem:[#allocation2 + $0x78] sm:$0xe] }
  0x8d   : > { %v1474_v26 = vsel %vm9195_vm8, %v1472_v17, %v1473_v18  ;;  %v1479_v22 = vrot.slane %v1477_v19, 4  ;;  %v1480_v38 = vrot.slane %v1342_v20, 5  ;;  %v1484_v27 = vrot.slane %v1344_v1, 5  ;;  %v1345_v28 = vld [vmem:[#allocation2 + $0x80] sm:$0x1] }
  0x8e   : > { %v1347_v29 = vld [vmem:[#allocation2 + $0x88] sm:$0xf]  ;;  %v1478_v30 = vsel %vm9195_vm8, %v8342_v24, %v1477_v19  ;;  %v8343_v31 = vrot.slane %v1343_v25, 9  ;;  %v1346_v35 = vld [vmem:[#allocation2 + $0x84] sm:$0xe]  ;;  %v1487_v40 = vrot.slane %v1345_v28, 5 }
  0x8f   : > { %1544 = vrot.lane.b32.xlu0 %v1450_v52, %s8862_s25  ;;  %v1185_v0 = vpop.permute.xlu0 %1184  ;;  %v1481_v36 = vsel %vm9195_vm8, %v1479_v22, %v1480_v38  ;;  %v1486_v39 = vrot.slane %v1484_v27, 4  ;;  %v1491_v41 = vrot.slane %v1347_v29, 5  ;;  %v1348_v42 = vld [vmem:[#allocation2 + $0x8c] sm:$0x1]  ;;  %v1350_v44 = vld [vmem:[#allocation2 + $0x94] sm:$0xf] }
  0x90   : > { %1281 = vst.msk [vmem:[#allocation3] sm:$0xf] %vm1280_vm9, %v1185_v0  ;;  %1546 = vrot.lane.b32.xlu1 %v1453_v58, %s8862_s25  ;;  %v1485_v45 = vsel %vm9195_vm8, %v8343_v31, %v1484_v27  ;;  %v8344_v46 = vrot.slane %v1346_v35, 9  ;;  %v1349_v49 = vld [vmem:[#allocation2 + $0x90] sm:$0xe]  ;;  %v1494_v52 = vrot.slane %v1348_v42, 5 }
  0x91   : > { %v1488_v50 = vsel %vm9195_vm8, %v1486_v39, %v1487_v40  ;;  %v1493_v51 = vrot.slane %v1491_v41, 4  ;;  %v1498_v53 = vrot.slane %v1350_v44, 5  ;;  %v1351_v16 = vld [vmem:[#allocation2 + $0x98] sm:$0x1]  ;;  %v1353_v54 = vld [vmem:[#allocation2 + $0xa0] sm:$0xf] }
  0x92   : > { %v1492_v32 = vsel %vm9195_vm8, %v8344_v46, %v1491_v41  ;;  %v8345_v55 = vrot.slane %v1349_v49, 9  ;;  %v1352_v58 = vld [vmem:[#allocation2 + $0x9c] sm:$0xe]  ;;  %v1501_v61 = vrot.slane %v1351_v16, 5  ;;  %v1505_v62 = vrot.slane %v1353_v54, 5 }
  0x93   : > { %1548 = vrot.lane.b32.xlu0 %v1457_v4, %s8862_s25  ;;  %v1187_v13 = vpop.permute.xlu0 %1186  ;;  %v1495_v59 = vsel %vm9195_vm8, %v1493_v51, %v1494_v52  ;;  %v1500_v60 = vrot.slane %v1498_v53, 4  ;;  %v1354_v63 = vld [vmem:[#allocation2 + $0xa4] sm:$0x1]  ;;  %v1356_v0 = vld [vmem:[#allocation2 + $0xac] sm:$0xf]  ;;  %v8346_v3 = vrot.slane %v1352_v58, 9 }
  0x94   : > { %1282 = vst.msk [vmem:[#allocation3 + $0x4] sm:$0xf] %vm1280_vm9, %v1187_v13  ;;  %1550 = vrot.lane.b32.xlu1 %v1460_v7, %s8862_s25  ;;  %v1499_v2 = vsel %vm9195_vm8, %v8345_v55, %v1498_v53  ;;  %v1355_v6 = vld [vmem:[#allocation2 + $0xa8] sm:$0xe]  ;;  %v1507_v8 = vrot.slane %v1505_v62, 4  ;;  %v1508_v9 = vrot.slane %v1354_v63, 5 }
  0x95   : > { %v1502_v7 = vsel %vm9195_vm8, %v1500_v60, %v1501_v61  ;;  %v1512_v10 = vrot.slane %v1356_v0, 5  ;;  %v1357_v11 = vld [vmem:[#allocation2 + $0xb0] sm:$0x1]  ;;  %v1359_v12 = vld [vmem:[#allocation2 + $0xb8] sm:$0xf]  ;;  %v1506_v13 = vsel %vm9195_vm8, %v8346_v3, %v1505_v62  ;;  %vm1620_vm10 = vcmask 93248  }
  0x96   : > { %v1509_v17 = vsel %vm9195_vm8, %v1507_v8, %v1508_v9  ;;  %v1515_v19 = vrot.slane %v1357_v11, 5  ;;  %v1519_v20 = vrot.slane %v1359_v12, 5  ;;  %v1360_v1 = vld [vmem:[#allocation2 + $0xbc] sm:$0x1]  ;;  %v1653_v29 = vld [vmem:[#allocation2 + $0xc] sm:$0xf] }
  0x97   : > { %1552 = vrot.lane.b32.xlu0 %v1464_v21, %s8862_s25  ;;  %v8347_v21 = vrot.slane %v1355_v6, 9  ;;  %v1514_v18 = vrot.slane %v1512_v10, 4  ;;  %v1522_v38 = vrot.slane %v1360_v1, 5  ;;  %v1655_v35 = vld [vmem:[#allocation2 + $0x18] sm:$0xf]  ;;  %vm1813_vm11 = vcmask 126048  }
  0x98   : > { %1554 = vrot.lane.b32.xlu1 %v1467_v15, %s8862_s25  ;;  %v1189_v33 = vpop.permute.xlu1 %1188  ;;  %v1358_v15 = vld [vmem:[#allocation2 + $0xb4] sm:$0xe]  ;;  %v1521_v22 = vrot.slane %v1519_v20, 4  ;;  %v1657_v40 = vld [vmem:[#allocation2 + $0x24] sm:$0xf]  ;;  %vm2374_vm12 = vcmask 158848  }
  0x99   : > { %1283 = vst.msk [vmem:[#allocation3 + $0x8] sm:$0xf] %vm1280_vm9, %v1189_v33  ;;  %v8348_v24 = vrot.slane %v1358_v15, 9  ;;  %v1658_v42 = vld [vmem:[#allocation2 + $0x28] sm:$0xf]  ;;  %vm2711_vm13 = vcmask 191648  }
  0x9a   : > { %v1523_v28 = vsel %vm9195_vm8, %v1521_v22, %v1522_v38  ;;  %v1661_v49 = vld [vmem:[#allocation2 + $0x3c] sm:$0xf]  ;;  %v1662_v51 = vld [vmem:[#allocation2 + $0x40] sm:$0xf]  ;;  %v1663_v53 = vld [vmem:[#allocation2 + $0x48] sm:$0xf] }
  0x9b   : > { %1556 = vrot.lane.b32.xlu0 %v1471_v23, %s8862_s25  ;;  %v1513_v23 = vsel %vm9195_vm8, %v8347_v21, %v1512_v10  ;;  %v1520_v27 = vsel %vm9195_vm8, %v8348_v24, %v1519_v20  ;;  %v1664_v54 = vld [vmem:[#allocation2 + $0x4c] sm:$0xf]  ;;  %v1666_v55 = vld [vmem:[#allocation2 + $0x58] sm:$0xf]  ;;  %v1670_v61 = vld [vmem:[#allocation2 + $0x70] sm:$0xf] }
  0x9c   : > { %1558 = vrot.lane.b32.xlu1 %v1474_v26, %s8862_s25  ;;  %v1191_v47 = vpop.permute.xlu1 %1190  ;;  %v1193_v48 = vpop.permute.xlu0 %1192  ;;  %v1516_v26 = vsel %vm9195_vm8, %v1514_v18, %v1515_v19  ;;  %v1671_v62 = vld [vmem:[#allocation2 + $0x78] sm:$0xf]  ;;  %v1673_v3 = vld [vmem:[#allocation2 + $0x84] sm:$0xf]  ;;  %v1675_v8 = vld [vmem:[#allocation2 + $0x90] sm:$0xf] }
  0x9d   : > { %1284 = vst.msk [vmem:[#allocation3 + $0xc] sm:$0xf] %vm1280_vm9, %v1191_v47  ;;  %1285 = vst.msk [vmem:[#allocation3 + $0x10] sm:$0xf] %vm1280_vm9, %v1193_v48  ;;  %v1660_v47 = vld [vmem:[#allocation2 + $0x34] sm:$0xf] }
  0x9e   : > { %v1847_v12 = vld [vmem:[#allocation2 + $0x10] sm:$0xf]  ;;  %v1676_v21 = vld [vmem:[#allocation2 + $0x94] sm:$0xf]  ;;  %v1850_v1 = vld [vmem:[#allocation2 + $0x1c] sm:$0xf] }
  0x9f   : > { %1560 = vrot.lane.b32.xlu0 %v1478_v30, %s8862_s25  ;;  %v1654_v30 = vld [vmem:[#allocation2 + $0x10] sm:$0xf]  ;;  %v1904_v18 = vshll.u32 %v1847_v12, 16  ;;  %v1908_v20 = vshrl.u32 %v1847_v12, 16  ;;  %v1852_v22 = vld [vmem:[#allocation2 + $0x24] sm:$0xf] }
  0xa0   : > { %1562 = vrot.lane.b32.xlu1 %v1481_v36, %s8862_s25  ;;  %v1195_v56 = vpop.permute.xlu1 %1194  ;;  %v1656_v36 = vld [vmem:[#allocation2 + $0x1c] sm:$0xf]  ;;  %v1853_v38 = vld [vmem:[#allocation2 + $0x28] sm:$0xf]  ;;  %vm4024_vm14 = vcmask 1041408   ;;  %vm2905_vm15 = vcmask 224448  }
  0xa1   : > { %v1197_v57 = vpop.permute.xlu0 %1196  ;;  %1286 = vst.msk [vmem:[#allocation3 + $0x14] sm:$0xf] %vm1280_vm9, %v1195_v56  ;;  %v1667_v56 = vld [vmem:[#allocation2 + $0x60] sm:$0xf]  ;;  %vm3466_vm2 = vcmask 257248   ;;  %vm3803_vm3 = vcmask 290048  }
  0xa2   : > { %1287 = vst.msk [vmem:[#allocation3 + $0x18] sm:$0xf] %vm1280_vm9, %v1197_v57  ;;  %v1668_v57 = vld [vmem:[#allocation2 + $0x64] sm:$0xf]  ;;  %vm3975_vm6 = vcmask 293888  }
  0xa3   : > { %1564 = vrot.lane.b32.xlu0 %v1485_v45, %s8862_s25  ;;  %v1659_v45 = vld [vmem:[#allocation2 + $0x30] sm:$0xf] }
  0xa4   : > { %1566 = vrot.lane.b32.xlu1 %v1488_v50, %s8862_s25  ;;  %v1199_v4 = vpop.permute.xlu1 %1198 }
  0xa5   : > { %v1201_v5 = vpop.permute.xlu0 %1200  ;;  %1288 = vst.msk [vmem:[#allocation3 + $0x1c] sm:$0xf] %vm1280_vm9, %v1199_v4 }
  0xa6   : > { %1289 = vst.msk [vmem:[#allocation3 + $0x20] sm:$0xf] %vm1280_vm9, %v1201_v5  ;;  %v1846_v5 = vld [vmem:[#allocation2 + $0xc] sm:$0xf] }
  0xa7   : > { %1568 = vrot.lane.b32.xlu0 %v1492_v32, %s8862_s25  ;;  %v1665_v32 = vld [vmem:[#allocation2 + $0x54] sm:$0xf]  ;;  %v1895_v9 = vshrl.u32 %v1846_v5, 16  ;;  %v1898_v10 = vshll.u32 %v1846_v5, 16 }
  0xa8   : > { %1570 = vrot.lane.b32.xlu1 %v1495_v59, %s8862_s25  ;;  %v1203_v37 = vpop.permute.xlu1 %1202  ;;  %v1669_v59 = vld [vmem:[#allocation2 + $0x6c] sm:$0xf] }
  0xa9   : > { %v1205_v14 = vpop.permute.xlu0 %1204  ;;  %1290 = vst.msk [vmem:[#allocation3 + $0x24] sm:$0xf] %vm1280_vm9, %v1203_v37  ;;  %v1849_v37 = vld [vmem:[#allocation2 + $0x18] sm:$0xf]  ;;  %v1897_v15 = vrot.slane %v1895_v9, 4 }
  0xaa   : > { %1291 = vst.msk [vmem:[#allocation3 + $0x28] sm:$0xf] %vm1280_vm9, %v1205_v14  ;;  %v1677_v14 = vld [vmem:[#allocation2 + $0x9c] sm:$0xf]  ;;  %v1922_v24 = vshll.u32 %v1849_v37, 16 }
  0xab   : > { %1572 = vrot.lane.b32.xlu0 %v1499_v2, %s8862_s25  ;;  %v1672_v2 = vld [vmem:[#allocation2 + $0x7c] sm:$0xf] }
  0xac   : > { %1574 = vrot.lane.b32.xlu1 %v1502_v7, %s8862_s25  ;;  %v1207_v25 = vpop.permute.xlu1 %1206  ;;  %v1674_v7 = vld [vmem:[#allocation2 + $0x88] sm:$0xf] }
  0xad   : > { %1292 = vst.msk [vmem:[#allocation3 + $0x2c] sm:$0xf] %vm1280_vm9, %v1207_v25  ;;  %v1678_v25 = vld [vmem:[#allocation2 + $0xa0] sm:$0xf] }
  0xaf   : > { %1576 = vrot.lane.b32.xlu0 %v1506_v13, %s8862_s25 }
  0xb0   : > { %1578 = vrot.lane.b32.xlu1 %v1509_v17, %s8862_s25  ;;  %v1900_v17 = vrot.slane %v1898_v10, 5 }
  0xb3   : > { %1580 = vrot.lane.b32.xlu0 %v1513_v23, %s8862_s25  ;;  %v1919_v23 = vshrl.u32 %v1849_v37, 16 }
  0xb4   : > { %1582 = vrot.lane.b32.xlu1 %v1516_v26, %s8862_s25 }
  0xb7   : > { %1584 = vrot.lane.b32.xlu0 %v1520_v27, %s8862_s25  ;;  %v1679_v27 = vld [vmem:[#allocation2 + $0xa8] sm:$0xf] }
  0xb8   : > { %1586 = vrot.lane.b32.xlu1 %v1523_v28, %s8862_s25  ;;  %v1901_v28 = vor.u32 %v1900_v17, %v1897_v15 }
  0xb9   : > { %v1209_v31 = vpop.permute.xlu0 %1208 }
  0xba   : > { %v1211_v33 = vpop.permute.xlu1 %1210  ;;  %1293 = vst.msk [vmem:[#allocation3 + $0x30] sm:$0xf] %vm1280_vm9, %v1209_v31  ;;  %v1928_v31 = vshll.u32 %v1850_v1, 16 }
  0xbb   : > { %1717 = vrot.lane.b32.xlu0 %v1653_v29, %s8863_s26  ;;  %1294 = vst.msk [vmem:[#allocation3 + $0x34] sm:$0xf] %vm1280_vm9, %v1211_v33  ;;  %v9378_v29 = vrot.slane %v1904_v18, 5  ;;  %v1861_v18 = vld [vmem:[#allocation2 + $0x48] sm:$0xf] }
  0xbc   : > { %1719 = vrot.lane.b32.xlu1 %v1654_v30, %s8863_s26  ;;  %v1848_v30 = vld [vmem:[#allocation2 + $0x14] sm:$0x1] }
  0xbd   : > { %v1213_v39 = vpop.permute.xlu0 %1212 }
  0xbe   : > { %1295 = vst.msk [vmem:[#allocation3 + $0x38] sm:$0xf] %vm1280_vm9, %v1213_v39  ;;  %v1215_v41 = vpop.permute.xlu1 %1214  ;;  %v1924_v39 = vrot.slane %v1922_v24, 5 }
  0xbf   : > { %1721 = vrot.lane.b32.xlu0 %v1655_v35, %s8863_s26  ;;  %1296 = vst.msk [vmem:[#allocation3 + $0x3c] sm:$0xf] %vm1280_vm9, %v1215_v41  ;;  %v1910_v35 = vrot.slane %v1908_v20, 4  ;;  %v1680_v41 = vld [vmem:[#allocation2 + $0xac] sm:$0xf] }
  0xc0   : > { %1723 = vrot.lane.b32.xlu1 %v1656_v36, %s8863_s26  ;;  %v1921_v36 = vrot.slane %v1919_v23, 4 }
  0xc2   : > { %v1217_v44 = vpop.permute.xlu0 %1216 }
  0xc3   : > { %1725 = vrot.lane.b32.xlu0 %v1657_v40, %s8863_s26  ;;  %1297 = vst.msk [vmem:[#allocation3 + $0x40] sm:$0xf] %vm1280_vm9, %v1217_v44  ;;  %v1219_v46 = vpop.permute.xlu1 %1218  ;;  %v1932_v40 = vshrl.u32 %v1850_v1, 16  ;;  %v1946_v44 = vshll.u32 %v1852_v22, 16 }
  0xc4   : > { %1727 = vrot.lane.b32.xlu1 %v1658_v42, %s8863_s26  ;;  %1298 = vst.msk [vmem:[#allocation3 + $0x44] sm:$0xf] %vm1280_vm9, %v1219_v46  ;;  %v1943_v42 = vshrl.u32 %v1852_v22, 16  ;;  %v1956_v46 = vshrl.u32 %v1853_v38, 16 }
  0xc6   : > { %v1221_v48 = vpop.permute.xlu0 %1220 }
  0xc7   : > { %1729 = vrot.lane.b32.xlu0 %v1659_v45, %s8863_s26  ;;  %1299 = vst.msk [vmem:[#allocation3 + $0x48] sm:$0xf] %vm1280_vm9, %v1221_v48  ;;  %v1223_v50 = vpop.permute.xlu1 %1222  ;;  %v1952_v45 = vshll.u32 %v1853_v38, 16  ;;  %v1914_v48 = vshll.u32 %v1848_v30, 16 }
  0xc8   : > { %1731 = vrot.lane.b32.xlu1 %v1660_v47, %s8863_s26  ;;  %1300 = vst.msk [vmem:[#allocation3 + $0x4c] sm:$0xf] %vm1280_vm9, %v1223_v50  ;;  %v9384_v50 = vrot.slane %v1901_v28, 4 }
  0xca   : > { %v1225_v52 = vpop.permute.xlu0 %1224  ;;  %v1907_v9 = vsel %vm8936_vm5, %v9384_v50, %v9378_v29 }
  0xcb   : > { %1733 = vrot.lane.b32.xlu0 %v1661_v49, %s8863_s26  ;;  %1301 = vst.msk [vmem:[#allocation3 + $0x50] sm:$0xf] %vm1280_vm9, %v1225_v52  ;;  %v1227_v16 = vpop.permute.xlu1 %1226  ;;  %v1681_v49 = vld [vmem:[#allocation2 + $0xb4] sm:$0xf] }
  0xcc   : > { %1735 = vrot.lane.b32.xlu1 %v1662_v51, %s8863_s26  ;;  %1302 = vst.msk [vmem:[#allocation3 + $0x54] sm:$0xf] %vm1280_vm9, %v1227_v16  ;;  %v1855_v51 = vld [vmem:[#allocation2 + $0x30] sm:$0xf]  ;;  %v1911_v16 = vor.u32 %v1910_v35, %v9378_v29 }
  0xce   : > { %v1912_v10 = vrot.slane %v1911_v16, 4 }
  0xcf   : > { %1737 = vrot.lane.b32.xlu0 %v1663_v53, %s8863_s26  ;;  %v1682_v53 = vld [vmem:[#allocation2 + $0xb8] sm:$0xf] }
  0xd0   : > { %1739 = vrot.lane.b32.xlu1 %v1664_v54, %s8863_s26  ;;  %v1925_v54 = vor.u32 %v1924_v39, %v1921_v36 }
  0xd2   : > { %v1926_v37 = vrot.slane %v1925_v54, 4 }
  0xd3   : > { %1741 = vrot.lane.b32.xlu0 %v1665_v32, %s8863_s26  ;;  %v9388_v32 = vrot.slane %v1928_v31, 5  ;;  %v2015_v31 = vshrl.u32 %v1861_v18, 16 }
  0xd4   : > { %1743 = vrot.lane.b32.xlu1 %v1666_v55, %s8863_s26  ;;  %v1934_v55 = vrot.slane %v1932_v40, 4 }
  0xd5   : > { %v1931_v36 = vsel %vm8936_vm5, %v1926_v37, %v9388_v32  ;;  %v2017_v54 = vrot.slane %v2015_v31, 4  ;;  %v1863_v37 = vld [vmem:[#allocation2 + $0x50] sm:$0x1] }
  0xd7   : > { %1745 = vrot.lane.b32.xlu0 %v1667_v56, %s8863_s26  ;;  %v1229_v58 = vpop.permute.xlu0 %1228  ;;  %v1856_v56 = vld [vmem:[#allocation2 + $0x34] sm:$0xf] }
  0xd8   : > { %1747 = vrot.lane.b32.xlu1 %v1668_v57, %s8863_s26  ;;  %1303 = vst.msk [vmem:[#allocation3 + $0x58] sm:$0xf] %vm1280_vm9, %v1229_v58  ;;  %v1231_v60 = vpop.permute.xlu1 %1230  ;;  %v1851_v57 = vld [vmem:[#allocation2 + $0x20] sm:$0x1]  ;;  %v1945_v58 = vrot.slane %v1943_v42, 4  ;;  %v1976_v5 = vshll.u32 %v1856_v56, 16 }
  0xd9   : > { %1304 = vst.msk [vmem:[#allocation3 + $0x5c] sm:$0xf] %vm1280_vm9, %v1231_v60  ;;  %v9391_v60 = vrot.slane %v1952_v45, 5  ;;  %v1938_v12 = vshll.u32 %v1851_v57, 16  ;;  %v1865_v57 = vld [vmem:[#allocation2 + $0x58] sm:$0xf] }
  0xdb   : > { %1749 = vrot.lane.b32.xlu0 %v1669_v59, %s8863_s26  ;;  %v1948_v59 = vrot.slane %v1946_v44, 5  ;;  %v1940_v30 = vrot.slane %v1938_v12, 5 }
  0xdc   : > { %1751 = vrot.lane.b32.xlu1 %v1670_v61, %s8863_s26  ;;  %v1958_v61 = vrot.slane %v1956_v46, 4 }
  0xdd   : > { %v1233_v63 = vpop.permute.xlu0 %1232  ;;  %v1235_v0 = vpop.permute.xlu1 %1234 }
  0xde   : > { %1305 = vst.msk [vmem:[#allocation3 + $0x60] sm:$0xf] %vm1280_vm9, %v1233_v63  ;;  %1306 = vst.msk [vmem:[#allocation3 + $0x64] sm:$0xf] %vm1280_vm9, %v1235_v0  ;;  %v1916_v63 = vrot.slane %v1914_v48, 5  ;;  %v1959_v15 = vor.u32 %v1958_v61, %v9391_v60 }
  0xdf   : > { %1753 = vrot.lane.b32.xlu0 %v1671_v62, %s8863_s26  ;;  %v1854_v0 = vld [vmem:[#allocation2 + $0x2c] sm:$0x1]  ;;  %v1864_v48 = vld [vmem:[#allocation2 + $0x54] sm:$0xf] }
  0xe0   : > { %1755 = vrot.lane.b32.xlu1 %v1672_v2, %s8863_s26  ;;  %v1967_v2 = vshrl.u32 %v1855_v51, 16  ;;  %v1962_v17 = vshll.u32 %v1854_v0, 16  ;;  %v1917_v35 = vsel %vm8936_vm5, %v1912_v10, %v1916_v63  ;;  %v2039_v61 = vshrl.u32 %v1864_v48, 16 }
  0xe1   : > { %v1237_v4 = vpop.permute.xlu0 %1236  ;;  %v1239_v6 = vpop.permute.xlu1 %1238 }
  0xe2   : > { %1307 = vst.msk [vmem:[#allocation3 + $0x68] sm:$0xf] %vm1280_vm9, %v1237_v4  ;;  %1308 = vst.msk [vmem:[#allocation3 + $0x6c] sm:$0xf] %vm1280_vm9, %v1239_v6  ;;  %v1683_v4 = vld [vmem:[#allocation2 + $0xc0] sm:$0xf] }
  0xe3   : > { %1757 = vrot.lane.b32.xlu0 %v1673_v3, %s8863_s26  ;;  %v1970_v3 = vshll.u32 %v1855_v51, 16  ;;  %v1980_v6 = vshrl.u32 %v1856_v56, 16  ;;  %v1969_v20 = vrot.slane %v1967_v2, 4  ;;  %v9414_v40 = vrot.slane %v1962_v17, 5 }
  0xe4   : > { %1759 = vrot.lane.b32.xlu1 %v1674_v7, %s8863_s26  ;;  %v1858_v7 = vld [vmem:[#allocation2 + $0x3c] sm:$0xf] }
  0xe5   : > { %v1241_v11 = vpop.permute.xlu0 %1240  ;;  %v1972_v1 = vrot.slane %v1970_v3, 5  ;;  %v1991_v23 = vshrl.u32 %v1858_v7, 16  ;;  %v1994_v24 = vshll.u32 %v1858_v7, 16  ;;  %v1982_v22 = vrot.slane %v1980_v6, 4 }
  0xe6   : > { %1309 = vst.msk [vmem:[#allocation3 + $0x70] sm:$0xf] %vm1280_vm9, %v1241_v11  ;;  %v1243_v13 = vpop.permute.xlu1 %1242  ;;  %v1935_v11 = vor.u32 %v1934_v55, %v9388_v32 }
  0xe7   : > { %1310 = vst.msk [vmem:[#allocation3 + $0x74] sm:$0xf] %vm1280_vm9, %v1243_v13  ;;  %1761 = vrot.lane.b32.xlu0 %v1675_v8, %s8863_s26  ;;  %v1859_v13 = vld [vmem:[#allocation2 + $0x40] sm:$0xf]  ;;  %v1973_v44 = vor.u32 %v1972_v1, %v1969_v20  ;;  %v1993_v46 = vrot.slane %v1991_v23, 4 }
  0xe8   : > { %1763 = vrot.lane.b32.xlu1 %v1676_v21, %s8863_s26  ;;  %v1684_v21 = vld [vmem:[#allocation2 + $0xc4] sm:$0xf]  ;;  %v2000_v38 = vshll.u32 %v1859_v13, 16  ;;  %v1936_v29 = vrot.slane %v1935_v11, 4 }
  0xe9   : > { %v1245_v19 = vpop.permute.xlu0 %1244  ;;  %v1974_v0 = vrot.slane %v1973_v44, 4 }
  0xea   : > { %1311 = vst.msk [vmem:[#allocation3 + $0x78] sm:$0xf] %vm1280_vm9, %v1245_v19  ;;  %v1247_v26 = vpop.permute.xlu1 %1246  ;;  %v9419_v51 = vrot.slane %v2000_v38, 5 }
  0xeb   : > { %1765 = vrot.lane.b32.xlu0 %v1677_v14, %s8863_s26  ;;  %1312 = vst.msk [vmem:[#allocation3 + $0x7c] sm:$0xf] %vm1280_vm9, %v1247_v26  ;;  %v1949_v14 = vor.u32 %v1948_v59, %v1945_v58  ;;  %v1857_v26 = vld [vmem:[#allocation2 + $0x38] sm:$0x1]  ;;  %v1941_v58 = vsel %vm8936_vm5, %v1936_v29, %v1940_v30 }
  0xec   : > { %1767 = vrot.lane.b32.xlu1 %v1678_v25, %s8863_s26  ;;  %v9405_v25 = vrot.slane %v1976_v5, 5  ;;  %v1986_v45 = vshll.u32 %v1857_v26, 16  ;;  %v1867_v5 = vld [vmem:[#allocation2 + $0x60] sm:$0xf] }
  0xed   : > { %v1525_v33 = vpop.permute.xlu0 %1524  ;;  %v1950_v39 = vrot.slane %v1949_v14, 4  ;;  %v2041_v14 = vrot.slane %v2039_v61, 4  ;;  %v2063_v17 = vshrl.u32 %v1867_v5, 16  ;;  %v1874_v61 = vld [vmem:[#allocation2 + $0x7c] sm:$0xf] }
  0xee   : > { %1621 = vst.msk [vmem:[#allocation3] sm:$0xf] %vm1620_vm10, %v1525_v33  ;;  %v1527_v47 = vpop.permute.xlu1 %1526  ;;  %v2018_v33 = vshll.u32 %v1861_v18, 16  ;;  %v1983_v50 = vor.u32 %v1982_v22, %v9405_v25  ;;  %v1988_v2 = vrot.slane %v1986_v45, 5  ;;  %v2066_v18 = vshll.u32 %v1867_v5, 16 }
  0xef   : > { %1769 = vrot.lane.b32.xlu0 %v1679_v27, %s8863_s26  ;;  %1622 = vst.msk [vmem:[#allocation3 + $0x4] sm:$0xf] %vm1620_vm10, %v1527_v47  ;;  %v2004_v27 = vshrl.u32 %v1859_v13, 16  ;;  %v1996_v47 = vrot.slane %v1994_v24, 5  ;;  %v1955_v59 = vsel %vm8936_vm5, %v1950_v39, %v9391_v60  ;;  %v1979_v20 = vsel %vm8936_vm5, %v1974_v0, %v9405_v25  ;;  %v1866_v25 = vld [vmem:[#allocation2 + $0x5c] sm:$0x1] }
  0xf0   : > { %1771 = vrot.lane.b32.xlu1 %v1680_v41, %s8863_s26  ;;  %v1862_v41 = vld [vmem:[#allocation2 + $0x4c] sm:$0xf]  ;;  %v2020_v32 = vrot.slane %v2018_v33, 5  ;;  %v1984_v7 = vrot.slane %v1983_v50, 4  ;;  %v2034_v33 = vshll.u32 %v1863_v37, 16  ;;  %v2065_v39 = vrot.slane %v2063_v17, 4 }
  0xf1   : > { %v1529_v52 = vpop.permute.xlu0 %1528  ;;  %v2024_v55 = vshll.u32 %v1862_v41, 16  ;;  %v2028_v56 = vshrl.u32 %v1862_v41, 16  ;;  %v1997_v3 = vor.u32 %v1996_v47, %v1993_v46  ;;  %v1871_v41 = vld [vmem:[#allocation2 + $0x70] sm:$0xf] }
  0xf2   : > { %1623 = vst.msk [vmem:[#allocation3 + $0x8] sm:$0xf] %vm1620_vm10, %v1529_v52  ;;  %v1531_v62 = vpop.permute.xlu1 %1530  ;;  %v1860_v52 = vld [vmem:[#allocation2 + $0x44] sm:$0x1]  ;;  %v2021_v11 = vor.u32 %v2020_v32, %v2017_v54  ;;  %v1989_v29 = vsel %vm8936_vm5, %v1984_v7, %v1988_v2  ;;  %v2036_v54 = vrot.slane %v2034_v33, 5 }
  0xf3   : > { %1773 = vrot.lane.b32.xlu0 %v1681_v49, %s8863_s26  ;;  %1624 = vst.msk [vmem:[#allocation3 + $0xc] sm:$0xf] %vm1620_vm10, %v1531_v62  ;;  %v1960_v49 = vrot.slane %v1959_v15, 4  ;;  %v2042_v62 = vshll.u32 %v1864_v48, 16  ;;  %v9435_v12 = vrot.slane %v2024_v55, 5  ;;  %v2030_v13 = vrot.slane %v2028_v56, 4 }
  0xf4   : > { %1775 = vrot.lane.b32.xlu1 %v1682_v53, %s8863_s26  ;;  %v2006_v53 = vrot.slane %v2004_v27, 4  ;;  %v1998_v1 = vrot.slane %v1997_v3, 4  ;;  %v1870_v27 = vld [vmem:[#allocation2 + $0x6c] sm:$0xf]  ;;  %v2022_v31 = vrot.slane %v2021_v11, 4  ;;  %v2058_v48 = vshll.u32 %v1866_v25, 16 }
  0xf5   : > { %v1533_v8 = vpop.permute.xlu0 %1532  ;;  %v1965_v6 = vsel %vm8936_vm5, %v1960_v49, %v9414_v40  ;;  %v2044_v15 = vrot.slane %v2042_v62, 5  ;;  %v2068_v40 = vrot.slane %v2066_v18, 5  ;;  %v2087_v45 = vshrl.u32 %v1870_v27, 16  ;;  %v1869_v32 = vld [vmem:[#allocation2 + $0x68] sm:$0x1] }
  0xf6   : > { %1625 = vst.msk [vmem:[#allocation3 + $0x10] sm:$0xf] %vm1620_vm10, %v1533_v8  ;;  %v1535_v19 = vpop.permute.xlu1 %1534  ;;  %v2048_v8 = vshll.u32 %v1865_v57, 16  ;;  %v2007_v10 = vor.u32 %v2006_v53, %v9419_v51  ;;  %v2003_v44 = vsel %vm8936_vm5, %v1998_v1, %v9419_v51  ;;  %v2090_v46 = vshll.u32 %v1870_v27, 16  ;;  %v1880_v33 = vld [vmem:[#allocation2 + $0x94] sm:$0xf] }
  0xf7   : > { %1777 = vrot.lane.b32.xlu0 %v1683_v4, %s8863_s26  ;;  %1626 = vst.msk [vmem:[#allocation3 + $0x14] sm:$0xf] %vm1620_vm10, %v1535_v19  ;;  %v2010_v4 = vshll.u32 %v1860_v52, 16  ;;  %v1873_v52 = vld [vmem:[#allocation2 + $0x78] sm:$0xf]  ;;  %v2096_v51 = vshll.u32 %v1871_v41, 16  ;;  %v2027_v56 = vsel %vm8936_vm5, %v2022_v31, %v9435_v12 }
  0xf8   : > { %1779 = vrot.lane.b32.xlu1 %v1684_v21, %s8863_s26  ;;  %v1868_v21 = vld [vmem:[#allocation2 + $0x64] sm:$0xf]  ;;  %v9443_v24 = vrot.slane %v2048_v8, 5  ;;  %v2008_v30 = vrot.slane %v2007_v10, 4  ;;  %v2100_v55 = vshrl.u32 %v1871_v41, 16  ;;  %v2092_v0 = vrot.slane %v2090_v46, 5 }
  0xf9   : > { %v1537_v28 = vpop.permute.xlu0 %1536  ;;  %v2012_v23 = vrot.slane %v2010_v4, 5  ;;  %v2072_v22 = vshll.u32 %v1868_v21, 16  ;;  %v2076_v38 = vshrl.u32 %v1868_v21, 16  ;;  %v2111_v2 = vshrl.u32 %v1873_v52, 16  ;;  %v1872_v8 = vld [vmem:[#allocation2 + $0x74] sm:$0x1] }
  0xfa   : > { %1627 = vst.msk [vmem:[#allocation3 + $0x18] sm:$0xf] %vm1620_vm10, %v1537_v28  ;;  %v1539_v42 = vpop.permute.xlu1 %1538  ;;  %v2114_v3 = vshll.u32 %v1873_v52, 16  ;;  %v2060_v5 = vrot.slane %v2058_v48, 5  ;;  %v2082_v7 = vshll.u32 %v1869_v32, 16  ;;  %v2102_v10 = vrot.slane %v2100_v55, 4 }
  0xfb   : > { %2278 = vrot.lane.b32.xlu0 %v1907_v9, %s8864_s27  ;;  %1628 = vst.msk [vmem:[#allocation3 + $0x1c] sm:$0xf] %vm1620_vm10, %v1539_v42  ;;  %v2052_v9 = vshrl.u32 %v1865_v57, 16  ;;  %v9456_v49 = vrot.slane %v2072_v22, 5  ;;  %v2078_v50 = vrot.slane %v2076_v38, 4  ;;  %v2120_v11 = vshll.u32 %v1874_v61, 16 }
  0xfc   : > { %2280 = vrot.lane.b32.xlu1 %v1917_v35, %s8864_s27  ;;  %v2031_v35 = vor.u32 %v2030_v13, %v9435_v12  ;;  %v2124_v12 = vshrl.u32 %v1874_v61, 16  ;;  %v1876_v13 = vld [vmem:[#allocation2 + $0x84] sm:$0xf]  ;;  %v2116_v1 = vrot.slane %v2114_v3, 5  ;;  %v2084_v22 = vrot.slane %v2082_v7, 5 }
  0xfd   : > { %v1541_v16 = vpop.permute.xlu0 %1540  ;;  %v2054_v26 = vrot.slane %v2052_v9, 4  ;;  %v2135_v38 = vshrl.u32 %v1876_v13, 16  ;;  %v2138_v27 = vshll.u32 %v1876_v13, 16  ;;  %v1875_v25 = vld [vmem:[#allocation2 + $0x80] sm:$0x1]  ;;  %v2172_v52 = vshrl.u32 %v1880_v33, 16 }
  0xfe   : > { %1629 = vst.msk [vmem:[#allocation3 + $0x20] sm:$0xf] %vm1620_vm10, %v1541_v16  ;;  %v1543_v63 = vpop.permute.xlu1 %1542  ;;  %v2013_v16 = vsel %vm8936_vm5, %v2008_v30, %v2012_v23  ;;  %v2032_v57 = vrot.slane %v2031_v35, 4  ;;  %v1879_v23 = vld [vmem:[#allocation2 + $0x90] sm:$0xf]  ;;  %v9483_v30 = vrot.slane %v2120_v11, 5 }
  0xff   : > { %2282 = vrot.lane.b32.xlu0 %v1931_v36, %s8864_s27  ;;  %1630 = vst.msk [vmem:[#allocation3 + $0x24] sm:$0xf] %vm1620_vm10, %v1543_v63  ;;  %v2045_v36 = vor.u32 %v2044_v15, %v2041_v14  ;;  %v2055_v47 = vor.u32 %v2054_v26, %v9443_v24  ;;  %v2089_v63 = vrot.slane %v2087_v45, 4  ;;  %v1877_v15 = vld [vmem:[#allocation2 + $0x88] sm:$0xf]  ;;  %v2126_v31 = vrot.slane %v2124_v12, 4 }
 0x100   : > { %2284 = vrot.lane.b32.xlu1 %v1941_v58, %s8864_s27  ;;  %v2037_v21 = vsel %vm8936_vm5, %v2032_v57, %v2036_v54  ;;  %v2144_v35 = vshll.u32 %v1877_v15, 16  ;;  %v2140_v48 = vrot.slane %v2138_v27, 5  ;;  %v1885_v7 = vld [vmem:[#allocation2 + $0xa8] sm:$0xf]  ;;  %v1881_v11 = vld [vmem:[#allocation2 + $0x98] sm:$0x1] }
 0x101   : > { %v1545_v60 = vpop.permute.xlu0 %1544  ;;  %v2046_v58 = vrot.slane %v2045_v36, 4  ;;  %v2056_v4 = vrot.slane %v2055_v47, 4  ;;  %v2093_v18 = vor.u32 %v2092_v0, %v2089_v63  ;;  %v2148_v36 = vshrl.u32 %v1877_v15, 16  ;;  %v1878_v63 = vld [vmem:[#allocation2 + $0x8c] sm:$0x1] }
 0x102   : > { %1631 = vst.msk [vmem:[#allocation3 + $0x28] sm:$0xf] %vm1620_vm10, %v1545_v60  ;;  %v1547_v19 = vpop.permute.xlu1 %1546  ;;  %v9469_v60 = vrot.slane %v2096_v51, 5  ;;  %v2137_v47 = vrot.slane %v2135_v38, 4  ;;  %v2127_v51 = vor.u32 %v2126_v31, %v9483_v30  ;;  %v9496_v55 = vrot.slane %v2144_v35, 5 }
 0x103   : > { %2286 = vrot.lane.b32.xlu0 %v1955_v59, %s8864_s27  ;;  %1632 = vst.msk [vmem:[#allocation3 + $0x2c] sm:$0xf] %vm1620_vm10, %v1547_v19  ;;  %v2069_v59 = vor.u32 %v2068_v40, %v2065_v39  ;;  %v2051_v37 = vsel %vm8936_vm5, %v2046_v58, %v9443_v24  ;;  %v2106_v19 = vshll.u32 %v1872_v8, 16  ;;  %v2061_v26 = vsel %vm8936_vm5, %v2056_v4, %v2060_v5  ;;  %v1886_v15 = vld [vmem:[#allocation2 + $0xac] sm:$0xf] }
 0x104   : > { %2288 = vrot.lane.b32.xlu1 %v1965_v6, %s8864_s27  ;;  %v2079_v6 = vor.u32 %v2078_v50, %v9456_v49  ;;  %v2159_v39 = vshrl.u32 %v1879_v23, 16  ;;  %v2162_v40 = vshll.u32 %v1879_v23, 16  ;;  %v2168_v50 = vshll.u32 %v1880_v33, 16  ;;  %v1884_v27 = vld [vmem:[#allocation2 + $0xa4] sm:$0x1] }
 0x105   : > { %v1549_v28 = vpop.permute.xlu0 %1548  ;;  %v2070_v14 = vrot.slane %v2069_v59, 4  ;;  %v2108_v45 = vrot.slane %v2106_v19, 5  ;;  %v1883_v59 = vld [vmem:[#allocation2 + $0xa0] sm:$0xf]  ;;  %v2141_v4 = vor.u32 %v2140_v48, %v2137_v47  ;;  %v2128_v13 = vrot.slane %v2127_v51, 4 }
 0x106   : > { %1633 = vst.msk [vmem:[#allocation3 + $0x30] sm:$0xf] %vm1620_vm10, %v1549_v28  ;;  %v1551_v42 = vpop.permute.xlu1 %1550  ;;  %v2080_v28 = vrot.slane %v2079_v6, 4  ;;  %v2161_v57 = vrot.slane %v2159_v39, 4  ;;  %v2164_v58 = vrot.slane %v2162_v40, 5  ;;  %v9503_v5 = vrot.slane %v2168_v50, 5 }
 0x107   : > { %2290 = vrot.lane.b32.xlu0 %v1979_v20, %s8864_s27  ;;  %1634 = vst.msk [vmem:[#allocation3 + $0x34] sm:$0xf] %vm1620_vm10, %v1551_v42  ;;  %v2113_v20 = vrot.slane %v2111_v2, 4  ;;  %v2075_v42 = vsel %vm8936_vm5, %v2070_v14, %v9456_v49  ;;  %v2130_v49 = vshll.u32 %v1875_v25, 16  ;;  %v2174_v6 = vrot.slane %v2172_v52, 4 }
 0x108   : > { %2292 = vrot.lane.b32.xlu1 %v1989_v29, %s8864_s27  ;;  %v2103_v29 = vor.u32 %v2102_v10, %v9469_v60  ;;  %v2085_v54 = vsel %vm8936_vm5, %v2080_v28, %v2084_v22  ;;  %v2196_v12 = vshrl.u32 %v1883_v59, 16  ;;  %v2165_v14 = vor.u32 %v2164_v58, %v2161_v57  ;;  %v1888_v25 = vld [vmem:[#allocation2 + $0xb4] sm:$0xf]  ;;  %v1887_v57 = vld [vmem:[#allocation2 + $0xb0] sm:$0x1] }
 0x109   : > { %v1553_v53 = vpop.permute.xlu0 %1552  ;;  %v2117_v46 = vor.u32 %v2116_v1, %v2113_v20  ;;  %v2132_v10 = vrot.slane %v2130_v49, 5  ;;  %v2207_v20 = vshrl.u32 %v1885_v7, 16  ;;  %v2210_v1 = vshll.u32 %v1885_v7, 16  ;;  %v1891_v49 = vld [vmem:[#allocation2 + $0xc0] sm:$0xf] }
 0x10a   : > { %1635 = vst.msk [vmem:[#allocation3 + $0x38] sm:$0xf] %vm1620_vm10, %v1553_v53  ;;  %v1555_v62 = vpop.permute.xlu1 %1554  ;;  %v1882_v53 = vld [vmem:[#allocation2 + $0x9c] sm:$0xf]  ;;  %v2104_v32 = vrot.slane %v2103_v29, 4  ;;  %v2175_v22 = vor.u32 %v2174_v6, %v9503_v5  ;;  %v2178_v38 = vshll.u32 %v1881_v11, 16 }
 0x10b   : > { %2294 = vrot.lane.b32.xlu0 %v2003_v44, %s8864_s27  ;;  %1636 = vst.msk [vmem:[#allocation3 + $0x3c] sm:$0xf] %vm1620_vm10, %v1555_v62  ;;  %v2094_v44 = vrot.slane %v2093_v18, 4  ;;  %v2183_v0 = vshrl.u32 %v1882_v53, 16  ;;  %v2186_v2 = vshll.u32 %v1882_v53, 16  ;;  %v2118_v3 = vrot.slane %v2117_v46, 4 }
 0x10c   : > { %2296 = vrot.lane.b32.xlu1 %v2013_v16, %s8864_s27  ;;  %v2198_v29 = vrot.slane %v2196_v12, 4  ;;  %v2216_v31 = vshll.u32 %v1886_v15, 16  ;;  %v2220_v33 = vshrl.u32 %v1886_v15, 16  ;;  %v2133_v35 = vsel %vm8936_vm5, %v2128_v13, %v2132_v10  ;;  %v1889_v46 = vld [vmem:[#allocation2 + $0xb8] sm:$0xf] }
 0x10d   : > { %v1557_v9 = vpop.permute.xlu0 %1556  ;;  %v2099_v62 = vsel %vm8936_vm5, %v2094_v44, %v9469_v60  ;;  %v2192_v60 = vshll.u32 %v1883_v59, 16  ;;  %v2185_v18 = vrot.slane %v2183_v0, 4  ;;  %v2188_v19 = vrot.slane %v2186_v2, 5  ;;  %v1892_v2 = vld [vmem:[#allocation2 + $0xc4] sm:$0xf] }
 0x10e   : > { %1637 = vst.msk [vmem:[#allocation3 + $0x40] sm:$0xf] %vm1620_vm10, %v1557_v9  ;;  %v1559_v17 = vpop.permute.xlu1 %1558  ;;  %v2109_v9 = vsel %vm8936_vm5, %v2104_v32, %v2108_v45  ;;  %v2123_v23 = vsel %vm8936_vm5, %v2118_v3, %v9483_v30  ;;  %v2166_v39 = vrot.slane %v2165_v14, 4  ;;  %v2209_v44 = vrot.slane %v2207_v20, 4  ;;  %v1890_v12 = vld [vmem:[#allocation2 + $0xbc] sm:$0x1] }
 0x10f   : > { %2298 = vrot.lane.b32.xlu0 %v2027_v56, %s8864_s27  ;;  %1638 = vst.msk [vmem:[#allocation3 + $0x44] sm:$0xf] %vm1620_vm10, %v1559_v17  ;;  %v2150_v56 = vrot.slane %v2148_v36, 4  ;;  %v9517_v28 = vrot.slane %v2192_v60, 5  ;;  %v2212_v45 = vrot.slane %v2210_v1, 5  ;;  %v2180_v48 = vrot.slane %v2178_v38, 5 }
 0x110   : > { %2300 = vrot.lane.b32.xlu1 %v2037_v21, %s8864_s27  ;;  %v2231_v50 = vshrl.u32 %v1888_v25, 16  ;;  %v2234_v52 = vshll.u32 %v1888_v25, 16  ;;  %v9529_v32 = vrot.slane %v2216_v31, 5  ;;  %v2222_v51 = vrot.slane %v2220_v33, 4  ;;  %v1893_v31 = vld [vmem:[#allocation2 + $0xc8] sm:$0x1] }
 0x111   : > { %v1561_v24 = vpop.permute.xlu0 %1560  ;;  %v2151_v21 = vor.u32 %v2150_v56, %v9496_v55  ;;  %v2244_v58 = vshrl.u32 %v1889_v46, 16  ;;  %v2213_v0 = vor.u32 %v2212_v45, %v2209_v44  ;;  %v2255_v6 = vshrl.u32 %v1891_v49, 16  ;;  %v2408_v45 = vld [vmem:[#allocation2 + $0x10] sm:$0xf] }
 0x112   : > { %1639 = vst.msk [vmem:[#allocation3 + $0x48] sm:$0xf] %vm1620_vm10, %v1561_v24  ;;  %v1563_v41 = vpop.permute.xlu1 %1562  ;;  %v2233_v3 = vrot.slane %v2231_v50, 4  ;;  %v2258_v7 = vshll.u32 %v1891_v49, 16  ;;  %v2223_v11 = vor.u32 %v2222_v51, %v9529_v32  ;;  %v2407_v50 = vld [vmem:[#allocation2 + $0xc] sm:$0xe] }
 0x113   : > { %2302 = vrot.lane.b32.xlu0 %v2051_v37, %s8864_s27  ;;  %1640 = vst.msk [vmem:[#allocation3 + $0x4c] sm:$0xf] %vm1620_vm10, %v1563_v41  ;;  %v2154_v37 = vshll.u32 %v1878_v63, 16  ;;  %v2152_v30 = vrot.slane %v2151_v21, 4  ;;  %v2189_v41 = vor.u32 %v2188_v19, %v2185_v18  ;;  %v2246_v13 = vrot.slane %v2244_v58, 4 }
 0x114   : > { %2304 = vrot.lane.b32.xlu1 %v2061_v26, %s8864_s27  ;;  %v2142_v26 = vrot.slane %v2141_v4, 4  ;;  %v2236_v4 = vrot.slane %v2234_v52, 5  ;;  %v2264_v21 = vshll.u32 %v1892_v2, 16  ;;  %v2257_v19 = vrot.slane %v2255_v6, 4  ;;  %v2409_v51 = vld [vmem:[#allocation2 + $0x14] sm:$0x1] }
 0x115   : > { %v1565_v16 = vpop.permute.xlu0 %1564  ;;  %v2156_v36 = vrot.slane %v2154_v37, 5  ;;  %v2268_v37 = vshrl.u32 %v1892_v2, 16  ;;  %v2260_v20 = vrot.slane %v2258_v7, 5  ;;  %v2224_v38 = vrot.slane %v2223_v11, 4  ;;  %v2411_v49 = vld [vmem:[#allocation2 + $0x1c] sm:$0xf] }
 0x116   : > { %1641 = vst.msk [vmem:[#allocation3 + $0x50] sm:$0xf] %vm1620_vm10, %v1565_v16  ;;  %v1567_v61 = vpop.permute.xlu1 %1566  ;;  %v2147_v47 = vsel %vm8936_vm5, %v2142_v26, %v9496_v55  ;;  %v2176_v16 = vrot.slane %v2175_v22, 4  ;;  %v2240_v55 = vshll.u32 %v1889_v46, 16  ;;  %v2237_v18 = vor.u32 %v2236_v4, %v2233_v3  ;;  %v2410_v58 = vld [vmem:[#allocation2 + $0x18] sm:$0xe] }
 0x117   : > { %2306 = vrot.lane.b32.xlu0 %v2075_v42, %s8864_s27  ;;  %1642 = vst.msk [vmem:[#allocation3 + $0x54] sm:$0xf] %vm1620_vm10, %v1567_v61  ;;  %v2202_v42 = vshll.u32 %v1884_v27, 16  ;;  %v2157_v56 = vsel %vm8936_vm5, %v2152_v30, %v2156_v36  ;;  %v2171_v61 = vsel %vm8936_vm5, %v2166_v39, %v9503_v5  ;;  %v2226_v5 = vshll.u32 %v1887_v57, 16  ;;  %v2412_v2 = vld [vmem:[#allocation2 + $0x20] sm:$0x1] }
 0x118   : > { %2308 = vrot.lane.b32.xlu1 %v2085_v54, %s8864_s27  ;;  %v2199_v54 = vor.u32 %v2198_v29, %v9517_v28  ;;  %v2242_v60 = vrot.slane %v2240_v55, 5  ;;  %v2250_v22 = vshll.u32 %v1890_v12, 16  ;;  %v2238_v25 = vrot.slane %v2237_v18, 4  ;;  %v2414_v3 = vld [vmem:[#allocation2 + $0x28] sm:$0xf] }
 0x119   : > { %v1569_v8 = vpop.permute.xlu0 %1568  ;;  %v2204_v63 = vrot.slane %v2202_v42, 5  ;;  %v2228_v26 = vrot.slane %v2226_v5, 5  ;;  %v2274_v42 = vshll.u32 %v1893_v31, 16  ;;  %v8349_v57 = vrot.slane %v2407_v50, 9  ;;  %v2415_v12 = vld [vmem:[#allocation2 + $0x2c] sm:$0x1] }
 0x11a   : > { %1643 = vst.msk [vmem:[#allocation3 + $0x58] sm:$0xf] %vm1620_vm10, %v1569_v8  ;;  %v1571_v17 = vpop.permute.xlu1 %1570  ;;  %v2200_v10 = vrot.slane %v2199_v54, 4  ;;  %v2247_v27 = vor.u32 %v2246_v13, %v2242_v60  ;;  %v2252_v36 = vrot.slane %v2250_v22, 5  ;;  %v2243_v46 = vsel %vm8936_vm5, %v2238_v25, %v2242_v60  ;;  %v2417_v13 = vld [vmem:[#allocation2 + $0x34] sm:$0xf] }
 0x11b   : > { %2310 = vrot.lane.b32.xlu0 %v2099_v62, %s8864_s27  ;;  %1644 = vst.msk [vmem:[#allocation3 + $0x5c] sm:$0xf] %vm1620_vm10, %v1571_v17  ;;  %v2190_v62 = vrot.slane %v2189_v41, 4  ;;  %v2214_v17 = vrot.slane %v2213_v0, 4  ;;  %v2229_v39 = vsel %vm8936_vm5, %v2224_v38, %v2228_v26  ;;  %v2505_v54 = vrot.slane %v2408_v45, 5 }
 0x11c   : > { %2312 = vrot.lane.b32.xlu1 %v2109_v9, %s8864_s27  ;;  %v2181_v9 = vsel %vm8936_vm5, %v2176_v16, %v2180_v48  ;;  %v2276_v16 = vrot.slane %v2274_v42, 5  ;;  %v8350_v6 = vrot.slane %v2410_v58, 9  ;;  %v2515_v11 = vrot.slane %v2412_v2, 5  ;;  %v2420_v26 = vld [vmem:[#allocation2 + $0x40] sm:$0xf] }
 0x11d   : > { %v1573_v24 = vpop.permute.xlu0 %1572  ;;  %v2195_v15 = vsel %vm8936_vm5, %v2190_v62, %v9517_v28  ;;  %v2270_v28 = vrot.slane %v2268_v37, 4  ;;  %v2219_v33 = vsel %vm8936_vm5, %v2214_v17, %v9529_v32  ;;  %v2508_v62 = vrot.slane %v2409_v51, 5  ;;  %v2426_v50 = vld [vmem:[#allocation2 + $0x58] sm:$0xf]  ;;  %v2429_v58 = vld [vmem:[#allocation2 + $0x64] sm:$0xf] }
 0x11e   : > { %1645 = vst.msk [vmem:[#allocation3 + $0x60] sm:$0xf] %vm1620_vm10, %v1573_v24  ;;  %v1575_v40 = vpop.permute.xlu1 %1574  ;;  %v2266_v24 = vrot.slane %v2264_v21, 5  ;;  %v2506_v4 = vsel %vm9195_vm8, %v8349_v57, %v2505_v54  ;;  %v2519_v5 = vrot.slane %v2414_v3, 5 }
 0x11f   : > { %2314 = vrot.lane.b32.xlu0 %v2123_v23, %s8864_s27  ;;  %1646 = vst.msk [vmem:[#allocation3 + $0x64] sm:$0xf] %vm1620_vm10, %v1575_v40  ;;  %v2205_v23 = vsel %vm8936_vm5, %v2200_v10, %v2204_v63  ;;  %v2248_v40 = vrot.slane %v2247_v27, 4  ;;  %v2512_v63 = vrot.slane %v2411_v49, 5 }
 0x120   : > { %2316 = vrot.lane.b32.xlu1 %v2133_v35, %s8864_s27  ;;  %v2261_v35 = vor.u32 %v2260_v20, %v2257_v19  ;;  %v2271_v41 = vor.u32 %v2270_v28, %v2266_v24  ;;  %v2521_v18 = vrot.slane %v2519_v5, 4  ;;  %v2522_v19 = vrot.slane %v2415_v12, 5 }
 0x121   : > { %v1577_v53 = vpop.permute.xlu0 %1576  ;;  %v2253_v52 = vsel %vm8936_vm5, %v2248_v40, %v2252_v36  ;;  %v2514_v10 = vrot.slane %v2512_v63, 4  ;;  %v2513_v21 = vsel %vm9195_vm8, %v8350_v6, %v2512_v63  ;;  %v2526_v20 = vrot.slane %v2417_v13, 5  ;;  %v2428_v63 = vld [vmem:[#allocation2 + $0x60] sm:$0xe] }
 0x122   : > { %1647 = vst.msk [vmem:[#allocation3 + $0x68] sm:$0xf] %vm1620_vm10, %v1577_v53  ;;  %v1579_v59 = vpop.permute.xlu1 %1578  ;;  %v2272_v53 = vrot.slane %v2271_v41, 4  ;;  %v2523_v28 = vsel %vm9195_vm8, %v2521_v18, %v2522_v19  ;;  %v2422_v41 = vld [vmem:[#allocation2 + $0x48] sm:$0xe] }
 0x123   : > { %2318 = vrot.lane.b32.xlu0 %v2147_v47, %s8864_s27  ;;  %1648 = vst.msk [vmem:[#allocation3 + $0x6c] sm:$0xf] %vm1620_vm10, %v1579_v59  ;;  %v2262_v47 = vrot.slane %v2261_v35, 4  ;;  %v2516_v17 = vsel %vm9195_vm8, %v2514_v10, %v2515_v11  ;;  %v2421_v35 = vld [vmem:[#allocation2 + $0x44] sm:$0x1]  ;;  %v8356_v10 = vrot.slane %v2428_v63, 9 }
 0x124   : > { %2320 = vrot.lane.b32.xlu1 %v2157_v56, %s8864_s27  ;;  %v2277_v59 = vsel %vm8936_vm5, %v2272_v53, %v2276_v16  ;;  %v2536_v45 = vrot.slane %v2421_v35, 5  ;;  %v8354_v53 = vrot.slane %v2422_v41, 9  ;;  %v2441_v41 = vld [vmem:[#allocation2 + $0x94] sm:$0xf]  ;;  %v2447_v63 = vld [vmem:[#allocation2 + $0xac] sm:$0xf] }
 0x125   : > { %v1581_v8 = vpop.permute.xlu0 %1580  ;;  %v2267_v56 = vsel %vm8936_vm5, %v2262_v47, %v2266_v24  ;;  %v2419_v24 = vld [vmem:[#allocation2 + $0x3c] sm:$0xe] }
 0x126   : > { %1649 = vst.msk [vmem:[#allocation3 + $0x70] sm:$0xf] %vm1620_vm10, %v1581_v8  ;;  %v1583_v14 = vpop.permute.xlu1 %1582  ;;  %v2413_v8 = vld [vmem:[#allocation2 + $0x24] sm:$0xe] }
 0x127   : > { %2322 = vrot.lane.b32.xlu0 %v2171_v61, %s8864_s27  ;;  %1650 = vst.msk [vmem:[#allocation3 + $0x74] sm:$0xf] %vm1620_vm10, %v1583_v14  ;;  %v2507_v61 = vrot.slane %v2505_v54, 4  ;;  %v8351_v37 = vrot.slane %v2413_v8, 9  ;;  %v2425_v54 = vld [vmem:[#allocation2 + $0x54] sm:$0xe] }
 0x128   : > { %2324 = vrot.lane.b32.xlu1 %v2181_v9, %s8864_s27  ;;  %v2432_v8 = vld [vmem:[#allocation2 + $0x70] sm:$0xf] }
 0x129   : > { %v1585_v1 = vpop.permute.xlu0 %1584  ;;  %v2509_v9 = vsel %vm9195_vm8, %v2507_v61, %v2508_v62  ;;  %v2520_v22 = vsel %vm9195_vm8, %v8351_v37, %v2519_v5  ;;  %v8355_v61 = vrot.slane %v2425_v54, 9  ;;  %v2431_v5 = vld [vmem:[#allocation2 + $0x6c] sm:$0xe]  ;;  %v2444_v54 = vld [vmem:[#allocation2 + $0xa0] sm:$0xf] }
 0x12a   : > { %1651 = vst.msk [vmem:[#allocation3 + $0x78] sm:$0xf] %vm1620_vm10, %v1585_v1  ;;  %v1587_v29 = vpop.permute.xlu1 %1586  ;;  %v8357_v18 = vrot.slane %v2431_v5, 9  ;;  %v2450_v5 = vld [vmem:[#allocation2 + $0xb8] sm:$0xf] }
 0x12b   : > { %2326 = vrot.lane.b32.xlu0 %v2195_v15, %s8864_s27  ;;  %1652 = vst.msk [vmem:[#allocation3 + $0x7c] sm:$0xf] %vm1620_vm10, %v1587_v29  ;;  %v2416_v15 = vld [vmem:[#allocation2 + $0x30] sm:$0xe]  ;;  %v2528_v29 = vrot.slane %v2526_v20, 4 }
 0x12c   : > { %2328 = vrot.lane.b32.xlu1 %v2205_v23, %s8864_s27  ;;  %v2418_v23 = vld [vmem:[#allocation2 + $0x38] sm:$0x1]  ;;  %v8352_v38 = vrot.slane %v2416_v15, 9  ;;  %v2435_v15 = vld [vmem:[#allocation2 + $0x7c] sm:$0xf] }
 0x12d   : > { %v1718_v30 = vpop.permute.xlu0 %1717  ;;  %v2529_v31 = vrot.slane %v2418_v23, 5 }
 0x12e   : > { %1814 = vst.msk [vmem:[#allocation3] sm:$0xf] %vm1813_vm11, %v1718_v30  ;;  %v1720_v44 = vpop.permute.xlu1 %1719  ;;  %v2423_v30 = vld [vmem:[#allocation2 + $0x4c] sm:$0xf]  ;;  %v2527_v36 = vsel %vm9195_vm8, %v8352_v38, %v2526_v20  ;;  %v2434_v20 = vld [vmem:[#allocation2 + $0x78] sm:$0xe] }
 0x12f   : > { %2330 = vrot.lane.b32.xlu0 %v2219_v33, %s8864_s27  ;;  %1815 = vst.msk [vmem:[#allocation3 + $0x4] sm:$0xf] %vm1813_vm11, %v1720_v44  ;;  %v2533_v33 = vrot.slane %v2420_v26, 5  ;;  %v2530_v42 = vsel %vm9195_vm8, %v2528_v29, %v2529_v31  ;;  %v8358_v29 = vrot.slane %v2434_v20, 9  ;;  %v2453_v20 = vld [vmem:[#allocation2 + $0xc4] sm:$0xf] }
 0x130   : > { %2332 = vrot.lane.b32.xlu1 %v2229_v39, %s8864_s27  ;;  %v8353_v39 = vrot.slane %v2419_v24, 9  ;;  %v2438_v24 = vld [vmem:[#allocation2 + $0x88] sm:$0xf] }
 0x131   : > { %v1722_v48 = vpop.permute.xlu0 %1721  ;;  %v2535_v44 = vrot.slane %v2533_v33, 4 }
 0x132   : > { %1816 = vst.msk [vmem:[#allocation3 + $0x8] sm:$0xf] %vm1813_vm11, %v1722_v48  ;;  %v1724_v32 = vpop.permute.xlu1 %1723  ;;  %v2424_v48 = vld [vmem:[#allocation2 + $0x50] sm:$0x1] }
 0x133   : > { %2334 = vrot.lane.b32.xlu0 %v2243_v46, %s8864_s27  ;;  %1817 = vst.msk [vmem:[#allocation3 + $0xc] sm:$0xf] %vm1813_vm11, %v1724_v32  ;;  %v2540_v46 = vrot.slane %v2423_v30, 5  ;;  %v2537_v32 = vsel %vm9195_vm8, %v2535_v44, %v2536_v45  ;;  %v2543_v49 = vrot.slane %v2424_v48, 5 }
 0x134   : > { %2336 = vrot.lane.b32.xlu1 %v2253_v52, %s8864_s27  ;;  %v2534_v52 = vsel %vm9195_vm8, %v8353_v39, %v2533_v33  ;;  %v2437_v33 = vld [vmem:[#allocation2 + $0x84] sm:$0xe] }
 0x135   : > { %v1726_v55 = vpop.permute.xlu0 %1725  ;;  %v2542_v51 = vrot.slane %v2540_v46, 4  ;;  %v8359_v44 = vrot.slane %v2437_v33, 9 }
 0x136   : > { %1818 = vst.msk [vmem:[#allocation3 + $0x10] sm:$0xf] %vm1813_vm11, %v1726_v55  ;;  %v1728_v0 = vpop.permute.xlu1 %1727  ;;  %v2427_v55 = vld [vmem:[#allocation2 + $0x5c] sm:$0x1] }
 0x137   : > { %2338 = vrot.lane.b32.xlu0 %v2267_v56, %s8864_s27  ;;  %1819 = vst.msk [vmem:[#allocation3 + $0x14] sm:$0xf] %vm1813_vm11, %v1728_v0  ;;  %v2547_v56 = vrot.slane %v2426_v50, 5  ;;  %v2544_v0 = vsel %vm9195_vm8, %v2542_v51, %v2543_v49  ;;  %v2550_v3 = vrot.slane %v2427_v55, 5 }
 0x138   : > { %2340 = vrot.lane.b32.xlu1 %v2277_v59, %s8864_s27  ;;  %v2541_v59 = vsel %vm9195_vm8, %v8354_v53, %v2540_v46  ;;  %v2440_v46 = vld [vmem:[#allocation2 + $0x90] sm:$0xe] }
 0x139   : > { %v1730_v7 = vpop.permute.xlu0 %1729  ;;  %v2549_v2 = vrot.slane %v2547_v56, 4  ;;  %v8360_v51 = vrot.slane %v2440_v46, 9  ;;  %v2745_v46 = vld [vmem:[#allocation2 + $0x18] sm:$0xf] }
 0x13a   : > { %1820 = vst.msk [vmem:[#allocation3 + $0x18] sm:$0xf] %vm1813_vm11, %v1730_v7  ;;  %v1732_v60 = vpop.permute.xlu1 %1731  ;;  %v2430_v7 = vld [vmem:[#allocation2 + $0x68] sm:$0x1] }
 0x13b   : > { %2615 = vrot.lane.b32.xlu0 %v2506_v4, %s8865_s28  ;;  %1821 = vst.msk [vmem:[#allocation3 + $0x1c] sm:$0xf] %vm1813_vm11, %v1732_v60  ;;  %v2554_v4 = vrot.slane %v2429_v58, 5  ;;  %v2551_v60 = vsel %vm9195_vm8, %v2549_v2, %v2550_v3  ;;  %v2557_v13 = vrot.slane %v2430_v7, 5 }
 0x13c   : > { %2617 = vrot.lane.b32.xlu1 %v2509_v9, %s8865_s28  ;;  %v2548_v9 = vsel %vm9195_vm8, %v8355_v61, %v2547_v56  ;;  %v2443_v56 = vld [vmem:[#allocation2 + $0x9c] sm:$0xe] }
 0x13d   : > { %v1734_v14 = vpop.permute.xlu0 %1733  ;;  %v2556_v12 = vrot.slane %v2554_v4, 4  ;;  %v8361_v2 = vrot.slane %v2443_v56, 9 }
 0x13e   : > { %1822 = vst.msk [vmem:[#allocation3 + $0x20] sm:$0xf] %vm1813_vm11, %v1734_v14  ;;  %v1736_v1 = vpop.permute.xlu1 %1735  ;;  %v2433_v14 = vld [vmem:[#allocation2 + $0x74] sm:$0x1] }
 0x13f   : > { %2619 = vrot.lane.b32.xlu0 %v2513_v21, %s8865_s28  ;;  %1823 = vst.msk [vmem:[#allocation3 + $0x24] sm:$0xf] %vm1813_vm11, %v1736_v1  ;;  %v2561_v21 = vrot.slane %v2432_v8, 5  ;;  %v2558_v1 = vsel %vm9195_vm8, %v2556_v12, %v2557_v13  ;;  %v2564_v26 = vrot.slane %v2433_v14, 5 }
 0x140   : > { %2621 = vrot.lane.b32.xlu1 %v2516_v17, %s8865_s28  ;;  %v2555_v17 = vsel %vm9195_vm8, %v8356_v10, %v2554_v4  ;;  %v2446_v4 = vld [vmem:[#allocation2 + $0xa8] sm:$0xe] }
 0x141   : > { %v1738_v27 = vpop.permute.xlu0 %1737  ;;  %v2563_v23 = vrot.slane %v2561_v21, 4  ;;  %v8362_v12 = vrot.slane %v2446_v4, 9  ;;  %v2756_v4 = vld [vmem:[#allocation2 + $0x58] sm:$0xf] }
 0x142   : > { %1824 = vst.msk [vmem:[#allocation3 + $0x28] sm:$0xf] %vm1813_vm11, %v1738_v27  ;;  %v1740_v25 = vpop.permute.xlu1 %1739  ;;  %v2436_v27 = vld [vmem:[#allocation2 + $0x80] sm:$0x1] }
 0x143   : > { %2623 = vrot.lane.b32.xlu0 %v2520_v22, %s8865_s28  ;;  %1825 = vst.msk [vmem:[#allocation3 + $0x2c] sm:$0xf] %vm1813_vm11, %v1740_v25  ;;  %v2568_v22 = vrot.slane %v2435_v15, 5  ;;  %v2565_v25 = vsel %vm9195_vm8, %v2563_v23, %v2564_v26  ;;  %v2571_v30 = vrot.slane %v2436_v27, 5 }
 0x144   : > { %2625 = vrot.lane.b32.xlu1 %v2523_v28, %s8865_s28  ;;  %v2562_v28 = vsel %vm9195_vm8, %v8357_v18, %v2561_v21  ;;  %v2449_v21 = vld [vmem:[#allocation2 + $0xb4] sm:$0xe] }
 0x145   : > { %v1742_v40 = vpop.permute.xlu0 %1741  ;;  %v2570_v35 = vrot.slane %v2568_v22, 4  ;;  %v8363_v23 = vrot.slane %v2449_v21, 9 }
 0x146   : > { %1826 = vst.msk [vmem:[#allocation3 + $0x30] sm:$0xf] %vm1813_vm11, %v1742_v40  ;;  %v1744_v47 = vpop.permute.xlu1 %1743  ;;  %v2439_v40 = vld [vmem:[#allocation2 + $0x8c] sm:$0x1] }
 0x147   : > { %2627 = vrot.lane.b32.xlu0 %v2527_v36, %s8865_s28  ;;  %1827 = vst.msk [vmem:[#allocation3 + $0x34] sm:$0xf] %vm1813_vm11, %v1744_v47  ;;  %v2575_v36 = vrot.slane %v2438_v24, 5  ;;  %v2572_v47 = vsel %vm9195_vm8, %v2570_v35, %v2571_v30  ;;  %v2578_v50 = vrot.slane %v2439_v40, 5 }
 0x148   : > { %2629 = vrot.lane.b32.xlu1 %v2530_v42, %s8865_s28  ;;  %v2569_v42 = vsel %vm9195_vm8, %v8358_v29, %v2568_v22  ;;  %v2452_v22 = vld [vmem:[#allocation2 + $0xc0] sm:$0xe] }
 0x149   : > { %v1746_v16 = vpop.permute.xlu0 %1745  ;;  %v2577_v48 = vrot.slane %v2575_v36, 4 }
 0x14a   : > { %1828 = vst.msk [vmem:[#allocation3 + $0x38] sm:$0xf] %vm1813_vm11, %v1746_v16  ;;  %v1748_v57 = vpop.permute.xlu1 %1747  ;;  %v2442_v16 = vld [vmem:[#allocation2 + $0x98] sm:$0x1] }
 0x14b   : > { %2631 = vrot.lane.b32.xlu0 %v2534_v52, %s8865_s28  ;;  %1829 = vst.msk [vmem:[#allocation3 + $0x3c] sm:$0xf] %vm1813_vm11, %v1748_v57  ;;  %v2582_v52 = vrot.slane %v2441_v41, 5  ;;  %v2579_v57 = vsel %vm9195_vm8, %v2577_v48, %v2578_v50  ;;  %v2585_v58 = vrot.slane %v2442_v16, 5  ;;  %v2746_v48 = vld [vmem:[#allocation2 + $0x1c] sm:$0xf] }
 0x14c   : > { %2633 = vrot.lane.b32.xlu1 %v2537_v32, %s8865_s28  ;;  %v2576_v32 = vsel %vm9195_vm8, %v8359_v44, %v2575_v36  ;;  %v2748_v16 = vld [vmem:[#allocation2 + $0x28] sm:$0xf] }
 0x14d   : > { %v1750_v62 = vpop.permute.xlu0 %1749  ;;  %v2584_v55 = vrot.slane %v2582_v52, 4 }
 0x14e   : > { %1830 = vst.msk [vmem:[#allocation3 + $0x40] sm:$0xf] %vm1813_vm11, %v1750_v62  ;;  %v1752_v6 = vpop.permute.xlu1 %1751  ;;  %v2445_v62 = vld [vmem:[#allocation2 + $0xa4] sm:$0x1] }
 0x14f   : > { %2635 = vrot.lane.b32.xlu0 %v2541_v59, %s8865_s28  ;;  %1831 = vst.msk [vmem:[#allocation3 + $0x44] sm:$0xf] %vm1813_vm11, %v1752_v6  ;;  %v2589_v59 = vrot.slane %v2444_v54, 5  ;;  %v2586_v6 = vsel %vm9195_vm8, %v2584_v55, %v2585_v58  ;;  %v2592_v8 = vrot.slane %v2445_v62, 5  ;;  %v2752_v58 = vld [vmem:[#allocation2 + $0x40] sm:$0xf] }
 0x150   : > { %2637 = vrot.lane.b32.xlu1 %v2544_v0, %s8865_s28  ;;  %v2583_v0 = vsel %vm9195_vm8, %v8360_v51, %v2582_v52  ;;  %v2747_v52 = vld [vmem:[#allocation2 + $0x24] sm:$0xf] }
 0x151   : > { %v1754_v11 = vpop.permute.xlu0 %1753  ;;  %v2591_v7 = vrot.slane %v2589_v59, 4 }
 0x152   : > { %1832 = vst.msk [vmem:[#allocation3 + $0x48] sm:$0xf] %vm1813_vm11, %v1754_v11  ;;  %v1756_v37 = vpop.permute.xlu1 %1755  ;;  %v2448_v11 = vld [vmem:[#allocation2 + $0xb0] sm:$0x1] }
 0x153   : > { %2639 = vrot.lane.b32.xlu0 %v2548_v9, %s8865_s28  ;;  %1833 = vst.msk [vmem:[#allocation3 + $0x4c] sm:$0xf] %vm1813_vm11, %v1756_v37  ;;  %v2596_v9 = vrot.slane %v2447_v63, 5  ;;  %v2593_v37 = vsel %vm9195_vm8, %v2591_v7, %v2592_v8  ;;  %v2599_v15 = vrot.slane %v2448_v11, 5  ;;  %v2754_v63 = vld [vmem:[#allocation2 + $0x4c] sm:$0xf] }
 0x154   : > { %2641 = vrot.lane.b32.xlu1 %v2551_v60, %s8865_s28  ;;  %v2590_v60 = vsel %vm9195_vm8, %v8361_v2, %v2589_v59  ;;  %v2755_v2 = vld [vmem:[#allocation2 + $0x54] sm:$0xf]  ;;  %v2757_v7 = vld [vmem:[#allocation2 + $0x60] sm:$0xf]  ;;  %v2759_v11 = vld [vmem:[#allocation2 + $0x6c] sm:$0xf] }
 0x155   : > { %v1758_v19 = vpop.permute.xlu0 %1757  ;;  %v2598_v14 = vrot.slane %v2596_v9, 4 }
 0x156   : > { %1834 = vst.msk [vmem:[#allocation3 + $0x50] sm:$0xf] %vm1813_vm11, %v1758_v19  ;;  %v1760_v38 = vpop.permute.xlu1 %1759  ;;  %v2451_v19 = vld [vmem:[#allocation2 + $0xbc] sm:$0x1] }
 0x157   : > { %2643 = vrot.lane.b32.xlu0 %v2555_v17, %s8865_s28  ;;  %1835 = vst.msk [vmem:[#allocation3 + $0x54] sm:$0xf] %vm1813_vm11, %v1760_v38  ;;  %v2603_v17 = vrot.slane %v2450_v5, 5  ;;  %v2600_v38 = vsel %vm9195_vm8, %v2598_v14, %v2599_v15  ;;  %v2606_v24 = vrot.slane %v2451_v19, 5  ;;  %v2763_v15 = vld [vmem:[#allocation2 + $0x84] sm:$0xf] }
 0x158   : > { %2645 = vrot.lane.b32.xlu1 %v2558_v1, %s8865_s28  ;;  %v2597_v1 = vsel %vm9195_vm8, %v8362_v12, %v2596_v9  ;;  %v2758_v9 = vld [vmem:[#allocation2 + $0x64] sm:$0xf] }
 0x159   : > { %v1762_v31 = vpop.permute.xlu0 %1761  ;;  %v2605_v27 = vrot.slane %v2603_v17, 4  ;;  %v2604_v33 = vsel %vm9195_vm8, %v8363_v23, %v2603_v17  ;;  %v2766_v23 = vld [vmem:[#allocation2 + $0x94] sm:$0xf] }
 0x15a   : > { %1836 = vst.msk [vmem:[#allocation3 + $0x58] sm:$0xf] %vm1813_vm11, %v1762_v31  ;;  %v1764_v39 = vpop.permute.xlu1 %1763  ;;  %v2454_v31 = vld [vmem:[#allocation2 + $0xc8] sm:$0x1] }
 0x15b   : > { %2647 = vrot.lane.b32.xlu0 %v2562_v28, %s8865_s28  ;;  %1837 = vst.msk [vmem:[#allocation3 + $0x5c] sm:$0xf] %vm1813_vm11, %v1764_v39  ;;  %v2610_v28 = vrot.slane %v2453_v20, 5  ;;  %v2607_v30 = vsel %vm9195_vm8, %v2605_v27, %v2606_v24  ;;  %v2613_v39 = vrot.slane %v2454_v31, 5  ;;  %v2765_v20 = vld [vmem:[#allocation2 + $0x90] sm:$0xf] }
 0x15c   : > { %2649 = vrot.lane.b32.xlu1 %v2565_v25, %s8865_s28  ;;  %v8364_v25 = vrot.slane %v2452_v22, 9  ;;  %v2767_v22 = vld [vmem:[#allocation2 + $0x9c] sm:$0xf]  ;;  %v2938_v27 = vld [vmem:[#allocation2 + $0x18] sm:$0xf] }
 0x15d   : > { %v1766_v45 = vpop.permute.xlu0 %1765  ;;  %v2612_v36 = vrot.slane %v2610_v28, 4  ;;  %v2768_v24 = vld [vmem:[#allocation2 + $0xa0] sm:$0xf]  ;;  %v2769_v31 = vld [vmem:[#allocation2 + $0xa8] sm:$0xf] }
 0x15e   : > { %1838 = vst.msk [vmem:[#allocation3 + $0x60] sm:$0xf] %vm1813_vm11, %v1766_v45  ;;  %v1768_v53 = vpop.permute.xlu1 %1767  ;;  %v2611_v41 = vsel %vm9195_vm8, %v8364_v25, %v2610_v28  ;;  %v2990_v25 = vshll.u32 %v2938_v27, 16 }
 0x15f   : > { %2651 = vrot.lane.b32.xlu0 %v2569_v42, %s8865_s28  ;;  %1839 = vst.msk [vmem:[#allocation3 + $0x64] sm:$0xf] %vm1813_vm11, %v1768_v53  ;;  %v2614_v44 = vsel %vm9195_vm8, %v2612_v36, %v2613_v39  ;;  %v2770_v36 = vld [vmem:[#allocation2 + $0xac] sm:$0xf] }
 0x160   : > { %2653 = vrot.lane.b32.xlu1 %v2572_v47, %s8865_s28 }
 0x161   : > { %v1770_v49 = vpop.permute.xlu0 %1769 }
 0x162   : > { %1840 = vst.msk [vmem:[#allocation3 + $0x68] sm:$0xf] %vm1813_vm11, %v1770_v49  ;;  %v1772_v61 = vpop.permute.xlu1 %1771  ;;  %v2750_v49 = vld [vmem:[#allocation2 + $0x34] sm:$0xf] }
 0x163   : > { %2655 = vrot.lane.b32.xlu0 %v2576_v32, %s8865_s28  ;;  %1841 = vst.msk [vmem:[#allocation3 + $0x6c] sm:$0xf] %vm1813_vm11, %v1772_v61  ;;  %v2749_v32 = vld [vmem:[#allocation2 + $0x30] sm:$0xf]  ;;  %v2753_v61 = vld [vmem:[#allocation2 + $0x48] sm:$0xf] }
 0x164   : > { %2657 = vrot.lane.b32.xlu1 %v2579_v57, %s8865_s28  ;;  %v2751_v57 = vld [vmem:[#allocation2 + $0x3c] sm:$0xf] }
 0x165   : > { %v1774_v3 = vpop.permute.xlu0 %1773 }
 0x166   : > { %1842 = vst.msk [vmem:[#allocation3 + $0x70] sm:$0xf] %vm1813_vm11, %v1774_v3  ;;  %v1776_v10 = vpop.permute.xlu1 %1775 }
 0x167   : > { %2659 = vrot.lane.b32.xlu0 %v2583_v0, %s8865_s28  ;;  %1843 = vst.msk [vmem:[#allocation3 + $0x74] sm:$0xf] %vm1813_vm11, %v1776_v10 }
 0x168   : > { %2661 = vrot.lane.b32.xlu1 %v2586_v6, %s8865_s28 }
 0x169   : > { %v1778_v13 = vpop.permute.xlu0 %1777 }
 0x16a   : > { %1844 = vst.msk [vmem:[#allocation3 + $0x78] sm:$0xf] %vm1813_vm11, %v1778_v13  ;;  %v1780_v18 = vpop.permute.xlu1 %1779  ;;  %v2761_v13 = vld [vmem:[#allocation2 + $0x78] sm:$0xf] }
 0x16b   : > { %2663 = vrot.lane.b32.xlu0 %v2590_v60, %s8865_s28  ;;  %1845 = vst.msk [vmem:[#allocation3 + $0x7c] sm:$0xf] %vm1813_vm11, %v1780_v18  ;;  %v2760_v60 = vld [vmem:[#allocation2 + $0x70] sm:$0xf]  ;;  %v2764_v18 = vld [vmem:[#allocation2 + $0x88] sm:$0xf] }
 0x16c   : > { %2665 = vrot.lane.b32.xlu1 %v2593_v37, %s8865_s28  ;;  %v2762_v37 = vld [vmem:[#allocation2 + $0x7c] sm:$0xf] }
 0x16d   : > { %v2279_v26 = vpop.permute.xlu0 %2278 }
 0x16e   : > { %2375 = vst.msk [vmem:[#allocation3] sm:$0xf] %vm2374_vm12, %v2279_v26  ;;  %v2281_v29 = vpop.permute.xlu1 %2280 }
 0x16f   : > { %2667 = vrot.lane.b32.xlu0 %v2597_v1, %s8865_s28  ;;  %2376 = vst.msk [vmem:[#allocation3 + $0x4] sm:$0xf] %vm2374_vm12, %v2281_v29  ;;  %v2939_v29 = vld [vmem:[#allocation2 + $0x1c] sm:$0xf] }
 0x170   : > { %2669 = vrot.lane.b32.xlu1 %v2600_v38, %s8865_s28  ;;  %v2996_v39 = vshll.u32 %v2939_v29, 16 }
 0x171   : > { %v2283_v35 = vpop.permute.xlu0 %2282 }
 0x172   : > { %2377 = vst.msk [vmem:[#allocation3 + $0x8] sm:$0xf] %vm2374_vm12, %v2283_v35  ;;  %v2285_v40 = vpop.permute.xlu1 %2284  ;;  %v2941_v35 = vld [vmem:[#allocation2 + $0x24] sm:$0xf] }
 0x173   : > { %2671 = vrot.lane.b32.xlu0 %v2604_v33, %s8865_s28  ;;  %2378 = vst.msk [vmem:[#allocation3 + $0xc] sm:$0xf] %vm2374_vm12, %v2285_v40  ;;  %v2987_v33 = vshrl.u32 %v2938_v27, 16  ;;  %v3000_v40 = vshrl.u32 %v2939_v29, 16  ;;  %v2947_v27 = vld [vmem:[#allocation2 + $0x3c] sm:$0xf] }
 0x174   : > { %2673 = vrot.lane.b32.xlu1 %v2607_v30, %s8865_s28  ;;  %v3501_v29 = vld [vmem:[#allocation2 + $0x20] sm:$0x1] }
 0x175   : > { %v2287_v42 = vpop.permute.xlu0 %2286 }
 0x176   : > { %2379 = vst.msk [vmem:[#allocation3 + $0x10] sm:$0xf] %vm2374_vm12, %v2287_v42  ;;  %v2289_v45 = vpop.permute.xlu1 %2288 }
 0x177   : > { %2675 = vrot.lane.b32.xlu0 %v2611_v41, %s8865_s28  ;;  %2380 = vst.msk [vmem:[#allocation3 + $0x14] sm:$0xf] %vm2374_vm12, %v2289_v45  ;;  %v2942_v41 = vld [vmem:[#allocation2 + $0x28] sm:$0xf]  ;;  %v3014_v45 = vshll.u32 %v2941_v35, 16 }
 0x178   : > { %2677 = vrot.lane.b32.xlu1 %v2614_v44, %s8865_s28  ;;  %v3011_v44 = vshrl.u32 %v2941_v35, 16 }
 0x179   : > { %v2291_v47 = vpop.permute.xlu0 %2290 }
 0x17a   : > { %2381 = vst.msk [vmem:[#allocation3 + $0x18] sm:$0xf] %vm2374_vm12, %v2291_v47  ;;  %v2293_v50 = vpop.permute.xlu1 %2292  ;;  %v2989_v47 = vrot.slane %v2987_v33, 4 }
 0x17b   : > { %2809 = vrot.lane.b32.xlu0 %v2745_v46, %s8866_s29  ;;  %2382 = vst.msk [vmem:[#allocation3 + $0x1c] sm:$0xf] %vm2374_vm12, %v2293_v50  ;;  %v2771_v46 = vld [vmem:[#allocation2 + $0xb4] sm:$0xf] }
 0x17c   : > { %2811 = vrot.lane.b32.xlu1 %v2746_v48, %s8866_s29  ;;  %v2992_v48 = vrot.slane %v2990_v25, 5  ;;  %v2948_v25 = vld [vmem:[#allocation2 + $0x40] sm:$0xf] }
 0x17d   : > { %v2295_v53 = vpop.permute.xlu0 %2294 }
 0x17e   : > { %2383 = vst.msk [vmem:[#allocation3 + $0x20] sm:$0xf] %vm2374_vm12, %v2295_v53  ;;  %v2297_v54 = vpop.permute.xlu1 %2296  ;;  %v3024_v53 = vshrl.u32 %v2942_v41, 16 }
 0x17f   : > { %2813 = vrot.lane.b32.xlu0 %v2747_v52, %s8866_s29  ;;  %2384 = vst.msk [vmem:[#allocation3 + $0x24] sm:$0xf] %vm2374_vm12, %v2297_v54  ;;  %v3020_v52 = vshll.u32 %v2942_v41, 16  ;;  %v9762_v54 = vrot.slane %v2996_v39, 5  ;;  %v3503_v39 = vld [vmem:[#allocation2 + $0x28] sm:$0xf] }
 0x180   : > { %2815 = vrot.lane.b32.xlu1 %v2748_v16, %s8866_s29  ;;  %v2772_v16 = vld [vmem:[#allocation2 + $0xb8] sm:$0xf] }
 0x181   : > { %v2299_v51 = vpop.permute.xlu0 %2298 }
 0x182   : > { %2385 = vst.msk [vmem:[#allocation3 + $0x28] sm:$0xf] %vm2374_vm12, %v2299_v51  ;;  %v2301_v56 = vpop.permute.xlu1 %2300 }
 0x183   : > { %2817 = vrot.lane.b32.xlu0 %v2749_v32, %s8866_s29  ;;  %2386 = vst.msk [vmem:[#allocation3 + $0x2c] sm:$0xf] %vm2374_vm12, %v2301_v56  ;;  %v3002_v32 = vrot.slane %v3000_v40, 4  ;;  %v3013_v56 = vrot.slane %v3011_v44, 4  ;;  %v8783_v40 = vld [vmem:[%s11408_s1 + $0x8] sm:$0xff]   ;;  %v3059_v44 = vshrl.u32 %v2947_v27, 16 }
 0x184   : > { %2819 = vrot.lane.b32.xlu1 %v2750_v49, %s8866_s29  ;;  %v2940_v49 = vld [vmem:[#allocation2 + $0x20] sm:$0x1] }
 0x185   : > { %v2303_v55 = vpop.permute.xlu0 %2302 }
 0x186   : > { %2387 = vst.msk [vmem:[#allocation3 + $0x30] sm:$0xf] %vm2374_vm12, %v2303_v55  ;;  %v2305_v59 = vpop.permute.xlu1 %2304  ;;  %v2773_v55 = vld [vmem:[#allocation2 + $0xc0] sm:$0xf] }
 0x187   : > { %2821 = vrot.lane.b32.xlu0 %v2751_v57, %s8866_s29  ;;  %2388 = vst.msk [vmem:[#allocation3 + $0x34] sm:$0xf] %vm2374_vm12, %v2305_v59  ;;  %v3016_v57 = vrot.slane %v3014_v45, 5  ;;  %v3062_v45 = vshll.u32 %v2947_v27, 16  ;;  %v2953_v27 = vld [vmem:[#allocation2 + $0x54] sm:$0xf] }
 0x188   : > { %2823 = vrot.lane.b32.xlu1 %v2752_v58, %s8866_s29  ;;  %v2993_v58 = vor.u32 %v2992_v48, %v2989_v47  ;;  %v3600_v48 = vrot.slane %v3501_v29, 5 }
 0x189   : > { %v2307_v62 = vpop.permute.xlu0 %2306 }
 0x18a   : > { %2389 = vst.msk [vmem:[#allocation3 + $0x38] sm:$0xf] %vm2374_vm12, %v2307_v62  ;;  %v2309_v0 = vpop.permute.xlu1 %2308  ;;  %v3026_v62 = vrot.slane %v3024_v53, 4  ;;  %v3072_v53 = vshrl.u32 %v2948_v25, 16 }
 0x18b   : > { %2825 = vrot.lane.b32.xlu0 %v2753_v61, %s8866_s29  ;;  %2390 = vst.msk [vmem:[#allocation3 + $0x3c] sm:$0xf] %vm2374_vm12, %v2309_v0  ;;  %v9767_v61 = vrot.slane %v3020_v52, 5  ;;  %v3003_v0 = vor.u32 %v3002_v32, %v9762_v54  ;;  %v3068_v52 = vshll.u32 %v2948_v25, 16 }
 0x18c   : > { %2827 = vrot.lane.b32.xlu1 %v2754_v63, %s8866_s29  ;;  %v2774_v63 = vld [vmem:[#allocation2 + $0xc4] sm:$0xf] }
 0x18d   : > { %v2311_v3 = vpop.permute.xlu0 %2310 }
 0x18e   : > { %2391 = vst.msk [vmem:[#allocation3 + $0x40] sm:$0xf] %vm2374_vm12, %v2311_v3  ;;  %v2313_v6 = vpop.permute.xlu1 %2312  ;;  %v2943_v3 = vld [vmem:[#allocation2 + $0x2c] sm:$0x1] }
 0x18f   : > { %2829 = vrot.lane.b32.xlu0 %v2755_v2, %s8866_s29  ;;  %2392 = vst.msk [vmem:[#allocation3 + $0x44] sm:$0xf] %vm2374_vm12, %v2313_v6  ;;  %v3006_v2 = vshll.u32 %v2940_v49, 16  ;;  %v3017_v6 = vor.u32 %v3016_v57, %v3013_v56  ;;  %v3504_v57 = vld [vmem:[#allocation2 + $0x2c] sm:$0x1] }
 0x190   : > { %2831 = vrot.lane.b32.xlu1 %v2756_v4, %s8866_s29 }
 0x191   : > { %v2315_v8 = vpop.permute.xlu0 %2314 }
 0x192   : > { %2393 = vst.msk [vmem:[#allocation3 + $0x48] sm:$0xf] %vm2374_vm12, %v2315_v8  ;;  %v2317_v10 = vpop.permute.xlu1 %2316  ;;  %v2994_v8 = vrot.slane %v2993_v58, 4  ;;  %v8784_v58 = vld [vmem:[%s11408_s1] sm:$0xff]  }
 0x193   : > { %2833 = vrot.lane.b32.xlu0 %v2757_v7, %s8866_s29  ;;  %2394 = vst.msk [vmem:[#allocation3 + $0x4c] sm:$0xf] %vm2374_vm12, %v2317_v10  ;;  %v2775_v7 = vld [vmem:[#allocation2 + $0xcc] sm:$0xf]  ;;  %v3027_v10 = vor.u32 %v3026_v62, %v9767_v61  ;;  %v3061_v62 = vrot.slane %v3059_v44, 4  ;;  %v3110_v44 = vshll.u32 %v2953_v27, 16 }
 0x194   : > { %2835 = vrot.lane.b32.xlu1 %v2758_v9, %s8866_s29 }
 0x195   : > { %v2319_v5 = vpop.permute.xlu0 %2318 }
 0x196   : > { %2395 = vst.msk [vmem:[#allocation3 + $0x50] sm:$0xf] %vm2374_vm12, %v2319_v5  ;;  %v2321_v12 = vpop.permute.xlu1 %2320  ;;  %v2944_v5 = vld [vmem:[#allocation2 + $0x30] sm:$0xf] }
 0x197   : > { %2837 = vrot.lane.b32.xlu0 %v2759_v11, %s8866_s29  ;;  %2396 = vst.msk [vmem:[#allocation3 + $0x54] sm:$0xf] %vm2374_vm12, %v2321_v12  ;;  %v3030_v11 = vshll.u32 %v2943_v3, 16  ;;  %v3004_v12 = vrot.slane %v3003_v0, 4  ;;  %v9814_v3 = vrot.slane %v3068_v52, 5 }
 0x198   : > { %2839 = vrot.lane.b32.xlu1 %v2760_v60, %s8866_s29  ;;  %v2776_v60 = vld [vmem:[#allocation2 + $0xd0] sm:$0xf] }
 0x199   : > { %v2323_v21 = vpop.permute.xlu0 %2322 }
 0x19a   : > { %2397 = vst.msk [vmem:[#allocation3 + $0x58] sm:$0xf] %vm2374_vm12, %v2323_v21  ;;  %v2325_v14 = vpop.permute.xlu1 %2324  ;;  %v3500_v21 = vld [vmem:[#allocation2 + $0x1c] sm:$0xf] }
 0x19b   : > { %2841 = vrot.lane.b32.xlu0 %v2761_v13, %s8866_s29  ;;  %2398 = vst.msk [vmem:[#allocation3 + $0x5c] sm:$0xf] %vm2374_vm12, %v2325_v14  ;;  %v3008_v13 = vrot.slane %v3006_v2, 5  ;;  %v3018_v14 = vrot.slane %v3017_v6, 4 }
 0x19c   : > { %2843 = vrot.lane.b32.xlu1 %v2762_v37, %s8866_s29 }
 0x19d   : > { %v2327_v17 = vpop.permute.xlu0 %2326 }
 0x19e   : > { %2399 = vst.msk [vmem:[#allocation3 + $0x60] sm:$0xf] %vm2374_vm12, %v2327_v17  ;;  %v2329_v19 = vpop.permute.xlu1 %2328  ;;  %v8782_v17 = vld [vmem:[%s11408_s1 + $0x10] ss:$0 sps:$4 sm:$0x33]  }
 0x19f   : > { %2845 = vrot.lane.b32.xlu0 %v2763_v15, %s8866_s29  ;;  %2400 = vst.msk [vmem:[#allocation3 + $0x64] sm:$0xf] %vm2374_vm12, %v2329_v19  ;;  %v2945_v15 = vld [vmem:[#allocation2 + $0x34] sm:$0xf]  ;;  %v3499_v19 = vld [vmem:[#allocation2 + $0x18] sm:$0xe]  ;;  %8763 = vmatprep.subr.msk.bf16.mxu0 %vm4024_vm14, %v8782_v17 }
 0x1a0   : > { %2847 = vrot.lane.b32.xlu1 %v2764_v18, %s8866_s29  ;;  %v2999_v18 = vsel %vm8936_vm5, %v2994_v8, %v9762_v54  ;;  %v3048_v33 = vshrl.u32 %v2945_v15, 16  ;;  %v3604_v54 = vrot.slane %v3503_v39, 5  ;;  %v2954_v39 = vld [vmem:[#allocation2 + $0x58] sm:$0xf] }
 0x1a1   : > { %v2331_v1 = vpop.permute.xlu0 %2330 }
 0x1a2   : > { %2401 = vst.msk [vmem:[#allocation3 + $0x68] sm:$0xf] %vm2374_vm12, %v2331_v1  ;;  %v2333_v26 = vpop.permute.xlu1 %2332  ;;  %v3038_v1 = vshll.u32 %v2944_v5, 16  ;;  %v3606_v6 = vrot.slane %v3604_v54, 4 }
 0x1a3   : > { %2849 = vrot.lane.b32.xlu0 %v2765_v20, %s8866_s29  ;;  %2402 = vst.msk [vmem:[#allocation3 + $0x6c] sm:$0xf] %vm2374_vm12, %v2333_v26  ;;  %v3035_v20 = vshrl.u32 %v2944_v5, 16  ;;  %v3028_v26 = vrot.slane %v3027_v10, 4  ;;  %v2949_v10 = vld [vmem:[#allocation2 + $0x44] sm:$0x1] }
 0x1a4   : > { %2851 = vrot.lane.b32.xlu1 %v2766_v23, %s8866_s29 }
 0x1a5   : > { %v2335_v38 = vpop.permute.xlu0 %2334  ;;  %v3037_v41 = vrot.slane %v3035_v20, 4 }
 0x1a6   : > { %2403 = vst.msk [vmem:[#allocation3 + $0x70] sm:$0xf] %vm2374_vm12, %v2335_v38  ;;  %v2337_v28 = vpop.permute.xlu1 %2336  ;;  %v3597_v38 = vrot.slane %v3500_v21, 5 }
 0x1a7   : > { %2853 = vrot.lane.b32.xlu0 %v2767_v22, %s8866_s29  ;;  %2404 = vst.msk [vmem:[#allocation3 + $0x74] sm:$0xf] %vm2374_vm12, %v2337_v28  ;;  %v3032_v22 = vrot.slane %v3030_v11, 5  ;;  %v3009_v28 = vsel %vm8936_vm5, %v3004_v12, %v3008_v13 }
 0x1a8   : > { %2855 = vrot.lane.b32.xlu1 %v2768_v24, %s8866_s29  ;;  %v4026_v24 = vsel %vm4024_vm14, %v8782_v17, 0  ;;  %v3599_v47 = vrot.slane %v3597_v38, 4 }
 0x1a9   : > { %v2339_v30 = vpop.permute.xlu0 %2338  ;;  %8688 = vmatpush3.bf16.msra.mxu0 %v4026_v24 }
 0x1aa   : > { %2405 = vst.msk [vmem:[#allocation3 + $0x78] sm:$0xf] %vm2374_vm12, %v2339_v30  ;;  %v2341_v42 = vpop.permute.xlu1 %2340  ;;  %v3023_v30 = vsel %vm8936_vm5, %v3018_v14, %v9767_v61  ;;  %8689 = vmatprep.subr.bf16.mxu0 %v8783_v40  ;;  %v3601_v2 = vsel %vm9195_vm8, %v3599_v47, %v3600_v48  ;;  %v2950_v14 = vld [vmem:[#allocation2 + $0x48] sm:$0xf] }
 0x1ab   : > { %2857 = vrot.lane.b32.xlu0 %v2769_v31, %s8866_s29  ;;  %2406 = vst.msk [vmem:[#allocation3 + $0x7c] sm:$0xf] %vm2374_vm12, %v2341_v42  ;;  %v3044_v31 = vshll.u32 %v2945_v15, 16  ;;  %v3040_v42 = vrot.slane %v3038_v1, 5  ;;  %v2951_v1 = vld [vmem:[#allocation2 + $0x4c] sm:$0xf] }
 0x1ac   : > { %2859 = vrot.lane.b32.xlu1 %v2770_v36, %s8866_s29  ;;  %v8365_v36 = vrot.slane %v3499_v19, 9  ;;  %v3506_v19 = vld [vmem:[#allocation2 + $0x34] sm:$0xf] }
 0x1ad   : > { %v2616_v50 = vpop.permute.xlu0 %2615  ;;  %v9802_v32 = vrot.slane %v3044_v31, 5  ;;  %8690 = vmatpush3.bf16.msra.mxu0 %v8783_v40  ;;  %v3041_v61 = vor.u32 %v3040_v42, %v3037_v41  ;;  %v3505_v31 = vld [vmem:[#allocation2 + $0x30] sm:$0xe]  ;;  %v3509_v41 = vld [vmem:[#allocation2 + $0x40] sm:$0xf]  ;;  %v3107_v42 = vshrl.u32 %v2953_v27, 16 }
 0x1ae   : > { %2712 = vst.msk [vmem:[#allocation3] sm:$0xf] %vm2711_vm13, %v2616_v50  ;;  %v2618_v51 = vpop.permute.xlu1 %2617  ;;  %v3502_v50 = vld [vmem:[#allocation2 + $0x24] sm:$0xe]  ;;  %v3598_v56 = vsel %vm9195_vm8, %v8365_v36, %v3597_v38  ;;  %8691 = vmatprep.subr.bf16.mxu0 %v8784_v58  ;;  %v3086_v38 = vshll.u32 %v2950_v14, 16  ;;  %v3096_v36 = vshrl.u32 %v2951_v1, 16 }
 0x1af   : > { %2861 = vrot.lane.b32.xlu0 %v2771_v46, %s8866_s29  ;;  %2713 = vst.msk [vmem:[#allocation3 + $0x4] sm:$0xf] %vm2711_vm13, %v2618_v51  ;;  %v3050_v51 = vrot.slane %v3048_v33, 4  ;;  %v3611_v33 = vrot.slane %v3506_v19, 5  ;;  %v3511_v27 = vld [vmem:[#allocation2 + $0x48] sm:$0xe] }
 0x1b0   : > { %2863 = vrot.lane.b32.xlu1 %v2772_v16, %s8866_s29  ;;  %v3033_v16 = vsel %vm8936_vm5, %v3028_v26, %v3032_v22  ;;  %v3083_v22 = vshrl.u32 %v2950_v14, 16  ;;  %v3088_v48 = vrot.slane %v3086_v38, 5 }
 0x1b1   : > { %v2620_v59 = vpop.permute.xlu0 %2619  ;;  %v3051_v8 = vor.u32 %v3050_v51, %v9802_v32  ;;  %8692 = vmatpush3.bf16.msra.mxu0 %v8784_v58  ;;  %v3613_v52 = vrot.slane %v3611_v33, 4  ;;  %v3510_v58 = vld [vmem:[#allocation2 + $0x44] sm:$0x1] }
 0x1b2   : > { %2714 = vst.msk [vmem:[#allocation3 + $0x8] sm:$0xf] %vm2711_vm13, %v2620_v59  ;;  %v2622_v4 = vpop.permute.xlu1 %2621  ;;  %v8366_v59 = vrot.slane %v3502_v50, 9  ;;  %v3085_v47 = vrot.slane %v3083_v22, 4  ;;  %v2957_v22 = vld [vmem:[#allocation2 + $0x64] sm:$0xf] }
 0x1b3   : > { %2865 = vrot.lane.b32.xlu0 %v2773_v55, %s8866_s29  ;;  %2715 = vst.msk [vmem:[#allocation3 + $0xc] sm:$0xf] %vm2711_vm13, %v2622_v4  ;;  %v2946_v55 = vld [vmem:[#allocation2 + $0x38] sm:$0x1]  ;;  %v3074_v4 = vrot.slane %v3072_v53, 4  ;;  %v3052_v17 = vrot.slane %v3051_v8, 4 }
 0x1b4   : > { %2867 = vrot.lane.b32.xlu1 %v2774_v63, %s8866_s29  ;;  %v3064_v63 = vrot.slane %v3062_v45, 5  ;;  %v3605_v5 = vsel %vm9195_vm8, %v8366_v59, %v3604_v54  ;;  %v3116_v54 = vshll.u32 %v2954_v39, 16  ;;  %v2952_v59 = vld [vmem:[#allocation2 + $0x50] sm:$0x1] }
 0x1b5   : > { %v2624_v9 = vpop.permute.xlu0 %2623  ;;  %v3075_v21 = vor.u32 %v3074_v4, %v9814_v3 }
 0x1b6   : > { %2716 = vst.msk [vmem:[#allocation3 + $0x10] sm:$0xf] %vm2711_vm13, %v2624_v9  ;;  %v2626_v37 = vpop.permute.xlu1 %2625  ;;  %v3054_v9 = vshll.u32 %v2946_v55, 16  ;;  %v3065_v12 = vor.u32 %v3064_v63, %v3061_v62  ;;  %v3112_v62 = vrot.slane %v3110_v44, 5 }
 0x1b7   : > { %2869 = vrot.lane.b32.xlu0 %v2775_v7, %s8866_s29  ;;  %2717 = vst.msk [vmem:[#allocation3 + $0x14] sm:$0xf] %vm2711_vm13, %v2626_v37  ;;  %v3607_v7 = vrot.slane %v3504_v57, 5  ;;  %v3078_v37 = vshll.u32 %v2949_v10, 16  ;;  %v3098_v57 = vrot.slane %v3096_v36, 4 }
 0x1b8   : > { %2871 = vrot.lane.b32.xlu1 %v2776_v60, %s8866_s29  ;;  %v3042_v60 = vrot.slane %v3041_v61, 4  ;;  %v3066_v26 = vrot.slane %v3065_v12, 4  ;;  %v3109_v61 = vrot.slane %v3107_v42, 4  ;;  %v3513_v36 = vld [vmem:[#allocation2 + $0x50] sm:$0x1] }
 0x1b9   : > { %v2628_v23 = vpop.permute.xlu0 %2627  ;;  %v3608_v15 = vsel %vm9195_vm8, %v3606_v6, %v3607_v7  ;;  %v3080_v29 = vrot.slane %v3078_v37, 5  ;;  %v9852_v6 = vrot.slane %v3116_v54, 5  ;;  %v3628_v54 = vrot.slane %v3513_v36, 5 }
 0x1ba   : > { %2718 = vst.msk [vmem:[#allocation3 + $0x18] sm:$0xf] %vm2711_vm13, %v2628_v23  ;;  %v2630_v35 = vpop.permute.xlu1 %2629  ;;  %v3047_v23 = vsel %vm8936_vm5, %v3042_v60, %v9802_v32  ;;  %v3071_v45 = vsel %vm8936_vm5, %v3066_v26, %v9814_v3  ;;  %v3120_v32 = vshrl.u32 %v2954_v39, 16  ;;  %v3113_v12 = vor.u32 %v3112_v62, %v3109_v61  ;;  %v3516_v62 = vld [vmem:[#allocation2 + $0x5c] sm:$0x1] }
 0x1bb   : > { %3370 = vrot.lane.b32.xlu0 %v2999_v18, %s8867_s7  ;;  %2719 = vst.msk [vmem:[#allocation3 + $0x1c] sm:$0xf] %vm2711_vm13, %v2630_v35  ;;  %v3056_v18 = vrot.slane %v3054_v9, 5  ;;  %v3507_v35 = vld [vmem:[#allocation2 + $0x38] sm:$0x1]  ;;  %v3621_v9 = vrot.slane %v3510_v58, 5 }
 0x1bc   : > { %3372 = vrot.lane.b32.xlu1 %v3009_v28, %s8867_s7  ;;  %v3076_v28 = vrot.slane %v3075_v21, 4  ;;  %v3614_v53 = vrot.slane %v3507_v35, 5  ;;  %v3122_v7 = vrot.slane %v3120_v32, 4  ;;  %v3114_v26 = vrot.slane %v3113_v12, 4  ;;  %v2959_v35 = vld [vmem:[#allocation2 + $0x6c] sm:$0xf] }
 0x1bd   : > { %v2632_v46 = vpop.permute.xlu0 %2631  ;;  %v3057_v25 = vsel %vm8936_vm5, %v3052_v17, %v3056_v18  ;;  %v2956_v17 = vld [vmem:[#allocation2 + $0x60] sm:$0xf]  ;;  %v3140_v39 = vshll.u32 %v2957_v22, 16  ;;  %v3514_v32 = vld [vmem:[#allocation2 + $0x54] sm:$0xe] }
 0x1be   : > { %2720 = vst.msk [vmem:[#allocation3 + $0x20] sm:$0xf] %vm2711_vm13, %v2632_v46  ;;  %v2634_v49 = vpop.permute.xlu1 %2633  ;;  %v8367_v46 = vrot.slane %v3505_v31, 9  ;;  %v3081_v51 = vsel %vm8936_vm5, %v3076_v28, %v3080_v29  ;;  %v3615_v4 = vsel %vm9195_vm8, %v3613_v52, %v3614_v53  ;;  %v3123_v14 = vor.u32 %v3122_v7, %v9852_v6  ;;  %v2961_v12 = vld [vmem:[#allocation2 + $0x74] sm:$0x1] }
 0x1bf   : > { %3374 = vrot.lane.b32.xlu0 %v3023_v30, %s8867_s7  ;;  %2721 = vst.msk [vmem:[#allocation3 + $0x24] sm:$0xf] %vm2711_vm13, %v2634_v49  ;;  %v3092_v30 = vshll.u32 %v2951_v1, 16  ;;  %v3618_v49 = vrot.slane %v3509_v41, 5  ;;  %v3512_v1 = vld [vmem:[#allocation2 + $0x4c] sm:$0xf]  ;;  %v3119_v44 = vsel %vm8936_vm5, %v3114_v26, %v9852_v6 }
 0x1c0   : > { %3376 = vrot.lane.b32.xlu1 %v3033_v16, %s8867_s7  ;;  %v3508_v16 = vld [vmem:[#allocation2 + $0x3c] sm:$0xe]  ;;  %v3612_v63 = vsel %vm9195_vm8, %v8367_v46, %v3611_v33  ;;  %v3134_v28 = vshll.u32 %v2956_v17, 16  ;;  %v3124_v31 = vrot.slane %v3123_v14, 4  ;;  %v2960_v41 = vld [vmem:[#allocation2 + $0x70] sm:$0xf] }
 0x1c1   : > { %v2636_v0 = vpop.permute.xlu0 %2635  ;;  %v3620_v8 = vrot.slane %v3618_v49, 4  ;;  %v3515_v46 = vld [vmem:[#allocation2 + $0x58] sm:$0xf]  ;;  %v3158_v52 = vshll.u32 %v2959_v35, 16  ;;  %v3518_v26 = vld [vmem:[#allocation2 + $0x64] sm:$0xf] }
 0x1c2   : > { %2722 = vst.msk [vmem:[#allocation3 + $0x28] sm:$0xf] %vm2711_vm13, %v2636_v0  ;;  %v2638_v11 = vpop.permute.xlu1 %2637  ;;  %v8368_v0 = vrot.slane %v3508_v16, 9  ;;  %v3639_v36 = vrot.slane %v3518_v26, 5 }
 0x1c3   : > { %3707 = vrot.lane.b32.xlu0 %v3598_v56, %s8868_s12  ;;  %2723 = vst.msk [vmem:[#allocation3 + $0x2c] sm:$0xf] %vm2711_vm13, %v2638_v11  ;;  %v3094_v56 = vrot.slane %v3092_v30, 5  ;;  %v3102_v11 = vshll.u32 %v2952_v59, 16  ;;  %v3622_v18 = vsel %vm9195_vm8, %v3620_v8, %v3621_v9 }
 0x1c4   : > { %3709 = vrot.lane.b32.xlu1 %v3601_v2, %s8868_s12  ;;  %v3089_v2 = vor.u32 %v3088_v48, %v3085_v47  ;;  %v3136_v48 = vrot.slane %v3134_v28, 5 }
 0x1c5   : > { %v2640_v13 = vpop.permute.xlu0 %2639  ;;  %v3099_v10 = vor.u32 %v3098_v57, %v3094_v56  ;;  %v3632_v57 = vrot.slane %v3515_v46, 5  ;;  %v3521_v46 = vld [vmem:[#allocation2 + $0x70] sm:$0xf] }
 0x1c6   : > { %2724 = vst.msk [vmem:[#allocation3 + $0x30] sm:$0xf] %vm2711_vm13, %v2640_v13  ;;  %v2642_v20 = vpop.permute.xlu1 %2641  ;;  %v3619_v13 = vsel %vm9195_vm8, %v8368_v0, %v3618_v49  ;;  %v3090_v21 = vrot.slane %v3089_v2, 4  ;;  %v3168_v49 = vshrl.u32 %v2960_v41, 16  ;;  %v8370_v0 = vrot.slane %v3514_v32, 9 }
 0x1c7   : > { %3711 = vrot.lane.b32.xlu0 %v3605_v5, %s8868_s12  ;;  %2725 = vst.msk [vmem:[#allocation3 + $0x34] sm:$0xf] %vm2711_vm13, %v2642_v20  ;;  %v2955_v5 = vld [vmem:[#allocation2 + $0x5c] sm:$0x1]  ;;  %v3100_v19 = vrot.slane %v3099_v10, 4  ;;  %v3104_v20 = vrot.slane %v3102_v11, 5 }
 0x1c8   : > { %3713 = vrot.lane.b32.xlu1 %v3608_v15, %s8868_s12  ;;  %v3126_v15 = vshll.u32 %v2955_v5, 16  ;;  %v3095_v38 = vsel %vm8936_vm5, %v3090_v21, %v3094_v56  ;;  %v3170_v9 = vrot.slane %v3168_v49, 4  ;;  %v3634_v10 = vrot.slane %v3632_v57, 4  ;;  %v3520_v49 = vld [vmem:[#allocation2 + $0x6c] sm:$0xe] }
 0x1c9   : > { %v2644_v24 = vpop.permute.xlu0 %2643  ;;  %v3105_v30 = vsel %vm8936_vm5, %v3100_v19, %v3104_v20  ;;  %v3635_v11 = vrot.slane %v3516_v62, 5  ;;  %v3633_v21 = vsel %vm9195_vm8, %v8370_v0, %v3632_v57  ;;  %v2962_v19 = vld [vmem:[#allocation2 + $0x78] sm:$0xf]  ;;  %v3641_v32 = vrot.slane %v3639_v36, 4  ;;  %v2964_v0 = vld [vmem:[#allocation2 + $0x80] sm:$0x1] }
 0x1ca   : > { %2726 = vst.msk [vmem:[#allocation3 + $0x38] sm:$0xf] %vm2711_vm13, %v2644_v24  ;;  %v2646_v40 = vpop.permute.xlu1 %2645  ;;  %v3131_v24 = vshrl.u32 %v2956_v17, 16  ;;  %v3128_v33 = vrot.slane %v3126_v15, 5  ;;  %v3179_v28 = vshrl.u32 %v2962_v19, 16 }
 0x1cb   : > { %3378 = vrot.lane.b32.xlu0 %v3047_v23, %s8867_s7  ;;  %2727 = vst.msk [vmem:[#allocation3 + $0x3c] sm:$0xf] %vm2711_vm13, %v2646_v40  ;;  %v3144_v40 = vshrl.u32 %v2957_v22, 16  ;;  %v3636_v20 = vsel %vm9195_vm8, %v3634_v10, %v3635_v11 }
 0x1cc   : > { %3380 = vrot.lane.b32.xlu1 %v3057_v25, %s8867_s7  ;;  %v3625_v25 = vrot.slane %v3512_v1, 5  ;;  %v3133_v47 = vrot.slane %v3131_v24, 4  ;;  %v3129_v56 = vsel %vm8936_vm5, %v3124_v31, %v3128_v33  ;;  %v2965_v31 = vld [vmem:[#allocation2 + $0x84] sm:$0xf] }
 0x1cd   : > { %v2648_v50 = vpop.permute.xlu0 %2647  ;;  %v3146_v58 = vrot.slane %v3144_v40, 4  ;;  %v3519_v40 = vld [vmem:[#allocation2 + $0x68] sm:$0x1] }
 0x1ce   : > { %2728 = vst.msk [vmem:[#allocation3 + $0x40] sm:$0xf] %vm2711_vm13, %v2648_v50  ;;  %v2650_v55 = vpop.permute.xlu1 %2649  ;;  %v3155_v50 = vshrl.u32 %v2959_v35, 16  ;;  %v3627_v16 = vrot.slane %v3625_v25, 4  ;;  %v3137_v2 = vor.u32 %v3136_v48, %v3133_v47  ;;  %v3203_v47 = vshrl.u32 %v2965_v31, 16 }
 0x1cf   : > { %3382 = vrot.lane.b32.xlu0 %v3071_v45, %s8867_s7  ;;  %2729 = vst.msk [vmem:[#allocation3 + $0x44] sm:$0xf] %vm2711_vm13, %v2650_v55  ;;  %v8369_v45 = vrot.slane %v3511_v27, 9  ;;  %v3142_v55 = vrot.slane %v3140_v39, 5  ;;  %v3206_v48 = vshll.u32 %v2965_v31, 16 }
 0x1d0   : > { %3384 = vrot.lane.b32.xlu1 %v3081_v51, %s8867_s7  ;;  %v3164_v51 = vshll.u32 %v2960_v41, 16  ;;  %v3629_v7 = vsel %vm9195_vm8, %v3627_v16, %v3628_v54  ;;  %v3523_v31 = vld [vmem:[#allocation2 + $0x78] sm:$0xe] }
 0x1d1   : > { %v2652_v3 = vpop.permute.xlu0 %2651  ;;  %v3626_v61 = vsel %vm9195_vm8, %v8369_v45, %v3625_v25  ;;  %v3147_v5 = vor.u32 %v3146_v58, %v3142_v55  ;;  %v3646_v58 = vrot.slane %v3521_v46, 5  ;;  %v2972_v46 = vld [vmem:[#allocation2 + $0xa0] sm:$0xf] }
 0x1d2   : > { %2730 = vst.msk [vmem:[#allocation3 + $0x48] sm:$0xf] %vm2711_vm13, %v2652_v3  ;;  %v2654_v60 = vpop.permute.xlu1 %2653  ;;  %v3157_v3 = vrot.slane %v3155_v50, 4  ;;  %v9888_v8 = vrot.slane %v3164_v51, 5  ;;  %v3642_v51 = vrot.slane %v3519_v40, 5 }
 0x1d3   : > { %3715 = vrot.lane.b32.xlu0 %v3612_v63, %s8868_s12  ;;  %2731 = vst.msk [vmem:[#allocation3 + $0x4c] sm:$0xf] %vm2711_vm13, %v2654_v60  ;;  %v2958_v63 = vld [vmem:[#allocation2 + $0x68] sm:$0x1]  ;;  %v3148_v1 = vrot.slane %v3147_v5, 4  ;;  %v3648_v5 = vrot.slane %v3646_v58, 4 }
 0x1d4   : > { %3717 = vrot.lane.b32.xlu1 %v3615_v4, %s8868_s12  ;;  %v3160_v4 = vrot.slane %v3158_v52, 5  ;;  %v3150_v60 = vshll.u32 %v2958_v63, 16  ;;  %v3171_v17 = vor.u32 %v3170_v9, %v9888_v8  ;;  %v3522_v63 = vld [vmem:[#allocation2 + $0x74] sm:$0x1]  ;;  %v3643_v9 = vsel %vm9195_vm8, %v3641_v32, %v3642_v51  ;;  %v2971_v40 = vld [vmem:[#allocation2 + $0x9c] sm:$0xf] }
 0x1d5   : > { %v2656_v37 = vpop.permute.xlu0 %2655  ;;  %v3254_v32 = vshll.u32 %v2971_v40, 16 }
 0x1d6   : > { %2732 = vst.msk [vmem:[#allocation3 + $0x50] sm:$0xf] %vm2711_vm13, %v2656_v37  ;;  %v2658_v23 = vpop.permute.xlu1 %2657  ;;  %v3138_v37 = vrot.slane %v3137_v2, 4  ;;  %v3161_v14 = vor.u32 %v3160_v4, %v3157_v3  ;;  %v3172_v25 = vrot.slane %v3171_v17, 4  ;;  %v3205_v2 = vrot.slane %v3203_v47, 4 }
 0x1d7   : > { %3719 = vrot.lane.b32.xlu0 %v3619_v13, %s8868_s12  ;;  %2733 = vst.msk [vmem:[#allocation3 + $0x54] sm:$0xf] %vm2711_vm13, %v2658_v23  ;;  %v3152_v23 = vrot.slane %v3150_v60, 5  ;;  %v3208_v3 = vrot.slane %v3206_v48, 5  ;;  %v3649_v60 = vrot.slane %v3522_v63, 5 }
 0x1d8   : > { %3721 = vrot.lane.b32.xlu1 %v3622_v18, %s8868_s12  ;;  %v3174_v18 = vshll.u32 %v2961_v12, 16  ;;  %v3143_v27 = vsel %vm8936_vm5, %v3138_v37, %v3142_v55  ;;  %v3162_v24 = vrot.slane %v3161_v14, 4 }
 0x1d9   : > { %v2660_v29 = vpop.permute.xlu0 %2659  ;;  %v3153_v39 = vsel %vm8936_vm5, %v3148_v1, %v3152_v23  ;;  %v3209_v14 = vor.u32 %v3208_v3, %v3205_v2  ;;  %v2968_v1 = vld [vmem:[#allocation2 + $0x90] sm:$0xf]  ;;  %v3650_v23 = vsel %vm9195_vm8, %v3648_v5, %v3649_v60  ;;  %v3528_v3 = vld [vmem:[#allocation2 + $0x8c] sm:$0x1] }
 0x1da   : > { %2734 = vst.msk [vmem:[#allocation3 + $0x58] sm:$0xf] %vm2711_vm13, %v2660_v29  ;;  %v2662_v42 = vpop.permute.xlu1 %2661  ;;  %v3182_v29 = vshll.u32 %v2962_v19, 16  ;;  %v3176_v35 = vrot.slane %v3174_v18, 5  ;;  %v3167_v50 = vsel %vm8936_vm5, %v3162_v24, %v9888_v8 }
 0x1db   : > { %3386 = vrot.lane.b32.xlu0 %v3095_v38, %s8867_s7  ;;  %2735 = vst.msk [vmem:[#allocation3 + $0x5c] sm:$0xf] %vm2711_vm13, %v2662_v42  ;;  %v2963_v38 = vld [vmem:[#allocation2 + $0x7c] sm:$0xf]  ;;  %v3210_v24 = vrot.slane %v3209_v14, 4 }
 0x1dc   : > { %3388 = vrot.lane.b32.xlu1 %v3105_v30, %s8867_s7  ;;  %v3517_v30 = vld [vmem:[#allocation2 + $0x60] sm:$0xe]  ;;  %v3188_v41 = vshll.u32 %v2963_v38, 16  ;;  %v3192_v42 = vshrl.u32 %v2963_v38, 16  ;;  %v3184_v16 = vrot.slane %v3182_v29, 5  ;;  %v3177_v55 = vsel %vm8936_vm5, %v3172_v25, %v3176_v35 }
 0x1dd   : > { %v2664_v53 = vpop.permute.xlu0 %2663  ;;  %v8371_v52 = vrot.slane %v3517_v30, 9  ;;  %v3524_v38 = vld [vmem:[#allocation2 + $0x7c] sm:$0xf]  ;;  %v3230_v25 = vshll.u32 %v2968_v1, 16  ;;  %v2973_v14 = vld [vmem:[#allocation2 + $0xa4] sm:$0x1] }
 0x1de   : > { %2736 = vst.msk [vmem:[#allocation3 + $0x60] sm:$0xf] %vm2711_vm13, %v2664_v53  ;;  %v2666_v59 = vpop.permute.xlu1 %2665  ;;  %v3181_v53 = vrot.slane %v3179_v28, 4  ;;  %v2969_v28 = vld [vmem:[#allocation2 + $0x94] sm:$0xf] }
 0x1df   : > { %3390 = vrot.lane.b32.xlu0 %v3119_v44, %s8867_s7  ;;  %2737 = vst.msk [vmem:[#allocation3 + $0x64] sm:$0xf] %vm2711_vm13, %v2666_v59  ;;  %v2966_v44 = vld [vmem:[#allocation2 + $0x88] sm:$0xf]  ;;  %v3190_v59 = vrot.slane %v3188_v41, 5  ;;  %v3640_v4 = vsel %vm9195_vm8, %v8371_v52, %v3639_v36 }
 0x1e0   : > { %3392 = vrot.lane.b32.xlu1 %v3129_v56, %s8867_s7  ;;  %v3212_v56 = vshll.u32 %v2966_v44, 16  ;;  %v3216_v57 = vshrl.u32 %v2966_v44, 16  ;;  %v3236_v44 = vshll.u32 %v2969_v28, 16  ;;  %v3527_v52 = vld [vmem:[#allocation2 + $0x88] sm:$0xf] }
 0x1e1   : > { %v2668_v6 = vpop.permute.xlu0 %2667 }
 0x1e2   : > { %2738 = vst.msk [vmem:[#allocation3 + $0x68] sm:$0xf] %vm2711_vm13, %v2668_v6  ;;  %v2670_v13 = vpop.permute.xlu1 %2669  ;;  %v8372_v6 = vrot.slane %v3520_v49, 9  ;;  %v9924_v10 = vrot.slane %v3212_v56, 5  ;;  %v3218_v11 = vrot.slane %v3216_v57, 4 }
 0x1e3   : > { %3723 = vrot.lane.b32.xlu0 %v3626_v61, %s8868_s12  ;;  %2739 = vst.msk [vmem:[#allocation3 + $0x6c] sm:$0xf] %vm2711_vm13, %v2670_v13  ;;  %v3194_v61 = vrot.slane %v3192_v42, 4  ;;  %v3198_v13 = vshll.u32 %v2964_v0, 16  ;;  %v3525_v42 = vld [vmem:[#allocation2 + $0x80] sm:$0x1] }
 0x1e4   : > { %3725 = vrot.lane.b32.xlu1 %v3629_v7, %s8868_s12  ;;  %v3185_v7 = vor.u32 %v3184_v16, %v3181_v53  ;;  %v3219_v19 = vor.u32 %v3218_v11, %v9924_v10  ;;  %v3215_v48 = vsel %vm8936_vm5, %v3210_v24, %v9924_v10  ;;  %v3232_v16 = vrot.slane %v3230_v25, 5  ;;  %v3526_v57 = vld [vmem:[#allocation2 + $0x84] sm:$0xe]  ;;  %v3530_v24 = vld [vmem:[#allocation2 + $0x94] sm:$0xf] }
 0x1e5   : > { %v2672_v15 = vpop.permute.xlu0 %2671  ;;  %v3195_v12 = vor.u32 %v3194_v61, %v3190_v59  ;;  %v3656_v56 = vrot.slane %v3525_v42, 5  ;;  %v3660_v61 = vrot.slane %v3527_v52, 5  ;;  %v3667_v42 = vrot.slane %v3530_v24, 5  ;;  %v3533_v52 = vld [vmem:[#allocation2 + $0xa0] sm:$0xf] }
 0x1e6   : > { %2740 = vst.msk [vmem:[#allocation3 + $0x70] sm:$0xf] %vm2711_vm13, %v2672_v15  ;;  %v2674_v22 = vpop.permute.xlu1 %2673  ;;  %v3647_v15 = vsel %vm9195_vm8, %v8372_v6, %v3646_v58  ;;  %v3186_v17 = vrot.slane %v3185_v7, 4  ;;  %v3220_v30 = vrot.slane %v3219_v19, 4  ;;  %v3264_v58 = vshrl.u32 %v2972_v46, 16 }
 0x1e7   : > { %3727 = vrot.lane.b32.xlu0 %v3633_v21, %s8868_s12  ;;  %2741 = vst.msk [vmem:[#allocation3 + $0x74] sm:$0xf] %vm2711_vm13, %v2674_v22  ;;  %v2967_v21 = vld [vmem:[#allocation2 + $0x8c] sm:$0x1]  ;;  %v3196_v26 = vrot.slane %v3195_v12, 4  ;;  %v3200_v22 = vrot.slane %v3198_v13, 5 }
 0x1e8   : > { %3729 = vrot.lane.b32.xlu1 %v3636_v20, %s8868_s12  ;;  %v3222_v20 = vshll.u32 %v2967_v21, 16  ;;  %v3191_v29 = vsel %vm8936_vm5, %v3186_v17, %v3190_v59  ;;  %v8374_v6 = vrot.slane %v3526_v57, 9  ;;  %v3266_v60 = vrot.slane %v3264_v58, 4  ;;  %v3532_v58 = vld [vmem:[#allocation2 + $0x9c] sm:$0xe] }
 0x1e9   : > { %v2676_v33 = vpop.permute.xlu0 %2675  ;;  %v3201_v41 = vsel %vm8936_vm5, %v3196_v26, %v3200_v22  ;;  %v3662_v12 = vrot.slane %v3660_v61, 4  ;;  %v3663_v13 = vrot.slane %v3528_v3, 5  ;;  %v2974_v26 = vld [vmem:[#allocation2 + $0xa8] sm:$0xf]  ;;  %v3669_v57 = vrot.slane %v3667_v42, 4 }
 0x1ea   : > { %2742 = vst.msk [vmem:[#allocation3 + $0x78] sm:$0xf] %vm2711_vm13, %v2676_v33  ;;  %v2678_v45 = vpop.permute.xlu1 %2677  ;;  %v3227_v33 = vshrl.u32 %v2968_v1, 16  ;;  %v3224_v36 = vrot.slane %v3222_v20, 5  ;;  %v3661_v17 = vsel %vm9195_vm8, %v8374_v6, %v3660_v61  ;;  %v3275_v25 = vshrl.u32 %v2974_v26, 16 }
 0x1eb   : > { %3394 = vrot.lane.b32.xlu0 %v3143_v27, %s8867_s7  ;;  %2743 = vst.msk [vmem:[#allocation3 + $0x7c] sm:$0xf] %vm2711_vm13, %v2678_v45  ;;  %v3240_v45 = vshrl.u32 %v2969_v28, 16  ;;  %v3664_v22 = vsel %vm9195_vm8, %v3662_v12, %v3663_v13  ;;  %v2976_v6 = vld [vmem:[#allocation2 + $0xb0] sm:$0x1] }
 0x1ec   : > { %3396 = vrot.lane.b32.xlu1 %v3153_v39, %s8867_s7  ;;  %v3653_v39 = vrot.slane %v3524_v38, 5  ;;  %v3229_v53 = vrot.slane %v3227_v33, 4  ;;  %v3225_v59 = vsel %vm8936_vm5, %v3220_v30, %v3224_v36  ;;  %v2977_v30 = vld [vmem:[#allocation2 + $0xb4] sm:$0xf] }
 0x1ed   : > { %v2810_v54 = vpop.permute.xlu0 %2809  ;;  %v3242_v63 = vrot.slane %v3240_v45, 4  ;;  %v3531_v45 = vld [vmem:[#allocation2 + $0x98] sm:$0x1] }
 0x1ee   : > { %2906 = vst.msk [vmem:[#allocation3] sm:$0xf] %vm2905_vm15, %v2810_v54  ;;  %v2812_v62 = vpop.permute.xlu1 %2811  ;;  %v3251_v54 = vshrl.u32 %v2971_v40, 16  ;;  %v3655_v49 = vrot.slane %v3653_v39, 4  ;;  %v3233_v7 = vor.u32 %v3232_v16, %v3229_v53  ;;  %v3299_v53 = vshrl.u32 %v2977_v30, 16 }
 0x1ef   : > { %3398 = vrot.lane.b32.xlu0 %v3167_v50, %s8867_s7  ;;  %2907 = vst.msk [vmem:[#allocation3 + $0x4] sm:$0xf] %vm2905_vm15, %v2812_v62  ;;  %v8373_v50 = vrot.slane %v3523_v31, 9  ;;  %v3238_v62 = vrot.slane %v3236_v44, 5  ;;  %v3302_v16 = vshll.u32 %v2977_v30, 16 }
 0x1f0   : > { %3400 = vrot.lane.b32.xlu1 %v3177_v55, %s8867_s7  ;;  %v3260_v55 = vshll.u32 %v2972_v46, 16  ;;  %v3657_v11 = vsel %vm9195_vm8, %v3655_v49, %v3656_v56  ;;  %v3535_v30 = vld [vmem:[#allocation2 + $0xa8] sm:$0xe] }
 0x1f1   : > { %v2814_v8 = vpop.permute.xlu0 %2813  ;;  %v3654_v2 = vsel %vm9195_vm8, %v8373_v50, %v3653_v39  ;;  %v3243_v21 = vor.u32 %v3242_v63, %v3238_v62  ;;  %v3674_v63 = vrot.slane %v3533_v52, 5 }
 0x1f2   : > { %2908 = vst.msk [vmem:[#allocation3 + $0x8] sm:$0xf] %vm2905_vm15, %v2814_v8  ;;  %v2816_v37 = vpop.permute.xlu1 %2815  ;;  %v3253_v8 = vrot.slane %v3251_v54, 4  ;;  %v9960_v5 = vrot.slane %v3260_v55, 5  ;;  %v3670_v55 = vrot.slane %v3531_v45, 5 }
 0x1f3   : > { %3731 = vrot.lane.b32.xlu0 %v3640_v4, %s8868_s12  ;;  %2909 = vst.msk [vmem:[#allocation3 + $0xc] sm:$0xf] %vm2905_vm15, %v2816_v37  ;;  %v2970_v4 = vld [vmem:[#allocation2 + $0x98] sm:$0x1]  ;;  %v3244_v38 = vrot.slane %v3243_v21, 4  ;;  %v3676_v21 = vrot.slane %v3674_v63, 4 }
 0x1f4   : > { %3733 = vrot.lane.b32.xlu1 %v3643_v9, %s8868_s12  ;;  %v3256_v9 = vrot.slane %v3254_v32, 5  ;;  %v3246_v37 = vshll.u32 %v2970_v4, 16  ;;  %v3267_v1 = vor.u32 %v3266_v60, %v9960_v5  ;;  %v3534_v4 = vld [vmem:[#allocation2 + $0xa4] sm:$0x1]  ;;  %v3671_v60 = vsel %vm9195_vm8, %v3669_v57, %v3670_v55  ;;  %v2983_v45 = vld [vmem:[#allocation2 + $0xcc] sm:$0xf] }
 0x1f5   : > { %v2818_v18 = vpop.permute.xlu0 %2817  ;;  %v3350_v57 = vshll.u32 %v2983_v45, 16 }
 0x1f6   : > { %2910 = vst.msk [vmem:[#allocation3 + $0x10] sm:$0xf] %vm2905_vm15, %v2818_v18  ;;  %v2820_v27 = vpop.permute.xlu1 %2819  ;;  %v3234_v18 = vrot.slane %v3233_v7, 4  ;;  %v3257_v19 = vor.u32 %v3256_v9, %v3253_v8  ;;  %v3268_v39 = vrot.slane %v3267_v1, 4  ;;  %v3301_v7 = vrot.slane %v3299_v53, 4 }
 0x1f7   : > { %3735 = vrot.lane.b32.xlu0 %v3647_v15, %s8868_s12  ;;  %2911 = vst.msk [vmem:[#allocation3 + $0x14] sm:$0xf] %vm2905_vm15, %v2820_v27  ;;  %v3248_v27 = vrot.slane %v3246_v37, 5  ;;  %v3304_v8 = vrot.slane %v3302_v16, 5  ;;  %v3677_v37 = vrot.slane %v3534_v4, 5 }
 0x1f8   : > { %3737 = vrot.lane.b32.xlu1 %v3650_v23, %s8868_s12  ;;  %v3270_v23 = vshll.u32 %v2973_v14, 16  ;;  %v3239_v31 = vsel %vm8936_vm5, %v3234_v18, %v3238_v62  ;;  %v3258_v33 = vrot.slane %v3257_v19, 4 }
 0x1f9   : > { %v2822_v35 = vpop.permute.xlu0 %2821  ;;  %v3249_v44 = vsel %vm8936_vm5, %v3244_v38, %v3248_v27  ;;  %v3305_v19 = vor.u32 %v3304_v8, %v3301_v7  ;;  %v2980_v38 = vld [vmem:[#allocation2 + $0xc0] sm:$0xf]  ;;  %v3678_v27 = vsel %vm9195_vm8, %v3676_v21, %v3677_v37 }
 0x1fa   : > { %2912 = vst.msk [vmem:[#allocation3 + $0x18] sm:$0xf] %vm2905_vm15, %v2822_v35  ;;  %v2824_v47 = vpop.permute.xlu1 %2823  ;;  %v3278_v35 = vshll.u32 %v2974_v26, 16  ;;  %v3272_v40 = vrot.slane %v3270_v23, 5  ;;  %v3263_v54 = vsel %vm8936_vm5, %v3258_v33, %v9960_v5 }
 0x1fb   : > { %3402 = vrot.lane.b32.xlu0 %v3191_v29, %s8867_s7  ;;  %2913 = vst.msk [vmem:[#allocation3 + $0x1c] sm:$0xf] %vm2905_vm15, %v2824_v47  ;;  %v2975_v29 = vld [vmem:[#allocation2 + $0xac] sm:$0xf]  ;;  %v3306_v33 = vrot.slane %v3305_v19, 4 }
 0x1fc   : > { %3404 = vrot.lane.b32.xlu1 %v3201_v41, %s8867_s7  ;;  %v3529_v41 = vld [vmem:[#allocation2 + $0x90] sm:$0xe]  ;;  %v3284_v46 = vshll.u32 %v2975_v29, 16  ;;  %v3288_v47 = vshrl.u32 %v2975_v29, 16  ;;  %v3280_v49 = vrot.slane %v3278_v35, 5  ;;  %v3273_v62 = vsel %vm8936_vm5, %v3268_v39, %v3272_v40 }
 0x1fd   : > { %v2826_v51 = vpop.permute.xlu0 %2825  ;;  %v8375_v32 = vrot.slane %v3529_v41, 9  ;;  %v3536_v29 = vld [vmem:[#allocation2 + $0xac] sm:$0xf]  ;;  %v3326_v39 = vshll.u32 %v2980_v38, 16 }
 0x1fe   : > { %2914 = vst.msk [vmem:[#allocation3 + $0x20] sm:$0xf] %vm2905_vm15, %v2826_v51  ;;  %v2828_v0 = vpop.permute.xlu1 %2827  ;;  %v3277_v51 = vrot.slane %v3275_v25, 4  ;;  %v2981_v25 = vld [vmem:[#allocation2 + $0xc4] sm:$0xf] }
 0x1ff   : > { %3406 = vrot.lane.b32.xlu0 %v3215_v48, %s8867_s7  ;;  %2915 = vst.msk [vmem:[#allocation3 + $0x24] sm:$0xf] %vm2905_vm15, %v2828_v0  ;;  %v2978_v48 = vld [vmem:[#allocation2 + $0xb8] sm:$0xf]  ;;  %v3286_v0 = vrot.slane %v3284_v46, 5  ;;  %v3668_v9 = vsel %vm9195_vm8, %v8375_v32, %v3667_v42  ;;  %v3336_v52 = vshrl.u32 %v2981_v25, 16 }
 0x200   : > { %3408 = vrot.lane.b32.xlu1 %v3225_v59, %s8867_s7  ;;  %v3308_v59 = vshll.u32 %v2978_v48, 16  ;;  %v3312_v61 = vshrl.u32 %v2978_v48, 16  ;;  %v3539_v48 = vld [vmem:[#allocation2 + $0xb8] sm:$0xf]  ;;  %v2984_v32 = vld [vmem:[#allocation2 + $0xd0] sm:$0xf] }
 0x201   : > { %v2830_v10 = vpop.permute.xlu0 %2829  ;;  %v3356_v4 = vshll.u32 %v2984_v32, 16 }
 0x202   : > { %2916 = vst.msk [vmem:[#allocation3 + $0x28] sm:$0xf] %vm2905_vm15, %v2830_v10  ;;  %v2832_v15 = vpop.permute.xlu1 %2831  ;;  %v8376_v10 = vrot.slane %v3532_v58, 9  ;;  %v9996_v12 = vrot.slane %v3308_v59, 5  ;;  %v3314_v13 = vrot.slane %v3312_v61, 4 }
 0x203   : > { %3739 = vrot.lane.b32.xlu0 %v3654_v2, %s8868_s12  ;;  %2917 = vst.msk [vmem:[#allocation3 + $0x2c] sm:$0xf] %vm2905_vm15, %v2832_v15  ;;  %v3290_v2 = vrot.slane %v3288_v47, 4  ;;  %v3294_v15 = vshll.u32 %v2976_v6, 16  ;;  %v3537_v47 = vld [vmem:[#allocation2 + $0xb0] sm:$0x1] }
 0x204   : > { %3741 = vrot.lane.b32.xlu1 %v3657_v11, %s8868_s12  ;;  %v3281_v11 = vor.u32 %v3280_v49, %v3277_v51  ;;  %v3315_v26 = vor.u32 %v3314_v13, %v9996_v12  ;;  %v3311_v16 = vsel %vm8936_vm5, %v3306_v33, %v9996_v12  ;;  %v3328_v49 = vrot.slane %v3326_v39, 5  ;;  %v3542_v33 = vld [vmem:[#allocation2 + $0xc4] sm:$0xf] }
 0x205   : > { %v2834_v20 = vpop.permute.xlu0 %2833  ;;  %v3291_v14 = vor.u32 %v3290_v2, %v3286_v0  ;;  %v3684_v61 = vrot.slane %v3537_v47, 5  ;;  %v3360_v6 = vshrl.u32 %v2984_v32, 16 }
 0x206   : > { %2918 = vst.msk [vmem:[#allocation3 + $0x30] sm:$0xf] %vm2905_vm15, %v2834_v20  ;;  %v2836_v28 = vpop.permute.xlu1 %2835  ;;  %v3675_v20 = vsel %vm9195_vm8, %v8376_v10, %v3674_v63  ;;  %v3282_v1 = vrot.slane %v3281_v11, 4  ;;  %v3316_v41 = vrot.slane %v3315_v26, 4  ;;  %v3688_v63 = vrot.slane %v3539_v48, 5 }
 0x207   : > { %3743 = vrot.lane.b32.xlu0 %v3661_v17, %s8868_s12  ;;  %2919 = vst.msk [vmem:[#allocation3 + $0x34] sm:$0xf] %vm2905_vm15, %v2836_v28  ;;  %v2979_v17 = vld [vmem:[#allocation2 + $0xbc] sm:$0x1]  ;;  %v3292_v24 = vrot.slane %v3291_v14, 4  ;;  %v3296_v28 = vrot.slane %v3294_v15, 5 }
 0x208   : > { %3745 = vrot.lane.b32.xlu1 %v3664_v22, %s8868_s12  ;;  %v3318_v22 = vshll.u32 %v2979_v17, 16  ;;  %v3287_v35 = vsel %vm8936_vm5, %v3282_v1, %v3286_v0  ;;  %v3540_v0 = vld [vmem:[#allocation2 + $0xbc] sm:$0x1]  ;;  %v3690_v21 = vrot.slane %v3688_v63, 4  ;;  %v3358_v17 = vrot.slane %v3356_v4, 5 }
 0x209   : > { %v2838_v36 = vpop.permute.xlu0 %2837  ;;  %v3297_v46 = vsel %vm8936_vm5, %v3292_v24, %v3296_v28  ;;  %v3691_v37 = vrot.slane %v3540_v0, 5 }
 0x20a   : > { %2920 = vst.msk [vmem:[#allocation3 + $0x38] sm:$0xf] %vm2905_vm15, %v2838_v36  ;;  %v2840_v50 = vpop.permute.xlu1 %2839  ;;  %v3323_v36 = vshrl.u32 %v2980_v38, 16  ;;  %v3320_v42 = vrot.slane %v3318_v22, 5 }
 0x20b   : > { %3410 = vrot.lane.b32.xlu0 %v3239_v31, %s8867_s7  ;;  %2921 = vst.msk [vmem:[#allocation3 + $0x3c] sm:$0xf] %vm2905_vm15, %v2840_v50  ;;  %v3332_v50 = vshll.u32 %v2981_v25, 16  ;;  %v3692_v38 = vsel %vm9195_vm8, %v3690_v21, %v3691_v37 }
 0x20c   : > { %3412 = vrot.lane.b32.xlu1 %v3249_v44, %s8867_s7  ;;  %v3681_v44 = vrot.slane %v3536_v29, 5  ;;  %v3325_v51 = vrot.slane %v3323_v36, 4  ;;  %v3321_v58 = vsel %vm8936_vm5, %v3316_v41, %v3320_v42  ;;  %v3541_v36 = vld [vmem:[#allocation2 + $0xc0] sm:$0xe]  ;;  %v3695_v42 = vrot.slane %v3542_v33, 5 }
 0x20d   : > { %v2842_v56 = vpop.permute.xlu0 %2841  ;;  %v3334_v2 = vrot.slane %v3332_v50, 5  ;;  %v8379_v48 = vrot.slane %v3541_v36, 9 }
 0x20e   : > { %2922 = vst.msk [vmem:[#allocation3 + $0x40] sm:$0xf] %vm2905_vm15, %v2842_v56  ;;  %v2844_v3 = vpop.permute.xlu1 %2843  ;;  %v3347_v56 = vshrl.u32 %v2983_v45, 16  ;;  %v3683_v59 = vrot.slane %v3681_v44, 4  ;;  %v3329_v11 = vor.u32 %v3328_v49, %v3325_v51  ;;  %v3543_v45 = vld [vmem:[#allocation2 + $0xc8] sm:$0x1] }
 0x20f   : > { %3414 = vrot.lane.b32.xlu0 %v3263_v54, %s8867_s7  ;;  %2923 = vst.msk [vmem:[#allocation3 + $0x44] sm:$0xf] %vm2905_vm15, %v2844_v3  ;;  %v8377_v54 = vrot.slane %v3535_v30, 9  ;;  %v3338_v3 = vrot.slane %v3336_v52, 4  ;;  %v3544_v52 = vld [vmem:[#allocation2 + $0xcc] sm:$0xe] }
 0x210   : > { %3416 = vrot.lane.b32.xlu1 %v3273_v62, %s8867_s7  ;;  %v3538_v62 = vld [vmem:[#allocation2 + $0xb4] sm:$0xe]  ;;  %v3685_v13 = vsel %vm9195_vm8, %v3683_v59, %v3684_v61  ;;  %v3546_v49 = vld [vmem:[#allocation2 + $0xd4] sm:$0x1] }
 0x211   : > { %v2846_v5 = vpop.permute.xlu0 %2845  ;;  %v3682_v8 = vsel %vm9195_vm8, %v8377_v54, %v3681_v44  ;;  %v8378_v10 = vrot.slane %v3538_v62, 9  ;;  %v3339_v14 = vor.u32 %v3338_v3, %v3334_v2  ;;  %v3698_v54 = vrot.slane %v3543_v45, 5 }
 0x212   : > { %2924 = vst.msk [vmem:[#allocation3 + $0x48] sm:$0xf] %vm2905_vm15, %v2846_v5  ;;  %v2848_v18 = vpop.permute.xlu1 %2847  ;;  %v3349_v5 = vrot.slane %v3347_v56, 4  ;;  %v3696_v56 = vsel %vm9195_vm8, %v8379_v48, %v3695_v42  ;;  %v3705_v61 = vrot.slane %v3546_v49, 5 }
 0x213   : > { %3747 = vrot.lane.b32.xlu0 %v3668_v9, %s8868_s12  ;;  %2925 = vst.msk [vmem:[#allocation3 + $0x4c] sm:$0xf] %vm2905_vm15, %v2848_v18  ;;  %v2982_v9 = vld [vmem:[#allocation2 + $0xc8] sm:$0x1]  ;;  %v3362_v18 = vrot.slane %v3360_v6, 4  ;;  %v3689_v1 = vsel %vm9195_vm8, %v8378_v10, %v3688_v63 }
 0x214   : > { %3749 = vrot.lane.b32.xlu1 %v3671_v60, %s8868_s12  ;;  %v3352_v60 = vrot.slane %v3350_v57, 5  ;;  %v3342_v15 = vshll.u32 %v2982_v9, 16  ;;  %v8380_v57 = vrot.slane %v3544_v52, 9  ;;  %v4637_v6 = vld [vmem:[#allocation2] sm:$0xf] }
 0x215   : > { %v2850_v23 = vpop.permute.xlu0 %2849  ;;  %v3363_v28 = vor.u32 %v3362_v18, %v3358_v17  ;;  %v4638_v9 = vld [vmem:[#allocation2 + $0x4] sm:$0xf] }
 0x216   : > { %2926 = vst.msk [vmem:[#allocation3 + $0x50] sm:$0xf] %vm2905_vm15, %v2850_v23  ;;  %v2852_v31 = vpop.permute.xlu1 %2851  ;;  %v3330_v23 = vrot.slane %v3329_v11, 4  ;;  %v3353_v26 = vor.u32 %v3352_v60, %v3349_v5  ;;  %v3344_v24 = vrot.slane %v3342_v15, 5 }
 0x217   : > { %3751 = vrot.lane.b32.xlu0 %v3675_v20, %s8868_s12  ;;  %2927 = vst.msk [vmem:[#allocation3 + $0x54] sm:$0xf] %vm2905_vm15, %v2852_v31  ;;  %v2985_v20 = vld [vmem:[#allocation2 + $0xd4] sm:$0x1] }
 0x218   : > { %3753 = vrot.lane.b32.xlu1 %v3678_v27, %s8868_s12  ;;  %v3340_v27 = vrot.slane %v3339_v14, 4  ;;  %v3366_v29 = vshll.u32 %v2985_v20, 16  ;;  %v3335_v25 = vsel %vm8936_vm5, %v3330_v23, %v3334_v2 }
 0x219   : > { %v2854_v40 = vpop.permute.xlu0 %2853 }
 0x21a   : > { %2928 = vst.msk [vmem:[#allocation3 + $0x58] sm:$0xf] %vm2905_vm15, %v2854_v40  ;;  %v2856_v53 = vpop.permute.xlu1 %2855  ;;  %v3345_v39 = vsel %vm8936_vm5, %v3340_v27, %v3344_v24  ;;  %v3364_v40 = vrot.slane %v3363_v28, 4  ;;  %v3368_v41 = vrot.slane %v3366_v29, 5 }
 0x21b   : > { %3418 = vrot.lane.b32.xlu0 %v3287_v35, %s8867_s7  ;;  %2929 = vst.msk [vmem:[#allocation3 + $0x5c] sm:$0xf] %vm2905_vm15, %v2856_v53  ;;  %v3354_v35 = vrot.slane %v3353_v26, 4 }
 0x21c   : > { %3420 = vrot.lane.b32.xlu1 %v3297_v46, %s8867_s7  ;;  %v3545_v46 = vld [vmem:[#allocation2 + $0xd0] sm:$0xf]  ;;  %v3369_v53 = vsel %vm8936_vm5, %v3364_v40, %v3368_v41 }
 0x21d   : > { %v2858_v55 = vpop.permute.xlu0 %2857  ;;  %v3359_v47 = vsel %vm8936_vm5, %v3354_v35, %v3358_v17  ;;  %v3702_v32 = vrot.slane %v3545_v46, 5 }
 0x21e   : > { %2930 = vst.msk [vmem:[#allocation3 + $0x60] sm:$0xf] %vm2905_vm15, %v2858_v55  ;;  %v2860_v7 = vpop.permute.xlu1 %2859 }
 0x21f   : > { %3422 = vrot.lane.b32.xlu0 %v3311_v16, %s8867_s7  ;;  %2931 = vst.msk [vmem:[#allocation3 + $0x64] sm:$0xf] %vm2905_vm15, %v2860_v7  ;;  %v3697_v16 = vrot.slane %v3695_v42, 4  ;;  %v3704_v59 = vrot.slane %v3702_v32, 4  ;;  %v3703_v63 = vsel %vm9195_vm8, %v8380_v57, %v3702_v32 }
 0x220   : > { %3424 = vrot.lane.b32.xlu1 %v3321_v58, %s8867_s7 }
 0x221   : > { %v2862_v12 = vpop.permute.xlu0 %2861  ;;  %v3699_v58 = vsel %vm9195_vm8, %v3697_v16, %v3698_v54  ;;  %v3706_v2 = vsel %vm9195_vm8, %v3704_v59, %v3705_v61 }
 0x222   : > { %2932 = vst.msk [vmem:[#allocation3 + $0x68] sm:$0xf] %vm2905_vm15, %v2862_v12  ;;  %v2864_v19 = vpop.permute.xlu1 %2863 }
 0x223   : > { %3755 = vrot.lane.b32.xlu0 %v3682_v8, %s8868_s12  ;;  %2933 = vst.msk [vmem:[#allocation3 + $0x6c] sm:$0xf] %vm2905_vm15, %v2864_v19 }
 0x224   : > { %3757 = vrot.lane.b32.xlu1 %v3685_v13, %s8868_s12 }
 0x225   : > { %v2866_v22 = vpop.permute.xlu0 %2865 }
 0x226   : > { %2934 = vst.msk [vmem:[#allocation3 + $0x70] sm:$0xf] %vm2905_vm15, %v2866_v22  ;;  %v2868_v31 = vpop.permute.xlu1 %2867 }
 0x227   : > { %3759 = vrot.lane.b32.xlu0 %v3689_v1, %s8868_s12  ;;  %2935 = vst.msk [vmem:[#allocation3 + $0x74] sm:$0xf] %vm2905_vm15, %v2868_v31 }
 0x228   : > { %3761 = vrot.lane.b32.xlu1 %v3692_v38, %s8868_s12 }
 0x229   : > { %v2870_v30 = vpop.permute.xlu0 %2869 }
 0x22a   : > { %2936 = vst.msk [vmem:[#allocation3 + $0x78] sm:$0xf] %vm2905_vm15, %v2870_v30  ;;  %v2872_v44 = vpop.permute.xlu1 %2871 }
 0x22b   : > { %3426 = vrot.lane.b32.xlu0 %v3335_v25, %s8867_s7  ;;  %2937 = vst.msk [vmem:[#allocation3 + $0x7c] sm:$0xf] %vm2905_vm15, %v2872_v44 }
 0x22c   : > { %3428 = vrot.lane.b32.xlu1 %v3345_v39, %s8867_s7 }
 0x22d   : > { %v3371_v50 = vpop.permute.xlu0 %3370 }
 0x22e   : > { %3467 = vst.msk [vmem:[#allocation3] sm:$0xf] %vm3466_vm2, %v3371_v50  ;;  %v3373_v51 = vpop.permute.xlu1 %3372 }
 0x22f   : > { %3430 = vrot.lane.b32.xlu0 %v3359_v47, %s8867_s7  ;;  %3468 = vst.msk [vmem:[#allocation3 + $0x4] sm:$0xf] %vm3466_vm2, %v3373_v51 }
 0x230   : > { %3432 = vrot.lane.b32.xlu1 %v3369_v53, %s8867_s7 }
 0x231   : > { %v3375_v55 = vpop.permute.xlu0 %3374 }
 0x232   : > { %3469 = vst.msk [vmem:[#allocation3 + $0x8] sm:$0xf] %vm3466_vm2, %v3375_v55  ;;  %v3377_v62 = vpop.permute.xlu1 %3376 }
 0x233   : > { %3763 = vrot.lane.b32.xlu0 %v3696_v56, %s8868_s12  ;;  %3470 = vst.msk [vmem:[#allocation3 + $0xc] sm:$0xf] %vm3466_vm2, %v3377_v62 }
 0x234   : > { %3765 = vrot.lane.b32.xlu1 %v3699_v58, %s8868_s12 }
 0x235   : > { %v3708_v0 = vpop.permute.xlu0 %3707 }
 0x236   : > { %3804 = vst.msk [vmem:[#allocation3] sm:$0xf] %vm3803_vm3, %v3708_v0  ;;  %v3710_v3 = vpop.permute.xlu1 %3709 }
 0x237   : > { %3767 = vrot.lane.b32.xlu0 %v3703_v63, %s8868_s12  ;;  %3805 = vst.msk [vmem:[#allocation3 + $0x4] sm:$0xf] %vm3803_vm3, %v3710_v3 }
 0x238   : > { %3769 = vrot.lane.b32.xlu1 %v3706_v2, %s8868_s12 }
 0x239   : > { %v3712_v4 = vpop.permute.xlu0 %3711 }
 0x23a   : > { %3806 = vst.msk [vmem:[#allocation3 + $0x8] sm:$0xf] %vm3803_vm3, %v3712_v4  ;;  %v3714_v7 = vpop.permute.xlu1 %3713  ;;  %v4701_v4 = vld [vmem:[#allocation2] sm:$0xf] }
 0x23b   : > { %3807 = vst.msk [vmem:[#allocation3 + $0xc] sm:$0xf] %vm3803_vm3, %v3714_v7  ;;  %v4750_v7 = vshrl.u32 %v4701_v4, 16 }
 0x23d   : > { %v3836_v8 = vld [vmem:[#allocation3] sm:$0xf]  ;;  %v3379_v10 = vpop.permute.xlu0 %3378 }
 0x23e   : > { %4669 = vst.msk [vmem:[#allocation3] sm:$0xf] %vm258_vm0, %v4637_v6  ;;  %v3837_v11 = vld [vmem:[#allocation3 + $0x4] sm:$0xf]  ;;  %v3381_v5 = vpop.permute.xlu1 %3380 }
 0x23f   : > { %3471 = vst.msk [vmem:[#allocation3 + $0x10] sm:$0xf] %vm3466_vm2, %v3379_v10  ;;  %3472 = vst.msk [vmem:[#allocation3 + $0x14] sm:$0xf] %vm3466_vm2, %v3381_v5  ;;  %v8382_v60 = vcombine.low %v3836_v8, %v3837_v11  ;;  %v4753_v8 = vshll.u32 %v4701_v4, 16  ;;  %v4752_v10 = vrot.slane %v4750_v7, 4 }
 0x240   : > { %4670 = vst.msk [vmem:[#allocation3 + $0x4] sm:$0xf] %vm258_vm0, %v4638_v9  ;;  %v4702_v5 = vld [vmem:[#allocation2 + $0x4] sm:$0xf] }
 0x241   : > { %v3383_v12 = vpop.permute.xlu0 %3382  ;;  %8693 = vmatprep.mubr.msk.bf16.mxu0 %vm3975_vm6, %v8382_v60  ;;  %v4755_v11 = vrot.slane %v4753_v8, 5 }
 0x242   : > { %3473 = vst.msk [vmem:[#allocation3 + $0x18] sm:$0xf] %vm3466_vm2, %v3383_v12  ;;  %v3385_v13 = vpop.permute.xlu1 %3384  ;;  %v8785_v21 = vld [vmem:[#allocation3 + $0x8] sm:$0xff]  }
 0x243   : > { %3474 = vst.msk [vmem:[#allocation3 + $0x1c] sm:$0xf] %vm3466_vm2, %v3385_v13  ;;  %8694 = vmatmul.mubr.msk.bf16.vlgmr.msra.gmra.mxu0 %vm3975_vm6, %v8785_v21  ;;  %v4756_v12 = vor.u32 %v4755_v11, %v4752_v10  ;;  %v4759_v13 = vshll.u32 %v4702_v5, 16  ;;  %v4763_v21 = vshrl.u32 %v4702_v5, 16 }
 0x245   : > { %v3716_v37 = vpop.permute.xlu0 %3715 }
 0x246   : > { %3808 = vst.msk [vmem:[#allocation3 + $0x10] sm:$0xf] %vm3803_vm3, %v3716_v37  ;;  %v3718_v14 = vpop.permute.xlu1 %3717 }
 0x247   : > { %3809 = vst.msk [vmem:[#allocation3 + $0x14] sm:$0xf] %vm3803_vm3, %v3718_v14  ;;  %v4757_v14 = vrot.slane %v4756_v12, 4 }
 0x249   : > { %v3720_v15 = vpop.permute.xlu0 %3719 }
 0x24a   : > { %3810 = vst.msk [vmem:[#allocation3 + $0x18] sm:$0xf] %vm3803_vm3, %v3720_v15  ;;  %v3722_v17 = vpop.permute.xlu1 %3721  ;;  %v4761_v15 = vrot.slane %v4759_v13, 5 }
 0x24b   : > { %3811 = vst.msk [vmem:[#allocation3 + $0x1c] sm:$0xf] %vm3803_vm3, %v3722_v17  ;;  %v4765_v17 = vrot.slane %v4763_v21, 4 }
 0x24d   : > { %v3387_v18 = vpop.permute.xlu0 %3386 }
 0x24e   : > { %3475 = vst.msk [vmem:[#allocation3 + $0x20] sm:$0xf] %vm3466_vm2, %v3387_v18  ;;  %v3389_v19 = vpop.permute.xlu1 %3388  ;;  %v8786_v20 = vld [vmem:[#allocation3 + $0x10] sm:$0xff]  }
 0x24f   : > { %3476 = vst.msk [vmem:[#allocation3 + $0x24] sm:$0xf] %vm3466_vm2, %v3389_v19  ;;  %8697 = vmatprep.mubr.msk.bf16.mxu0 %vm3975_vm6, %v8786_v20  ;;  %v4703_v18 = vld [vmem:[#allocation2 + $0x8] sm:$0x1]  ;;  %v4762_v20 = vsel %vm8936_vm5, %v4757_v14, %v4761_v15 }
 0x250   : > { %5133 = vrot.lane.b32.xlu0 %v4762_v20, %s8861_s24 }
 0x251   : > { %v3391_v1 = vpop.permute.xlu0 %3390 }
 0x252   : > { %3477 = vst.msk [vmem:[#allocation3 + $0x28] sm:$0xf] %vm3466_vm2, %v3391_v1  ;;  %v3393_v23 = vpop.permute.xlu1 %3392  ;;  %v8787_v26 = vld [vmem:[#allocation3 + $0x18] sm:$0xff]   ;;  %v4766_v1 = vor.u32 %v4765_v17, %v4761_v15 }
 0x253   : > { %3478 = vst.msk [vmem:[#allocation3 + $0x2c] sm:$0xf] %vm3466_vm2, %v3393_v23  ;;  %8698 = vmatmul.mubr.msk.bf16.gmra.mxu0 %vm3975_vm6, %v8787_v26  ;;  %v4769_v23 = vshll.u32 %v4703_v18, 16 }
 0x255   : > { %v3724_v22 = vpop.permute.xlu0 %3723 }
 0x256   : > { %3812 = vst.msk [vmem:[#allocation3 + $0x20] sm:$0xf] %vm3803_vm3, %v3724_v22  ;;  %v3726_v38 = vpop.permute.xlu1 %3725 }
 0x257   : > { %3813 = vst.msk [vmem:[#allocation3 + $0x24] sm:$0xf] %vm3803_vm3, %v3726_v38  ;;  %v4767_v38 = vrot.slane %v4766_v1, 4 }
 0x259   : > { %v3728_v27 = vpop.permute.xlu0 %3727 }
 0x25a   : > { %3814 = vst.msk [vmem:[#allocation3 + $0x28] sm:$0xf] %vm3803_vm3, %v3728_v27  ;;  %v3730_v24 = vpop.permute.xlu1 %3729  ;;  %v4771_v27 = vrot.slane %v4769_v23, 5 }
 0x25b   : > { %3815 = vst.msk [vmem:[#allocation3 + $0x2c] sm:$0xf] %vm3803_vm3, %v3730_v24 }
 0x25d   : > { %v3395_v28 = vpop.permute.xlu0 %3394 }
 0x25e   : > { %3479 = vst.msk [vmem:[#allocation3 + $0x30] sm:$0xf] %vm3466_vm2, %v3395_v28  ;;  %v3397_v29 = vpop.permute.xlu1 %3396  ;;  %v8788_v31 = vld [vmem:[#allocation3 + $0x20] sm:$0xff]   ;;  %v4772_v28 = vsel %vm8936_vm5, %v4767_v38, %v4771_v27 }
 0x25f   : > { %3480 = vst.msk [vmem:[#allocation3 + $0x34] sm:$0xf] %vm3466_vm2, %v3397_v29  ;;  %8701 = vmatprep.mubr.msk.bf16.mxu0 %vm3975_vm6, %v8788_v31  ;;  %5135 = vrot.lane.b32.xlu1 %v4772_v28, %s8861_s24 }
 0x261   : > { %v3399_v33 = vpop.permute.xlu0 %3398 }
 0x262   : > { %3481 = vst.msk [vmem:[#allocation3 + $0x38] sm:$0xf] %vm3466_vm2, %v3399_v33  ;;  %v3401_v25 = vpop.permute.xlu1 %3400  ;;  %v8789_v35 = vld [vmem:[#allocation3 + $0x28] sm:$0xff]  }
 0x263   : > { %3482 = vst.msk [vmem:[#allocation3 + $0x3c] sm:$0xf] %vm3466_vm2, %v3401_v25  ;;  %8702 = vmatmul.mubr.msk.bf16.gmra.mxu0 %vm3975_vm6, %v8789_v35 }
 0x265   : > { %v3732_v30 = vpop.permute.xlu0 %3731 }
 0x266   : > { %3816 = vst.msk [vmem:[#allocation3 + $0x30] sm:$0xf] %vm3803_vm3, %v3732_v30  ;;  %v3734_v36 = vpop.permute.xlu1 %3733 }
 0x267   : > { %3817 = vst.msk [vmem:[#allocation3 + $0x34] sm:$0xf] %vm3803_vm3, %v3734_v36 }
 0x269   : > { %v3736_v39 = vpop.permute.xlu0 %3735 }
 0x26a   : > { %3818 = vst.msk [vmem:[#allocation3 + $0x38] sm:$0xf] %vm3803_vm3, %v3736_v39  ;;  %v3738_v40 = vpop.permute.xlu1 %3737 }
 0x26b   : > { %3819 = vst.msk [vmem:[#allocation3 + $0x3c] sm:$0xf] %vm3803_vm3, %v3738_v40  ;;  %v10161_v40 = vld [vmem:[%s11410_s3] ss:$0 sm:$0xff] }
 0x26d   : > { %v3403_v41 = vpop.permute.xlu0 %3402 }
 0x26e   : > { %3483 = vst.msk [vmem:[#allocation3 + $0x40] sm:$0xf] %vm3466_vm2, %v3403_v41  ;;  %v3405_v42 = vpop.permute.xlu1 %3404  ;;  %v8790_v44 = vld [vmem:[#allocation3 + $0x30] sm:$0xff]  }
 0x26f   : > { %3484 = vst.msk [vmem:[#allocation3 + $0x44] sm:$0xf] %vm3466_vm2, %v3405_v42  ;;  %8705 = vmatprep.mubr.msk.bf16.mxu0 %vm3975_vm6, %v8790_v44 }
 0x271   : > { %v3407_v45 = vpop.permute.xlu0 %3406 }
 0x272   : > { %3485 = vst.msk [vmem:[#allocation3 + $0x48] sm:$0xf] %vm3466_vm2, %v3407_v45  ;;  %v3409_v46 = vpop.permute.xlu1 %3408  ;;  %v8791_v47 = vld [vmem:[#allocation3 + $0x38] sm:$0xff]  }
 0x273   : > { %3486 = vst.msk [vmem:[#allocation3 + $0x4c] sm:$0xf] %vm3466_vm2, %v3409_v46  ;;  %8706 = vmatmul.mubr.msk.bf16.gmra.mxu0 %vm3975_vm6, %v8791_v47 }
 0x275   : > { %v3740_v48 = vpop.permute.xlu0 %3739 }
 0x276   : > { %3820 = vst.msk [vmem:[#allocation3 + $0x40] sm:$0xf] %vm3803_vm3, %v3740_v48  ;;  %v3742_v50 = vpop.permute.xlu1 %3741 }
 0x277   : > { %3821 = vst.msk [vmem:[#allocation3 + $0x44] sm:$0xf] %vm3803_vm3, %v3742_v50 }
 0x279   : > { %v3744_v52 = vpop.permute.xlu0 %3743 }
 0x27a   : > { %3822 = vst.msk [vmem:[#allocation3 + $0x48] sm:$0xf] %vm3803_vm3, %v3744_v52  ;;  %v3746_v53 = vpop.permute.xlu1 %3745 }
 0x27b   : > { %3823 = vst.msk [vmem:[#allocation3 + $0x4c] sm:$0xf] %vm3803_vm3, %v3746_v53 }
 0x27d   : > { %v3411_v16 = vpop.permute.xlu0 %3410 }
 0x27e   : > { %3487 = vst.msk [vmem:[#allocation3 + $0x50] sm:$0xf] %vm3466_vm2, %v3411_v16  ;;  %v3413_v54 = vpop.permute.xlu1 %3412  ;;  %v8792_v32 = vld [vmem:[#allocation3 + $0x40] sm:$0xff]  }
 0x27f   : > { %3488 = vst.msk [vmem:[#allocation3 + $0x54] sm:$0xf] %vm3466_vm2, %v3413_v54  ;;  %8709 = vmatprep.mubr.msk.bf16.mxu0 %vm3975_vm6, %v8792_v32 }
 0x281   : > { %v3415_v51 = vpop.permute.xlu0 %3414 }
 0x282   : > { %3489 = vst.msk [vmem:[#allocation3 + $0x58] sm:$0xf] %vm3466_vm2, %v3415_v51  ;;  %v3417_v49 = vpop.permute.xlu1 %3416  ;;  %v8793_v56 = vld [vmem:[#allocation3 + $0x48] sm:$0xff]  }
 0x283   : > { %3490 = vst.msk [vmem:[#allocation3 + $0x5c] sm:$0xf] %vm3466_vm2, %v3417_v49  ;;  %8710 = vmatmul.mubr.msk.bf16.gmra.mxu0 %vm3975_vm6, %v8793_v56 }
 0x285   : > { %v3748_v57 = vpop.permute.xlu0 %3747 }
 0x286   : > { %3824 = vst.msk [vmem:[#allocation3 + $0x50] sm:$0xf] %vm3803_vm3, %v3748_v57  ;;  %v3750_v55 = vpop.permute.xlu1 %3749 }
 0x287   : > { %3825 = vst.msk [vmem:[#allocation3 + $0x54] sm:$0xf] %vm3803_vm3, %v3750_v55 }
 0x289   : > { %v3752_v58 = vpop.permute.xlu0 %3751 }
 0x28a   : > { %3826 = vst.msk [vmem:[#allocation3 + $0x58] sm:$0xf] %vm3803_vm3, %v3752_v58  ;;  %v3754_v59 = vpop.permute.xlu1 %3753 }
 0x28b   : > { %3827 = vst.msk [vmem:[#allocation3 + $0x5c] sm:$0xf] %vm3803_vm3, %v3754_v59 }
 0x28d   : > { %v3419_v61 = vpop.permute.xlu0 %3418 }
 0x28e   : > { %3491 = vst.msk [vmem:[#allocation3 + $0x60] sm:$0xf] %vm3466_vm2, %v3419_v61  ;;  %v3421_v62 = vpop.permute.xlu1 %3420  ;;  %v8794_v63 = vld [vmem:[#allocation3 + $0x50] sm:$0xff]  }
 0x28f   : > { %3492 = vst.msk [vmem:[#allocation3 + $0x64] sm:$0xf] %vm3466_vm2, %v3421_v62  ;;  %8713 = vmatprep.mubr.msk.bf16.mxu0 %vm3975_vm6, %v8794_v63 }
 0x291   : > { %v3423_v0 = vpop.permute.xlu0 %3422 }
 0x292   : > { %3493 = vst.msk [vmem:[#allocation3 + $0x68] sm:$0xf] %vm3466_vm2, %v3423_v0  ;;  %v3425_v2 = vpop.permute.xlu1 %3424  ;;  %v8795_v3 = vld [vmem:[#allocation3 + $0x58] sm:$0xff]  }
 0x293   : > { %3494 = vst.msk [vmem:[#allocation3 + $0x6c] sm:$0xf] %vm3466_vm2, %v3425_v2  ;;  %8714 = vmatmul.mubr.msk.bf16.gmra.mxu0 %vm3975_vm6, %v8795_v3 }
 0x295   : > { %v3756_v6 = vpop.permute.xlu0 %3755 }
 0x296   : > { %3828 = vst.msk [vmem:[#allocation3 + $0x60] sm:$0xf] %vm3803_vm3, %v3756_v6  ;;  %v3758_v9 = vpop.permute.xlu1 %3757 }
 0x297   : > { %3829 = vst.msk [vmem:[#allocation3 + $0x64] sm:$0xf] %vm3803_vm3, %v3758_v9 }
 0x299   : > { %v3760_v60 = vpop.permute.xlu0 %3759 }
 0x29a   : > { %3830 = vst.msk [vmem:[#allocation3 + $0x68] sm:$0xf] %vm3803_vm3, %v3760_v60  ;;  %v3762_v37 = vpop.permute.xlu1 %3761 }
 0x29b   : > { %3831 = vst.msk [vmem:[#allocation3 + $0x6c] sm:$0xf] %vm3803_vm3, %v3762_v37 }
 0x29d   : > { %v3427_v19 = vpop.permute.xlu0 %3426 }
 0x29e   : > { %3495 = vst.msk [vmem:[#allocation3 + $0x70] sm:$0xf] %vm3466_vm2, %v3427_v19  ;;  %v3429_v26 = vpop.permute.xlu1 %3428  ;;  %v8796_v22 = vld [vmem:[#allocation3 + $0x60] sm:$0xff]  }
 0x29f   : > { %3496 = vst.msk [vmem:[#allocation3 + $0x74] sm:$0xf] %vm3466_vm2, %v3429_v26  ;;  %8717 = vmatprep.mubr.msk.bf16.mxu0 %vm3975_vm6, %v8796_v22 }
 0x2a1   : > { %v3431_v24 = vpop.permute.xlu0 %3430 }
 0x2a2   : > { %3497 = vst.msk [vmem:[#allocation3 + $0x78] sm:$0xf] %vm3466_vm2, %v3431_v24  ;;  %v3433_v29 = vpop.permute.xlu1 %3432  ;;  %v8797_v31 = vld [vmem:[#allocation3 + $0x68] sm:$0xff]  }
 0x2a3   : > { %3498 = vst.msk [vmem:[#allocation3 + $0x7c] sm:$0xf] %vm3466_vm2, %v3433_v29  ;;  %8718 = vmatmul.mubr.msk.bf16.gmra.mxu0 %vm3975_vm6, %v8797_v31 }
 0x2a5   : > { %v3764_v33 = vpop.permute.xlu0 %3763 }
 0x2a6   : > { %3832 = vst.msk [vmem:[#allocation3 + $0x70] sm:$0xf] %vm3803_vm3, %v3764_v33  ;;  %v3766_v25 = vpop.permute.xlu1 %3765 }
 0x2a7   : > { %3833 = vst.msk [vmem:[#allocation3 + $0x74] sm:$0xf] %vm3803_vm3, %v3766_v25 }
 0x2a9   : > { %v3768_v35 = vpop.permute.xlu0 %3767 }
 0x2aa   : > { %3834 = vst.msk [vmem:[#allocation3 + $0x78] sm:$0xf] %vm3803_vm3, %v3768_v35  ;;  %v3770_v30 = vpop.permute.xlu1 %3769 }
 0x2ab   : > { %3835 = vst.msk [vmem:[#allocation3 + $0x7c] sm:$0xf] %vm3803_vm3, %v3770_v30 }
 0x2ae   : > { %v8798_v36 = vld [vmem:[#allocation3 + $0x70] sm:$0xff]  }
 0x2af   : > { %8721 = vmatprep.mubr.msk.bf16.mxu0 %vm3975_vm6, %v8798_v36 }
 0x2b2   : > { %v8799_v39 = vld [vmem:[#allocation3 + $0x78] sm:$0xff]  }
 0x2b3   : > { %8722 = vmatmul.mubr.msk.bf16.gmra.mxu0 %vm3975_vm6, %v8799_v39 }
 0x2c2   : > { %v5134_v63 = vpop.permute.xlu0 %5133 }
 0x2c3   : > { %5229 = vst.msk [vmem:[#allocation3] sm:$0xf] %vm1280_vm9, %v5134_v63 }
 0x2d1   : > { %v5136_v8 = vpop.permute.xlu1 %5135 }
 0x2d2   : > { %5230 = vst.msk [vmem:[#allocation3 + $0x4] sm:$0xf] %vm1280_vm9, %v5136_v8 }
 0x303   : > { %v8695_v41 = vpop.f32.mrf.mxu0 }
 0x304   : > { %v4071_v42 = vadd.f32 %v8695_v41, %v10161_v40 }
 0x305   : > { %v4062_v44 = vpop.f32.mrf.mxu0 }
 0x306   : > { %v4191_v45 = vmax.f32 %v4071_v42, 0.0  ;;  %v4063_v46 = vadd.f32 %v10161_v40, %v4062_v44 }
 0x307   : > { %v8696_v47 = vpop.f32.mrf.mxu0 }
 0x308   : > { %v4256_v48 = vrot.slane %v4191_v45, 7  ;;  %v4189_v50 = vmax.f32 %v4063_v46, 0.0  ;;  %v4074_v52 = vadd.f32 %v8696_v47, %v10161_v40 }
 0x309   : > { %v4065_v53 = vpop.f32.mrf.mxu0 }
 0x30a   : > { %v4350_v16 = vsel %vm299_vm4, 0.0, %v4256_v48  ;;  %v4253_v54 = vrot.slane %v4189_v50, 7  ;;  %v4192_v32 = vmax.f32 %v4074_v52, 0.0  ;;  %v4066_v51 = vadd.f32 %v10161_v40, %v4065_v53 }
 0x30b   : > { %v8604_v49 = vpack.c.bf16 %v4350_v16, %v4350_v16 }
 0x30c   : > { %v4349_v56 = vsel %vm299_vm4, 0.0, %v4253_v54  ;;  %v4257_v57 = vrot.slane %v4192_v32, 7  ;;  %v4190_v55 = vmax.f32 %v4066_v51, 0.0 }
 0x30d   : > { %4592 = vst.msk [vmem:[#allocation2 + $0x18] sm:$0xf] %vm258_vm0, %v8604_v49  ;;  %v8601_v58 = vpack.c.bf16 %v4349_v56, %v4349_v56 }
 0x30e   : > { %v4258_v59 = vsel %vm299_vm4, %v4256_v48, %v4257_v57  ;;  %v4366_v61 = vsel %vm299_vm4, %v4257_v57, 0.0  ;;  %v4254_v62 = vrot.slane %v4190_v55, 7 }
 0x30f   : > { %4589 = vst.msk [vmem:[#allocation2 + $0xc] sm:$0xf] %vm258_vm0, %v8601_v58  ;;  %v8605_v0 = vpack.c.bf16 %v4258_v59, %v4258_v59  ;;  %v8606_v2 = vpack.c.bf16 %v4366_v61, %v4366_v61 }
 0x310   : > { %v4255_v3 = vsel %vm299_vm4, %v4253_v54, %v4254_v62  ;;  %v4365_v4 = vsel %vm299_vm4, %v4254_v62, 0.0 }
 0x311   : > { %4593 = vst.msk [vmem:[#allocation2 + $0x1c] sm:$0xf] %vm258_vm0, %v8605_v0  ;;  %v8602_v6 = vpack.c.bf16 %v4255_v3, %v4255_v3  ;;  %v8603_v7 = vpack.c.bf16 %v4365_v4, %v4365_v4 }
 0x312   : > { %4594 = vst.msk [vmem:[#allocation2 + $0x20] sm:$0x1] %vm261_vm1, %v8606_v2 }
 0x313   : > { %4591 = vst.msk [vmem:[#allocation2 + $0x14] sm:$0x1] %vm261_vm1, %v8603_v7  ;;  %v8699_v9 = vpop.f32.mrf.mxu0 }
 0x314   : > { %4590 = vst.msk [vmem:[#allocation2 + $0x10] sm:$0xf] %vm258_vm0, %v8602_v6  ;;  %v4087_v10 = vadd.f32 %v8699_v9, %v10161_v40  ;;  %v4707_v11 = vld [vmem:[#allocation2 + $0x18] sm:$0xf] }
 0x315   : > { %v4078_v5 = vpop.f32.mrf.mxu0  ;;  %v4798_v60 = vshrl.u32 %v4707_v11, 16  ;;  %v4801_v12 = vshll.u32 %v4707_v11, 16  ;;  %v4641_v13 = vld [vmem:[#allocation2 + $0x18] sm:$0xf] }
 0x316   : > { %v4195_v21 = vmax.f32 %v4087_v10, 0.0  ;;  %v4079_v37 = vadd.f32 %v10161_v40, %v4078_v5  ;;  %v4704_v14 = vld [vmem:[#allocation2 + $0xc] sm:$0xf]  ;;  %4673 = vst.msk [vmem:[#allocation3 + $0x10] sm:$0xf] %vm258_vm0, %v4641_v13 }
 0x317   : > { %v4639_v15 = vld [vmem:[#allocation2 + $0xc] sm:$0xf]  ;;  %v8700_v17 = vpop.f32.mrf.mxu0  ;;  %v4774_v18 = vshrl.u32 %v4704_v14, 16  ;;  %v4777_v19 = vshll.u32 %v4704_v14, 16  ;;  %v4800_v20 = vrot.slane %v4798_v60, 4  ;;  %v4803_v1 = vrot.slane %v4801_v12, 5 }
 0x318   : > { %4671 = vst.msk [vmem:[#allocation3 + $0x8] sm:$0xf] %vm258_vm0, %v4639_v15  ;;  %v4262_v23 = vrot.slane %v4195_v21, 7  ;;  %v4193_v26 = vmax.f32 %v4079_v37, 0.0  ;;  %v4090_v22 = vadd.f32 %v8700_v17, %v10161_v40  ;;  %v4708_v38 = vld [vmem:[#allocation2 + $0x1c] sm:$0xf] }
 0x319   : > { %v4081_v27 = vpop.f32.mrf.mxu0  ;;  %v4776_v24 = vrot.slane %v4774_v18, 4  ;;  %v4779_v28 = vrot.slane %v4777_v19, 5  ;;  %v4804_v29 = vor.u32 %v4803_v1, %v4800_v20  ;;  %v4807_v31 = vshll.u32 %v4708_v38, 16  ;;  %v4642_v51 = vld [vmem:[#allocation2 + $0x1c] sm:$0xf] }
 0x31a   : > { %v4352_v33 = vsel %vm299_vm4, 0.0, %v4262_v23  ;;  %v4259_v25 = vrot.slane %v4193_v26, 7  ;;  %v4196_v35 = vmax.f32 %v4090_v22, 0.0  ;;  %v4082_v30 = vadd.f32 %v10161_v40, %v4081_v27  ;;  %v4706_v45 = vld [vmem:[#allocation2 + $0x14] sm:$0x1] }
 0x31b   : > { %v4705_v36 = vld [vmem:[#allocation2 + $0x10] sm:$0xf]  ;;  %v8610_v39 = vpack.c.bf16 %v4352_v33, %v4352_v33  ;;  %v4780_v41 = vor.u32 %v4779_v28, %v4776_v24  ;;  %v4793_v52 = vshll.u32 %v4706_v45, 16  ;;  %4674 = vst.msk [vmem:[#allocation3 + $0x14] sm:$0xf] %vm258_vm0, %v4642_v51  ;;  %v4805_v3 = vrot.slane %v4804_v29, 4 }
 0x31c   : > { %v4783_v42 = vshll.u32 %v4705_v36, 16  ;;  %v4787_v44 = vshrl.u32 %v4705_v36, 16  ;;  %v4640_v46 = vld [vmem:[#allocation2 + $0x10] sm:$0xf]  ;;  %v4351_v47 = vsel %vm299_vm4, 0.0, %v4259_v25  ;;  %v4263_v48 = vrot.slane %v4196_v35, 7 }
 0x31d   : > { %v4194_v50 = vmax.f32 %v4082_v30, 0.0  ;;  %4672 = vst.msk [vmem:[#allocation3 + $0xc] sm:$0xf] %vm258_vm0, %v4640_v46  ;;  %4598 = vst.msk [vmem:[#allocation2 + $0x30] sm:$0xf] %vm258_vm0, %v8610_v39  ;;  %v8607_v53 = vpack.c.bf16 %v4351_v47, %v4351_v47  ;;  %v4781_v16 = vrot.slane %v4780_v41, 4 }
 0x31e   : > { %v4785_v54 = vrot.slane %v4783_v42, 5  ;;  %v4789_v32 = vrot.slane %v4787_v44, 4  ;;  %v4264_v49 = vsel %vm299_vm4, %v4262_v23, %v4263_v48  ;;  %v4368_v56 = vsel %vm299_vm4, %v4263_v48, 0.0  ;;  %v4709_v63 = vld [vmem:[#allocation2 + $0x20] sm:$0x1] }
 0x31f   : > { %v4260_v57 = vrot.slane %v4194_v50, 7  ;;  %v4795_v55 = vrot.slane %v4793_v52, 5  ;;  %4595 = vst.msk [vmem:[#allocation2 + $0x24] sm:$0xf] %vm258_vm0, %v8607_v53  ;;  %v8611_v58 = vpack.c.bf16 %v4264_v49, %v4264_v49  ;;  %v8612_v59 = vpack.c.bf16 %v4368_v56, %v4368_v56 }
 0x320   : > { %v4786_v61 = vsel %vm8936_vm5, %v4781_v16, %v4785_v54  ;;  %v4790_v62 = vor.u32 %v4789_v32, %v4785_v54  ;;  %v4809_v4 = vrot.slane %v4807_v31, 5  ;;  %v4811_v9 = vshrl.u32 %v4708_v38, 16 }
 0x321   : > { %v4261_v0 = vsel %vm299_vm4, %v4259_v25, %v4260_v57  ;;  %v4367_v2 = vsel %vm299_vm4, %v4260_v57, 0.0  ;;  %5137 = vrot.lane.b32.xlu0 %v4786_v61, %s8861_s24  ;;  %4599 = vst.msk [vmem:[#allocation2 + $0x34] sm:$0xf] %vm258_vm0, %v8611_v58  ;;  %v4817_v10 = vshll.u32 %v4709_v63, 16 }
 0x322   : > { %4600 = vst.msk [vmem:[#allocation2 + $0x38] sm:$0x1] %vm261_vm1, %v8612_v59  ;;  %v8608_v6 = vpack.c.bf16 %v4261_v0, %v4261_v0  ;;  %v8609_v7 = vpack.c.bf16 %v4367_v2, %v4367_v2  ;;  %v4791_v8 = vrot.slane %v4790_v62, 4  ;;  %v4810_v60 = vsel %vm8936_vm5, %v4805_v3, %v4809_v4 }
 0x323   : > { %v8703_v11 = vpop.f32.mrf.mxu0  ;;  %v4813_v12 = vrot.slane %v4811_v9, 4  ;;  %v4819_v1 = vrot.slane %v4817_v10, 5 }
 0x324   : > { %4596 = vst.msk [vmem:[#allocation2 + $0x28] sm:$0xf] %vm258_vm0, %v8608_v6  ;;  %v4796_v5 = vsel %vm8936_vm5, %v4791_v8, %v4795_v55  ;;  %v4103_v13 = vadd.f32 %v8703_v11, %v10161_v40  ;;  %v4713_v21 = vld [vmem:[#allocation2 + $0x30] sm:$0xf] }
 0x325   : > { %4597 = vst.msk [vmem:[#allocation2 + $0x2c] sm:$0x1] %vm261_vm1, %v8609_v7  ;;  %5139 = vrot.lane.b32.xlu1 %v4796_v5, %s8861_s24  ;;  %5141 = vrot.lane.b32.xlu0 %v4810_v60, %s8861_s24  ;;  %v4094_v37 = vpop.f32.mrf.mxu0  ;;  %v4814_v14 = vor.u32 %v4813_v12, %v4809_v4  ;;  %v4846_v15 = vshrl.u32 %v4713_v21, 16  ;;  %v4849_v17 = vshll.u32 %v4713_v21, 16  ;;  %v4645_v18 = vld [vmem:[#allocation2 + $0x30] sm:$0xf] }
 0x326   : > { %v4199_v19 = vmax.f32 %v4103_v13, 0.0  ;;  %v4095_v20 = vadd.f32 %v10161_v40, %v4094_v37  ;;  %v4710_v23 = vld [vmem:[#allocation2 + $0x24] sm:$0xf]  ;;  %4677 = vst.msk [vmem:[#allocation3 + $0x20] sm:$0xf] %vm258_vm0, %v4645_v18 }
 0x327   : > { %v8704_v26 = vpop.f32.mrf.mxu0  ;;  %v4815_v22 = vrot.slane %v4814_v14, 4  ;;  %v4822_v38 = vshrl.u32 %v4710_v23, 16  ;;  %v4825_v27 = vshll.u32 %v4710_v23, 16  ;;  %v4848_v24 = vrot.slane %v4846_v15, 4  ;;  %v4643_v56 = vld [vmem:[#allocation2 + $0x24] sm:$0xf] }
 0x328   : > { %v4268_v28 = vrot.slane %v4199_v19, 7  ;;  %v4197_v29 = vmax.f32 %v4095_v20, 0.0  ;;  %v4106_v31 = vadd.f32 %v8704_v26, %v10161_v40  ;;  %v4714_v33 = vld [vmem:[#allocation2 + $0x34] sm:$0xf]  ;;  %v4851_v25 = vrot.slane %v4849_v17, 5 }
 0x329   : > { %v4820_v35 = vsel %vm8936_vm5, %v4815_v22, %v4819_v1  ;;  %v4097_v30 = vpop.f32.mrf.mxu0  ;;  %v4824_v36 = vrot.slane %v4822_v38, 4  ;;  %v4827_v39 = vrot.slane %v4825_v27, 5  ;;  %v4855_v41 = vshll.u32 %v4714_v33, 16  ;;  %4675 = vst.msk [vmem:[#allocation3 + $0x18] sm:$0xf] %vm258_vm0, %v4643_v56 }
 0x32a   : > { %v4354_v42 = vsel %vm299_vm4, 0.0, %v4268_v28  ;;  %v4265_v44 = vrot.slane %v4197_v29, 7  ;;  %v4200_v45 = vmax.f32 %v4106_v31, 0.0  ;;  %5143 = vrot.lane.b32.xlu1 %v4820_v35, %s8861_s24  ;;  %v4098_v46 = vadd.f32 %v10161_v40, %v4097_v30  ;;  %v4715_v7 = vld [vmem:[#allocation2 + $0x38] sm:$0x1] }
 0x32b   : > { %v4711_v47 = vld [vmem:[#allocation2 + $0x28] sm:$0xf]  ;;  %v8616_v48 = vpack.c.bf16 %v4354_v42, %v4354_v42  ;;  %v4828_v50 = vor.u32 %v4827_v39, %v4824_v36  ;;  %v4646_v9 = vld [vmem:[#allocation2 + $0x34] sm:$0xf]  ;;  %v4852_v5 = vor.u32 %v4851_v25, %v4848_v24  ;;  %v4857_v60 = vrot.slane %v4855_v41, 5 }
 0x32c   : > { %v4831_v52 = vshll.u32 %v4711_v47, 16  ;;  %v4835_v53 = vshrl.u32 %v4711_v47, 16  ;;  %v4712_v16 = vld [vmem:[#allocation2 + $0x2c] sm:$0x1]  ;;  %v4353_v54 = vsel %vm299_vm4, 0.0, %v4265_v44  ;;  %v4269_v32 = vrot.slane %v4200_v45, 7 }
 0x32d   : > { %v4198_v51 = vmax.f32 %v4098_v46, 0.0  ;;  %v4841_v49 = vshll.u32 %v4712_v16, 16  ;;  %4604 = vst.msk [vmem:[#allocation2 + $0x48] sm:$0xf] %vm258_vm0, %v8616_v48  ;;  %v8613_v57 = vpack.c.bf16 %v4353_v54, %v4353_v54  ;;  %v4829_v55 = vrot.slane %v4828_v50, 4 }
 0x32e   : > { %v4833_v58 = vrot.slane %v4831_v52, 5  ;;  %v4837_v59 = vrot.slane %v4835_v53, 4  ;;  %v4270_v61 = vsel %vm299_vm4, %v4268_v28, %v4269_v32  ;;  %v4370_v62 = vsel %vm299_vm4, %v4269_v32, 0.0  ;;  %v4644_v8 = vld [vmem:[#allocation2 + $0x28] sm:$0xf] }
 0x32f   : > { %v4266_v63 = vrot.slane %v4198_v51, 7  ;;  %v4843_v0 = vrot.slane %v4841_v49, 5  ;;  %4601 = vst.msk [vmem:[#allocation2 + $0x3c] sm:$0xf] %vm258_vm0, %v8613_v57  ;;  %v8617_v2 = vpack.c.bf16 %v4270_v61, %v4270_v61  ;;  %v8618_v3 = vpack.c.bf16 %v4370_v62, %v4370_v62  ;;  %4676 = vst.msk [vmem:[#allocation3 + $0x1c] sm:$0xf] %vm258_vm0, %v4644_v8 }
 0x330   : > { %v4834_v4 = vsel %vm8936_vm5, %v4829_v55, %v4833_v58  ;;  %v4838_v6 = vor.u32 %v4837_v59, %v4833_v58  ;;  %4678 = vst.msk [vmem:[#allocation3 + $0x24] sm:$0xf] %vm258_vm0, %v4646_v9  ;;  %v4859_v37 = vshrl.u32 %v4714_v33, 16  ;;  %v4853_v14 = vrot.slane %v4852_v5, 4 }
 0x331   : > { %v4267_v10 = vsel %vm299_vm4, %v4265_v44, %v4266_v63  ;;  %v4369_v11 = vsel %vm299_vm4, %v4266_v63, 0.0  ;;  %5145 = vrot.lane.b32.xlu0 %v4834_v4, %s8861_s24  ;;  %4605 = vst.msk [vmem:[#allocation2 + $0x4c] sm:$0xf] %vm258_vm0, %v8617_v2  ;;  %v4865_v15 = vshll.u32 %v4715_v7, 16 }
 0x332   : > { %4606 = vst.msk [vmem:[#allocation2 + $0x50] sm:$0x1] %vm261_vm1, %v8618_v3  ;;  %v8614_v12 = vpack.c.bf16 %v4267_v10, %v4267_v10  ;;  %v8615_v13 = vpack.c.bf16 %v4369_v11, %v4369_v11  ;;  %v4839_v21 = vrot.slane %v4838_v6, 4  ;;  %v4861_v19 = vrot.slane %v4859_v37, 4 }
 0x333   : > { %v8707_v17 = vpop.f32.mrf.mxu0  ;;  %v4858_v1 = vsel %vm8936_vm5, %v4853_v14, %v4857_v60  ;;  %v4867_v31 = vrot.slane %v4865_v15, 5 }
 0x334   : > { %4602 = vst.msk [vmem:[#allocation2 + $0x40] sm:$0xf] %vm258_vm0, %v8614_v12  ;;  %v4844_v18 = vsel %vm8936_vm5, %v4839_v21, %v4843_v0  ;;  %v4119_v20 = vadd.f32 %v8707_v17, %v10161_v40  ;;  %v4719_v23 = vld [vmem:[#allocation2 + $0x48] sm:$0xf]  ;;  %v4862_v22 = vor.u32 %v4861_v19, %v4857_v60 }
 0x335   : > { %4603 = vst.msk [vmem:[#allocation2 + $0x44] sm:$0x1] %vm261_vm1, %v8615_v13  ;;  %5147 = vrot.lane.b32.xlu1 %v4844_v18, %s8861_s24  ;;  %5149 = vrot.lane.b32.xlu0 %v4858_v1, %s8861_s24  ;;  %v4110_v26 = vpop.f32.mrf.mxu0  ;;  %v4894_v38 = vshrl.u32 %v4719_v23, 16  ;;  %v4897_v27 = vshll.u32 %v4719_v23, 16  ;;  %v4649_v24 = vld [vmem:[#allocation2 + $0x48] sm:$0xf] }
 0x336   : > { %v4203_v28 = vmax.f32 %v4119_v20, 0.0  ;;  %v4111_v29 = vadd.f32 %v10161_v40, %v4110_v26  ;;  %v4716_v33 = vld [vmem:[#allocation2 + $0x3c] sm:$0xf]  ;;  %4681 = vst.msk [vmem:[#allocation3 + $0x30] sm:$0xf] %vm258_vm0, %v4649_v24  ;;  %v4863_v35 = vrot.slane %v4862_v22, 4 }
 0x337   : > { %v8708_v25 = vpop.f32.mrf.mxu0  ;;  %v4870_v30 = vshrl.u32 %v4716_v33, 16  ;;  %v4873_v36 = vshll.u32 %v4716_v33, 16  ;;  %v4896_v39 = vrot.slane %v4894_v38, 4  ;;  %v4899_v46 = vrot.slane %v4897_v27, 5  ;;  %v4647_v21 = vld [vmem:[#allocation2 + $0x3c] sm:$0xf] }
 0x338   : > { %v4274_v41 = vrot.slane %v4203_v28, 7  ;;  %v4201_v42 = vmax.f32 %v4111_v29, 0.0  ;;  %v4122_v44 = vadd.f32 %v8708_v25, %v10161_v40  ;;  %v4720_v45 = vld [vmem:[#allocation2 + $0x4c] sm:$0xf]  ;;  %v4868_v47 = vsel %vm8936_vm5, %v4863_v35, %v4867_v31  ;;  %4679 = vst.msk [vmem:[#allocation3 + $0x28] sm:$0xf] %vm258_vm0, %v4647_v21 }
 0x339   : > { %v4113_v48 = vpop.f32.mrf.mxu0  ;;  %v4872_v50 = vrot.slane %v4870_v30, 4  ;;  %v4875_v52 = vrot.slane %v4873_v36, 5  ;;  %v4903_v53 = vshll.u32 %v4720_v45, 16  ;;  %5151 = vrot.lane.b32.xlu1 %v4868_v47, %s8861_s24  ;;  %v4721_v11 = vld [vmem:[#allocation2 + $0x50] sm:$0x1]  ;;  %v4900_v18 = vor.u32 %v4899_v46, %v4896_v39 }
 0x33a   : > { %v4356_v16 = vsel %vm299_vm4, 0.0, %v4274_v41  ;;  %v4271_v54 = vrot.slane %v4201_v42, 7  ;;  %v4204_v32 = vmax.f32 %v4122_v44, 0.0  ;;  %v4114_v51 = vadd.f32 %v10161_v40, %v4113_v48  ;;  %v4650_v14 = vld [vmem:[#allocation2 + $0x4c] sm:$0xf] }
 0x33b   : > { %v4717_v49 = vld [vmem:[#allocation2 + $0x40] sm:$0xf]  ;;  %v8622_v56 = vpack.c.bf16 %v4356_v16, %v4356_v16  ;;  %v4876_v57 = vor.u32 %v4875_v52, %v4872_v50  ;;  %v4905_v19 = vrot.slane %v4903_v53, 5  ;;  %4682 = vst.msk [vmem:[#allocation3 + $0x34] sm:$0xf] %vm258_vm0, %v4650_v14  ;;  %v4907_v26 = vshrl.u32 %v4720_v45, 16 }
 0x33c   : > { %v4879_v55 = vshll.u32 %v4717_v49, 16  ;;  %v4883_v58 = vshrl.u32 %v4717_v49, 16  ;;  %v4718_v59 = vld [vmem:[#allocation2 + $0x44] sm:$0x1]  ;;  %v4355_v61 = vsel %vm299_vm4, 0.0, %v4271_v54  ;;  %v4275_v62 = vrot.slane %v4204_v32, 7 }
 0x33d   : > { %v4202_v63 = vmax.f32 %v4114_v51, 0.0  ;;  %v4889_v0 = vshll.u32 %v4718_v59, 16  ;;  %4610 = vst.msk [vmem:[#allocation2 + $0x60] sm:$0xf] %vm258_vm0, %v8622_v56  ;;  %v8619_v2 = vpack.c.bf16 %v4355_v61, %v4355_v61  ;;  %v4877_v3 = vrot.slane %v4876_v57, 4 }
 0x33e   : > { %v4881_v4 = vrot.slane %v4879_v55, 5  ;;  %v4885_v6 = vrot.slane %v4883_v58, 4  ;;  %v4276_v7 = vsel %vm299_vm4, %v4274_v41, %v4275_v62  ;;  %v4372_v8 = vsel %vm299_vm4, %v4275_v62, 0.0  ;;  %v4648_v37 = vld [vmem:[#allocation2 + $0x40] sm:$0xf] }
 0x33f   : > { %v4272_v9 = vrot.slane %v4202_v63, 7  ;;  %v4891_v10 = vrot.slane %v4889_v0, 5  ;;  %4607 = vst.msk [vmem:[#allocation2 + $0x54] sm:$0xf] %vm258_vm0, %v8619_v2  ;;  %v8623_v5 = vpack.c.bf16 %v4276_v7, %v4276_v7  ;;  %v8624_v60 = vpack.c.bf16 %v4372_v8, %v4372_v8  ;;  %4680 = vst.msk [vmem:[#allocation3 + $0x2c] sm:$0xf] %vm258_vm0, %v4648_v37 }
 0x340   : > { %v4882_v12 = vsel %vm8936_vm5, %v4877_v3, %v4881_v4  ;;  %v4886_v13 = vor.u32 %v4885_v6, %v4881_v4  ;;  %v4901_v22 = vrot.slane %v4900_v18, 4  ;;  %v4913_v38 = vshll.u32 %v4721_v11, 16 }
 0x341   : > { %v4273_v15 = vsel %vm299_vm4, %v4271_v54, %v4272_v9  ;;  %v4371_v17 = vsel %vm299_vm4, %v4272_v9, 0.0  ;;  %5153 = vrot.lane.b32.xlu0 %v4882_v12, %s8861_s24  ;;  %4611 = vst.msk [vmem:[#allocation2 + $0x64] sm:$0xf] %vm258_vm0, %v8623_v5  ;;  %v4909_v28 = vrot.slane %v4907_v26, 4 }
 0x342   : > { %4612 = vst.msk [vmem:[#allocation2 + $0x68] sm:$0x1] %vm261_vm1, %v8624_v60  ;;  %v8620_v20 = vpack.c.bf16 %v4273_v15, %v4273_v15  ;;  %v8621_v1 = vpack.c.bf16 %v4371_v17, %v4371_v17  ;;  %v4887_v23 = vrot.slane %v4886_v13, 4  ;;  %v4906_v31 = vsel %vm8936_vm5, %v4901_v22, %v4905_v19 }
 0x343   : > { %v8711_v27 = vpop.f32.mrf.mxu0  ;;  %v4910_v35 = vor.u32 %v4909_v28, %v4905_v19  ;;  %v4915_v44 = vrot.slane %v4913_v38, 5 }
 0x344   : > { %4608 = vst.msk [vmem:[#allocation2 + $0x58] sm:$0xf] %vm258_vm0, %v8620_v20  ;;  %v4892_v24 = vsel %vm8936_vm5, %v4887_v23, %v4891_v10  ;;  %v4135_v29 = vadd.f32 %v8711_v27, %v10161_v40  ;;  %v4725_v33 = vld [vmem:[#allocation2 + $0x60] sm:$0xf] }
 0x345   : > { %4609 = vst.msk [vmem:[#allocation2 + $0x5c] sm:$0x1] %vm261_vm1, %v8621_v1  ;;  %5155 = vrot.lane.b32.xlu1 %v4892_v24, %s8861_s24  ;;  %5157 = vrot.lane.b32.xlu0 %v4906_v31, %s8861_s24  ;;  %v4126_v25 = vpop.f32.mrf.mxu0  ;;  %v4942_v30 = vshrl.u32 %v4725_v33, 16  ;;  %v4945_v36 = vshll.u32 %v4725_v33, 16  ;;  %v4653_v39 = vld [vmem:[#allocation2 + $0x60] sm:$0xf] }
 0x346   : > { %v4207_v41 = vmax.f32 %v4135_v29, 0.0  ;;  %v4127_v42 = vadd.f32 %v10161_v40, %v4126_v25  ;;  %v4722_v45 = vld [vmem:[#allocation2 + $0x54] sm:$0xf]  ;;  %4685 = vst.msk [vmem:[#allocation3 + $0x40] sm:$0xf] %vm258_vm0, %v4653_v39  ;;  %v4911_v47 = vrot.slane %v4910_v35, 4 }
 0x347   : > { %v8712_v46 = vpop.f32.mrf.mxu0  ;;  %v4918_v48 = vshrl.u32 %v4722_v45, 16  ;;  %v4921_v50 = vshll.u32 %v4722_v45, 16  ;;  %v4944_v52 = vrot.slane %v4942_v30, 4  ;;  %v4651_v53 = vld [vmem:[#allocation2 + $0x54] sm:$0xf]  ;;  %v4947_v49 = vrot.slane %v4945_v36, 5 }
 0x348   : > { %v4280_v16 = vrot.slane %v4207_v41, 7  ;;  %v4205_v54 = vmax.f32 %v4127_v42, 0.0  ;;  %v4138_v32 = vadd.f32 %v8712_v46, %v10161_v40  ;;  %v4726_v51 = vld [vmem:[#allocation2 + $0x64] sm:$0xf]  ;;  %4683 = vst.msk [vmem:[#allocation3 + $0x38] sm:$0xf] %vm258_vm0, %v4651_v53  ;;  %v4916_v56 = vsel %vm8936_vm5, %v4911_v47, %v4915_v44 }
 0x349   : > { %v4129_v57 = vpop.f32.mrf.mxu0  ;;  %v4920_v55 = vrot.slane %v4918_v48, 4  ;;  %v4923_v58 = vrot.slane %v4921_v50, 5  ;;  %v4951_v59 = vshll.u32 %v4726_v51, 16  ;;  %5159 = vrot.lane.b32.xlu1 %v4916_v56, %s8861_s24  ;;  %v4727_v23 = vld [vmem:[#allocation2 + $0x68] sm:$0x1]  ;;  %v4948_v24 = vor.u32 %v4947_v49, %v4944_v52 }
 0x34a   : > { %v4358_v61 = vsel %vm299_vm4, 0.0, %v4280_v16  ;;  %v4277_v62 = vrot.slane %v4205_v54, 7  ;;  %v4208_v63 = vmax.f32 %v4138_v32, 0.0  ;;  %v4130_v0 = vadd.f32 %v10161_v40, %v4129_v57  ;;  %v4654_v22 = vld [vmem:[#allocation2 + $0x64] sm:$0xf] }
 0x34b   : > { %v4723_v2 = vld [vmem:[#allocation2 + $0x58] sm:$0xf]  ;;  %v8628_v3 = vpack.c.bf16 %v4358_v61, %v4358_v61  ;;  %v4924_v4 = vor.u32 %v4923_v58, %v4920_v55  ;;  %v4953_v28 = vrot.slane %v4951_v59, 5  ;;  %4686 = vst.msk [vmem:[#allocation3 + $0x44] sm:$0xf] %vm258_vm0, %v4654_v22  ;;  %v4955_v25 = vshrl.u32 %v4726_v51, 16 }
 0x34c   : > { %v4927_v6 = vshll.u32 %v4723_v2, 16  ;;  %v4931_v7 = vshrl.u32 %v4723_v2, 16  ;;  %v4724_v8 = vld [vmem:[#allocation2 + $0x5c] sm:$0x1]  ;;  %v4357_v9 = vsel %vm299_vm4, 0.0, %v4277_v62  ;;  %v4281_v10 = vrot.slane %v4208_v63, 7 }
 0x34d   : > { %v4206_v11 = vmax.f32 %v4130_v0, 0.0  ;;  %v4937_v5 = vshll.u32 %v4724_v8, 16  ;;  %4616 = vst.msk [vmem:[#allocation2 + $0x78] sm:$0xf] %vm258_vm0, %v8628_v3  ;;  %v8625_v60 = vpack.c.bf16 %v4357_v9, %v4357_v9  ;;  %v4925_v12 = vrot.slane %v4924_v4, 4 }
 0x34e   : > { %v4929_v13 = vrot.slane %v4927_v6, 5  ;;  %v4933_v21 = vrot.slane %v4931_v7, 4  ;;  %v4282_v37 = vsel %vm299_vm4, %v4280_v16, %v4281_v10  ;;  %v4374_v14 = vsel %vm299_vm4, %v4281_v10, 0.0  ;;  %v4652_v26 = vld [vmem:[#allocation2 + $0x58] sm:$0xf] }
 0x34f   : > { %v4278_v15 = vrot.slane %v4206_v11, 7  ;;  %v4939_v17 = vrot.slane %v4937_v5, 5  ;;  %4613 = vst.msk [vmem:[#allocation2 + $0x6c] sm:$0xf] %vm258_vm0, %v8625_v60  ;;  %v8629_v18 = vpack.c.bf16 %v4282_v37, %v4282_v37  ;;  %v8630_v19 = vpack.c.bf16 %v4374_v14, %v4374_v14  ;;  %4684 = vst.msk [vmem:[#allocation3 + $0x3c] sm:$0xf] %vm258_vm0, %v4652_v26 }
 0x350   : > { %v4930_v20 = vsel %vm8936_vm5, %v4925_v12, %v4929_v13  ;;  %v4934_v1 = vor.u32 %v4933_v21, %v4929_v13  ;;  %v4949_v35 = vrot.slane %v4948_v24, 4  ;;  %v4961_v30 = vshll.u32 %v4727_v23, 16 }
 0x351   : > { %v4279_v38 = vsel %vm299_vm4, %v4277_v62, %v4278_v15  ;;  %v4373_v27 = vsel %vm299_vm4, %v4278_v15, 0.0  ;;  %5161 = vrot.lane.b32.xlu0 %v4930_v20, %s8861_s24  ;;  %4617 = vst.msk [vmem:[#allocation2 + $0x7c] sm:$0xf] %vm258_vm0, %v8629_v18  ;;  %v4957_v41 = vrot.slane %v4955_v25, 4 }
 0x352   : > { %4618 = vst.msk [vmem:[#allocation2 + $0x80] sm:$0x1] %vm261_vm1, %v8630_v19  ;;  %v8626_v29 = vpack.c.bf16 %v4279_v38, %v4279_v38  ;;  %v8627_v31 = vpack.c.bf16 %v4373_v27, %v4373_v27  ;;  %v4935_v33 = vrot.slane %v4934_v1, 4  ;;  %v4954_v44 = vsel %vm8936_vm5, %v4949_v35, %v4953_v28 }
 0x353   : > { %v8715_v36 = vpop.f32.mrf.mxu0  ;;  %v4958_v47 = vor.u32 %v4957_v41, %v4953_v28  ;;  %v4963_v54 = vrot.slane %v4961_v30, 5 }
 0x354   : > { %4614 = vst.msk [vmem:[#allocation2 + $0x70] sm:$0xf] %vm258_vm0, %v8626_v29  ;;  %v4940_v39 = vsel %vm8936_vm5, %v4935_v33, %v4939_v17  ;;  %v4151_v42 = vadd.f32 %v8715_v36, %v10161_v40  ;;  %v4731_v45 = vld [vmem:[#allocation2 + $0x78] sm:$0xf] }
 0x355   : > { %4615 = vst.msk [vmem:[#allocation2 + $0x74] sm:$0x1] %vm261_vm1, %v8627_v31  ;;  %5163 = vrot.lane.b32.xlu1 %v4940_v39, %s8861_s24  ;;  %5165 = vrot.lane.b32.xlu0 %v4954_v44, %s8861_s24  ;;  %v4142_v46 = vpop.f32.mrf.mxu0  ;;  %v4990_v48 = vshrl.u32 %v4731_v45, 16  ;;  %v4993_v50 = vshll.u32 %v4731_v45, 16  ;;  %v4657_v52 = vld [vmem:[#allocation2 + $0x78] sm:$0xf] }
 0x356   : > { %v4211_v53 = vmax.f32 %v4151_v42, 0.0  ;;  %v4143_v16 = vadd.f32 %v10161_v40, %v4142_v46  ;;  %v4728_v32 = vld [vmem:[#allocation2 + $0x6c] sm:$0xf]  ;;  %4689 = vst.msk [vmem:[#allocation3 + $0x50] sm:$0xf] %vm258_vm0, %v4657_v52  ;;  %v4959_v49 = vrot.slane %v4958_v47, 4 }
 0x357   : > { %v8716_v51 = vpop.f32.mrf.mxu0  ;;  %v4966_v56 = vshrl.u32 %v4728_v32, 16  ;;  %v4969_v57 = vshll.u32 %v4728_v32, 16  ;;  %v4992_v55 = vrot.slane %v4990_v48, 4  ;;  %v4995_v63 = vrot.slane %v4993_v50, 5  ;;  %v4655_v33 = vld [vmem:[#allocation2 + $0x6c] sm:$0xf] }
 0x358   : > { %v4286_v58 = vrot.slane %v4211_v53, 7  ;;  %v4209_v59 = vmax.f32 %v4143_v16, 0.0  ;;  %v4154_v61 = vadd.f32 %v8716_v51, %v10161_v40  ;;  %v4732_v62 = vld [vmem:[#allocation2 + $0x7c] sm:$0xf]  ;;  %v4964_v0 = vsel %vm8936_vm5, %v4959_v49, %v4963_v54  ;;  %4687 = vst.msk [vmem:[#allocation3 + $0x48] sm:$0xf] %vm258_vm0, %v4655_v33 }
 0x359   : > { %v4145_v2 = vpop.f32.mrf.mxu0  ;;  %v4968_v3 = vrot.slane %v4966_v56, 4  ;;  %v4971_v4 = vrot.slane %v4969_v57, 5  ;;  %v4999_v6 = vshll.u32 %v4732_v62, 16  ;;  %5167 = vrot.lane.b32.xlu1 %v4964_v0, %s8861_s24  ;;  %v4733_v27 = vld [vmem:[#allocation2 + $0x80] sm:$0x1]  ;;  %v4996_v39 = vor.u32 %v4995_v63, %v4992_v55 }
 0x35a   : > { %v4360_v7 = vsel %vm299_vm4, 0.0, %v4286_v58  ;;  %v4283_v8 = vrot.slane %v4209_v59, 7  ;;  %v4212_v9 = vmax.f32 %v4154_v61, 0.0  ;;  %v4146_v10 = vadd.f32 %v10161_v40, %v4145_v2  ;;  %v4658_v35 = vld [vmem:[#allocation2 + $0x7c] sm:$0xf] }
 0x35b   : > { %v4729_v11 = vld [vmem:[#allocation2 + $0x70] sm:$0xf]  ;;  %v8634_v5 = vpack.c.bf16 %v4360_v7, %v4360_v7  ;;  %v4972_v60 = vor.u32 %v4971_v4, %v4968_v3  ;;  %v5001_v41 = vrot.slane %v4999_v6, 5  ;;  %4690 = vst.msk [vmem:[#allocation3 + $0x54] sm:$0xf] %vm258_vm0, %v4658_v35  ;;  %v5003_v46 = vshrl.u32 %v4732_v62, 16 }
 0x35c   : > { %v4975_v12 = vshll.u32 %v4729_v11, 16  ;;  %v4979_v13 = vshrl.u32 %v4729_v11, 16  ;;  %v4730_v21 = vld [vmem:[#allocation2 + $0x74] sm:$0x1]  ;;  %v4359_v37 = vsel %vm299_vm4, 0.0, %v4283_v8  ;;  %v4287_v14 = vrot.slane %v4212_v9, 7 }
 0x35d   : > { %v4210_v15 = vmax.f32 %v4146_v10, 0.0  ;;  %v4985_v17 = vshll.u32 %v4730_v21, 16  ;;  %4622 = vst.msk [vmem:[#allocation2 + $0x90] sm:$0xf] %vm258_vm0, %v8634_v5  ;;  %v8631_v18 = vpack.c.bf16 %v4359_v37, %v4359_v37  ;;  %v4973_v19 = vrot.slane %v4972_v60, 4 }
 0x35e   : > { %v4977_v20 = vrot.slane %v4975_v12, 5  ;;  %v4981_v1 = vrot.slane %v4979_v13, 4  ;;  %v4288_v23 = vsel %vm299_vm4, %v4286_v58, %v4287_v14  ;;  %v4376_v26 = vsel %vm299_vm4, %v4287_v14, 0.0  ;;  %v4656_v25 = vld [vmem:[#allocation2 + $0x70] sm:$0xf] }
 0x35f   : > { %v4284_v22 = vrot.slane %v4210_v15, 7  ;;  %v4987_v38 = vrot.slane %v4985_v17, 5  ;;  %4619 = vst.msk [vmem:[#allocation2 + $0x84] sm:$0xf] %vm258_vm0, %v8631_v18  ;;  %v8635_v24 = vpack.c.bf16 %v4288_v23, %v4288_v23  ;;  %v8636_v28 = vpack.c.bf16 %v4376_v26, %v4376_v26  ;;  %4688 = vst.msk [vmem:[#allocation3 + $0x4c] sm:$0xf] %vm258_vm0, %v4656_v25 }
 0x360   : > { %v4978_v29 = vsel %vm8936_vm5, %v4973_v19, %v4977_v20  ;;  %v4982_v31 = vor.u32 %v4981_v1, %v4977_v20  ;;  %v4997_v47 = vrot.slane %v4996_v39, 4  ;;  %v5009_v48 = vshll.u32 %v4733_v27, 16 }
 0x361   : > { %v4285_v30 = vsel %vm299_vm4, %v4283_v8, %v4284_v22  ;;  %v4375_v36 = vsel %vm299_vm4, %v4284_v22, 0.0  ;;  %5169 = vrot.lane.b32.xlu0 %v4978_v29, %s8861_s24  ;;  %4623 = vst.msk [vmem:[#allocation2 + $0x94] sm:$0xf] %vm258_vm0, %v8635_v24  ;;  %v5005_v53 = vrot.slane %v5003_v46, 4 }
 0x362   : > { %4624 = vst.msk [vmem:[#allocation2 + $0x98] sm:$0x1] %vm261_vm1, %v8636_v28  ;;  %v8632_v42 = vpack.c.bf16 %v4285_v30, %v4285_v30  ;;  %v8633_v44 = vpack.c.bf16 %v4375_v36, %v4375_v36  ;;  %v4983_v45 = vrot.slane %v4982_v31, 4  ;;  %v5002_v54 = vsel %vm8936_vm5, %v4997_v47, %v5001_v41 }
 0x363   : > { %v8719_v50 = vpop.f32.mrf.mxu0  ;;  %v5006_v49 = vor.u32 %v5005_v53, %v5001_v41  ;;  %v5011_v61 = vrot.slane %v5009_v48, 5 }
 0x364   : > { %4620 = vst.msk [vmem:[#allocation2 + $0x88] sm:$0xf] %vm258_vm0, %v8632_v42  ;;  %v4988_v52 = vsel %vm8936_vm5, %v4983_v45, %v4987_v38  ;;  %v4167_v16 = vadd.f32 %v8719_v50, %v10161_v40  ;;  %v4737_v32 = vld [vmem:[#allocation2 + $0x90] sm:$0xf] }
 0x365   : > { %4621 = vst.msk [vmem:[#allocation2 + $0x8c] sm:$0x1] %vm261_vm1, %v8633_v44  ;;  %5171 = vrot.lane.b32.xlu1 %v4988_v52, %s8861_s24  ;;  %5173 = vrot.lane.b32.xlu0 %v5002_v54, %s8861_s24  ;;  %v4158_v51 = vpop.f32.mrf.mxu0  ;;  %v5038_v56 = vshrl.u32 %v4737_v32, 16  ;;  %v5041_v57 = vshll.u32 %v4737_v32, 16  ;;  %v4661_v55 = vld [vmem:[#allocation2 + $0x90] sm:$0xf] }
 0x366   : > { %v4215_v58 = vmax.f32 %v4167_v16, 0.0  ;;  %v4159_v59 = vadd.f32 %v10161_v40, %v4158_v51  ;;  %v4734_v62 = vld [vmem:[#allocation2 + $0x84] sm:$0xf]  ;;  %4693 = vst.msk [vmem:[#allocation3 + $0x60] sm:$0xf] %vm258_vm0, %v4661_v55  ;;  %v5007_v0 = vrot.slane %v5006_v49, 4 }
 0x367   : > { %v8720_v63 = vpop.f32.mrf.mxu0  ;;  %v5014_v2 = vshrl.u32 %v4734_v62, 16  ;;  %v5017_v3 = vshll.u32 %v4734_v62, 16  ;;  %v5040_v4 = vrot.slane %v5038_v56, 4  ;;  %v5043_v10 = vrot.slane %v5041_v57, 5  ;;  %v4659_v44 = vld [vmem:[#allocation2 + $0x84] sm:$0xf] }
 0x368   : > { %v4292_v6 = vrot.slane %v4215_v58, 7  ;;  %v4213_v7 = vmax.f32 %v4159_v59, 0.0  ;;  %v4170_v8 = vadd.f32 %v8720_v63, %v10161_v40  ;;  %v4738_v9 = vld [vmem:[#allocation2 + $0x94] sm:$0xf]  ;;  %v5012_v11 = vsel %vm8936_vm5, %v5007_v0, %v5011_v61  ;;  %4691 = vst.msk [vmem:[#allocation3 + $0x58] sm:$0xf] %vm258_vm0, %v4659_v44 }
 0x369   : > { %v4161_v5 = vpop.f32.mrf.mxu0  ;;  %v5016_v60 = vrot.slane %v5014_v2, 4  ;;  %v5019_v12 = vrot.slane %v5017_v3, 5  ;;  %v5047_v13 = vshll.u32 %v4738_v9, 16  ;;  %5175 = vrot.lane.b32.xlu1 %v5012_v11, %s8861_s24  ;;  %v4739_v30 = vld [vmem:[#allocation2 + $0x98] sm:$0x1]  ;;  %v5044_v50 = vor.u32 %v5043_v10, %v5040_v4 }
 0x36a   : > { %v4362_v21 = vsel %vm299_vm4, 0.0, %v4292_v6  ;;  %v4289_v37 = vrot.slane %v4213_v7, 7  ;;  %v4216_v14 = vmax.f32 %v4170_v8, 0.0  ;;  %v4162_v15 = vadd.f32 %v10161_v40, %v4161_v5  ;;  %v4662_v46 = vld [vmem:[#allocation2 + $0x94] sm:$0xf] }
 0x36b   : > { %v4735_v17 = vld [vmem:[#allocation2 + $0x88] sm:$0xf]  ;;  %v8640_v18 = vpack.c.bf16 %v4362_v21, %v4362_v21  ;;  %v5020_v19 = vor.u32 %v5019_v12, %v5016_v60  ;;  %v5049_v52 = vrot.slane %v5047_v13, 5  ;;  %4694 = vst.msk [vmem:[#allocation3 + $0x64] sm:$0xf] %vm258_vm0, %v4662_v46  ;;  %v5051_v32 = vshrl.u32 %v4738_v9, 16 }
 0x36c   : > { %v5023_v20 = vshll.u32 %v4735_v17, 16  ;;  %v5027_v1 = vshrl.u32 %v4735_v17, 16  ;;  %v4736_v23 = vld [vmem:[#allocation2 + $0x8c] sm:$0x1]  ;;  %v4361_v26 = vsel %vm299_vm4, 0.0, %v4289_v37  ;;  %v4293_v22 = vrot.slane %v4216_v14, 7 }
 0x36d   : > { %v4214_v38 = vmax.f32 %v4162_v15, 0.0  ;;  %v5033_v27 = vshll.u32 %v4736_v23, 16  ;;  %4628 = vst.msk [vmem:[#allocation2 + $0xa8] sm:$0xf] %vm258_vm0, %v8640_v18  ;;  %v8637_v24 = vpack.c.bf16 %v4361_v26, %v4361_v26  ;;  %v5021_v28 = vrot.slane %v5020_v19, 4 }
 0x36e   : > { %v5025_v29 = vrot.slane %v5023_v20, 5  ;;  %v5029_v31 = vrot.slane %v5027_v1, 4  ;;  %v4294_v33 = vsel %vm299_vm4, %v4292_v6, %v4293_v22  ;;  %v4378_v40 = vsel %vm299_vm4, %v4293_v22, 0.0  ;;  %v4660_v45 = vld [vmem:[#allocation2 + $0x88] sm:$0xf] }
 0x36f   : > { %v4290_v25 = vrot.slane %v4214_v38, 7  ;;  %v5035_v35 = vrot.slane %v5033_v27, 5  ;;  %4625 = vst.msk [vmem:[#allocation2 + $0x9c] sm:$0xf] %vm258_vm0, %v8637_v24  ;;  %v8641_v36 = vpack.c.bf16 %v4294_v33, %v4294_v33  ;;  %v8642_v39 = vpack.c.bf16 %v4378_v40, %v4378_v40  ;;  %4692 = vst.msk [vmem:[#allocation3 + $0x5c] sm:$0xf] %vm258_vm0, %v4660_v45 }
 0x370   : > { %v5026_v41 = vsel %vm8936_vm5, %v5021_v28, %v5025_v29  ;;  %v5030_v42 = vor.u32 %v5029_v31, %v5025_v29  ;;  %v5045_v51 = vrot.slane %v5044_v50, 4  ;;  %v5057_v49 = vshll.u32 %v4739_v30, 16  ;;  %v8819_v58 = vld [vmem:[%s11410_s3] ss:$0 sm:$0xff] }
 0x371   : > { %v4291_v47 = vsel %vm299_vm4, %v4289_v37, %v4290_v25  ;;  %v4377_v48 = vsel %vm299_vm4, %v4290_v25, 0.0  ;;  %5177 = vrot.lane.b32.xlu0 %v5026_v41, %s8861_s24  ;;  %4629 = vst.msk [vmem:[#allocation2 + $0xac] sm:$0xf] %vm258_vm0, %v8641_v36  ;;  %v5053_v55 = vrot.slane %v5051_v32, 4 }
 0x372   : > { %4630 = vst.msk [vmem:[#allocation2 + $0xb0] sm:$0x1] %vm261_vm1, %v8642_v39  ;;  %v8638_v53 = vpack.c.bf16 %v4291_v47, %v4291_v47  ;;  %v8639_v16 = vpack.c.bf16 %v4377_v48, %v4377_v48  ;;  %v5031_v54 = vrot.slane %v5030_v42, 4  ;;  %v5050_v61 = vsel %vm8936_vm5, %v5045_v51, %v5049_v52 }
 0x373   : > { %v8723_v56 = vpop.f32.mrf.mxu0  ;;  %v5054_v0 = vor.u32 %v5053_v55, %v5049_v52  ;;  %v5059_v8 = vrot.slane %v5057_v49, 5 }
 0x374   : > { %4626 = vst.msk [vmem:[#allocation2 + $0xa0] sm:$0xf] %vm258_vm0, %v8638_v53  ;;  %v5036_v57 = vsel %vm8936_vm5, %v5031_v54, %v5035_v35  ;;  %v4183_v59 = vadd.f32 %v8819_v58, %v8723_v56  ;;  %v4743_v62 = vld [vmem:[#allocation2 + $0xa8] sm:$0xf] }
 0x375   : > { %4627 = vst.msk [vmem:[#allocation2 + $0xa4] sm:$0x1] %vm261_vm1, %v8639_v16  ;;  %5179 = vrot.lane.b32.xlu1 %v5036_v57, %s8861_s24  ;;  %5181 = vrot.lane.b32.xlu0 %v5050_v61, %s8861_s24  ;;  %v4174_v63 = vpop.f32.mrf.mxu0  ;;  %v5086_v2 = vshrl.u32 %v4743_v62, 16  ;;  %v5089_v3 = vshll.u32 %v4743_v62, 16  ;;  %v4665_v4 = vld [vmem:[#allocation2 + $0xa8] sm:$0xf] }
 0x376   : > { %v4219_v6 = vmax.f32 %v4183_v59, 0.0  ;;  %v4175_v7 = vadd.f32 %v8819_v58, %v4174_v63  ;;  %v4740_v9 = vld [vmem:[#allocation2 + $0x9c] sm:$0xf]  ;;  %4697 = vst.msk [vmem:[#allocation3 + $0x70] sm:$0xf] %vm258_vm0, %v4665_v4  ;;  %v5055_v11 = vrot.slane %v5054_v0, 4 }
 0x377   : > { %v8724_v10 = vpop.f32.mrf.mxu0  ;;  %v5062_v5 = vshrl.u32 %v4740_v9, 16  ;;  %v5065_v60 = vshll.u32 %v4740_v9, 16  ;;  %v5088_v12 = vrot.slane %v5086_v2, 4  ;;  %v4663_v13 = vld [vmem:[#allocation2 + $0x9c] sm:$0xf]  ;;  %v5091_v17 = vrot.slane %v5089_v3, 5 }
 0x378   : > { %v4298_v21 = vrot.slane %v4219_v6, 7  ;;  %v4217_v37 = vmax.f32 %v4175_v7, 0.0  ;;  %v4186_v14 = vadd.f32 %v8819_v58, %v8724_v10  ;;  %v4744_v15 = vld [vmem:[#allocation2 + $0xac] sm:$0xf]  ;;  %4695 = vst.msk [vmem:[#allocation3 + $0x68] sm:$0xf] %vm258_vm0, %v4663_v13  ;;  %v5060_v18 = vsel %vm8936_vm5, %v5055_v11, %v5059_v8 }
 0x379   : > { %v4177_v19 = vpop.f32.mrf.mxu0  ;;  %v5064_v20 = vrot.slane %v5062_v5, 4  ;;  %v5067_v1 = vrot.slane %v5065_v60, 5  ;;  %v5095_v23 = vshll.u32 %v4744_v15, 16  ;;  %5183 = vrot.lane.b32.xlu1 %v5060_v18, %s8861_s24  ;;  %v4666_v32 = vld [vmem:[#allocation2 + $0xac] sm:$0xf]  ;;  %v5092_v56 = vor.u32 %v5091_v17, %v5088_v12 }
 0x37a   : > { %v4364_v26 = vsel %vm299_vm4, 0.0, %v4298_v21  ;;  %v4295_v22 = vrot.slane %v4217_v37, 7  ;;  %v4220_v38 = vmax.f32 %v4186_v14, 0.0  ;;  %v4178_v27 = vadd.f32 %v8819_v58, %v4177_v19  ;;  %v4745_v55 = vld [vmem:[#allocation2 + $0xb0] sm:$0x1] }
 0x37b   : > { %v4741_v24 = vld [vmem:[#allocation2 + $0xa0] sm:$0xf]  ;;  %v8646_v28 = vpack.c.bf16 %v4364_v26, %v4364_v26  ;;  %v5068_v29 = vor.u32 %v5067_v1, %v5064_v20  ;;  %v5097_v57 = vrot.slane %v5095_v23, 5  ;;  %4698 = vst.msk [vmem:[#allocation3 + $0x74] sm:$0xf] %vm258_vm0, %v4666_v32  ;;  %v5099_v62 = vshrl.u32 %v4744_v15, 16 }
 0x37c   : > { %v5071_v31 = vshll.u32 %v4741_v24, 16  ;;  %v5075_v33 = vshrl.u32 %v4741_v24, 16  ;;  %v4742_v40 = vld [vmem:[#allocation2 + $0xa4] sm:$0x1]  ;;  %v4363_v25 = vsel %vm299_vm4, 0.0, %v4295_v22  ;;  %v4299_v35 = vrot.slane %v4220_v38, 7 }
 0x37d   : > { %v4218_v30 = vmax.f32 %v4178_v27, 0.0  ;;  %v5081_v36 = vshll.u32 %v4742_v40, 16  ;;  %4634 = vst.msk [vmem:[#allocation2 + $0xc0] sm:$0xf] %vm258_vm0, %v8646_v28  ;;  %v8643_v39 = vpack.c.bf16 %v4363_v25, %v4363_v25  ;;  %v5069_v41 = vrot.slane %v5068_v29, 4 }
 0x37e   : > { %v5073_v42 = vrot.slane %v5071_v31, 5  ;;  %v5077_v44 = vrot.slane %v5075_v33, 4  ;;  %v4300_v45 = vsel %vm299_vm4, %v4298_v21, %v4299_v35  ;;  %v4380_v46 = vsel %vm299_vm4, %v4299_v35, 0.0  ;;  %v4664_v54 = vld [vmem:[#allocation2 + $0xa0] sm:$0xf] }
 0x37f   : > { %v4296_v47 = vrot.slane %v4218_v30, 7  ;;  %v5083_v48 = vrot.slane %v5081_v36, 5  ;;  %4631 = vst.msk [vmem:[#allocation2 + $0xb4] sm:$0xf] %vm258_vm0, %v8643_v39  ;;  %v8647_v50 = vpack.c.bf16 %v4300_v45, %v4300_v45  ;;  %v8648_v52 = vpack.c.bf16 %v4380_v46, %v4380_v46  ;;  %4696 = vst.msk [vmem:[#allocation3 + $0x6c] sm:$0xf] %vm258_vm0, %v4664_v54 }
 0x380   : > { %v5074_v53 = vsel %vm8936_vm5, %v5069_v41, %v5073_v42  ;;  %v5078_v16 = vor.u32 %v5077_v44, %v5073_v42  ;;  %v5093_v63 = vrot.slane %v5092_v56, 4  ;;  %v5101_v2 = vrot.slane %v5099_v62, 4  ;;  %v5261_v21 = vld [vmem:[#allocation2] sm:$0xe]  ;;  %v5262_v37 = vld [vmem:[#allocation2 + $0x4] sm:$0xf] }
 0x381   : > { %v4297_v51 = vsel %vm299_vm4, %v4295_v22, %v4296_v47  ;;  %v4379_v49 = vsel %vm299_vm4, %v4296_v47, 0.0  ;;  %5185 = vrot.lane.b32.xlu0 %v5074_v53, %s8861_s24  ;;  %4636 = vst.msk [vmem:[#allocation2 + $0xc8] sm:$0x1] %vm261_vm1, %v8648_v52  ;;  %v5105_v3 = vshll.u32 %v4745_v55, 16  ;;  %v8465_v20 = vrot.slane %v5261_v21, 9 }
 0x382   : > { %4635 = vst.msk [vmem:[#allocation2 + $0xc4] sm:$0xf] %vm258_vm0, %v8647_v50  ;;  %v8644_v58 = vpack.c.bf16 %v4297_v51, %v4297_v51  ;;  %v8645_v59 = vpack.c.bf16 %v4379_v49, %v4379_v49  ;;  %v5079_v61 = vrot.slane %v5078_v16, 4  ;;  %v5098_v4 = vsel %vm8936_vm5, %v5093_v63, %v5097_v57  ;;  %v5263_v24 = vld [vmem:[#allocation2 + $0x8] sm:$0x1] }
 0x383   : > { %v5102_v6 = vor.u32 %v5101_v2, %v5097_v57  ;;  %v5107_v9 = vrot.slane %v5105_v3, 5  ;;  %v5359_v1 = vrot.slane %v5262_v37, 5  ;;  %v5265_v33 = vld [vmem:[#allocation2 + $0x10] sm:$0xf]  ;;  %v5362_v30 = vrot.slane %v5263_v24, 5 }
 0x384   : > { %4632 = vst.msk [vmem:[#allocation2 + $0xb8] sm:$0xf] %vm258_vm0, %v8644_v58  ;;  %v5084_v0 = vsel %vm8936_vm5, %v5079_v61, %v5083_v48  ;;  %v5264_v39 = vld [vmem:[#allocation2 + $0xc] sm:$0xe]  ;;  %v5366_v42 = vrot.slane %v5265_v33, 5 }
 0x385   : > { %4633 = vst.msk [vmem:[#allocation2 + $0xbc] sm:$0x1] %vm261_vm1, %v8645_v59  ;;  %5187 = vrot.lane.b32.xlu1 %v5084_v0, %s8861_s24  ;;  %5189 = vrot.lane.b32.xlu0 %v5098_v4, %s8861_s24  ;;  %v5103_v8 = vrot.slane %v5102_v6, 4  ;;  %v5360_v31 = vsel %vm9195_vm8, %v8465_v20, %v5359_v1  ;;  %v5361_v35 = vrot.slane %v5359_v1, 4  ;;  %v5268_v44 = vld [vmem:[#allocation2 + $0x1c] sm:$0xf] }
 0x386   : > { %v4746_v7 = vld [vmem:[#allocation2 + $0xb4] sm:$0xf]  ;;  %v8466_v46 = vrot.slane %v5264_v39, 9  ;;  %v5267_v52 = vld [vmem:[#allocation2 + $0x18] sm:$0xe]  ;;  %v5368_v16 = vrot.slane %v5366_v42, 4 }
 0x387   : > { %v5110_v10 = vshrl.u32 %v4746_v7, 16  ;;  %v5113_v11 = vshll.u32 %v4746_v7, 16  ;;  %v4667_v5 = vld [vmem:[#allocation2 + $0xb4] sm:$0xf]  ;;  %v5108_v60 = vsel %vm8936_vm5, %v5103_v8, %v5107_v9  ;;  %v5363_v45 = vsel %vm9195_vm8, %v5361_v35, %v5362_v30  ;;  %v5271_v32 = vld [vmem:[#allocation2 + $0x28] sm:$0xf] }
 0x388   : > { %4699 = vst.msk [vmem:[#allocation3 + $0x78] sm:$0xf] %vm258_vm0, %v4667_v5  ;;  %v5266_v50 = vld [vmem:[#allocation2 + $0x14] sm:$0x1]  ;;  %v5367_v53 = vsel %vm9195_vm8, %v8466_v46, %v5366_v42  ;;  %v5373_v54 = vrot.slane %v5268_v44, 5  ;;  %v8467_v49 = vrot.slane %v5267_v52, 9 }
 0x389   : > { %v5112_v12 = vrot.slane %v5110_v10, 4  ;;  %v5115_v13 = vrot.slane %v5113_v11, 5  ;;  %5191 = vrot.lane.b32.xlu1 %v5108_v60, %s8861_s24  ;;  %v5369_v51 = vrot.slane %v5266_v50, 5  ;;  %v5269_v56 = vld [vmem:[#allocation2 + $0x20] sm:$0x1]  ;;  %v5380_v61 = vrot.slane %v5271_v32, 5 }
 0x38a   : > { %v5270_v57 = vld [vmem:[#allocation2 + $0x24] sm:$0xe]  ;;  %v5374_v58 = vsel %vm9195_vm8, %v8467_v49, %v5373_v54  ;;  %v5375_v59 = vrot.slane %v5373_v54, 4  ;;  %v5274_v63 = vld [vmem:[#allocation2 + $0x34] sm:$0xf]  ;;  %v5376_v0 = vrot.slane %v5269_v56, 5 }
 0x38b   : > { %v4747_v14 = vld [vmem:[#allocation2 + $0xb8] sm:$0xf]  ;;  %v5116_v17 = vor.u32 %v5115_v13, %v5112_v12  ;;  %v5370_v55 = vsel %vm9195_vm8, %v5368_v16, %v5369_v51  ;;  %v8468_v2 = vrot.slane %v5270_v57, 9  ;;  %v5272_v3 = vld [vmem:[#allocation2 + $0x2c] sm:$0x1]  ;;  %v5382_v8 = vrot.slane %v5380_v61, 4 }
 0x38c   : > { %v4748_v15 = vld [vmem:[#allocation2 + $0xbc] sm:$0x1]  ;;  %v5119_v18 = vshll.u32 %v4747_v14, 16  ;;  %v5123_v19 = vshrl.u32 %v4747_v14, 16  ;;  %v4668_v27 = vld [vmem:[#allocation2 + $0xb8] sm:$0xf]  ;;  %v5377_v6 = vsel %vm9195_vm8, %v5375_v59, %v5376_v0 }
 0x38d   : > { %v5117_v23 = vrot.slane %v5116_v17, 4  ;;  %v5129_v38 = vshll.u32 %v4748_v15, 16  ;;  %4700 = vst.msk [vmem:[#allocation3 + $0x7c] sm:$0xf] %vm258_vm0, %v4668_v27  ;;  %v5273_v4 = vld [vmem:[#allocation2 + $0x30] sm:$0xe]  ;;  %v5381_v7 = vsel %vm9195_vm8, %v8468_v2, %v5380_v61 }
 0x38e   : > { %v5121_v26 = vrot.slane %v5119_v18, 5  ;;  %v5125_v22 = vrot.slane %v5123_v19, 4  ;;  %v5387_v9 = vrot.slane %v5274_v63, 5  ;;  %v5277_v10 = vld [vmem:[#allocation2 + $0x40] sm:$0xf]  ;;  %v5383_v11 = vrot.slane %v5272_v3, 5 }
 0x38f   : > { %v5131_v25 = vrot.slane %v5129_v38, 5  ;;  %v8469_v5 = vrot.slane %v5273_v4, 9  ;;  %v5275_v12 = vld [vmem:[#allocation2 + $0x38] sm:$0x1]  ;;  %v5276_v13 = vld [vmem:[#allocation2 + $0x3c] sm:$0xe] }
 0x390   : > { %v5122_v28 = vsel %vm8936_vm5, %v5117_v23, %v5121_v26  ;;  %v5126_v29 = vor.u32 %v5125_v22, %v5121_v26  ;;  %v5384_v21 = vsel %vm9195_vm8, %v5382_v8, %v5383_v11  ;;  %v5389_v14 = vrot.slane %v5387_v9, 4  ;;  %v5280_v17 = vld [vmem:[#allocation2 + $0x4c] sm:$0xf]  ;;  %v5278_v1 = vld [vmem:[#allocation2 + $0x44] sm:$0x1] }
 0x391   : > { %5193 = vrot.lane.b32.xlu0 %v5122_v28, %s8861_s24  ;;  %v5388_v37 = vsel %vm9195_vm8, %v8469_v5, %v5387_v9  ;;  %v5394_v15 = vrot.slane %v5277_v10, 5  ;;  %v5390_v18 = vrot.slane %v5275_v12, 5  ;;  %v8470_v19 = vrot.slane %v5276_v13, 9  ;;  %v5279_v23 = vld [vmem:[#allocation2 + $0x48] sm:$0xe] }
 0x392   : > { %v5127_v40 = vrot.slane %v5126_v29, 4  ;;  %v5401_v24 = vrot.slane %v5280_v17, 5  ;;  %v5283_v28 = vld [vmem:[#allocation2 + $0x58] sm:$0xf]  ;;  %v5397_v29 = vrot.slane %v5278_v1, 5  ;;  %vm8188_vm0 = vcmask 31744  }
 0x393   : > { %v5138_v36 = vpop.permute.xlu0 %5137  ;;  %v5391_v22 = vsel %vm9195_vm8, %v5389_v14, %v5390_v18  ;;  %v5395_v38 = vsel %vm9195_vm8, %v8470_v19, %v5394_v15  ;;  %v5396_v27 = vrot.slane %v5394_v15, 4  ;;  %v5281_v33 = vld [vmem:[#allocation2 + $0x50] sm:$0x1]  ;;  %v5285_v46 = vld [vmem:[#allocation2 + $0x60] sm:$0xe] }
 0x394   : > { %5231 = vst.msk [vmem:[#allocation3 + $0x8] sm:$0xf] %vm1280_vm9, %v5138_v36  ;;  %v5132_v41 = vsel %vm8936_vm5, %v5127_v40, %v5131_v25  ;;  %v5282_v40 = vld [vmem:[#allocation2 + $0x54] sm:$0xe]  ;;  %v5403_v30 = vrot.slane %v5401_v24, 4  ;;  %v5408_v36 = vrot.slane %v5283_v28, 5 }
 0x395   : > { %5195 = vrot.lane.b32.xlu1 %v5132_v41, %s8861_s24  ;;  %5469 = vrot.lane.b32.xlu0 %v5360_v31, %s8862_s25  ;;  %v8471_v31 = vrot.slane %v5279_v23, 9  ;;  %v5398_v25 = vsel %vm9195_vm8, %v5396_v27, %v5397_v29  ;;  %v5286_v41 = vld [vmem:[#allocation2 + $0x64] sm:$0xf]  ;;  %v5404_v42 = vrot.slane %v5281_v33, 5  ;;  %v8472_v44 = vrot.slane %v5282_v40, 9 }
 0x396   : > { %v5410_v50 = vrot.slane %v5408_v36, 4  ;;  %v5415_v52 = vrot.slane %v5286_v41, 5  ;;  %v8473_v54 = vrot.slane %v5285_v46, 9  ;;  %v5287_v51 = vld [vmem:[#allocation2 + $0x68] sm:$0x1] }
 0x397   : > { %v5140_v47 = vpop.permute.xlu1 %5139  ;;  %v5142_v48 = vpop.permute.xlu0 %5141  ;;  %v5402_v35 = vsel %vm9195_vm8, %v8471_v31, %v5401_v24  ;;  %v5288_v49 = vld [vmem:[#allocation2 + $0x6c] sm:$0xe]  ;;  %v5292_v59 = vld [vmem:[#allocation2 + $0x7c] sm:$0xf]  ;;  %v5418_v61 = vrot.slane %v5287_v51, 5 }
 0x398   : > { %5232 = vst.msk [vmem:[#allocation3 + $0xc] sm:$0xf] %vm1280_vm9, %v5140_v47  ;;  %5233 = vst.msk [vmem:[#allocation3 + $0x10] sm:$0xf] %vm1280_vm9, %v5142_v48  ;;  %v5405_v47 = vsel %vm9195_vm8, %v5403_v30, %v5404_v42  ;;  %v5409_v48 = vsel %vm9195_vm8, %v8472_v44, %v5408_v36  ;;  %v5416_v57 = vsel %vm9195_vm8, %v8473_v54, %v5415_v52  ;;  %v5290_v0 = vld [vmem:[#allocation2 + $0x74] sm:$0x1] }
 0x399   : > { %5471 = vrot.lane.b32.xlu1 %v5363_v45, %s8862_s25  ;;  %5473 = vrot.lane.b32.xlu0 %v5367_v53, %s8862_s25  ;;  %v5284_v45 = vld [vmem:[#allocation2 + $0x5c] sm:$0x1]  ;;  %v5289_v53 = vld [vmem:[#allocation2 + $0x70] sm:$0xf]  ;;  %v5291_v2 = vld [vmem:[#allocation2 + $0x78] sm:$0xe] }
 0x39a   : > { %v5411_v16 = vrot.slane %v5284_v45, 5  ;;  %v5429_v8 = vrot.slane %v5292_v59, 5  ;;  %v5295_v9 = vld [vmem:[#allocation2 + $0x88] sm:$0xf]  ;;  %v5425_v10 = vrot.slane %v5290_v0, 5  ;;  %v8475_v11 = vrot.slane %v5291_v2, 9 }
 0x39b   : > { %v5293_v5 = vld [vmem:[#allocation2 + $0x80] sm:$0x1]  ;;  %v5298_v15 = vld [vmem:[#allocation2 + $0x94] sm:$0xf]  ;;  %v5296_v19 = vld [vmem:[#allocation2 + $0x8c] sm:$0x1] }
 0x39c   : > { %v5144_v62 = vpop.permute.xlu1 %5143  ;;  %v5412_v56 = vsel %vm9195_vm8, %v5410_v50, %v5411_v16  ;;  %v5430_v13 = vsel %vm9195_vm8, %v8475_v11, %v5429_v8  ;;  %v5432_v17 = vrot.slane %v5293_v5, 5  ;;  %v5439_v27 = vrot.slane %v5296_v19, 5  ;;  %v5299_v29 = vld [vmem:[#allocation2 + $0x98] sm:$0x1]  ;;  %v5300_v31 = vld [vmem:[#allocation2 + $0x9c] sm:$0xe] }
 0x39d   : > { %5475 = vrot.lane.b32.xlu1 %v5370_v55, %s8862_s25  ;;  %5477 = vrot.lane.b32.xlu0 %v5374_v58, %s8862_s25  ;;  %5234 = vst.msk [vmem:[#allocation3 + $0x14] sm:$0xf] %vm1280_vm9, %v5144_v62  ;;  %v5417_v55 = vrot.slane %v5415_v52, 4  ;;  %v5422_v58 = vrot.slane %v5289_v53, 5  ;;  %v8474_v62 = vrot.slane %v5288_v49, 9  ;;  %v5446_v36 = vrot.slane %v5299_v29, 5 }
 0x39e   : > { %v5304_v30 = vld [vmem:[#allocation2 + $0xac] sm:$0xf]  ;;  %v5302_v42 = vld [vmem:[#allocation2 + $0xa4] sm:$0x1]  ;;  %v5303_v44 = vld [vmem:[#allocation2 + $0xa8] sm:$0xe] }
 0x39f   : > { %v5419_v4 = vsel %vm9195_vm8, %v5417_v55, %v5418_v61  ;;  %v5457_v50 = vrot.slane %v5304_v30, 5  ;;  %v5307_v52 = vld [vmem:[#allocation2 + $0xb8] sm:$0xf]  ;;  %v5453_v53 = vrot.slane %v5302_v42, 5  ;;  %v8479_v16 = vrot.slane %v5303_v44, 9 }
 0x3a0   : > { %v5305_v54 = vld [vmem:[#allocation2 + $0xb0] sm:$0x1]  ;;  %v5308_v61 = vld [vmem:[#allocation2 + $0xbc] sm:$0x1]  ;;  %v5601_v5 = vld [vmem:[#allocation2 + $0x24] sm:$0xf] }
 0x3a1   : > { %5479 = vrot.lane.b32.xlu1 %v5377_v6, %s8862_s25  ;;  %5481 = vrot.lane.b32.xlu0 %v5381_v7, %s8862_s25  ;;  %v5423_v6 = vsel %vm9195_vm8, %v8474_v62, %v5422_v58  ;;  %v5424_v7 = vrot.slane %v5422_v58, 4  ;;  %v5458_v49 = vsel %vm9195_vm8, %v8479_v16, %v5457_v50  ;;  %v5460_v58 = vrot.slane %v5305_v54, 5  ;;  %v5600_v11 = vld [vmem:[#allocation2 + $0x1c] sm:$0xf]  ;;  %v5607_v19 = vld [vmem:[#allocation2 + $0x48] sm:$0xf] }
 0x3a2   : > { %v5467_v2 = vrot.slane %v5308_v61, 5  ;;  %v5790_v29 = vld [vmem:[#allocation2 + $0x10] sm:$0xf]  ;;  %v5793_v42 = vld [vmem:[#allocation2 + $0x1c] sm:$0xf] }
 0x3a3   : > { %v5146_v60 = vpop.permute.xlu0 %5145  ;;  %v5426_v12 = vsel %vm9195_vm8, %v5424_v7, %v5425_v10  ;;  %v5599_v10 = vld [vmem:[#allocation2 + $0x18] sm:$0xf]  ;;  %v5616_v44 = vld [vmem:[#allocation2 + $0x7c] sm:$0xf]  ;;  %v5871_v16 = vshll.u32 %v5793_v42, 16  ;;  %v5875_v54 = vshrl.u32 %v5793_v42, 16 }
 0x3a4   : > { %5235 = vst.msk [vmem:[#allocation3 + $0x18] sm:$0xf] %vm1280_vm9, %v5146_v60  ;;  %v5294_v60 = vld [vmem:[#allocation2 + $0x84] sm:$0xe]  ;;  %v6881_v42 = vld [vmem:[#allocation2 + $0x28] sm:$0xf] }
 0x3a5   : > { %5483 = vrot.lane.b32.xlu1 %v5384_v21, %s8862_s25  ;;  %5485 = vrot.lane.b32.xlu0 %v5388_v37, %s8862_s25  ;;  %v5431_v21 = vrot.slane %v5429_v8, 4  ;;  %v5436_v37 = vrot.slane %v5295_v9, 5  ;;  %v8476_v18 = vrot.slane %v5294_v60, 9  ;;  %v5598_v9 = vld [vmem:[#allocation2 + $0x10] sm:$0xf]  ;;  %v5873_v61 = vrot.slane %v5871_v16, 5 }
 0x3a6   : > { %v6959_v16 = vshll.u32 %v6881_v42, 16 }
 0x3a7   : > { %v5148_v20 = vpop.permute.xlu1 %5147  ;;  %v5150_v26 = vpop.permute.xlu0 %5149  ;;  %v5433_v1 = vsel %vm9195_vm8, %v5431_v21, %v5432_v17  ;;  %v5437_v23 = vsel %vm9195_vm8, %v8476_v18, %v5436_v37  ;;  %v5606_v18 = vld [vmem:[#allocation2 + $0x40] sm:$0xf] }
 0x3a8   : > { %5236 = vst.msk [vmem:[#allocation3 + $0x1c] sm:$0xf] %vm1280_vm9, %v5148_v20  ;;  %5237 = vst.msk [vmem:[#allocation3 + $0x20] sm:$0xf] %vm1280_vm9, %v5150_v26  ;;  %v5297_v20 = vld [vmem:[#allocation2 + $0x90] sm:$0xe] }
 0x3a9   : > { %5487 = vrot.lane.b32.xlu1 %v5391_v22, %s8862_s25  ;;  %5489 = vrot.lane.b32.xlu0 %v5395_v38, %s8862_s25  ;;  %v5438_v26 = vrot.slane %v5436_v37, 4  ;;  %v5443_v22 = vrot.slane %v5298_v15, 5  ;;  %v5301_v38 = vld [vmem:[#allocation2 + $0xa0] sm:$0xf]  ;;  %v8477_v24 = vrot.slane %v5297_v20, 9 }
 0x3aa   : > { %v5604_v37 = vld [vmem:[#allocation2 + $0x34] sm:$0xf]  ;;  %v5608_v20 = vld [vmem:[#allocation2 + $0x4c] sm:$0xf] }
 0x3ab   : > { %v5152_v39 = vpop.permute.xlu1 %5151  ;;  %v5440_v33 = vsel %vm9195_vm8, %v5438_v26, %v5439_v27  ;;  %v5444_v40 = vsel %vm9195_vm8, %v8477_v24, %v5443_v22  ;;  %v5610_v26 = vld [vmem:[#allocation2 + $0x58] sm:$0xf]  ;;  %v5789_v27 = vld [vmem:[#allocation2 + $0xc] sm:$0xf]  ;;  %v5612_v24 = vld [vmem:[#allocation2 + $0x64] sm:$0xf] }
 0x3ac   : > { %5238 = vst.msk [vmem:[#allocation3 + $0x24] sm:$0xf] %vm1280_vm9, %v5152_v39  ;;  %v8478_v39 = vrot.slane %v5300_v31, 9 }
 0x3ad   : > { %5491 = vrot.lane.b32.xlu1 %v5398_v25, %s8862_s25  ;;  %5493 = vrot.lane.b32.xlu0 %v5402_v35, %s8862_s25  ;;  %v5445_v25 = vrot.slane %v5443_v22, 4  ;;  %v5450_v35 = vrot.slane %v5301_v38, 5  ;;  %v5611_v22 = vld [vmem:[#allocation2 + $0x60] sm:$0xf] }
 0x3af   : > { %v5447_v46 = vsel %vm9195_vm8, %v5445_v25, %v5446_v36  ;;  %v5847_v25 = vshll.u32 %v5790_v29, 16  ;;  %v5614_v36 = vld [vmem:[#allocation2 + $0x70] sm:$0xf] }
 0x3b1   : > { %5495 = vrot.lane.b32.xlu1 %v5405_v47, %s8862_s25  ;;  %5497 = vrot.lane.b32.xlu0 %v5409_v48, %s8862_s25  ;;  %v5451_v47 = vsel %vm9195_vm8, %v8478_v39, %v5450_v35  ;;  %v5452_v48 = vrot.slane %v5450_v35, 4  ;;  %v5851_v35 = vshrl.u32 %v5790_v29, 16  ;;  %v5615_v39 = vld [vmem:[#allocation2 + $0x78] sm:$0xf] }
 0x3b3   : > { %v5154_v32 = vpop.permute.xlu0 %5153  ;;  %v5454_v51 = vsel %vm9195_vm8, %v5452_v48, %v5453_v53  ;;  %v5853_v48 = vrot.slane %v5851_v35, 4 }
 0x3b4   : > { %5239 = vst.msk [vmem:[#allocation3 + $0x28] sm:$0xf] %vm1280_vm9, %v5154_v32  ;;  %v5306_v32 = vld [vmem:[#allocation2 + $0xb4] sm:$0xe] }
 0x3b5   : > { %5499 = vrot.lane.b32.xlu1 %v5412_v56, %s8862_s25  ;;  %5501 = vrot.lane.b32.xlu0 %v5416_v57, %s8862_s25  ;;  %v5459_v56 = vrot.slane %v5457_v50, 4  ;;  %v5464_v57 = vrot.slane %v5307_v52, 5  ;;  %v8480_v59 = vrot.slane %v5306_v32, 9  ;;  %v5617_v50 = vld [vmem:[#allocation2 + $0x84] sm:$0xf] }
 0x3b7   : > { %v5156_v63 = vpop.permute.xlu1 %5155  ;;  %v5158_v3 = vpop.permute.xlu0 %5157  ;;  %v5461_v62 = vsel %vm9195_vm8, %v5459_v56, %v5460_v58  ;;  %v5466_v0 = vrot.slane %v5464_v57, 4  ;;  %v5791_v56 = vld [vmem:[#allocation2 + $0x14] sm:$0x1] }
 0x3b8   : > { %5240 = vst.msk [vmem:[#allocation3 + $0x2c] sm:$0xf] %vm1280_vm9, %v5156_v63  ;;  %5241 = vst.msk [vmem:[#allocation3 + $0x30] sm:$0xf] %vm1280_vm9, %v5158_v3  ;;  %v5465_v63 = vsel %vm9195_vm8, %v8480_v59, %v5464_v57 }
 0x3b9   : > { %5503 = vrot.lane.b32.xlu1 %v5419_v4, %s8862_s25  ;;  %5505 = vrot.lane.b32.xlu0 %v5423_v6, %s8862_s25  ;;  %v5468_v4 = vsel %vm9195_vm8, %v5466_v0, %v5467_v2  ;;  %v5597_v6 = vld [vmem:[#allocation2 + $0xc] sm:$0xf]  ;;  %v5794_v2 = vld [vmem:[#allocation2 + $0x20] sm:$0x1] }
 0x3bb   : > { %v5160_v14 = vpop.permute.xlu1 %5159 }
 0x3bc   : > { %5242 = vst.msk [vmem:[#allocation3 + $0x34] sm:$0xf] %vm1280_vm9, %v5160_v14  ;;  %v5605_v14 = vld [vmem:[#allocation2 + $0x3c] sm:$0xf] }
 0x3bd   : > { %5507 = vrot.lane.b32.xlu1 %v5426_v12, %s8862_s25  ;;  %5509 = vrot.lane.b32.xlu0 %v5430_v13, %s8862_s25  ;;  %v5602_v12 = vld [vmem:[#allocation2 + $0x28] sm:$0xf]  ;;  %v5603_v13 = vld [vmem:[#allocation2 + $0x30] sm:$0xf] }
 0x3c1   : > { %5511 = vrot.lane.b32.xlu1 %v5433_v1, %s8862_s25  ;;  %5513 = vrot.lane.b32.xlu0 %v5437_v23, %s8862_s25  ;;  %v5609_v1 = vld [vmem:[#allocation2 + $0x54] sm:$0xf] }
 0x3c3   : > { %v5162_v28 = vpop.permute.xlu0 %5161 }
 0x3c4   : > { %5243 = vst.msk [vmem:[#allocation3 + $0x38] sm:$0xf] %vm1280_vm9, %v5162_v28  ;;  %v5613_v28 = vld [vmem:[#allocation2 + $0x6c] sm:$0xf] }
 0x3c5   : > { %5515 = vrot.lane.b32.xlu1 %v5440_v33, %s8862_s25  ;;  %5517 = vrot.lane.b32.xlu0 %v5444_v40, %s8862_s25  ;;  %v5838_v33 = vshrl.u32 %v5789_v27, 16  ;;  %v5841_v40 = vshll.u32 %v5789_v27, 16 }
 0x3c7   : > { %v5164_v41 = vpop.permute.xlu1 %5163  ;;  %v5166_v45 = vpop.permute.xlu0 %5165 }
 0x3c8   : > { %5244 = vst.msk [vmem:[#allocation3 + $0x3c] sm:$0xf] %vm1280_vm9, %v5164_v41  ;;  %5245 = vst.msk [vmem:[#allocation3 + $0x40] sm:$0xf] %vm1280_vm9, %v5166_v45  ;;  %v5792_v41 = vld [vmem:[#allocation2 + $0x18] sm:$0xf] }
 0x3c9   : > { %5519 = vrot.lane.b32.xlu1 %v5447_v46, %s8862_s25  ;;  %5521 = vrot.lane.b32.xlu0 %v5451_v47, %s8862_s25  ;;  %v5840_v45 = vrot.slane %v5838_v33, 4  ;;  %v5843_v46 = vrot.slane %v5841_v40, 5  ;;  %v5849_v47 = vrot.slane %v5847_v25, 5  ;;  %v5862_v52 = vshrl.u32 %v5792_v41, 16  ;;  %v6352_v33 = vld [vmem:[#allocation2 + $0x18] sm:$0xe] }
 0x3ca   : > { %v5865_v53 = vshll.u32 %v5792_v41, 16  ;;  %v6354_v40 = vld [vmem:[#allocation2 + $0x20] sm:$0x1]  ;;  %v6880_v41 = vld [vmem:[#allocation2 + $0x24] sm:$0xf] }
 0x3cb   : > { %v5168_v55 = vpop.permute.xlu1 %5167  ;;  %v5854_v57 = vor.u32 %v5853_v48, %v5849_v47  ;;  %v5864_v58 = vrot.slane %v5862_v52, 4  ;;  %v8482_v48 = vrot.slane %v6352_v33, 9  ;;  %v6950_v52 = vshrl.u32 %v6880_v41, 16 }
 0x3cc   : > { %5246 = vst.msk [vmem:[#allocation3 + $0x44] sm:$0xf] %vm1280_vm9, %v5168_v55  ;;  %v5619_v55 = vld [vmem:[#allocation2 + $0x90] sm:$0xf]  ;;  %v5867_v59 = vrot.slane %v5865_v53, 5  ;;  %v6953_v53 = vshll.u32 %v6880_v41, 16 }
 0x3cd   : > { %5523 = vrot.lane.b32.xlu1 %v5454_v51, %s8862_s25  ;;  %5525 = vrot.lane.b32.xlu0 %v5458_v49, %s8862_s25  ;;  %v5618_v51 = vld [vmem:[#allocation2 + $0x88] sm:$0xf]  ;;  %v5844_v49 = vor.u32 %v5843_v46, %v5840_v45  ;;  %v5798_v41 = vld [vmem:[#allocation2 + $0x30] sm:$0xf] }
 0x3d1   : > { %5527 = vrot.lane.b32.xlu1 %v5461_v62, %s8862_s25  ;;  %5529 = vrot.lane.b32.xlu0 %v5465_v63, %s8862_s25  ;;  %v5877_v62 = vrot.slane %v5875_v54, 4  ;;  %v5857_v63 = vshll.u32 %v5791_v56, 16  ;;  %v6963_v54 = vshrl.u32 %v6881_v42, 16 }
 0x3d3   : > { %v5170_v3 = vpop.permute.xlu0 %5169 }
 0x3d4   : > { %5247 = vst.msk [vmem:[#allocation3 + $0x48] sm:$0xf] %vm1280_vm9, %v5170_v3  ;;  %v6350_v3 = vld [vmem:[#allocation2 + $0x10] sm:$0xf] }
 0x3d5   : > { %5531 = vrot.lane.b32.xlu1 %v5468_v4, %s8862_s25  ;;  %5661 = vrot.lane.b32.xlu0 %v5597_v6, %s8863_s26  ;;  %v5620_v4 = vld [vmem:[#allocation2 + $0x94] sm:$0xf]  ;;  %v5621_v6 = vld [vmem:[#allocation2 + $0x9c] sm:$0xf] }
 0x3d7   : > { %v5172_v7 = vpop.permute.xlu1 %5171  ;;  %v5174_v8 = vpop.permute.xlu0 %5173 }
 0x3d8   : > { %5248 = vst.msk [vmem:[#allocation3 + $0x4c] sm:$0xf] %vm1280_vm9, %v5172_v7  ;;  %5249 = vst.msk [vmem:[#allocation3 + $0x50] sm:$0xf] %vm1280_vm9, %v5174_v8  ;;  %v5845_v7 = vrot.slane %v5844_v49, 4  ;;  %v5855_v8 = vrot.slane %v5854_v57, 4 }
 0x3d9   : > { %5663 = vrot.lane.b32.xlu1 %v5598_v9, %s8863_s26  ;;  %5665 = vrot.lane.b32.xlu0 %v5599_v10, %s8863_s26  ;;  %v5868_v9 = vor.u32 %v5867_v59, %v5864_v58  ;;  %v5878_v10 = vor.u32 %v5877_v62, %v5873_v61  ;;  %v6955_v62 = vrot.slane %v6953_v53, 5 }
 0x3db   : > { %v5176_v60 = vpop.permute.xlu1 %5175 }
 0x3dc   : > { %5250 = vst.msk [vmem:[#allocation3 + $0x54] sm:$0xf] %vm1280_vm9, %v5176_v60 }
 0x3dd   : > { %5667 = vrot.lane.b32.xlu1 %v5600_v11, %s8863_s26  ;;  %5669 = vrot.lane.b32.xlu0 %v5601_v5, %s8863_s26  ;;  %v5859_v11 = vrot.slane %v5857_v63, 5  ;;  %v5881_v5 = vshll.u32 %v5794_v2, 16  ;;  %v10594_v63 = vrot.slane %v6959_v16, 5 }
 0x3e1   : > { %5671 = vrot.lane.b32.xlu1 %v5602_v12, %s8863_s26  ;;  %5673 = vrot.lane.b32.xlu0 %v5603_v13, %s8863_s26  ;;  %v6447_v13 = vrot.slane %v6350_v3, 5 }
 0x3e3   : > { %v5178_v21 = vpop.permute.xlu0 %5177 }
 0x3e4   : > { %5251 = vst.msk [vmem:[#allocation3 + $0x58] sm:$0xf] %vm1280_vm9, %v5178_v21  ;;  %v5850_v21 = vsel %vm8936_vm5, %v5845_v7, %v5849_v47  ;;  %v6686_v7 = vld [vmem:[#allocation2 + $0x1c] sm:$0xf] }
 0x3e5   : > { %5675 = vrot.lane.b32.xlu1 %v5604_v37, %s8863_s26  ;;  %5677 = vrot.lane.b32.xlu0 %v5605_v14, %s8863_s26  ;;  %v5860_v37 = vsel %vm8936_vm5, %v5855_v8, %v5859_v11  ;;  %v5869_v14 = vrot.slane %v5868_v9, 4  ;;  %v6687_v11 = vld [vmem:[#allocation2 + $0x24] sm:$0xf] }
 0x3e7   : > { %v5180_v15 = vpop.permute.xlu1 %5179  ;;  %v5182_v17 = vpop.permute.xlu0 %5181 }
 0x3e8   : > { %5252 = vst.msk [vmem:[#allocation3 + $0x5c] sm:$0xf] %vm1280_vm9, %v5180_v15  ;;  %5253 = vst.msk [vmem:[#allocation3 + $0x60] sm:$0xf] %vm1280_vm9, %v5182_v17  ;;  %v5879_v15 = vrot.slane %v5878_v10, 4 }
 0x3e9   : > { %5679 = vrot.lane.b32.xlu1 %v5606_v18, %s8863_s26  ;;  %5681 = vrot.lane.b32.xlu0 %v5607_v19, %s8863_s26  ;;  %v6353_v17 = vld [vmem:[#allocation2 + $0x1c] sm:$0xf]  ;;  %v5883_v18 = vrot.slane %v5881_v5, 5  ;;  %v6349_v19 = vld [vmem:[#allocation2 + $0xc] sm:$0xe] }
 0x3ea   : > { %v6454_v27 = vrot.slane %v6353_v17, 5  ;;  %v6882_v10 = vld [vmem:[#allocation2 + $0x2c] sm:$0x1] }
 0x3eb   : > { %v5184_v23 = vpop.permute.xlu1 %5183 }
 0x3ec   : > { %5254 = vst.msk [vmem:[#allocation3 + $0x64] sm:$0xf] %vm1280_vm9, %v5184_v23  ;;  %v6455_v49 = vsel %vm9195_vm8, %v8482_v48, %v6454_v27  ;;  %v7439_v48 = vld [vmem:[#allocation2 + $0x20] sm:$0x1] }
 0x3ed   : > { %5683 = vrot.lane.b32.xlu1 %v5608_v20, %s8863_s26  ;;  %5685 = vrot.lane.b32.xlu0 %v5609_v1, %s8863_s26  ;;  %v6351_v20 = vld [vmem:[#allocation2 + $0x14] sm:$0x1] }
 0x3ee   : > { %v6450_v29 = vrot.slane %v6351_v20, 5  ;;  %v5796_v20 = vld [vmem:[#allocation2 + $0x28] sm:$0xf] }
 0x3f1   : > { %5687 = vrot.lane.b32.xlu1 %v5610_v26, %s8863_s26  ;;  %5689 = vrot.lane.b32.xlu0 %v5611_v22, %s8863_s26  ;;  %v6449_v26 = vrot.slane %v6447_v13, 4  ;;  %v5874_v22 = vsel %vm8936_vm5, %v5869_v14, %v5873_v61  ;;  %v6952_v61 = vrot.slane %v6950_v52, 4  ;;  %v7438_v14 = vld [vmem:[#allocation2 + $0x1c] sm:$0xf] }
 0x3f3   : > { %v5186_v38 = vpop.permute.xlu0 %5185 }
 0x3f4   : > { %5255 = vst.msk [vmem:[#allocation3 + $0x68] sm:$0xf] %vm1280_vm9, %v5186_v38  ;;  %v5884_v38 = vsel %vm8936_vm5, %v5879_v15, %v5883_v18  ;;  %v5795_v15 = vld [vmem:[#allocation2 + $0x24] sm:$0xf] }
 0x3f5   : > { %5691 = vrot.lane.b32.xlu1 %v5612_v24, %s8863_s26  ;;  %5693 = vrot.lane.b32.xlu0 %v5613_v28, %s8863_s26  ;;  %v6877_v24 = vld [vmem:[#allocation2 + $0x18] sm:$0xf]  ;;  %v8481_v28 = vrot.slane %v6349_v19, 9  ;;  %v6969_v19 = vshll.u32 %v6882_v10, 16  ;;  %v5889_v33 = vshll.u32 %v5795_v15, 16 }
 0x3f6   : > { %v6929_v45 = vshll.u32 %v6877_v24, 16 }
 0x3f7   : > { %v5188_v31 = vpop.permute.xlu1 %5187  ;;  %v5190_v30 = vpop.permute.xlu0 %5189 }
 0x3f8   : > { %5256 = vst.msk [vmem:[#allocation3 + $0x6c] sm:$0xf] %vm1280_vm9, %v5188_v31  ;;  %5257 = vst.msk [vmem:[#allocation3 + $0x70] sm:$0xf] %vm1280_vm9, %v5190_v30  ;;  %v6878_v31 = vld [vmem:[#allocation2 + $0x1c] sm:$0xf]  ;;  %v6448_v30 = vsel %vm9195_vm8, %v8481_v28, %v6447_v13 }
 0x3f9   : > { %5695 = vrot.lane.b32.xlu1 %v5614_v36, %s8863_s26  ;;  %5697 = vrot.lane.b32.xlu0 %v5615_v39, %s8863_s26  ;;  %v6451_v36 = vsel %vm9195_vm8, %v6449_v26, %v6450_v29  ;;  %v6926_v39 = vshrl.u32 %v6877_v24, 16  ;;  %v6935_v46 = vshll.u32 %v6878_v31, 16  ;;  %v6939_v47 = vshrl.u32 %v6878_v31, 16  ;;  %v10608_v29 = vld [vmem:[#allocation2 + $0x28] sm:$0xf] }
 0x3fa   : > { %v5886_v31 = vshrl.u32 %v5795_v15, 16  ;;  %v7542_v52 = vrot.slane %v10608_v29, 5 }
 0x3fb   : > { %v5192_v32 = vpop.permute.xlu1 %5191  ;;  %v6928_v56 = vrot.slane %v6926_v39, 4  ;;  %v6937_v58 = vrot.slane %v6935_v46, 5  ;;  %v6941_v59 = vrot.slane %v6939_v47, 4  ;;  %v5899_v39 = vshrl.u32 %v5796_v20, 16 }
 0x3fc   : > { %5258 = vst.msk [vmem:[#allocation3 + $0x74] sm:$0xf] %vm1280_vm9, %v5192_v32 }
 0x3fd   : > { %5699 = vrot.lane.b32.xlu1 %v5616_v44, %s8863_s26  ;;  %5701 = vrot.lane.b32.xlu0 %v5617_v50, %s8863_s26  ;;  %v6456_v44 = vrot.slane %v6454_v27, 4  ;;  %v6457_v50 = vrot.slane %v6354_v40, 5  ;;  %v6942_v9 = vor.u32 %v6941_v59, %v6937_v58  ;;  %v7535_v27 = vrot.slane %v7438_v14, 5 }
 0x3fe   : > { %v5895_v40 = vshll.u32 %v5796_v20, 16  ;;  %v7538_v59 = vrot.slane %v7439_v48, 5 }
 0x3ff   : > { %v6458_v57 = vsel %vm9195_vm8, %v6456_v44, %v6457_v50  ;;  %v6943_v18 = vrot.slane %v6942_v9, 4  ;;  %v5799_v44 = vld [vmem:[#allocation2 + $0x34] sm:$0xf]  ;;  %v7537_v50 = vrot.slane %v7535_v27, 4 }
 0x401   : > { %5703 = vrot.lane.b32.xlu1 %v5618_v51, %s8863_s26  ;;  %5705 = vrot.lane.b32.xlu0 %v5619_v55, %s8863_s26  ;;  %v6931_v55 = vrot.slane %v6929_v45, 5  ;;  %v8801_v45 = vld [vmem:[%s11409_s2 + $0x8] sm:$0xff]  }
 0x403   : > { %v5194_v0 = vpop.permute.xlu0 %5193  ;;  %v6932_v8 = vor.u32 %v6931_v55, %v6928_v56  ;;  %v5901_v56 = vrot.slane %v5899_v39, 4  ;;  %v5919_v55 = vshll.u32 %v5799_v44, 16 }
 0x404   : > { %5259 = vst.msk [vmem:[#allocation3 + $0x78] sm:$0xf] %vm1280_vm9, %v5194_v0  ;;  %v6965_v0 = vrot.slane %v6963_v54, 4  ;;  %v5888_v54 = vrot.slane %v5886_v31, 4 }
 0x405   : > { %5707 = vrot.lane.b32.xlu1 %v5620_v4, %s8863_s26  ;;  %5709 = vrot.lane.b32.xlu0 %v5621_v6, %s8863_s26  ;;  %v6879_v4 = vld [vmem:[#allocation2 + $0x20] sm:$0x1]  ;;  %v6685_v6 = vld [vmem:[#allocation2 + $0x18] sm:$0xf]  ;;  %v6933_v17 = vrot.slane %v6932_v8, 4 }
 0x406   : > { %v6945_v5 = vshll.u32 %v6879_v4, 16  ;;  %v7539_v4 = vsel %vm9195_vm8, %v7537_v50, %v7538_v59  ;;  %v5797_v8 = vld [vmem:[#allocation2 + $0x2c] sm:$0x1]  ;;  %v6883_v50 = vld [vmem:[#allocation2 + $0x30] sm:$0xf] }
 0x407   : > { %v5196_v60 = vpop.permute.xlu1 %5195  ;;  %v5470_v12 = vpop.permute.xlu0 %5469  ;;  %v6977_v59 = vshll.u32 %v6883_v50, 16 }
 0x408   : > { %5260 = vst.msk [vmem:[#allocation3 + $0x7c] sm:$0xf] %vm1280_vm9, %v5196_v60  ;;  %v6956_v60 = vor.u32 %v6955_v62, %v6952_v61  ;;  %v8802_v61 = vld [vmem:[%s11409_s2] sm:$0xff]  }
 0x409   : > { %5565 = vst.msk [vmem:[#allocation3] sm:$0xf] %vm1620_vm10, %v5470_v12  ;;  %6221 = vrot.lane.b32.xlu1 %v5850_v21, %s8864_s27  ;;  %6223 = vrot.lane.b32.xlu0 %v5860_v37, %s8864_s27  ;;  %v6966_v12 = vor.u32 %v6965_v0, %v10594_v63  ;;  %v6688_v37 = vld [vmem:[#allocation2 + $0x28] sm:$0xf]  ;;  %v7442_v0 = vld [vmem:[#allocation2 + $0x2c] sm:$0x1] }
 0x40a   : > { %v6957_v26 = vrot.slane %v6956_v60, 4 }
 0x40b   : > { %v5472_v1 = vpop.permute.xlu1 %5471  ;;  %v5474_v23 = vpop.permute.xlu0 %5473 }
 0x40c   : > { %5566 = vst.msk [vmem:[#allocation3 + $0x4] sm:$0xf] %vm1620_vm10, %v5472_v1  ;;  %5567 = vst.msk [vmem:[#allocation3 + $0x8] sm:$0xf] %vm1620_vm10, %v5474_v23  ;;  %v6947_v23 = vrot.slane %v6945_v5, 5  ;;  %v6962_v46 = vsel %vm8936_vm5, %v6957_v26, %v10594_v63  ;;  %v5921_v5 = vrot.slane %v5919_v55, 5 }
 0x40d   : > { %6225 = vrot.lane.b32.xlu1 %v5874_v22, %s8864_s27  ;;  %6227 = vrot.lane.b32.xlu0 %v5884_v38, %s8864_s27  ;;  %v8800_v1 = vld [vmem:[%s11409_s2 + $0x10] ss:$0 sps:$4 sm:$0x33]   ;;  %v6967_v22 = vrot.slane %v6966_v12, 4  ;;  %v7437_v38 = vld [vmem:[#allocation2 + $0x18] sm:$0xe] }
 0x40e   : > { %8764 = vmatprep.subr.msk.bf16.mxu1 %vm4024_vm14, %v8800_v1  ;;  %v8497_v42 = vrot.slane %v7437_v38, 9  ;;  %v7440_v63 = vld [vmem:[#allocation2 + $0x24] sm:$0xe]  ;;  %v6356_v26 = vld [vmem:[#allocation2 + $0x28] sm:$0xf] }
 0x40f   : > { %v5476_v25 = vpop.permute.xlu1 %5475  ;;  %v5478_v35 = vpop.permute.xlu0 %5477  ;;  %v8498_v12 = vrot.slane %v7440_v63, 9  ;;  %v6887_v55 = vld [vmem:[#allocation2 + $0x40] sm:$0xf] }
 0x410   : > { %5568 = vst.msk [vmem:[#allocation3 + $0xc] sm:$0xf] %vm1620_vm10, %v5476_v25  ;;  %5569 = vst.msk [vmem:[#allocation3 + $0x10] sm:$0xf] %vm1620_vm10, %v5478_v35  ;;  %v7961_v25 = vsel %vm4024_vm14, %v8800_v1, 0  ;;  %v6938_v35 = vsel %vm8936_vm5, %v6933_v17, %v6937_v58  ;;  %v5923_v58 = vshrl.u32 %v5799_v44, 16  ;;  %v7536_v62 = vsel %vm9195_vm8, %v8497_v42, %v7535_v27 }
 0x411   : > { %6557 = vrot.lane.b32.xlu1 %v6448_v30, %s8865_s28  ;;  %6559 = vrot.lane.b32.xlu0 %v6451_v36, %s8865_s28  ;;  %v6948_v30 = vsel %vm8936_vm5, %v6943_v18, %v6947_v23  ;;  %v6971_v36 = vrot.slane %v6969_v19, 5  ;;  %v7543_v15 = vsel %vm9195_vm8, %v8498_v12, %v7542_v52  ;;  %v5800_v18 = vld [vmem:[#allocation2 + $0x38] sm:$0x1] }
 0x412   : > { %8726 = vmatpush3.bf16.msra.mxu1 %v7961_v25  ;;  %v5925_v60 = vrot.slane %v5923_v58, 4  ;;  %v5929_v38 = vshll.u32 %v5800_v18, 16  ;;  %v6359_v25 = vld [vmem:[#allocation2 + $0x34] sm:$0xf]  ;;  %v6974_v58 = vshrl.u32 %v6883_v50, 16 }
 0x413   : > { %v5480_v32 = vpop.permute.xlu1 %5479  ;;  %v5482_v51 = vpop.permute.xlu0 %5481  ;;  %v6972_v47 = vsel %vm8936_vm5, %v6967_v22, %v6971_v36  ;;  %8727 = vmatprep.subr.bf16.mxu1 %v8801_v45  ;;  %v6357_v36 = vld [vmem:[#allocation2 + $0x2c] sm:$0x1]  ;;  %v6468_v44 = vrot.slane %v6359_v25, 5  ;;  %v6885_v18 = vld [vmem:[#allocation2 + $0x38] sm:$0x1] }
 0x414   : > { %5570 = vst.msk [vmem:[#allocation3 + $0x14] sm:$0xf] %vm1620_vm10, %v5480_v32  ;;  %5571 = vst.msk [vmem:[#allocation3 + $0x18] sm:$0xf] %vm1620_vm10, %v5482_v51  ;;  %v5891_v32 = vrot.slane %v5889_v33, 5  ;;  %v10629_v51 = vrot.slane %v5895_v40, 5  ;;  %v5926_v23 = vor.u32 %v5925_v60, %v5921_v5 }
 0x415   : > { %6561 = vrot.lane.b32.xlu1 %v6455_v49, %s8865_s28  ;;  %6563 = vrot.lane.b32.xlu0 %v6458_v57, %s8865_s28  ;;  %v5910_v49 = vshrl.u32 %v5798_v41, 16  ;;  %v5913_v57 = vshll.u32 %v5798_v41, 16  ;;  %v6464_v48 = vrot.slane %v6357_v36, 5  ;;  %v5802_v36 = vld [vmem:[#allocation2 + $0x40] sm:$0xf] }
 0x416   : > { %8728 = vmatpush3.bf16.msra.mxu1 %v8801_v45  ;;  %v5902_v10 = vor.u32 %v5901_v56, %v10629_v51  ;;  %v5927_v40 = vrot.slane %v5926_v23, 4  ;;  %v6470_v56 = vrot.slane %v6468_v44, 4 }
 0x417   : > { %v5484_v2 = vpop.permute.xlu1 %5483  ;;  %v5486_v3 = vpop.permute.xlu0 %5485  ;;  %v5912_v9 = vrot.slane %v5910_v49, 4  ;;  %8729 = vmatprep.subr.bf16.mxu1 %v8802_v61 }
 0x418   : > { %5572 = vst.msk [vmem:[#allocation3 + $0x1c] sm:$0xf] %vm1620_vm10, %v5484_v2  ;;  %5573 = vst.msk [vmem:[#allocation3 + $0x20] sm:$0xf] %vm1620_vm10, %v5486_v3  ;;  %v5903_v20 = vrot.slane %v5902_v10, 4 }
 0x419   : > { %6749 = vrot.lane.b32.xlu1 %v6685_v6, %s8866_s29  ;;  %6751 = vrot.lane.b32.xlu0 %v6686_v7, %s8866_s29  ;;  %v7544_v6 = vrot.slane %v7542_v52, 4  ;;  %v5892_v7 = vor.u32 %v5891_v32, %v5888_v54  ;;  %v6884_v52 = vld [vmem:[#allocation2 + $0x34] sm:$0xf] }
 0x41a   : > { %8730 = vmatpush3.bf16.msra.mxu1 %v8802_v61  ;;  %v6983_v61 = vshll.u32 %v6884_v52, 16 }
 0x41b   : > { %v5488_v13 = vpop.permute.xlu1 %5487  ;;  %v5490_v21 = vpop.permute.xlu0 %5489  ;;  %v5893_v19 = vrot.slane %v5892_v7, 4 }
 0x41c   : > { %5574 = vst.msk [vmem:[#allocation3 + $0x24] sm:$0xf] %vm1620_vm10, %v5488_v13  ;;  %5575 = vst.msk [vmem:[#allocation3 + $0x28] sm:$0xf] %vm1620_vm10, %v5490_v21  ;;  %v7545_v13 = vrot.slane %v7442_v0, 5  ;;  %v5905_v21 = vshll.u32 %v5797_v8, 16 }
 0x41d   : > { %6753 = vrot.lane.b32.xlu1 %v6687_v11, %s8866_s29  ;;  %6755 = vrot.lane.b32.xlu0 %v6688_v37, %s8866_s29  ;;  %v5915_v11 = vrot.slane %v5913_v57, 5  ;;  %v5898_v29 = vsel %vm8936_vm5, %v5893_v19, %v10629_v51  ;;  %v6886_v57 = vld [vmem:[#allocation2 + $0x3c] sm:$0xf]  ;;  %v6985_v60 = vrot.slane %v6983_v61, 5  ;;  %v6689_v19 = vld [vmem:[#allocation2 + $0x30] sm:$0xf] }
 0x41e   : > { %v7546_v17 = vsel %vm9195_vm8, %v7544_v6, %v7545_v13  ;;  %v5907_v22 = vrot.slane %v5905_v21, 5  ;;  %v7011_v6 = vshrl.u32 %v6887_v55, 16 }
 0x41f   : > { %v5492_v24 = vpop.permute.xlu1 %5491  ;;  %v5494_v28 = vpop.permute.xlu0 %5493  ;;  %v5916_v1 = vor.u32 %v5915_v11, %v5912_v9  ;;  %v6976_v11 = vrot.slane %v6974_v58, 4 }
 0x420   : > { %5576 = vst.msk [vmem:[#allocation3 + $0x2c] sm:$0xf] %vm1620_vm10, %v5492_v24  ;;  %5577 = vst.msk [vmem:[#allocation3 + $0x30] sm:$0xf] %vm1620_vm10, %v5494_v28  ;;  %v6461_v28 = vrot.slane %v6356_v26, 5  ;;  %v5908_v31 = vsel %vm8936_vm5, %v5903_v20, %v5907_v22 }
 0x421   : > { %7309 = vrot.lane.b32.xlu1 %v6938_v35, %s8867_s7  ;;  %7311 = vrot.lane.b32.xlu0 %v6948_v30, %s8867_s7  ;;  %v5917_v33 = vrot.slane %v5916_v1, 4  ;;  %v5931_v35 = vrot.slane %v5929_v38, 5  ;;  %v6355_v30 = vld [vmem:[#allocation2 + $0x24] sm:$0xe]  ;;  %v6690_v20 = vld [vmem:[#allocation2 + $0x34] sm:$0xf] }
 0x422   : > { %v6463_v42 = vrot.slane %v6461_v28, 4  ;;  %v6888_v26 = vld [vmem:[#allocation2 + $0x44] sm:$0x1]  ;;  %v6691_v22 = vld [vmem:[#allocation2 + $0x3c] sm:$0xf]  ;;  %v6993_v38 = vshll.u32 %v6885_v18, 16 }
 0x423   : > { %v5496_v53 = vpop.permute.xlu1 %5495  ;;  %v5498_v16 = vpop.permute.xlu0 %5497  ;;  %v5922_v45 = vsel %vm8936_vm5, %v5917_v33, %v5921_v5  ;;  %v6979_v5 = vrot.slane %v6977_v59, 5  ;;  %v7444_v33 = vld [vmem:[#allocation2 + $0x34] sm:$0xf]  ;;  %v7445_v59 = vld [vmem:[#allocation2 + $0x38] sm:$0x1] }
 0x424   : > { %5578 = vst.msk [vmem:[#allocation3 + $0x34] sm:$0xf] %vm1620_vm10, %v5496_v53  ;;  %5579 = vst.msk [vmem:[#allocation3 + $0x38] sm:$0xf] %vm1620_vm10, %v5498_v16  ;;  %v6358_v53 = vld [vmem:[#allocation2 + $0x30] sm:$0xe]  ;;  %v6465_v49 = vsel %vm9195_vm8, %v6463_v42, %v6464_v48 }
 0x425   : > { %7313 = vrot.lane.b32.xlu1 %v6962_v46, %s8867_s7  ;;  %7315 = vrot.lane.b32.xlu0 %v6972_v47, %s8867_s7  ;;  %v5932_v46 = vsel %vm8936_vm5, %v5927_v40, %v5931_v35  ;;  %v8483_v47 = vrot.slane %v6355_v30, 9  ;;  %v6360_v16 = vld [vmem:[#allocation2 + $0x38] sm:$0x1]  ;;  %v8484_v63 = vrot.slane %v6358_v53, 9  ;;  %v6980_v1 = vor.u32 %v6979_v5, %v6976_v11  ;;  %v5801_v40 = vld [vmem:[#allocation2 + $0x3c] sm:$0xf] }
 0x426   : > { %v6471_v0 = vrot.slane %v6360_v16, 5  ;;  %v7017_v30 = vshll.u32 %v6888_v26, 16  ;;  %v7447_v48 = vld [vmem:[#allocation2 + $0x40] sm:$0xf]  ;;  %v5934_v50 = vshrl.u32 %v5801_v40, 16  ;;  %v5943_v53 = vshll.u32 %v5802_v36, 16 }
 0x427   : > { %v5500_v2 = vpop.permute.xlu1 %5499  ;;  %v5502_v3 = vpop.permute.xlu0 %5501  ;;  %v6462_v51 = vsel %vm9195_vm8, %v8483_v47, %v6461_v28  ;;  %v6469_v9 = vsel %vm9195_vm8, %v8484_v63, %v6468_v44  ;;  %v6981_v25 = vrot.slane %v6980_v1, 4  ;;  %v7443_v44 = vld [vmem:[#allocation2 + $0x30] sm:$0xe]  ;;  %v5947_v16 = vshrl.u32 %v5802_v36, 16 }
 0x428   : > { %5580 = vst.msk [vmem:[#allocation3 + $0x3c] sm:$0xf] %vm1620_vm10, %v5500_v2  ;;  %5581 = vst.msk [vmem:[#allocation3 + $0x40] sm:$0xf] %vm1620_vm10, %v5502_v3  ;;  %v6998_v2 = vshrl.u32 %v6886_v57, 16  ;;  %v7001_v3 = vshll.u32 %v6886_v57, 16  ;;  %v6472_v10 = vsel %vm9195_vm8, %v6470_v56, %v6471_v0 }
 0x429   : > { %7645 = vrot.lane.b32.xlu1 %v7536_v62, %s8868_s12  ;;  %7647 = vrot.lane.b32.xlu0 %v7539_v4, %s8868_s12  ;;  %v6987_v62 = vshrl.u32 %v6884_v52, 16  ;;  %v7007_v4 = vshll.u32 %v6887_v55, 16  ;;  %v5937_v52 = vshll.u32 %v5801_v40, 16  ;;  %v5804_v56 = vld [vmem:[#allocation2 + $0x48] sm:$0xf]  ;;  %v7552_v11 = vrot.slane %v7445_v59, 5 }
 0x42a   : > { %v7000_v13 = vrot.slane %v6998_v2, 4  ;;  %v7003_v21 = vrot.slane %v7001_v3, 5  ;;  %v5805_v57 = vld [vmem:[#allocation2 + $0x4c] sm:$0xf]  ;;  %v5936_v2 = vrot.slane %v5934_v50, 4 }
 0x42b   : > { %v5504_v37 = vpop.permute.xlu1 %5503  ;;  %v5506_v14 = vpop.permute.xlu0 %5505  ;;  %v6989_v12 = vrot.slane %v6987_v62, 4  ;;  %v7556_v62 = vrot.slane %v7447_v48, 5  ;;  %v5939_v3 = vrot.slane %v5937_v52, 5  ;;  %v6365_v50 = vld [vmem:[#allocation2 + $0x4c] sm:$0xf] }
 0x42c   : > { %5582 = vst.msk [vmem:[#allocation3 + $0x44] sm:$0xf] %vm1620_vm10, %v5504_v37  ;;  %5583 = vst.msk [vmem:[#allocation3 + $0x48] sm:$0xf] %vm1620_vm10, %v5506_v14  ;;  %v10688_v37 = vrot.slane %v7007_v4, 5  ;;  %v7013_v14 = vrot.slane %v7011_v6, 4 }
 0x42d   : > { %7649 = vrot.lane.b32.xlu1 %v7543_v15, %s8868_s12  ;;  %7651 = vrot.lane.b32.xlu0 %v7546_v17, %s8868_s12  ;;  %v6990_v23 = vor.u32 %v6989_v12, %v6985_v60  ;;  %v5945_v4 = vrot.slane %v5943_v53, 5  ;;  %v5949_v6 = vrot.slane %v5947_v16, 4  ;;  %v7448_v12 = vld [vmem:[#allocation2 + $0x44] sm:$0x1]  ;;  %v6361_v53 = vld [vmem:[#allocation2 + $0x3c] sm:$0xe] }
 0x42e   : > { %v6363_v16 = vld [vmem:[#allocation2 + $0x44] sm:$0x1] }
 0x42f   : > { %v5508_v27 = vpop.permute.xlu1 %5507  ;;  %v5510_v24 = vpop.permute.xlu0 %5509  ;;  %v6991_v35 = vrot.slane %v6990_v23, 4  ;;  %v5950_v18 = vor.u32 %v5949_v6, %v5945_v4  ;;  %v6478_v59 = vrot.slane %v6363_v16, 5  ;;  %v5808_v16 = vld [vmem:[#allocation2 + $0x58] sm:$0xf] }
 0x430   : > { %5584 = vst.msk [vmem:[#allocation3 + $0x4c] sm:$0xf] %vm1620_vm10, %v5508_v27  ;;  %5585 = vst.msk [vmem:[#allocation3 + $0x50] sm:$0xf] %vm1620_vm10, %v5510_v24  ;;  %v7004_v27 = vor.u32 %v7003_v21, %v7000_v13  ;;  %v7014_v24 = vor.u32 %v7013_v14, %v10688_v37  ;;  %v7558_v14 = vrot.slane %v7556_v62, 4 }
 0x431   : > { %6229 = vrot.lane.b32.xlu1 %v5898_v29, %s8864_s27  ;;  %6231 = vrot.lane.b32.xlu0 %v5908_v31, %s8864_s27  ;;  %v6692_v31 = vld [vmem:[#allocation2 + $0x40] sm:$0xf]  ;;  %v5951_v40 = vrot.slane %v5950_v18, 4 }
 0x432   : > { %v7015_v42 = vrot.slane %v7014_v24, 4 }
 0x433   : > { %v5512_v39 = vpop.permute.xlu1 %5511  ;;  %v5514_v41 = vpop.permute.xlu0 %5513 }
 0x434   : > { %5586 = vst.msk [vmem:[#allocation3 + $0x54] sm:$0xf] %vm1620_vm10, %v5512_v39  ;;  %5587 = vst.msk [vmem:[#allocation3 + $0x58] sm:$0xf] %vm1620_vm10, %v5514_v41  ;;  %v6995_v39 = vrot.slane %v6993_v38, 5  ;;  %v7005_v41 = vrot.slane %v7004_v27, 4 }
 0x435   : > { %6233 = vrot.lane.b32.xlu1 %v5922_v45, %s8864_s27  ;;  %6235 = vrot.lane.b32.xlu0 %v5932_v46, %s8864_s27  ;;  %v7549_v45 = vrot.slane %v7444_v33, 5 }
 0x436   : > { %v7010_v55 = vsel %vm8936_vm5, %v7005_v41, %v10688_v37 }
 0x437   : > { %v5516_v54 = vpop.permute.xlu1 %5515  ;;  %v5518_v32 = vpop.permute.xlu0 %5517  ;;  %v7551_v61 = vrot.slane %v7549_v45, 4 }
 0x438   : > { %5588 = vst.msk [vmem:[#allocation3 + $0x5c] sm:$0xf] %vm1620_vm10, %v5516_v54  ;;  %5589 = vst.msk [vmem:[#allocation3 + $0x60] sm:$0xf] %vm1620_vm10, %v5518_v32  ;;  %v6986_v54 = vsel %vm8936_vm5, %v6981_v25, %v6985_v60  ;;  %v6996_v32 = vsel %vm8936_vm5, %v6991_v35, %v6995_v39  ;;  %v7446_v60 = vld [vmem:[#allocation2 + $0x3c] sm:$0xe] }
 0x439   : > { %6565 = vrot.lane.b32.xlu1 %v6462_v51, %s8865_s28  ;;  %6567 = vrot.lane.b32.xlu0 %v6465_v49, %s8865_s28  ;;  %v7019_v51 = vrot.slane %v7017_v30, 5  ;;  %v8499_v49 = vrot.slane %v7443_v44, 9  ;;  %v7553_v37 = vsel %vm9195_vm8, %v7551_v61, %v7552_v11  ;;  %v8500_v26 = vrot.slane %v7446_v60, 9  ;;  %v6362_v30 = vld [vmem:[#allocation2 + $0x40] sm:$0xf] }
 0x43a   : > { %v6475_v44 = vrot.slane %v6362_v30, 5  ;;  %v6890_v61 = vld [vmem:[#allocation2 + $0x4c] sm:$0xf]  ;;  %v6894_v30 = vld [vmem:[#allocation2 + $0x5c] sm:$0x1] }
 0x43b   : > { %v5520_v7 = vpop.permute.xlu1 %5519  ;;  %v5522_v8 = vpop.permute.xlu0 %5521  ;;  %v7020_v58 = vsel %vm8936_vm5, %v7015_v42, %v7019_v51  ;;  %v7550_v5 = vsel %vm9195_vm8, %v8499_v49, %v7549_v45  ;;  %v7031_v11 = vshll.u32 %v6890_v61, 16 }
 0x43c   : > { %5590 = vst.msk [vmem:[#allocation3 + $0x64] sm:$0xf] %vm1620_vm10, %v5520_v7  ;;  %5591 = vst.msk [vmem:[#allocation3 + $0x68] sm:$0xf] %vm1620_vm10, %v5522_v8  ;;  %v5958_v7 = vshrl.u32 %v5804_v56, 16  ;;  %v5961_v8 = vshll.u32 %v5804_v56, 16 }
 0x43d   : > { %6569 = vrot.lane.b32.xlu1 %v6469_v9, %s8865_s28  ;;  %6571 = vrot.lane.b32.xlu0 %v6472_v10, %s8865_s28  ;;  %v5967_v9 = vshll.u32 %v5805_v57, 16  ;;  %v5971_v10 = vshrl.u32 %v5805_v57, 16  ;;  %v6477_v51 = vrot.slane %v6475_v44, 4  ;;  %v6482_v57 = vrot.slane %v6365_v50, 5 }
 0x43f   : > { %v5524_v15 = vpop.permute.xlu1 %5523  ;;  %v5526_v17 = vpop.permute.xlu0 %5525  ;;  %v5969_v1 = vrot.slane %v5967_v9, 5  ;;  %v5973_v23 = vrot.slane %v5971_v10, 4  ;;  %v6484_v9 = vrot.slane %v6482_v57, 4 }
 0x440   : > { %5592 = vst.msk [vmem:[#allocation3 + $0x6c] sm:$0xf] %vm1620_vm10, %v5524_v15  ;;  %5593 = vst.msk [vmem:[#allocation3 + $0x70] sm:$0xf] %vm1620_vm10, %v5526_v17  ;;  %v5940_v15 = vor.u32 %v5939_v3, %v5936_v2  ;;  %v5803_v17 = vld [vmem:[#allocation2 + $0x44] sm:$0x1] }
 0x441   : > { %6757 = vrot.lane.b32.xlu1 %v6689_v19, %s8866_s29  ;;  %6759 = vrot.lane.b32.xlu0 %v6690_v20, %s8866_s29  ;;  %v5960_v19 = vrot.slane %v5958_v7, 4  ;;  %v5963_v20 = vrot.slane %v5961_v8, 5  ;;  %v5953_v38 = vshll.u32 %v5803_v17, 16  ;;  %v5974_v35 = vor.u32 %v5973_v23, %v5969_v1  ;;  %v6892_v7 = vld [vmem:[#allocation2 + $0x54] sm:$0xf] }
 0x442   : > { %v5941_v33 = vrot.slane %v5940_v15, 4  ;;  %v6893_v8 = vld [vmem:[#allocation2 + $0x58] sm:$0xf]  ;;  %v7033_v23 = vrot.slane %v7031_v11, 5 }
 0x443   : > { %v5528_v28 = vpop.permute.xlu1 %5527  ;;  %v5530_v29 = vpop.permute.xlu0 %5529  ;;  %v5964_v25 = vor.u32 %v5963_v20, %v5960_v19  ;;  %v5955_v36 = vrot.slane %v5953_v38, 5  ;;  %v5975_v48 = vrot.slane %v5974_v35, 4 }
 0x444   : > { %5594 = vst.msk [vmem:[#allocation3 + $0x74] sm:$0xf] %vm1620_vm10, %v5528_v28  ;;  %5595 = vst.msk [vmem:[#allocation3 + $0x78] sm:$0xf] %vm1620_vm10, %v5530_v29  ;;  %v7557_v28 = vsel %vm9195_vm8, %v8500_v26, %v7556_v62  ;;  %v5946_v45 = vsel %vm8936_vm5, %v5941_v33, %v5945_v4  ;;  %v6364_v62 = vld [vmem:[#allocation2 + $0x48] sm:$0xe]  ;;  %v6479_v4 = vsel %vm9195_vm8, %v6477_v51, %v6478_v59 }
 0x445   : > { %6761 = vrot.lane.b32.xlu1 %v6691_v22, %s8866_s29  ;;  %6763 = vrot.lane.b32.xlu0 %v6692_v31, %s8866_s29  ;;  %v7559_v22 = vrot.slane %v7448_v12, 5  ;;  %v5806_v31 = vld [vmem:[#allocation2 + $0x50] sm:$0x1]  ;;  %v8486_v60 = vrot.slane %v6364_v62, 9  ;;  %v6693_v33 = vld [vmem:[#allocation2 + $0x48] sm:$0xf] }
 0x446   : > { %v5977_v39 = vshll.u32 %v5806_v31, 16  ;;  %v6891_v31 = vld [vmem:[#allocation2 + $0x50] sm:$0x1]  ;;  %v5991_v62 = vshll.u32 %v5808_v16, 16 }
 0x447   : > { %v5532_v46 = vpop.permute.xlu1 %5531  ;;  %v5662_v47 = vpop.permute.xlu0 %5661  ;;  %v7560_v29 = vsel %vm9195_vm8, %v7558_v14, %v7559_v22  ;;  %v7059_v14 = vshrl.u32 %v6893_v8, 16  ;;  %v6483_v18 = vsel %vm9195_vm8, %v8486_v60, %v6482_v57 }
 0x448   : > { %5596 = vst.msk [vmem:[#allocation3 + $0x7c] sm:$0xf] %vm1620_vm10, %v5532_v46  ;;  %v5956_v46 = vsel %vm8936_vm5, %v5951_v40, %v5955_v36  ;;  %v5979_v52 = vrot.slane %v5977_v39, 5  ;;  %v6694_v40 = vld [vmem:[#allocation2 + $0x4c] sm:$0xf]  ;;  %v7041_v39 = vshll.u32 %v6891_v31, 16 }
 0x449   : > { %5757 = vst.msk [vmem:[#allocation3] sm:$0xf] %vm1813_vm11, %v5662_v47  ;;  %7317 = vrot.lane.b32.xlu1 %v6986_v54, %s8867_s7  ;;  %7319 = vrot.lane.b32.xlu0 %v6996_v32, %s8867_s7  ;;  %v5965_v47 = vrot.slane %v5964_v25, 4  ;;  %v6695_v36 = vld [vmem:[#allocation2 + $0x54] sm:$0xf] }
 0x44a   : > { %v5980_v56 = vsel %vm8936_vm5, %v5975_v48, %v5979_v52  ;;  %v5807_v48 = vld [vmem:[#allocation2 + $0x54] sm:$0xf] }
 0x44b   : > { %v5664_v63 = vpop.permute.xlu1 %5663  ;;  %v5666_v0 = vpop.permute.xlu0 %5665  ;;  %v5970_v49 = vsel %vm8936_vm5, %v5965_v47, %v5969_v1  ;;  %v7450_v47 = vld [vmem:[#allocation2 + $0x4c] sm:$0xf]  ;;  %v5982_v59 = vshrl.u32 %v5807_v48, 16 }
 0x44c   : > { %5758 = vst.msk [vmem:[#allocation3 + $0x4] sm:$0xf] %vm1813_vm11, %v5664_v63  ;;  %5759 = vst.msk [vmem:[#allocation3 + $0x8] sm:$0xf] %vm1813_vm11, %v5666_v0  ;;  %v6366_v63 = vld [vmem:[#allocation2 + $0x50] sm:$0x1] }
 0x44d   : > { %7321 = vrot.lane.b32.xlu1 %v7010_v55, %s8867_s7  ;;  %7323 = vrot.lane.b32.xlu0 %v7020_v58, %s8867_s7  ;;  %v6889_v55 = vld [vmem:[#allocation2 + $0x48] sm:$0xf]  ;;  %v8485_v58 = vrot.slane %v6361_v53, 9  ;;  %v6485_v12 = vrot.slane %v6366_v63, 5  ;;  %v7065_v53 = vshll.u32 %v6894_v30, 16 }
 0x44e   : > { %v7022_v6 = vshrl.u32 %v6889_v55, 16  ;;  %v7025_v10 = vshll.u32 %v6889_v55, 16 }
 0x44f   : > { %v5668_v13 = vpop.permute.xlu1 %5667  ;;  %v5670_v21 = vpop.permute.xlu0 %5669  ;;  %v6476_v3 = vsel %vm9195_vm8, %v8485_v58, %v6475_v44  ;;  %v6486_v20 = vsel %vm9195_vm8, %v6484_v9, %v6485_v12  ;;  %v7453_v58 = vld [vmem:[#allocation2 + $0x58] sm:$0xf] }
 0x450   : > { %5760 = vst.msk [vmem:[#allocation3 + $0xc] sm:$0xf] %vm1813_vm11, %v5668_v13  ;;  %5761 = vst.msk [vmem:[#allocation3 + $0x10] sm:$0xf] %vm1813_vm11, %v5670_v21  ;;  %v7046_v13 = vshrl.u32 %v6892_v7, 16  ;;  %v7049_v21 = vshll.u32 %v6892_v7, 16 }
 0x451   : > { %7653 = vrot.lane.b32.xlu1 %v7550_v5, %s8868_s12  ;;  %7655 = vrot.lane.b32.xlu0 %v7553_v37, %s8868_s12  ;;  %v7035_v5 = vshrl.u32 %v6890_v61, 16  ;;  %v7055_v37 = vshll.u32 %v6893_v8, 16  ;;  %v7024_v19 = vrot.slane %v7022_v6, 4  ;;  %v7027_v1 = vrot.slane %v7025_v10, 5  ;;  %v5811_v7 = vld [vmem:[#allocation2 + $0x64] sm:$0xf] }
 0x452   : > { %v7048_v22 = vrot.slane %v7046_v13, 4  ;;  %v7051_v38 = vrot.slane %v7049_v21, 5  ;;  %v5985_v61 = vshll.u32 %v5807_v48, 16  ;;  %v7451_v10 = vld [vmem:[#allocation2 + $0x50] sm:$0x1]  ;;  %v5984_v13 = vrot.slane %v5982_v59, 4 }
 0x453   : > { %v5672_v27 = vpop.permute.xlu1 %5671  ;;  %v5674_v24 = vpop.permute.xlu0 %5673  ;;  %v7037_v26 = vrot.slane %v7035_v5, 4  ;;  %v7028_v25 = vor.u32 %v7027_v1, %v7024_v19  ;;  %v7570_v5 = vrot.slane %v7453_v58, 5  ;;  %v6019_v19 = vshrl.u32 %v5811_v7, 16  ;;  %v6371_v59 = vld [vmem:[#allocation2 + $0x64] sm:$0xf] }
 0x454   : > { %5762 = vst.msk [vmem:[#allocation3 + $0x14] sm:$0xf] %vm1813_vm11, %v5672_v27  ;;  %5763 = vst.msk [vmem:[#allocation3 + $0x18] sm:$0xf] %vm1813_vm11, %v5674_v24  ;;  %v10764_v27 = vrot.slane %v7055_v37, 5  ;;  %v7061_v24 = vrot.slane %v7059_v14, 4 }
 0x455   : > { %7657 = vrot.lane.b32.xlu1 %v7557_v28, %s8868_s12  ;;  %7659 = vrot.lane.b32.xlu0 %v7560_v29, %s8868_s12  ;;  %v7038_v35 = vor.u32 %v7037_v26, %v7033_v23  ;;  %v7029_v50 = vrot.slane %v7028_v25, 4  ;;  %v5987_v21 = vrot.slane %v5985_v61, 5  ;;  %v5993_v37 = vrot.slane %v5991_v62, 5  ;;  %v7454_v26 = vld [vmem:[#allocation2 + $0x5c] sm:$0x1] }
 0x456   : > { %v6367_v62 = vld [vmem:[#allocation2 + $0x54] sm:$0xe] }
 0x457   : > { %v5676_v41 = vpop.permute.xlu1 %5675  ;;  %v5678_v42 = vpop.permute.xlu0 %5677  ;;  %v7039_v52 = vrot.slane %v7038_v35, 4  ;;  %v7034_v63 = vsel %vm8936_vm5, %v7029_v50, %v7033_v23  ;;  %v7452_v23 = vld [vmem:[#allocation2 + $0x54] sm:$0xe]  ;;  %v6021_v35 = vrot.slane %v6019_v19, 4 }
 0x458   : > { %5764 = vst.msk [vmem:[#allocation3 + $0x1c] sm:$0xf] %vm1813_vm11, %v5676_v41  ;;  %5765 = vst.msk [vmem:[#allocation3 + $0x20] sm:$0xf] %vm1813_vm11, %v5678_v42  ;;  %v7052_v41 = vor.u32 %v7051_v38, %v7048_v22  ;;  %v7062_v42 = vor.u32 %v7061_v24, %v10764_v27  ;;  %v7572_v24 = vrot.slane %v7570_v5, 4  ;;  %v8502_v30 = vrot.slane %v7452_v23, 9 }
 0x459   : > { %6237 = vrot.lane.b32.xlu1 %v5946_v45, %s8864_s27  ;;  %6239 = vrot.lane.b32.xlu0 %v5956_v46, %s8864_s27  ;;  %v6696_v46 = vld [vmem:[#allocation2 + $0x58] sm:$0xf] }
 0x45a   : > { %v7063_v51 = vrot.slane %v7062_v42, 4 }
 0x45b   : > { %v5680_v54 = vpop.permute.xlu1 %5679  ;;  %v5682_v32 = vpop.permute.xlu0 %5681 }
 0x45c   : > { %5766 = vst.msk [vmem:[#allocation3 + $0x24] sm:$0xf] %vm1813_vm11, %v5680_v54  ;;  %5767 = vst.msk [vmem:[#allocation3 + $0x28] sm:$0xf] %vm1813_vm11, %v5682_v32  ;;  %v7043_v54 = vrot.slane %v7041_v39, 5  ;;  %v7053_v32 = vrot.slane %v7052_v41, 4 }
 0x45d   : > { %6241 = vrot.lane.b32.xlu1 %v5970_v49, %s8864_s27  ;;  %6243 = vrot.lane.b32.xlu0 %v5980_v56, %s8864_s27  ;;  %v7449_v49 = vld [vmem:[#allocation2 + $0x48] sm:$0xe]  ;;  %v7563_v56 = vrot.slane %v7450_v47, 5 }
 0x45e   : > { %v8501_v6 = vrot.slane %v7449_v49, 9  ;;  %v7058_v8 = vsel %vm8936_vm5, %v7053_v32, %v10764_v27 }
 0x45f   : > { %v5684_v0 = vpop.permute.xlu1 %5683  ;;  %v5686_v2 = vpop.permute.xlu0 %5685  ;;  %v7565_v11 = vrot.slane %v7563_v56, 4 }
 0x460   : > { %5768 = vst.msk [vmem:[#allocation3 + $0x2c] sm:$0xf] %vm1813_vm11, %v5684_v0  ;;  %5769 = vst.msk [vmem:[#allocation3 + $0x30] sm:$0xf] %vm1813_vm11, %v5686_v2  ;;  %v7044_v0 = vsel %vm8936_vm5, %v7039_v52, %v7043_v54  ;;  %v7067_v2 = vrot.slane %v7065_v53, 5  ;;  %v7564_v1 = vsel %vm9195_vm8, %v8501_v6, %v7563_v56 }
 0x461   : > { %6573 = vrot.lane.b32.xlu1 %v6476_v3, %s8865_s28  ;;  %6575 = vrot.lane.b32.xlu0 %v6479_v4, %s8865_s28  ;;  %v5995_v3 = vshrl.u32 %v5808_v16, 16  ;;  %v5810_v4 = vld [vmem:[#allocation2 + $0x60] sm:$0xf]  ;;  %v6368_v53 = vld [vmem:[#allocation2 + $0x58] sm:$0xf] }
 0x462   : > { %v7068_v9 = vsel %vm8936_vm5, %v7063_v51, %v7067_v2  ;;  %v6006_v14 = vshrl.u32 %v5810_v4, 16  ;;  %v6489_v49 = vrot.slane %v6368_v53, 5  ;;  %v6900_v53 = vld [vmem:[#allocation2 + $0x74] sm:$0x1] }
 0x463   : > { %v5688_v15 = vpop.permute.xlu1 %5687  ;;  %v5690_v17 = vpop.permute.xlu0 %5689 }
 0x464   : > { %5770 = vst.msk [vmem:[#allocation3 + $0x34] sm:$0xf] %vm1813_vm11, %v5688_v15  ;;  %5771 = vst.msk [vmem:[#allocation3 + $0x38] sm:$0xf] %vm1813_vm11, %v5690_v17  ;;  %v5997_v15 = vrot.slane %v5995_v3, 4  ;;  %v6009_v17 = vshll.u32 %v5810_v4, 16 }
 0x465   : > { %6577 = vrot.lane.b32.xlu1 %v6483_v18, %s8865_s28  ;;  %6579 = vrot.lane.b32.xlu0 %v6486_v20, %s8865_s28  ;;  %v6015_v18 = vshll.u32 %v5811_v7, 16  ;;  %v7566_v20 = vrot.slane %v7451_v10, 5  ;;  %v6008_v31 = vrot.slane %v6006_v14, 4  ;;  %v6491_v3 = vrot.slane %v6489_v49, 4  ;;  %v6895_v10 = vld [vmem:[#allocation2 + $0x60] sm:$0xf] }
 0x466   : > { %v6496_v4 = vrot.slane %v6371_v59, 5  ;;  %v7073_v19 = vshll.u32 %v6895_v10, 16 }
 0x467   : > { %v5692_v28 = vpop.permute.xlu1 %5691  ;;  %v5694_v29 = vpop.permute.xlu0 %5693  ;;  %v7567_v27 = vsel %vm9195_vm8, %v7565_v11, %v7566_v20  ;;  %v6017_v25 = vrot.slane %v6015_v18, 5  ;;  %v6896_v11 = vld [vmem:[#allocation2 + $0x64] sm:$0xf]  ;;  %v7070_v18 = vshrl.u32 %v6895_v10, 16 }
 0x468   : > { %5772 = vst.msk [vmem:[#allocation3 + $0x3c] sm:$0xf] %vm1813_vm11, %v5692_v28  ;;  %5773 = vst.msk [vmem:[#allocation3 + $0x40] sm:$0xf] %vm1813_vm11, %v5694_v29  ;;  %v5988_v28 = vor.u32 %v5987_v21, %v5984_v13  ;;  %v5809_v29 = vld [vmem:[#allocation2 + $0x5c] sm:$0x1] }
 0x469   : > { %6765 = vrot.lane.b32.xlu1 %v6693_v33, %s8866_s29  ;;  %6767 = vrot.lane.b32.xlu0 %v6694_v40, %s8866_s29  ;;  %v5998_v33 = vor.u32 %v5997_v15, %v5993_v37  ;;  %v6011_v40 = vrot.slane %v6009_v17, 5  ;;  %v6001_v39 = vshll.u32 %v5809_v29, 16  ;;  %v6022_v52 = vor.u32 %v6021_v35, %v6017_v25  ;;  %v6898_v15 = vld [vmem:[#allocation2 + $0x6c] sm:$0xf]  ;;  %v6899_v17 = vld [vmem:[#allocation2 + $0x70] sm:$0xf] }
 0x46a   : > { %v5989_v47 = vrot.slane %v5988_v28, 4  ;;  %v6498_v14 = vrot.slane %v6496_v4, 4  ;;  %v7079_v20 = vshll.u32 %v6896_v11, 16 }
 0x46b   : > { %v5696_v44 = vpop.permute.xlu1 %5695  ;;  %v5698_v45 = vpop.permute.xlu0 %5697  ;;  %v5999_v48 = vrot.slane %v5998_v33, 4  ;;  %v6012_v50 = vor.u32 %v6011_v40, %v6008_v31  ;;  %v6003_v16 = vrot.slane %v6001_v39, 5  ;;  %v6023_v58 = vrot.slane %v6022_v52, 4 }
 0x46c   : > { %5774 = vst.msk [vmem:[#allocation3 + $0x44] sm:$0xf] %vm1813_vm11, %v5696_v44  ;;  %5775 = vst.msk [vmem:[#allocation3 + $0x48] sm:$0xf] %vm1813_vm11, %v5698_v45  ;;  %v7571_v44 = vsel %vm9195_vm8, %v8502_v30, %v7570_v5  ;;  %v5994_v56 = vsel %vm8936_vm5, %v5989_v47, %v5993_v37  ;;  %v6370_v5 = vld [vmem:[#allocation2 + $0x60] sm:$0xe] }
 0x46d   : > { %6769 = vrot.lane.b32.xlu1 %v6695_v36, %s8866_s29  ;;  %6771 = vrot.lane.b32.xlu0 %v6696_v46, %s8866_s29  ;;  %v7573_v36 = vrot.slane %v7454_v26, 5  ;;  %v5812_v46 = vld [vmem:[#allocation2 + $0x68] sm:$0x1]  ;;  %v8488_v23 = vrot.slane %v6370_v5, 9  ;;  %v7072_v40 = vrot.slane %v7070_v18, 4  ;;  %v7081_v35 = vrot.slane %v7079_v20, 5 }
 0x46e   : > { %v6025_v54 = vshll.u32 %v5812_v46, 16  ;;  %v6897_v46 = vld [vmem:[#allocation2 + $0x68] sm:$0x1]  ;;  %v6697_v47 = vld [vmem:[#allocation2 + $0x60] sm:$0xf] }
 0x46f   : > { %v5700_v57 = vpop.permute.xlu1 %5699  ;;  %v5702_v55 = vpop.permute.xlu0 %5701  ;;  %v7574_v45 = vsel %vm9195_vm8, %v7572_v24, %v7573_v36  ;;  %v7107_v24 = vshrl.u32 %v6899_v17, 16  ;;  %v6497_v31 = vsel %vm9195_vm8, %v8488_v23, %v6496_v4  ;;  %v7455_v4 = vld [vmem:[#allocation2 + $0x60] sm:$0xe] }
 0x470   : > { %5776 = vst.msk [vmem:[#allocation3 + $0x4c] sm:$0xf] %vm1813_vm11, %v5700_v57  ;;  %5777 = vst.msk [vmem:[#allocation3 + $0x50] sm:$0xf] %vm1813_vm11, %v5702_v55  ;;  %v6004_v57 = vsel %vm8936_vm5, %v5999_v48, %v6003_v16  ;;  %v6013_v55 = vrot.slane %v6012_v50, 4  ;;  %v6027_v61 = vrot.slane %v6025_v54, 5 }
 0x471   : > { %7325 = vrot.lane.b32.xlu1 %v7034_v63, %s8867_s7  ;;  %7327 = vrot.lane.b32.xlu0 %v7044_v0, %s8867_s7  ;;  %v6369_v63 = vld [vmem:[#allocation2 + $0x5c] sm:$0x1]  ;;  %v6698_v48 = vld [vmem:[#allocation2 + $0x64] sm:$0xf]  ;;  %v6699_v16 = vld [vmem:[#allocation2 + $0x6c] sm:$0xf] }
 0x472   : > { %v6018_v6 = vsel %vm8936_vm5, %v6013_v55, %v6017_v25  ;;  %v6028_v7 = vsel %vm8936_vm5, %v6023_v58, %v6027_v61  ;;  %v7075_v25 = vrot.slane %v7073_v19, 5  ;;  %v7089_v54 = vshll.u32 %v6897_v46, 16  ;;  %v7456_v55 = vld [vmem:[#allocation2 + $0x64] sm:$0xf]  ;;  %v5813_v58 = vld [vmem:[#allocation2 + $0x6c] sm:$0xf] }
 0x473   : > { %v5704_v60 = vpop.permute.xlu1 %5703  ;;  %v5706_v12 = vpop.permute.xlu0 %5705  ;;  %v6030_v10 = vshrl.u32 %v5813_v58, 16  ;;  %v7457_v19 = vld [vmem:[#allocation2 + $0x68] sm:$0x1] }
 0x474   : > { %5778 = vst.msk [vmem:[#allocation3 + $0x54] sm:$0xf] %vm1813_vm11, %v5704_v60  ;;  %5779 = vst.msk [vmem:[#allocation3 + $0x58] sm:$0xf] %vm1813_vm11, %v5706_v12  ;;  %v6372_v60 = vld [vmem:[#allocation2 + $0x68] sm:$0x1]  ;;  %v7076_v50 = vor.u32 %v7075_v25, %v7072_v40 }
 0x475   : > { %7329 = vrot.lane.b32.xlu1 %v7058_v8, %s8867_s7  ;;  %7331 = vrot.lane.b32.xlu0 %v7068_v9, %s8867_s7  ;;  %v8487_v8 = vrot.slane %v6367_v62, 9  ;;  %v6492_v9 = vrot.slane %v6369_v63, 5  ;;  %v6499_v26 = vrot.slane %v6372_v60, 5  ;;  %v7113_v62 = vshll.u32 %v6900_v53, 16  ;;  %v5814_v63 = vld [vmem:[#allocation2 + $0x70] sm:$0xf] }
 0x476   : > { %v7077_v59 = vrot.slane %v7076_v50, 4  ;;  %v6039_v5 = vshll.u32 %v5814_v63, 16  ;;  %v6043_v60 = vshrl.u32 %v5814_v63, 16  ;;  %v7580_v40 = vrot.slane %v7457_v19, 5  ;;  %v6374_v63 = vld [vmem:[#allocation2 + $0x70] sm:$0xf] }
 0x477   : > { %v5708_v22 = vpop.permute.xlu1 %5707  ;;  %v5710_v38 = vpop.permute.xlu0 %5709  ;;  %v6490_v21 = vsel %vm9195_vm8, %v8487_v8, %v6489_v49  ;;  %v6493_v37 = vsel %vm9195_vm8, %v6491_v3, %v6492_v9  ;;  %v6500_v33 = vsel %vm9195_vm8, %v6498_v14, %v6499_v26  ;;  %v7459_v9 = vld [vmem:[#allocation2 + $0x70] sm:$0xf]  ;;  %v5816_v14 = vld [vmem:[#allocation2 + $0x78] sm:$0xf] }
 0x478   : > { %5780 = vst.msk [vmem:[#allocation3 + $0x5c] sm:$0xf] %vm1813_vm11, %v5708_v22  ;;  %5781 = vst.msk [vmem:[#allocation3 + $0x60] sm:$0xf] %vm1813_vm11, %v5710_v38  ;;  %v7094_v22 = vshrl.u32 %v6898_v15, 16  ;;  %v7097_v38 = vshll.u32 %v6898_v15, 16 }
 0x479   : > { %7661 = vrot.lane.b32.xlu1 %v7564_v1, %s8868_s12  ;;  %7663 = vrot.lane.b32.xlu0 %v7567_v27, %s8868_s12  ;;  %v7083_v1 = vshrl.u32 %v6896_v11, 16  ;;  %v7103_v27 = vshll.u32 %v6899_v17, 16  ;;  %v6033_v11 = vshll.u32 %v5813_v58, 16  ;;  %v5817_v15 = vld [vmem:[#allocation2 + $0x7c] sm:$0xf] }
 0x47a   : > { %v7096_v36 = vrot.slane %v7094_v22, 4  ;;  %v7099_v39 = vrot.slane %v7097_v38, 5  ;;  %v6032_v22 = vrot.slane %v6030_v10, 4  ;;  %v6901_v19 = vld [vmem:[#allocation2 + $0x78] sm:$0xf] }
 0x47b   : > { %v6222_v41 = vpop.permute.xlu1 %6221  ;;  %v6224_v42 = vpop.permute.xlu0 %6223  ;;  %v7085_v30 = vrot.slane %v7083_v1, 4  ;;  %v7584_v1 = vrot.slane %v7459_v9, 5  ;;  %v6035_v38 = vrot.slane %v6033_v11, 5 }
 0x47c   : > { %6317 = vst.msk [vmem:[#allocation3] sm:$0xf] %vm2374_vm12, %v6222_v41  ;;  %6318 = vst.msk [vmem:[#allocation3 + $0x4] sm:$0xf] %vm2374_vm12, %v6224_v42  ;;  %v10840_v41 = vrot.slane %v7103_v27, 5  ;;  %v7109_v42 = vrot.slane %v7107_v24, 4 }
 0x47d   : > { %7665 = vrot.lane.b32.xlu1 %v7571_v44, %s8868_s12  ;;  %7667 = vrot.lane.b32.xlu0 %v7574_v45, %s8868_s12  ;;  %v7086_v52 = vor.u32 %v7085_v30, %v7081_v35  ;;  %v6041_v27 = vrot.slane %v6039_v5, 5  ;;  %v6045_v24 = vrot.slane %v6043_v60, 4  ;;  %v7460_v30 = vld [vmem:[#allocation2 + $0x74] sm:$0x1]  ;;  %v6377_v5 = vld [vmem:[#allocation2 + $0x7c] sm:$0xf] }
 0x47f   : > { %v6226_v32 = vpop.permute.xlu1 %6225  ;;  %v6228_v51 = vpop.permute.xlu0 %6227  ;;  %v7087_v61 = vrot.slane %v7086_v52, 4  ;;  %v6046_v46 = vor.u32 %v6045_v24, %v6041_v27 }
 0x480   : > { %6319 = vst.msk [vmem:[#allocation3 + $0x8] sm:$0xf] %vm2374_vm12, %v6226_v32  ;;  %6320 = vst.msk [vmem:[#allocation3 + $0xc] sm:$0xf] %vm2374_vm12, %v6228_v51  ;;  %v7100_v32 = vor.u32 %v7099_v39, %v7096_v36  ;;  %v7110_v51 = vor.u32 %v7109_v42, %v10840_v41  ;;  %v7586_v42 = vrot.slane %v7584_v1, 4 }
 0x481   : > { %6245 = vrot.lane.b32.xlu1 %v5994_v56, %s8864_s27  ;;  %6247 = vrot.lane.b32.xlu0 %v6004_v57, %s8864_s27  ;;  %v6700_v57 = vld [vmem:[#allocation2 + $0x70] sm:$0xf] }
 0x482   : > { %v7111_v3 = vrot.slane %v7110_v51, 4 }
 0x483   : > { %v6558_v0 = vpop.permute.xlu1 %6557  ;;  %v6560_v2 = vpop.permute.xlu0 %6559 }
 0x484   : > { %6653 = vst.msk [vmem:[#allocation3] sm:$0xf] %vm2711_vm13, %v6558_v0  ;;  %6654 = vst.msk [vmem:[#allocation3 + $0x4] sm:$0xf] %vm2711_vm13, %v6560_v2  ;;  %v7091_v0 = vrot.slane %v7089_v54, 5  ;;  %v7101_v2 = vrot.slane %v7100_v32, 4 }
 0x485   : > { %6249 = vrot.lane.b32.xlu1 %v6018_v6, %s8864_s27  ;;  %6251 = vrot.lane.b32.xlu0 %v6028_v7, %s8864_s27  ;;  %v7577_v6 = vrot.slane %v7456_v55, 5  ;;  %v5818_v32 = vld [vmem:[#allocation2 + $0x80] sm:$0x1] }
 0x486   : > { %v7106_v17 = vsel %vm8936_vm5, %v7101_v2, %v10840_v41  ;;  %v6073_v2 = vshll.u32 %v5818_v32, 16 }
 0x487   : > { %v6562_v12 = vpop.permute.xlu1 %6561  ;;  %v6564_v13 = vpop.permute.xlu0 %6563  ;;  %v7579_v20 = vrot.slane %v7577_v6, 4 }
 0x488   : > { %6655 = vst.msk [vmem:[#allocation3 + $0x8] sm:$0xf] %vm2711_vm13, %v6562_v12  ;;  %6656 = vst.msk [vmem:[#allocation3 + $0xc] sm:$0xf] %vm2711_vm13, %v6564_v13  ;;  %v7082_v12 = vsel %vm8936_vm5, %v7077_v59, %v7081_v35  ;;  %v7092_v13 = vsel %vm8936_vm5, %v7087_v61, %v7091_v0  ;;  %v7458_v35 = vld [vmem:[#allocation2 + $0x6c] sm:$0xe] }
 0x489   : > { %6581 = vrot.lane.b32.xlu1 %v6490_v21, %s8865_s28  ;;  %6583 = vrot.lane.b32.xlu0 %v6493_v37, %s8865_s28  ;;  %v7115_v21 = vrot.slane %v7113_v62, 5  ;;  %v8503_v37 = vrot.slane %v7455_v4, 9  ;;  %v7581_v41 = vsel %vm9195_vm8, %v7579_v20, %v7580_v40  ;;  %v8504_v53 = vrot.slane %v7458_v35, 9 }
 0x48a   : > { %v6047_v59 = vrot.slane %v6046_v46, 4  ;;  %v6075_v60 = vrot.slane %v6073_v2, 5  ;;  %v6703_v2 = vld [vmem:[#allocation2 + $0x84] sm:$0xf] }
 0x48b   : > { %v6750_v28 = vpop.permute.xlu1 %6749  ;;  %v6752_v29 = vpop.permute.xlu0 %6751  ;;  %v7116_v18 = vsel %vm8936_vm5, %v7111_v3, %v7115_v21  ;;  %v7578_v25 = vsel %vm9195_vm8, %v8503_v37, %v7577_v6 }
 0x48c   : > { %6845 = vst.msk [vmem:[#allocation3] sm:$0xf] %vm2905_vm15, %v6750_v28  ;;  %6846 = vst.msk [vmem:[#allocation3 + $0x4] sm:$0xf] %vm2905_vm15, %v6752_v29  ;;  %v6054_v28 = vshrl.u32 %v5816_v14, 16  ;;  %v6057_v29 = vshll.u32 %v5816_v14, 16 }
 0x48d   : > { %6585 = vrot.lane.b32.xlu1 %v6497_v31, %s8865_s28  ;;  %6587 = vrot.lane.b32.xlu0 %v6500_v33, %s8865_s28  ;;  %v6063_v31 = vshll.u32 %v5817_v15, 16  ;;  %v6067_v33 = vshrl.u32 %v5817_v15, 16 }
 0x48f   : > { %v6754_v44 = vpop.permute.xlu1 %6753  ;;  %v6756_v45 = vpop.permute.xlu0 %6755  ;;  %v6065_v50 = vrot.slane %v6063_v31, 5  ;;  %v6069_v52 = vrot.slane %v6067_v33, 4  ;;  %v6904_v31 = vld [vmem:[#allocation2 + $0x84] sm:$0xf]  ;;  %v6905_v33 = vld [vmem:[#allocation2 + $0x88] sm:$0xf] }
 0x490   : > { %6847 = vst.msk [vmem:[#allocation3 + $0x8] sm:$0xf] %vm2905_vm15, %v6754_v44  ;;  %6848 = vst.msk [vmem:[#allocation3 + $0xc] sm:$0xf] %vm2905_vm15, %v6756_v45  ;;  %v6036_v44 = vor.u32 %v6035_v38, %v6032_v22  ;;  %v5815_v45 = vld [vmem:[#allocation2 + $0x74] sm:$0x1] }
 0x491   : > { %6773 = vrot.lane.b32.xlu1 %v6697_v47, %s8866_s29  ;;  %6775 = vrot.lane.b32.xlu0 %v6698_v48, %s8866_s29  ;;  %v6056_v47 = vrot.slane %v6054_v28, 4  ;;  %v6059_v48 = vrot.slane %v6057_v29, 5  ;;  %v6049_v54 = vshll.u32 %v5815_v45, 16  ;;  %v6070_v62 = vor.u32 %v6069_v52, %v6065_v50  ;;  %v6378_v22 = vld [vmem:[#allocation2 + $0x80] sm:$0x1] }
 0x492   : > { %v6037_v58 = vrot.slane %v6036_v44, 4  ;;  %v7118_v29 = vshrl.u32 %v6901_v19, 16  ;;  %v7151_v44 = vshll.u32 %v6905_v33, 16  ;;  %v7155_v45 = vshrl.u32 %v6905_v33, 16 }
 0x493   : > { %v7310_v49 = vpop.permute.xlu1 %7309  ;;  %v7312_v56 = vpop.permute.xlu0 %7311  ;;  %v6060_v61 = vor.u32 %v6059_v48, %v6056_v47  ;;  %v6051_v0 = vrot.slane %v6049_v54, 5  ;;  %v6071_v11 = vrot.slane %v6070_v62, 4 }
 0x494   : > { %7405 = vst.msk [vmem:[#allocation3] sm:$0xf] %vm3466_vm2, %v7310_v49  ;;  %7406 = vst.msk [vmem:[#allocation3 + $0x4] sm:$0xf] %vm3466_vm2, %v7312_v56  ;;  %v7585_v56 = vsel %vm9195_vm8, %v8504_v53, %v7584_v1 }
 0x495   : > { %6777 = vrot.lane.b32.xlu1 %v6699_v16, %s8866_s29  ;;  %6779 = vrot.lane.b32.xlu0 %v6700_v57, %s8866_s29  ;;  %v7587_v16 = vrot.slane %v7460_v30, 5  ;;  %v6052_v9 = vsel %vm8936_vm5, %v6047_v59, %v6051_v0  ;;  %v6061_v10 = vrot.slane %v6060_v61, 4  ;;  %v6701_v59 = vld [vmem:[#allocation2 + $0x78] sm:$0xf]  ;;  %v6702_v61 = vld [vmem:[#allocation2 + $0x7c] sm:$0xf] }
 0x496   : > { %v6906_v0 = vld [vmem:[#allocation2 + $0x8c] sm:$0x1] }
 0x497   : > { %v7314_v7 = vpop.permute.xlu1 %7313  ;;  %v7316_v8 = vpop.permute.xlu0 %7315  ;;  %v7588_v57 = vsel %vm9195_vm8, %v7586_v42, %v7587_v16  ;;  %v6066_v15 = vsel %vm8936_vm5, %v6061_v10, %v6065_v50  ;;  %v7145_v42 = vshll.u32 %v6904_v31, 16  ;;  %v7120_v50 = vrot.slane %v7118_v29, 4  ;;  %v7462_v10 = vld [vmem:[#allocation2 + $0x7c] sm:$0xf] }
 0x498   : > { %7407 = vst.msk [vmem:[#allocation3 + $0x8] sm:$0xf] %vm3466_vm2, %v7314_v7  ;;  %7408 = vst.msk [vmem:[#allocation3 + $0xc] sm:$0xf] %vm3466_vm2, %v7316_v8  ;;  %v6503_v7 = vrot.slane %v6374_v63, 5  ;;  %v6042_v8 = vsel %vm8936_vm5, %v6037_v58, %v6041_v27 }
 0x499   : > { %7333 = vrot.lane.b32.xlu1 %v7082_v12, %s8867_s7  ;;  %7335 = vrot.lane.b32.xlu0 %v7092_v13, %s8867_s7  ;;  %v6373_v12 = vld [vmem:[#allocation2 + $0x6c] sm:$0xe]  ;;  %v6375_v13 = vld [vmem:[#allocation2 + $0x74] sm:$0x1]  ;;  %v6903_v58 = vld [vmem:[#allocation2 + $0x80] sm:$0x1] }
 0x49a   : > { %v6505_v14 = vrot.slane %v6503_v7, 4  ;;  %v8489_v20 = vrot.slane %v6373_v12, 9  ;;  %v6506_v1 = vrot.slane %v6375_v13, 5  ;;  %v7161_v12 = vshll.u32 %v6906_v0, 16  ;;  %v5820_v13 = vld [vmem:[#allocation2 + $0x88] sm:$0xf] }
 0x49b   : > { %v7646_v23 = vpop.permute.xlu1 %7645  ;;  %v7648_v26 = vpop.permute.xlu0 %7647 }
 0x49c   : > { %7741 = vst.msk [vmem:[#allocation3] sm:$0xf] %vm3803_vm3, %v7646_v23  ;;  %7742 = vst.msk [vmem:[#allocation3 + $0x4] sm:$0xf] %vm3803_vm3, %v7648_v26  ;;  %v6902_v23 = vld [vmem:[#allocation2 + $0x7c] sm:$0xf]  ;;  %v6504_v24 = vsel %vm9195_vm8, %v8489_v20, %v6503_v7  ;;  %v6507_v28 = vsel %vm9195_vm8, %v6505_v14, %v6506_v1 }
 0x49d   : > { %7337 = vrot.lane.b32.xlu1 %v7106_v17, %s8867_s7  ;;  %7339 = vrot.lane.b32.xlu0 %v7116_v18, %s8867_s7  ;;  %v6076_v17 = vsel %vm8936_vm5, %v6071_v11, %v6075_v60  ;;  %v6510_v18 = vrot.slane %v6377_v5, 5  ;;  %v6376_v26 = vld [vmem:[#allocation2 + $0x78] sm:$0xe]  ;;  %v7127_v35 = vshll.u32 %v6902_v23, 16  ;;  %v7131_v30 = vshrl.u32 %v6902_v23, 16 }
 0x49e   : > { %v5819_v11 = vld [vmem:[#allocation2 + $0x84] sm:$0xf]  ;;  %v7465_v20 = vld [vmem:[#allocation2 + $0x88] sm:$0xf] }
 0x49f   : > { %v7650_v36 = vpop.permute.xlu1 %7649  ;;  %v7652_v39 = vpop.permute.xlu0 %7651  ;;  %v6512_v40 = vrot.slane %v6510_v18, 4  ;;  %v7129_v16 = vrot.slane %v7127_v35, 5  ;;  %v7133_v54 = vrot.slane %v7131_v30, 4  ;;  %v6078_v1 = vshrl.u32 %v5819_v11, 16 }
 0x4a0   : > { %7743 = vst.msk [vmem:[#allocation3 + $0x8] sm:$0xf] %vm3803_vm3, %v7650_v36  ;;  %7744 = vst.msk [vmem:[#allocation3 + $0xc] sm:$0xf] %vm3803_vm3, %v7652_v39  ;;  %v8490_v36 = vrot.slane %v6376_v26, 9  ;;  %v6513_v39 = vrot.slane %v6378_v22, 5 }
 0x4a1   : > { %7669 = vrot.lane.b32.xlu1 %v7578_v25, %s8868_s12  ;;  %7671 = vrot.lane.b32.xlu0 %v7581_v41, %s8868_s12  ;;  %v7121_v25 = vshll.u32 %v6901_v19, 16  ;;  %v7142_v41 = vshrl.u32 %v6904_v31, 16  ;;  %v7134_v63 = vor.u32 %v7133_v54, %v7129_v16  ;;  %v6081_v23 = vshll.u32 %v5819_v11, 16  ;;  %v5823_v31 = vld [vmem:[#allocation2 + $0x94] sm:$0xf] }
 0x4a2   : > { %v6511_v48 = vsel %vm9195_vm8, %v8490_v36, %v6510_v18  ;;  %v6514_v52 = vsel %vm9195_vm8, %v6512_v40, %v6513_v39  ;;  %v6087_v26 = vshll.u32 %v5820_v13, 16  ;;  %v7598_v30 = vrot.slane %v7465_v20, 5  ;;  %v7466_v54 = vld [vmem:[#allocation2 + $0x8c] sm:$0x1] }
 0x4a3   : > { %v6230_v51 = vpop.permute.xlu1 %6229  ;;  %v6232_v49 = vpop.permute.xlu0 %6231  ;;  %v8803_v55 = vld [vmem:[#allocation3] sm:$0xff]   ;;  %v7123_v53 = vrot.slane %v7121_v25, 5  ;;  %v7144_v32 = vrot.slane %v7142_v41, 4  ;;  %v7135_v60 = vrot.slane %v7134_v63, 4  ;;  %v7463_v25 = vld [vmem:[#allocation2 + $0x80] sm:$0x1] }
 0x4a4   : > { %6321 = vst.msk [vmem:[#allocation3 + $0x10] sm:$0xf] %vm2374_vm12, %v6230_v51  ;;  %6322 = vst.msk [vmem:[#allocation3 + $0x14] sm:$0xf] %vm2374_vm12, %v6232_v49  ;;  %8731 = vmatprep.mubr.msk.bf16.mxu1 %vm3975_vm6, %v8803_v55  ;;  %v7147_v51 = vrot.slane %v7145_v42, 5  ;;  %v10918_v49 = vrot.slane %v7151_v44, 5 }
 0x4a5   : > { %7673 = vrot.lane.b32.xlu1 %v7585_v56, %s8868_s12  ;;  %7675 = vrot.lane.b32.xlu0 %v7588_v57, %s8868_s12  ;;  %v7157_v56 = vrot.slane %v7155_v45, 4  ;;  %v7124_v62 = vor.u32 %v7123_v53, %v7120_v50  ;;  %v6080_v41 = vrot.slane %v6078_v1, 4  ;;  %v6083_v42 = vrot.slane %v6081_v23, 5 }
 0x4a6   : > { %v6089_v44 = vrot.slane %v6087_v26, 5  ;;  %v6115_v50 = vshrl.u32 %v5823_v31, 16 }
 0x4a7   : > { %v6234_v3 = vpop.permute.xlu1 %6233  ;;  %v6236_v4 = vpop.permute.xlu0 %6235  ;;  %v8804_v6 = vld [vmem:[#allocation3 + $0x8] sm:$0xff]   ;;  %v7125_v5 = vrot.slane %v7124_v62, 4 }
 0x4a8   : > { %6323 = vst.msk [vmem:[#allocation3 + $0x18] sm:$0xf] %vm2374_vm12, %v6234_v3  ;;  %6324 = vst.msk [vmem:[#allocation3 + $0x1c] sm:$0xf] %vm2374_vm12, %v6236_v4  ;;  %8732 = vmatmul.mubr.msk.bf16.vlgmr.msra.gmra.mxu1 %vm3975_vm6, %v8804_v6  ;;  %v7137_v3 = vshll.u32 %v6903_v58, 16  ;;  %v7148_v4 = vor.u32 %v7147_v51, %v7144_v32  ;;  %v7158_v6 = vor.u32 %v7157_v56, %v10918_v49  ;;  %v7600_v56 = vrot.slane %v7598_v30, 4 }
 0x4a9   : > { %6253 = vrot.lane.b32.xlu1 %v6042_v8, %s8864_s27  ;;  %6255 = vrot.lane.b32.xlu0 %v6052_v9, %s8864_s27  ;;  %v6704_v9 = vld [vmem:[#allocation2 + $0x88] sm:$0xf]  ;;  %v7130_v22 = vsel %vm8936_vm5, %v7125_v5, %v7129_v16  ;;  %v7464_v16 = vld [vmem:[#allocation2 + $0x84] sm:$0xe]  ;;  %v6117_v63 = vrot.slane %v6115_v50, 4 }
 0x4aa   : > { %v7159_v14 = vrot.slane %v7158_v6, 4  ;;  %v8506_v0 = vrot.slane %v7464_v16, 9 }
 0x4ab   : > { %v6566_v21 = vpop.permute.xlu1 %6565  ;;  %v6568_v37 = vpop.permute.xlu0 %6567 }
 0x4ac   : > { %6657 = vst.msk [vmem:[#allocation3 + $0x10] sm:$0xf] %vm2711_vm13, %v6566_v21  ;;  %6658 = vst.msk [vmem:[#allocation3 + $0x14] sm:$0xf] %vm2711_vm13, %v6568_v37  ;;  %v7139_v21 = vrot.slane %v7137_v3, 5  ;;  %v7149_v37 = vrot.slane %v7148_v4, 4 }
 0x4ad   : > { %6257 = vrot.lane.b32.xlu1 %v6066_v15, %s8864_s27  ;;  %6259 = vrot.lane.b32.xlu0 %v6076_v17, %s8864_s27  ;;  %v7461_v15 = vld [vmem:[#allocation2 + $0x78] sm:$0xe]  ;;  %v7591_v17 = vrot.slane %v7462_v10, 5  ;;  %v5824_v4 = vld [vmem:[#allocation2 + $0x98] sm:$0x1] }
 0x4ae   : > { %v8505_v29 = vrot.slane %v7461_v15, 9  ;;  %v7154_v33 = vsel %vm8936_vm5, %v7149_v37, %v10918_v49  ;;  %v6121_v37 = vshll.u32 %v5824_v4, 16 }
 0x4af   : > { %v6570_v38 = vpop.permute.xlu1 %6569  ;;  %v6572_v27 = vpop.permute.xlu0 %6571  ;;  %v7593_v35 = vrot.slane %v7591_v17, 4 }
 0x4b0   : > { %6659 = vst.msk [vmem:[#allocation3 + $0x18] sm:$0xf] %vm2711_vm13, %v6570_v38  ;;  %6660 = vst.msk [vmem:[#allocation3 + $0x1c] sm:$0xf] %vm2711_vm13, %v6572_v27  ;;  %v7140_v38 = vsel %vm8936_vm5, %v7135_v60, %v7139_v21  ;;  %v7163_v27 = vrot.slane %v7161_v12, 5  ;;  %v7592_v53 = vsel %vm9195_vm8, %v8505_v29, %v7591_v17 }
 0x4b1   : > { %6589 = vrot.lane.b32.xlu1 %v6504_v24, %s8865_s28  ;;  %6591 = vrot.lane.b32.xlu0 %v6507_v28, %s8865_s28  ;;  %v6091_v24 = vshrl.u32 %v5820_v13, 16  ;;  %v5822_v28 = vld [vmem:[#allocation2 + $0x90] sm:$0xf]  ;;  %v6380_v13 = vld [vmem:[#allocation2 + $0x88] sm:$0xf] }
 0x4b2   : > { %v7164_v40 = vsel %vm8936_vm5, %v7159_v14, %v7163_v27  ;;  %v6102_v45 = vshrl.u32 %v5822_v28, 16  ;;  %v6383_v14 = vld [vmem:[#allocation2 + $0x94] sm:$0xf]  ;;  %v6381_v29 = vld [vmem:[#allocation2 + $0x8c] sm:$0x1] }
 0x4b3   : > { %v6758_v46 = vpop.permute.xlu1 %6757  ;;  %v6760_v47 = vpop.permute.xlu0 %6759  ;;  %v6524_v27 = vrot.slane %v6383_v14, 5 }
 0x4b4   : > { %6849 = vst.msk [vmem:[#allocation3 + $0x10] sm:$0xf] %vm2905_vm15, %v6758_v46  ;;  %6850 = vst.msk [vmem:[#allocation3 + $0x14] sm:$0xf] %vm2905_vm15, %v6760_v47  ;;  %v6093_v46 = vrot.slane %v6091_v24, 4  ;;  %v6105_v47 = vshll.u32 %v5822_v28, 16 }
 0x4b5   : > { %6593 = vrot.lane.b32.xlu1 %v6511_v48, %s8865_s28  ;;  %6595 = vrot.lane.b32.xlu0 %v6514_v52, %s8865_s28  ;;  %v6111_v48 = vshll.u32 %v5823_v31, 16  ;;  %v7594_v52 = vrot.slane %v7463_v25, 5  ;;  %v6104_v58 = vrot.slane %v6102_v45, 4  ;;  %v6907_v25 = vld [vmem:[#allocation2 + $0x90] sm:$0xf] }
 0x4b7   : > { %v6762_v57 = vpop.permute.xlu1 %6761  ;;  %v6764_v55 = vpop.permute.xlu0 %6763  ;;  %v7595_v49 = vsel %vm9195_vm8, %v7593_v35, %v7594_v52  ;;  %v6113_v62 = vrot.slane %v6111_v48, 5  ;;  %v6908_v35 = vld [vmem:[#allocation2 + $0x94] sm:$0xf]  ;;  %v7169_v48 = vshll.u32 %v6907_v25, 16 }
 0x4b8   : > { %6851 = vst.msk [vmem:[#allocation3 + $0x18] sm:$0xf] %vm2905_vm15, %v6762_v57  ;;  %6852 = vst.msk [vmem:[#allocation3 + $0x1c] sm:$0xf] %vm2905_vm15, %v6764_v55  ;;  %v6084_v57 = vor.u32 %v6083_v42, %v6080_v41  ;;  %v5821_v55 = vld [vmem:[#allocation2 + $0x8c] sm:$0x1] }
 0x4b9   : > { %6781 = vrot.lane.b32.xlu1 %v6701_v59, %s8866_s29  ;;  %6783 = vrot.lane.b32.xlu0 %v6702_v61, %s8866_s29  ;;  %v6094_v59 = vor.u32 %v6093_v46, %v6089_v44  ;;  %v6107_v61 = vrot.slane %v6105_v47, 5  ;;  %v6097_v3 = vshll.u32 %v5821_v55, 16  ;;  %v6118_v12 = vor.u32 %v6117_v63, %v6113_v62 }
 0x4ba   : > { %v6085_v11 = vrot.slane %v6084_v57, 4  ;;  %v6520_v41 = vrot.slane %v6381_v29, 5  ;;  %v6526_v42 = vrot.slane %v6524_v27, 4  ;;  %v7166_v47 = vshrl.u32 %v6907_v25, 16  ;;  %v7471_v25 = vld [vmem:[#allocation2 + $0xa0] sm:$0xf] }
 0x4bb   : > { %v7318_v7 = vpop.permute.xlu1 %7317  ;;  %v7320_v8 = vpop.permute.xlu0 %7319  ;;  %v6095_v5 = vrot.slane %v6094_v59, 4  ;;  %v6108_v60 = vor.u32 %v6107_v61, %v6104_v58  ;;  %v6099_v21 = vrot.slane %v6097_v3, 5  ;;  %v6119_v26 = vrot.slane %v6118_v12, 4 }
 0x4bc   : > { %7409 = vst.msk [vmem:[#allocation3 + $0x10] sm:$0xf] %vm3466_vm2, %v7318_v7  ;;  %7410 = vst.msk [vmem:[#allocation3 + $0x14] sm:$0xf] %vm3466_vm2, %v7320_v8  ;;  %v7599_v8 = vsel %vm9195_vm8, %v8506_v0, %v7598_v30  ;;  %v6090_v20 = vsel %vm8936_vm5, %v6085_v11, %v6089_v44  ;;  %v7175_v50 = vshll.u32 %v6908_v35, 16  ;;  %v7168_v58 = vrot.slane %v7166_v47, 4 }
 0x4bd   : > { %6785 = vrot.lane.b32.xlu1 %v6703_v2, %s8866_s29  ;;  %6787 = vrot.lane.b32.xlu0 %v6704_v9, %s8866_s29  ;;  %v7601_v2 = vrot.slane %v7466_v54, 5  ;;  %v6100_v1 = vsel %vm8936_vm5, %v6095_v5, %v6099_v21  ;;  %v6109_v23 = vrot.slane %v6108_v60, 4  ;;  %v7179_v54 = vshrl.u32 %v6908_v35, 16  ;;  %v6706_v11 = vld [vmem:[#allocation2 + $0x94] sm:$0xf] }
 0x4be   : > { %v7171_v59 = vrot.slane %v7169_v48, 5  ;;  %v7177_v61 = vrot.slane %v7175_v50, 5  ;;  %v5825_v35 = vld [vmem:[#allocation2 + $0x9c] sm:$0xf] }
 0x4bf   : > { %v7322_v18 = vpop.permute.xlu1 %7321  ;;  %v7324_v19 = vpop.permute.xlu0 %7323  ;;  %v7602_v9 = vsel %vm9195_vm8, %v7600_v56, %v7601_v2  ;;  %v6114_v31 = vsel %vm8936_vm5, %v6109_v23, %v6113_v62  ;;  %v7181_v63 = vrot.slane %v7179_v54, 4  ;;  %v6129_v47 = vshll.u32 %v5825_v35, 16 }
 0x4c0   : > { %7411 = vst.msk [vmem:[#allocation3 + $0x18] sm:$0xf] %vm3466_vm2, %v7322_v18  ;;  %7412 = vst.msk [vmem:[#allocation3 + $0x1c] sm:$0xf] %vm3466_vm2, %v7324_v19  ;;  %v6517_v19 = vrot.slane %v6380_v13, 5 }
 0x4c1   : > { %7341 = vrot.lane.b32.xlu1 %v7130_v22, %s8867_s7  ;;  %7343 = vrot.lane.b32.xlu0 %v7140_v38, %s8867_s7  ;;  %v6123_v22 = vrot.slane %v6121_v37, 5  ;;  %v6379_v38 = vld [vmem:[#allocation2 + $0x84] sm:$0xe]  ;;  %v7182_v5 = vor.u32 %v7181_v63, %v7177_v61 }
 0x4c2   : > { %v8491_v30 = vrot.slane %v6379_v38, 9 }
 0x4c3   : > { %v7654_v36 = vpop.permute.xlu1 %7653  ;;  %v7656_v39 = vpop.permute.xlu0 %7655 }
 0x4c4   : > { %7745 = vst.msk [vmem:[#allocation3 + $0x10] sm:$0xf] %vm3803_vm3, %v7654_v36  ;;  %7746 = vst.msk [vmem:[#allocation3 + $0x14] sm:$0xf] %vm3803_vm3, %v7656_v39  ;;  %v6382_v36 = vld [vmem:[#allocation2 + $0x90] sm:$0xe]  ;;  %v6518_v46 = vsel %vm9195_vm8, %v8491_v30, %v6517_v19 }
 0x4c5   : > { %7345 = vrot.lane.b32.xlu1 %v7154_v33, %s8867_s7  ;;  %7347 = vrot.lane.b32.xlu0 %v7164_v40, %s8867_s7  ;;  %v6124_v33 = vsel %vm8936_vm5, %v6119_v26, %v6123_v22  ;;  %v6519_v40 = vrot.slane %v6517_v19, 4  ;;  %v6384_v39 = vld [vmem:[#allocation2 + $0x98] sm:$0x1]  ;;  %v7468_v26 = vld [vmem:[#allocation2 + $0x94] sm:$0xf] }
 0x4c6   : > { %v6527_v16 = vrot.slane %v6384_v39, 5  ;;  %v7469_v39 = vld [vmem:[#allocation2 + $0x98] sm:$0x1] }
 0x4c7   : > { %v7658_v32 = vpop.permute.xlu1 %7657  ;;  %v7660_v51 = vpop.permute.xlu0 %7659  ;;  %v6521_v52 = vsel %vm9195_vm8, %v6519_v40, %v6520_v41 }
 0x4c8   : > { %7747 = vst.msk [vmem:[#allocation3 + $0x18] sm:$0xf] %vm3803_vm3, %v7658_v32  ;;  %7748 = vst.msk [vmem:[#allocation3 + $0x1c] sm:$0xf] %vm3803_vm3, %v7660_v51  ;;  %v6910_v32 = vld [vmem:[#allocation2 + $0x9c] sm:$0xf]  ;;  %v6528_v56 = vsel %vm9195_vm8, %v6526_v42, %v6527_v16 }
 0x4c9   : > { %7677 = vrot.lane.b32.xlu1 %v7592_v53, %s8868_s12  ;;  %7679 = vrot.lane.b32.xlu0 %v7595_v49, %s8868_s12  ;;  %v8492_v53 = vrot.slane %v6382_v36, 9  ;;  %v6911_v51 = vld [vmem:[#allocation2 + $0xa0] sm:$0xf]  ;;  %v7190_v62 = vshrl.u32 %v6910_v32, 16  ;;  %v7193_v0 = vshll.u32 %v6910_v32, 16  ;;  %v7608_v32 = vrot.slane %v7469_v39, 5 }
 0x4ca   : > { %v7199_v2 = vshll.u32 %v6911_v51, 16  ;;  %v7203_v3 = vshrl.u32 %v6911_v51, 16  ;;  %v7467_v36 = vld [vmem:[#allocation2 + $0x90] sm:$0xe]  ;;  %v5828_v16 = vld [vmem:[#allocation2 + $0xa8] sm:$0xf] }
 0x4cb   : > { %v6238_v6 = vpop.permute.xlu1 %6237  ;;  %v6240_v7 = vpop.permute.xlu0 %6239  ;;  %v8805_v10 = vld [vmem:[#allocation3 + $0x10] sm:$0xff]   ;;  %v6525_v49 = vsel %vm9195_vm8, %v8492_v53, %v6524_v27  ;;  %v7195_v60 = vrot.slane %v7193_v0, 5  ;;  %v7470_v53 = vld [vmem:[#allocation2 + $0x9c] sm:$0xe]  ;;  %v8507_v54 = vrot.slane %v7467_v36, 9  ;;  %v6150_v0 = vshrl.u32 %v5828_v16, 16 }
 0x4cc   : > { %6325 = vst.msk [vmem:[#allocation3 + $0x20] sm:$0xf] %vm2374_vm12, %v6238_v6  ;;  %6326 = vst.msk [vmem:[#allocation3 + $0x24] sm:$0xf] %vm2374_vm12, %v6240_v7  ;;  %8735 = vmatprep.mubr.msk.bf16.mxu1 %vm3975_vm6, %v8805_v10  ;;  %v6705_v7 = vld [vmem:[#allocation2 + $0x90] sm:$0xf] }
 0x4cd   : > { %7681 = vrot.lane.b32.xlu1 %v7599_v8, %s8868_s12  ;;  %7683 = vrot.lane.b32.xlu0 %v7602_v9, %s8868_s12  ;;  %v7172_v8 = vor.u32 %v7171_v59, %v7168_v58  ;;  %v6909_v9 = vld [vmem:[#allocation2 + $0x98] sm:$0x1]  ;;  %v7192_v10 = vrot.slane %v7190_v62, 4  ;;  %v7201_v12 = vrot.slane %v7199_v2, 5  ;;  %v7205_v13 = vrot.slane %v7203_v3, 4 }
 0x4ce   : > { %v7185_v21 = vshll.u32 %v6909_v9, 16  ;;  %v7472_v51 = vld [vmem:[#allocation2 + $0xa4] sm:$0x1]  ;;  %v6131_v59 = vrot.slane %v6129_v47, 5  ;;  %v6153_v2 = vshll.u32 %v5828_v16, 16  ;;  %v8508_v3 = vrot.slane %v7470_v53, 9 }
 0x4cf   : > { %v6242_v15 = vpop.permute.xlu1 %6241  ;;  %v6244_v17 = vpop.permute.xlu0 %6243  ;;  %v8806_v18 = vld [vmem:[#allocation3 + $0x18] sm:$0xff]   ;;  %v7173_v19 = vrot.slane %v7172_v8, 4  ;;  %v7206_v23 = vor.u32 %v7205_v13, %v7201_v12  ;;  %v6152_v13 = vrot.slane %v6150_v0, 4  ;;  %v6386_v36 = vld [vmem:[#allocation2 + $0xa0] sm:$0xf] }
 0x4d0   : > { %6327 = vst.msk [vmem:[#allocation3 + $0x28] sm:$0xf] %vm2374_vm12, %v6242_v15  ;;  %6328 = vst.msk [vmem:[#allocation3 + $0x2c] sm:$0xf] %vm2374_vm12, %v6244_v17  ;;  %8736 = vmatmul.mubr.msk.bf16.gmra.mxu1 %vm3975_vm6, %v8806_v18  ;;  %v6707_v15 = vld [vmem:[#allocation2 + $0x9c] sm:$0xf] }
 0x4d1   : > { %6261 = vrot.lane.b32.xlu1 %v6090_v20, %s8864_s27  ;;  %6263 = vrot.lane.b32.xlu0 %v6100_v1, %s8864_s27  ;;  %v6912_v17 = vld [vmem:[#allocation2 + $0xa4] sm:$0x1]  ;;  %v6708_v18 = vld [vmem:[#allocation2 + $0xa0] sm:$0xf]  ;;  %v7183_v20 = vrot.slane %v7182_v5, 4  ;;  %v7196_v1 = vor.u32 %v7195_v60, %v7192_v10  ;;  %v7187_v22 = vrot.slane %v7185_v21, 5  ;;  %v7178_v29 = vsel %vm8936_vm5, %v7173_v19, %v7177_v61 }
 0x4d2   : > { %v7209_v38 = vshll.u32 %v6912_v17, 16  ;;  %v7207_v40 = vrot.slane %v7206_v23, 4  ;;  %v6155_v21 = vrot.slane %v6153_v2, 5  ;;  %v5827_v17 = vld [vmem:[#allocation2 + $0xa4] sm:$0x1] }
 0x4d3   : > { %v6574_v24 = vpop.permute.xlu1 %6573  ;;  %v6576_v28 = vpop.permute.xlu0 %6575  ;;  %v5623_v23 = vld [vmem:[#allocation2 + $0xa8] sm:$0xf]  ;;  %v6916_v0 = vld [vmem:[#allocation2 + $0xb4] sm:$0xf] }
 0x4d4   : > { %6661 = vst.msk [vmem:[#allocation3 + $0x20] sm:$0xf] %vm2711_vm13, %v6574_v24  ;;  %6662 = vst.msk [vmem:[#allocation3 + $0x24] sm:$0xf] %vm2711_vm13, %v6576_v28  ;;  %v7605_v28 = vrot.slane %v7468_v26, 5  ;;  %v7211_v30 = vrot.slane %v7209_v38, 5 }
 0x4d5   : > { %6265 = vrot.lane.b32.xlu1 %v6114_v31, %s8864_s27  ;;  %6267 = vrot.lane.b32.xlu0 %v6124_v33, %s8864_s27  ;;  %v7188_v31 = vsel %vm8936_vm5, %v7183_v20, %v7187_v22  ;;  %v7197_v33 = vrot.slane %v7196_v1, 4  ;;  %v6156_v22 = vor.u32 %v6155_v21, %v6152_v13  ;;  %v6913_v53 = vld [vmem:[#allocation2 + $0xa8] sm:$0xf]  ;;  %v7238_v13 = vshrl.u32 %v6916_v0, 16 }
 0x4d6   : > { %v7212_v50 = vsel %vm8936_vm5, %v7207_v40, %v7211_v30  ;;  %v7606_v62 = vsel %vm9195_vm8, %v8507_v54, %v7605_v28  ;;  %v7241_v21 = vshll.u32 %v6916_v0, 16 }
 0x4d7   : > { %v6578_v44 = vpop.permute.xlu1 %6577  ;;  %v6580_v45 = vpop.permute.xlu0 %6579  ;;  %v7202_v48 = vsel %vm8936_vm5, %v7197_v33, %v7201_v12  ;;  %v5624_v33 = vld [vmem:[#allocation2 + $0xac] sm:$0xf] }
 0x4d8   : > { %6663 = vst.msk [vmem:[#allocation3 + $0x28] sm:$0xf] %vm2711_vm13, %v6578_v44  ;;  %6664 = vst.msk [vmem:[#allocation3 + $0x2c] sm:$0xf] %vm2711_vm13, %v6580_v45  ;;  %v7612_v44 = vrot.slane %v7471_v25, 5 }
 0x4d9   : > { %6597 = vrot.lane.b32.xlu1 %v6518_v46, %s8865_s28  ;;  %6599 = vrot.lane.b32.xlu0 %v6521_v52, %s8865_s28  ;;  %v5826_v45 = vld [vmem:[#allocation2 + $0xa0] sm:$0xf]  ;;  %v6126_v46 = vshrl.u32 %v5825_v35, 16  ;;  %v7607_v52 = vrot.slane %v7605_v28, 4  ;;  %v6157_v35 = vrot.slane %v6156_v22, 4  ;;  %v7243_v22 = vrot.slane %v7241_v21, 5 }
 0x4da   : > { %v6139_v61 = vshrl.u32 %v5826_v45, 16  ;;  %v7613_v10 = vsel %vm9195_vm8, %v8508_v3, %v7612_v44  ;;  %v7478_v21 = vld [vmem:[#allocation2 + $0xbc] sm:$0x1] }
 0x4db   : > { %v6766_v57 = vpop.permute.xlu1 %6765  ;;  %v6768_v55 = vpop.permute.xlu0 %6767  ;;  %v6128_v58 = vrot.slane %v6126_v46, 4  ;;  %v7609_v63 = vsel %vm9195_vm8, %v7607_v52, %v7608_v32  ;;  %v6389_v46 = vld [vmem:[#allocation2 + $0xac] sm:$0xf]  ;;  %v6531_v52 = vrot.slane %v6386_v36, 5 }
 0x4dc   : > { %6853 = vst.msk [vmem:[#allocation3 + $0x20] sm:$0xf] %vm2905_vm15, %v6766_v57  ;;  %6854 = vst.msk [vmem:[#allocation3 + $0x24] sm:$0xf] %vm2905_vm15, %v6768_v55  ;;  %v7614_v55 = vrot.slane %v7612_v44, 4  ;;  %v6141_v12 = vrot.slane %v6139_v61, 4 }
 0x4dd   : > { %6601 = vrot.lane.b32.xlu1 %v6525_v49, %s8865_s28  ;;  %6603 = vrot.lane.b32.xlu0 %v6528_v56, %s8865_s28  ;;  %v6135_v49 = vshll.u32 %v5826_v45, 16  ;;  %v6132_v60 = vor.u32 %v6131_v59, %v6128_v58  ;;  %v6385_v45 = vld [vmem:[#allocation2 + $0x9c] sm:$0xe]  ;;  %v6538_v32 = vrot.slane %v6389_v46, 5  ;;  %v7217_v58 = vshll.u32 %v6913_v53, 16 }
 0x4de   : > { %v8493_v54 = vrot.slane %v6385_v45, 9  ;;  %v6712_v45 = vld [vmem:[#allocation2 + $0xb8] sm:$0xf] }
 0x4df   : > { %v6770_v4 = vpop.permute.xlu1 %6769  ;;  %v6772_v6 = vpop.permute.xlu0 %6771  ;;  %v6133_v26 = vrot.slane %v6132_v60, 4 }
 0x4e0   : > { %6855 = vst.msk [vmem:[#allocation3 + $0x28] sm:$0xf] %vm2905_vm15, %v6770_v4  ;;  %6856 = vst.msk [vmem:[#allocation3 + $0x2c] sm:$0xf] %vm2905_vm15, %v6772_v6  ;;  %v7615_v4 = vrot.slane %v7472_v51, 5  ;;  %v6532_v61 = vsel %vm9195_vm8, %v8493_v54, %v6531_v52 }
 0x4e1   : > { %6789 = vrot.lane.b32.xlu1 %v6705_v7, %s8866_s29  ;;  %6791 = vrot.lane.b32.xlu0 %v6706_v11, %s8866_s29  ;;  %v5829_v6 = vld [vmem:[#allocation2 + $0xac] sm:$0xf]  ;;  %v6137_v7 = vrot.slane %v6135_v49, 5 }
 0x4e2   : > { %v7616_v11 = vsel %vm9195_vm8, %v7614_v55, %v7615_v4  ;;  %v7214_v55 = vshrl.u32 %v6913_v53, 16  ;;  %v6390_v4 = vld [vmem:[#allocation2 + $0xb0] sm:$0x1] }
 0x4e3   : > { %v7326_v37 = vpop.permute.xlu1 %7325  ;;  %v7328_v14 = vpop.permute.xlu0 %7327  ;;  %v6142_v1 = vor.u32 %v6141_v12, %v6137_v7  ;;  %v6138_v40 = vsel %vm8936_vm5, %v6133_v26, %v6137_v7  ;;  %v7240_v26 = vrot.slane %v7238_v13, 4  ;;  %v5834_v13 = vld [vmem:[#allocation2 + $0xc0] sm:$0xf] }
 0x4e4   : > { %7413 = vst.msk [vmem:[#allocation3 + $0x20] sm:$0xf] %vm3466_vm2, %v7326_v37  ;;  %7414 = vst.msk [vmem:[#allocation3 + $0x24] sm:$0xf] %vm3466_vm2, %v7328_v14  ;;  %v6159_v37 = vshll.u32 %v5829_v6, 16  ;;  %v6163_v14 = vshrl.u32 %v5829_v6, 16 }
 0x4e5   : > { %6793 = vrot.lane.b32.xlu1 %v6707_v15, %s8866_s29  ;;  %6795 = vrot.lane.b32.xlu0 %v6708_v18, %s8866_s29  ;;  %v5622_v15 = vld [vmem:[#allocation2 + $0xa0] sm:$0xf]  ;;  %v6143_v25 = vrot.slane %v6142_v1, 4  ;;  %v6540_v6 = vrot.slane %v6538_v32, 4 }
 0x4e6   : > { %v6161_v38 = vrot.slane %v6159_v37, 5  ;;  %v6541_v37 = vrot.slane %v6390_v4, 5 }
 0x4e7   : > { %v7330_v27 = vpop.permute.xlu1 %7329  ;;  %v7332_v24 = vpop.permute.xlu0 %7331 }
 0x4e8   : > { %7415 = vst.msk [vmem:[#allocation3 + $0x28] sm:$0xf] %vm3466_vm2, %v7330_v27  ;;  %7416 = vst.msk [vmem:[#allocation3 + $0x2c] sm:$0xf] %vm3466_vm2, %v7332_v24  ;;  %v6165_v27 = vrot.slane %v6163_v14, 4  ;;  %v6145_v24 = vshll.u32 %v5827_v17, 16 }
 0x4e9   : > { %7349 = vrot.lane.b32.xlu1 %v7178_v29, %s8867_s7  ;;  %7351 = vrot.lane.b32.xlu0 %v7188_v31, %s8867_s7  ;;  %v5830_v31 = vld [vmem:[#allocation2 + $0xb0] sm:$0x1]  ;;  %v6917_v14 = vld [vmem:[#allocation2 + $0xb8] sm:$0xf] }
 0x4ea   : > { %v6166_v30 = vor.u32 %v6165_v27, %v6161_v38  ;;  %v6147_v39 = vrot.slane %v6145_v24, 5  ;;  %v7251_v27 = vshrl.u32 %v6917_v14, 16 }
 0x4eb   : > { %v7662_v41 = vpop.permute.xlu1 %7661  ;;  %v7664_v42 = vpop.permute.xlu0 %7663 }
 0x4ec   : > { %7749 = vst.msk [vmem:[#allocation3 + $0x20] sm:$0xf] %vm3803_vm3, %v7662_v41  ;;  %7750 = vst.msk [vmem:[#allocation3 + $0x24] sm:$0xf] %vm3803_vm3, %v7664_v42  ;;  %v6169_v41 = vshll.u32 %v5830_v31, 16  ;;  %v6148_v47 = vsel %vm8936_vm5, %v6143_v25, %v6147_v39  ;;  %v7253_v36 = vrot.slane %v7251_v27, 4 }
 0x4ed   : > { %7353 = vrot.lane.b32.xlu1 %v7202_v48, %s8867_s7  ;;  %7355 = vrot.lane.b32.xlu0 %v7212_v50, %s8867_s7  ;;  %v6162_v48 = vsel %vm8936_vm5, %v6157_v35, %v6161_v38  ;;  %v6167_v50 = vrot.slane %v6166_v30, 4  ;;  %v7247_v38 = vshll.u32 %v6917_v14, 16  ;;  %v6915_v31 = vld [vmem:[#allocation2 + $0xb0] sm:$0x1]  ;;  %v7244_v35 = vor.u32 %v7243_v22, %v7240_v26  ;;  %v5835_v22 = vld [vmem:[#allocation2 + $0xc4] sm:$0xf] }
 0x4ee   : > { %v6171_v16 = vrot.slane %v6169_v41, 5  ;;  %v7233_v39 = vshll.u32 %v6915_v31, 16  ;;  %v6201_v27 = vshll.u32 %v5834_v13, 16 }
 0x4ef   : > { %v7666_v56 = vpop.permute.xlu1 %7665  ;;  %v7668_v57 = vpop.permute.xlu0 %7667  ;;  %v7249_v30 = vrot.slane %v7247_v38, 5  ;;  %v6198_v38 = vshrl.u32 %v5834_v13, 16 }
 0x4f0   : > { %7751 = vst.msk [vmem:[#allocation3 + $0x28] sm:$0xf] %vm3803_vm3, %v7666_v56  ;;  %7752 = vst.msk [vmem:[#allocation3 + $0x2c] sm:$0xf] %vm3803_vm3, %v7668_v57  ;;  %v6387_v56 = vld [vmem:[#allocation2 + $0xa4] sm:$0x1]  ;;  %v6172_v59 = vsel %vm8936_vm5, %v6167_v50, %v6171_v16 }
 0x4f1   : > { %7685 = vrot.lane.b32.xlu1 %v7606_v62, %s8868_s12  ;;  %7687 = vrot.lane.b32.xlu0 %v7609_v63, %s8868_s12  ;;  %v6388_v57 = vld [vmem:[#allocation2 + $0xa8] sm:$0xe]  ;;  %v6533_v62 = vrot.slane %v6531_v52, 4  ;;  %v6914_v63 = vld [vmem:[#allocation2 + $0xac] sm:$0xf]  ;;  %v6534_v2 = vrot.slane %v6387_v56, 5  ;;  %v7254_v50 = vor.u32 %v7253_v36, %v7249_v30 }
 0x4f2   : > { %v8494_v3 = vrot.slane %v6388_v57, 9  ;;  %v7474_v52 = vld [vmem:[#allocation2 + $0xac] sm:$0xf]  ;;  %v7235_v53 = vrot.slane %v7233_v39, 5  ;;  %v7477_v56 = vld [vmem:[#allocation2 + $0xb8] sm:$0xf] }
 0x4f3   : > { %v6246_v8 = vpop.permute.xlu1 %6245  ;;  %v6248_v9 = vpop.permute.xlu0 %6247  ;;  %v8807_v5 = vld [vmem:[#allocation3 + $0x20] sm:$0xff]   ;;  %v6535_v60 = vsel %vm9195_vm8, %v6533_v62, %v6534_v2  ;;  %v5831_v62 = vld [vmem:[#allocation2 + $0xb4] sm:$0xf]  ;;  %v7626_v2 = vrot.slane %v7477_v56, 5  ;;  %v6200_v36 = vrot.slane %v6198_v38, 4  ;;  %v6203_v39 = vrot.slane %v6201_v27, 5 }
 0x4f4   : > { %6329 = vst.msk [vmem:[#allocation3 + $0x30] sm:$0xf] %vm2374_vm12, %v6246_v8  ;;  %6330 = vst.msk [vmem:[#allocation3 + $0x34] sm:$0xf] %vm2374_vm12, %v6248_v9  ;;  %8739 = vmatprep.mubr.msk.bf16.mxu1 %vm3975_vm6, %v8807_v5  ;;  %v7216_v9 = vrot.slane %v7214_v55, 4  ;;  %v7227_v5 = vshrl.u32 %v6914_v63, 16  ;;  %v6539_v12 = vsel %vm9195_vm8, %v8494_v3, %v6538_v32 }
 0x4f5   : > { %7689 = vrot.lane.b32.xlu1 %v7613_v10, %s8868_s12  ;;  %7691 = vrot.lane.b32.xlu0 %v7616_v11, %s8868_s12  ;;  %v7219_v10 = vrot.slane %v7217_v58, 5  ;;  %v7223_v11 = vshll.u32 %v6914_v63, 16  ;;  %v7255_v58 = vrot.slane %v7254_v50, 4  ;;  %v5832_v3 = vld [vmem:[#allocation2 + $0xb8] sm:$0xf] }
 0x4f6   : > { %v7229_v1 = vrot.slane %v7227_v5, 4  ;;  %v6177_v5 = vshll.u32 %v5831_v62, 16  ;;  %v6183_v14 = vshll.u32 %v5832_v3, 16  ;;  %v5628_v56 = vld [vmem:[#allocation2 + $0xc4] sm:$0xf] }
 0x4f7   : > { %v6250_v18 = vpop.permute.xlu1 %6249  ;;  %v6252_v19 = vpop.permute.xlu0 %6251  ;;  %v8808_v20 = vld [vmem:[#allocation3 + $0x28] sm:$0xff]  }
 0x4f8   : > { %6331 = vst.msk [vmem:[#allocation3 + $0x38] sm:$0xf] %vm2374_vm12, %v6250_v18  ;;  %6332 = vst.msk [vmem:[#allocation3 + $0x3c] sm:$0xf] %vm2374_vm12, %v6252_v19  ;;  %8740 = vmatmul.mubr.msk.bf16.gmra.mxu1 %vm3975_vm6, %v8808_v20  ;;  %v6542_v18 = vsel %vm9195_vm8, %v6540_v6, %v6541_v37  ;;  %v7220_v19 = vor.u32 %v7219_v10, %v7216_v9  ;;  %v7225_v20 = vrot.slane %v7223_v11, 5  ;;  %v6174_v11 = vshrl.u32 %v5831_v62, 16 }
 0x4f9   : > { %5711 = vrot.lane.b32.xlu1 %v5622_v15, %s8863_s26  ;;  %5713 = vrot.lane.b32.xlu0 %v5623_v23, %s8863_s26  ;;  %v6709_v23 = vld [vmem:[#allocation2 + $0xa8] sm:$0xf]  ;;  %v7628_v37 = vrot.slane %v7626_v2, 4  ;;  %v6179_v26 = vrot.slane %v6177_v5, 5 }
 0x4fa   : > { %v7230_v25 = vor.u32 %v7229_v1, %v7225_v20  ;;  %v6187_v1 = vshrl.u32 %v5832_v3, 16  ;;  %v6391_v3 = vld [vmem:[#allocation2 + $0xb4] sm:$0xe] }
 0x4fb   : > { %v6582_v28 = vpop.permute.xlu1 %6581  ;;  %v6584_v29 = vpop.permute.xlu0 %6583  ;;  %v8495_v5 = vrot.slane %v6391_v3, 9 }
 0x4fc   : > { %6665 = vst.msk [vmem:[#allocation3 + $0x30] sm:$0xf] %vm2711_vm13, %v6582_v28  ;;  %6666 = vst.msk [vmem:[#allocation3 + $0x34] sm:$0xf] %vm2711_vm13, %v6584_v29  ;;  %v7221_v29 = vrot.slane %v7220_v19, 4 }
 0x4fd   : > { %5715 = vrot.lane.b32.xlu1 %v5624_v33, %s8863_s26  ;;  %6269 = vrot.lane.b32.xlu0 %v6138_v40, %s8864_s27  ;;  %v6710_v33 = vld [vmem:[#allocation2 + $0xac] sm:$0xf]  ;;  %v6711_v40 = vld [vmem:[#allocation2 + $0xb4] sm:$0xf] }
 0x4fe   : > { %v7226_v46 = vsel %vm8936_vm5, %v7221_v29, %v7225_v20 }
 0x4ff   : > { %v6586_v42 = vpop.permute.xlu1 %6585  ;;  %v6588_v44 = vpop.permute.xlu0 %6587 }
 0x500   : > { %6667 = vst.msk [vmem:[#allocation3 + $0x38] sm:$0xf] %vm2711_vm13, %v6586_v42  ;;  %6668 = vst.msk [vmem:[#allocation3 + $0x3c] sm:$0xf] %vm2711_vm13, %v6588_v44  ;;  %v6918_v44 = vld [vmem:[#allocation2 + $0xbc] sm:$0x1] }
 0x501   : > { %6271 = vrot.lane.b32.xlu1 %v6148_v47, %s8864_s27  ;;  %6273 = vrot.lane.b32.xlu0 %v6162_v48, %s8864_s27  ;;  %v7231_v47 = vrot.slane %v7230_v25, 4  ;;  %v7245_v48 = vrot.slane %v7244_v35, 4  ;;  %v7257_v16 = vshll.u32 %v6918_v44, 16  ;;  %v6207_v25 = vshll.u32 %v5835_v22, 16  ;;  %v5625_v35 = vld [vmem:[#allocation2 + $0xb4] sm:$0xf] }
 0x503   : > { %v6774_v51 = vpop.permute.xlu1 %6773  ;;  %v6776_v49 = vpop.permute.xlu0 %6775  ;;  %v7236_v57 = vsel %vm8936_vm5, %v7231_v47, %v7235_v53  ;;  %v7250_v55 = vsel %vm8936_vm5, %v7245_v48, %v7249_v30  ;;  %v7259_v63 = vrot.slane %v7257_v16, 5  ;;  %v5627_v48 = vld [vmem:[#allocation2 + $0xc0] sm:$0xf]  ;;  %v6209_v53 = vrot.slane %v6207_v25, 5 }
 0x504   : > { %6857 = vst.msk [vmem:[#allocation3 + $0x30] sm:$0xf] %vm2905_vm15, %v6774_v51  ;;  %6858 = vst.msk [vmem:[#allocation3 + $0x34] sm:$0xf] %vm2905_vm15, %v6776_v49  ;;  %v7473_v51 = vld [vmem:[#allocation2 + $0xa8] sm:$0xe] }
 0x505   : > { %6275 = vrot.lane.b32.xlu1 %v6172_v59, %s8864_s27  ;;  %6605 = vrot.lane.b32.xlu0 %v6532_v61, %s8865_s28  ;;  %v7619_v49 = vrot.slane %v7474_v52, 5  ;;  %v7475_v59 = vld [vmem:[#allocation2 + $0xb0] sm:$0x1]  ;;  %v7476_v61 = vld [vmem:[#allocation2 + $0xb4] sm:$0xe]  ;;  %v8509_v0 = vrot.slane %v7473_v51, 9  ;;  %v7260_v9 = vsel %vm8936_vm5, %v7255_v58, %v7259_v63  ;;  %v6204_v52 = vor.u32 %v6203_v39, %v6200_v36 }
 0x507   : > { %v6778_v7 = vpop.permute.xlu1 %6777  ;;  %v6780_v8 = vpop.permute.xlu0 %6779  ;;  %v7620_v10 = vsel %vm9195_vm8, %v8509_v0, %v7619_v49  ;;  %v6205_v58 = vrot.slane %v6204_v52, 4 }
 0x508   : > { %6859 = vst.msk [vmem:[#allocation3 + $0x38] sm:$0xf] %vm2905_vm15, %v6778_v7  ;;  %6860 = vst.msk [vmem:[#allocation3 + $0x3c] sm:$0xf] %vm2905_vm15, %v6780_v8  ;;  %v7621_v8 = vrot.slane %v7619_v49, 4 }
 0x509   : > { %6607 = vrot.lane.b32.xlu1 %v6535_v60, %s8865_s28  ;;  %6609 = vrot.lane.b32.xlu0 %v6539_v12, %s8865_s28  ;;  %v7622_v60 = vrot.slane %v7475_v59, 5  ;;  %v8510_v12 = vrot.slane %v7476_v61, 9  ;;  %v5836_v49 = vld [vmem:[#allocation2 + $0xc8] sm:$0x1]  ;;  %v6392_v61 = vld [vmem:[#allocation2 + $0xb8] sm:$0xf] }
 0x50a   : > { %v6217_v63 = vshll.u32 %v5836_v49, 16 }
 0x50b   : > { %v7334_v15 = vpop.permute.xlu1 %7333  ;;  %v7336_v17 = vpop.permute.xlu0 %7335  ;;  %v7627_v19 = vsel %vm9195_vm8, %v8510_v12, %v7626_v2  ;;  %v6394_v12 = vld [vmem:[#allocation2 + $0xc0] sm:$0xe] }
 0x50c   : > { %7417 = vst.msk [vmem:[#allocation3 + $0x30] sm:$0xf] %vm3466_vm2, %v7334_v15  ;;  %7418 = vst.msk [vmem:[#allocation3 + $0x34] sm:$0xf] %vm3466_vm2, %v7336_v17 }
 0x50d   : > { %6611 = vrot.lane.b32.xlu1 %v6542_v18, %s8865_s28  ;;  %6797 = vrot.lane.b32.xlu0 %v6709_v23, %s8866_s29  ;;  %v7623_v18 = vsel %vm9195_vm8, %v7621_v8, %v7622_v60  ;;  %v6176_v23 = vrot.slane %v6174_v11, 4  ;;  %v6219_v11 = vrot.slane %v6217_v63, 5  ;;  %v6393_v60 = vld [vmem:[#allocation2 + $0xbc] sm:$0x1] }
 0x50f   : > { %v7338_v24 = vpop.permute.xlu1 %7337  ;;  %v7340_v28 = vpop.permute.xlu0 %7339  ;;  %v6180_v30 = vor.u32 %v6179_v26, %v6176_v23  ;;  %v8496_v23 = vrot.slane %v6394_v12, 9  ;;  %v6920_v26 = vld [vmem:[#allocation2 + $0xc4] sm:$0xf] }
 0x510   : > { %7419 = vst.msk [vmem:[#allocation3 + $0x38] sm:$0xf] %vm3466_vm2, %v7338_v24  ;;  %7420 = vst.msk [vmem:[#allocation3 + $0x3c] sm:$0xf] %vm3466_vm2, %v7340_v28  ;;  %v7629_v24 = vrot.slane %v7478_v21, 5  ;;  %v7275_v36 = vshrl.u32 %v6920_v26, 16 }
 0x511   : > { %6799 = vrot.lane.b32.xlu1 %v6710_v33, %s8866_s29  ;;  %6801 = vrot.lane.b32.xlu0 %v6711_v40, %s8866_s29  ;;  %v6185_v33 = vrot.slane %v6183_v14, 5  ;;  %v6189_v40 = vrot.slane %v6187_v1, 4  ;;  %v6181_v50 = vrot.slane %v6180_v30, 4  ;;  %v6548_v1 = vrot.slane %v6393_v60, 5  ;;  %v7480_v60 = vld [vmem:[#allocation2 + $0xc4] sm:$0xf] }
 0x512   : > { %v7630_v31 = vsel %vm9195_vm8, %v7628_v37, %v7629_v24  ;;  %v7271_v30 = vshll.u32 %v6920_v26, 16 }
 0x513   : > { %v7670_v41 = vpop.permute.xlu1 %7669  ;;  %v7672_v42 = vpop.permute.xlu0 %7671  ;;  %v6190_v47 = vor.u32 %v6189_v40, %v6185_v33  ;;  %v6923_v40 = vld [vmem:[#allocation2 + $0xd0] sm:$0xf] }
 0x514   : > { %7753 = vst.msk [vmem:[#allocation3 + $0x30] sm:$0xf] %vm3803_vm3, %v7670_v41  ;;  %7754 = vst.msk [vmem:[#allocation3 + $0x34] sm:$0xf] %vm3803_vm3, %v7672_v42  ;;  %v6211_v41 = vshrl.u32 %v5835_v22, 16 }
 0x515   : > { %6803 = vrot.lane.b32.xlu1 %v6712_v45, %s8866_s29  ;;  %7357 = vrot.lane.b32.xlu0 %v7226_v46, %s8867_s7  ;;  %v5626_v45 = vld [vmem:[#allocation2 + $0xb8] sm:$0xf]  ;;  %v5833_v46 = vld [vmem:[#allocation2 + $0xbc] sm:$0x1]  ;;  %v6396_v22 = vld [vmem:[#allocation2 + $0xc8] sm:$0x1] }
 0x516   : > { %v6213_v16 = vrot.slane %v6211_v41, 4  ;;  %v6555_v39 = vrot.slane %v6396_v22, 5 }
 0x517   : > { %v7674_v54 = vpop.permute.xlu1 %7673  ;;  %v7676_v32 = vpop.permute.xlu0 %7675 }
 0x518   : > { %7755 = vst.msk [vmem:[#allocation3 + $0x38] sm:$0xf] %vm3803_vm3, %v7674_v54  ;;  %7756 = vst.msk [vmem:[#allocation3 + $0x3c] sm:$0xf] %vm3803_vm3, %v7676_v32  ;;  %v6193_v54 = vshll.u32 %v5833_v46, 16  ;;  %v6214_v59 = vor.u32 %v6213_v16, %v6209_v53  ;;  %v7277_v16 = vrot.slane %v7275_v36, 4 }
 0x519   : > { %7359 = vrot.lane.b32.xlu1 %v7236_v57, %s8867_s7  ;;  %7361 = vrot.lane.b32.xlu0 %v7250_v55, %s8867_s7  ;;  %v6186_v57 = vsel %vm8936_vm5, %v6181_v50, %v6185_v33  ;;  %v6191_v55 = vrot.slane %v6190_v47, 4  ;;  %v6713_v50 = vld [vmem:[#allocation2 + $0xc0] sm:$0xf] }
 0x51a   : > { %v6195_v62 = vrot.slane %v6193_v54, 5  ;;  %v6215_v8 = vrot.slane %v6214_v59, 4  ;;  %v6715_v54 = vld [vmem:[#allocation2 + $0xcc] sm:$0xf]  ;;  %v6714_v59 = vld [vmem:[#allocation2 + $0xc4] sm:$0xf] }
 0x51b   : > { %v6254_v4 = vpop.permute.xlu1 %6253  ;;  %v6256_v6 = vpop.permute.xlu0 %6255  ;;  %v8809_v7 = vld [vmem:[#allocation3 + $0x30] sm:$0xff]  }
 0x51c   : > { %6333 = vst.msk [vmem:[#allocation3 + $0x40] sm:$0xf] %vm2374_vm12, %v6254_v4  ;;  %6334 = vst.msk [vmem:[#allocation3 + $0x44] sm:$0xf] %vm2374_vm12, %v6256_v6  ;;  %8743 = vmatprep.mubr.msk.bf16.mxu1 %vm3975_vm6, %v8809_v7  ;;  %v6545_v4 = vrot.slane %v6392_v61, 5  ;;  %v6196_v6 = vsel %vm8936_vm5, %v6191_v55, %v6195_v62  ;;  %v6210_v7 = vsel %vm8936_vm5, %v6205_v58, %v6209_v53  ;;  %v7273_v53 = vrot.slane %v7271_v30, 5 }
 0x51d   : > { %7363 = vrot.lane.b32.xlu1 %v7260_v9, %s8867_s7  ;;  %7693 = vrot.lane.b32.xlu0 %v7620_v10, %s8868_s12  ;;  %v6395_v9 = vld [vmem:[#allocation2 + $0xc4] sm:$0xf]  ;;  %v6919_v10 = vld [vmem:[#allocation2 + $0xc0] sm:$0xf]  ;;  %v6924_v58 = vld [vmem:[#allocation2 + $0xd4] sm:$0x1] }
 0x51e   : > { %v6547_v37 = vrot.slane %v6545_v4, 4  ;;  %v6552_v14 = vrot.slane %v6395_v9, 5  ;;  %v7278_v62 = vor.u32 %v7277_v16, %v7273_v53 }
 0x51f   : > { %v6258_v15 = vpop.permute.xlu1 %6257  ;;  %v6260_v17 = vpop.permute.xlu0 %6259  ;;  %v8810_v20 = vld [vmem:[#allocation3 + $0x38] sm:$0xff]  }
 0x520   : > { %6335 = vst.msk [vmem:[#allocation3 + $0x48] sm:$0xf] %vm2374_vm12, %v6258_v15  ;;  %6336 = vst.msk [vmem:[#allocation3 + $0x4c] sm:$0xf] %vm2374_vm12, %v6260_v17  ;;  %8744 = vmatmul.mubr.msk.bf16.gmra.mxu1 %vm3975_vm6, %v8810_v20  ;;  %v6922_v15 = vld [vmem:[#allocation2 + $0xcc] sm:$0xf]  ;;  %v6220_v17 = vsel %vm8936_vm5, %v6215_v8, %v6219_v11 }
 0x521   : > { %7695 = vrot.lane.b32.xlu1 %v7623_v18, %s8868_s12  ;;  %7697 = vrot.lane.b32.xlu0 %v7627_v19, %s8868_s12  ;;  %v6546_v18 = vsel %vm9195_vm8, %v8495_v5, %v6545_v4  ;;  %v7262_v19 = vshrl.u32 %v6919_v10, 16  ;;  %v7265_v20 = vshll.u32 %v6919_v10, 16  ;;  %v7286_v38 = vshrl.u32 %v6922_v15, 16  ;;  %v7479_v5 = vld [vmem:[#allocation2 + $0xc0] sm:$0xe] }
 0x522   : > { %v7289_v27 = vshll.u32 %v6922_v15, 16  ;;  %v6554_v33 = vrot.slane %v6552_v14, 4  ;;  %v7305_v4 = vshll.u32 %v6924_v58, 16  ;;  %v7279_v10 = vrot.slane %v7278_v62, 4  ;;  %v8820_v58 = vld [vmem:[%s8921_s23 + $0x10] sm:$0xff] }
 0x523   : > { %v6590_v28 = vpop.permute.xlu1 %6589  ;;  %v6592_v29 = vpop.permute.xlu0 %6591  ;;  %v7264_v25 = vrot.slane %v7262_v19, 4  ;;  %v7288_v41 = vrot.slane %v7286_v38, 4 }
 0x524   : > { %6669 = vst.msk [vmem:[#allocation3 + $0x40] sm:$0xf] %vm2711_vm13, %v6590_v28  ;;  %6670 = vst.msk [vmem:[#allocation3 + $0x44] sm:$0xf] %vm2711_vm13, %v6592_v29  ;;  %v6549_v29 = vsel %vm9195_vm8, %v6547_v37, %v6548_v1  ;;  %v7483_v37 = vld [vmem:[#allocation2 + $0xd0] sm:$0xf] }
 0x525   : > { %7699 = vrot.lane.b32.xlu1 %v7630_v31, %s8868_s12  ;;  %5717 = vrot.lane.b32.xlu0 %v5625_v35, %s8863_s26  ;;  %v6553_v31 = vsel %vm9195_vm8, %v8496_v23, %v6552_v14  ;;  %v7267_v35 = vrot.slane %v7265_v20, 5  ;;  %v7482_v14 = vld [vmem:[#allocation2 + $0xcc] sm:$0xe]  ;;  %v7633_v20 = vrot.slane %v7480_v60, 5  ;;  %v8511_v23 = vrot.slane %v7479_v5, 9 }
 0x526   : > { %v7640_v26 = vrot.slane %v7483_v37, 5  ;;  %v8512_v22 = vrot.slane %v7482_v14, 9 }
 0x527   : > { %v6594_v42 = vpop.permute.xlu1 %6593  ;;  %v6596_v44 = vpop.permute.xlu0 %6595  ;;  %v7268_v52 = vor.u32 %v7267_v35, %v7264_v25 }
 0x528   : > { %6671 = vst.msk [vmem:[#allocation3 + $0x48] sm:$0xf] %vm2711_vm13, %v6594_v42  ;;  %6672 = vst.msk [vmem:[#allocation3 + $0x4c] sm:$0xf] %vm2711_vm13, %v6596_v44  ;;  %v7291_v42 = vrot.slane %v7289_v27, 5  ;;  %v7295_v44 = vshll.u32 %v6923_v40, 16  ;;  %v7641_v25 = vsel %vm9195_vm8, %v8512_v22, %v7640_v26 }
 0x529   : > { %5719 = vrot.lane.b32.xlu1 %v5626_v45, %s8863_s26  ;;  %5721 = vrot.lane.b32.xlu0 %v5627_v48, %s8863_s26  ;;  %v7299_v45 = vshrl.u32 %v6923_v40, 16  ;;  %v6556_v48 = vsel %vm9195_vm8, %v6554_v33, %v6555_v39  ;;  %v7269_v61 = vrot.slane %v7268_v52, 4  ;;  %v7642_v33 = vrot.slane %v7640_v26, 4 }
 0x52a   : > { %v7297_v49 = vrot.slane %v7295_v44, 5 }
 0x52b   : > { %v6782_v32 = vpop.permute.xlu1 %6781  ;;  %v6784_v51 = vpop.permute.xlu0 %6783  ;;  %v7274_v9 = vsel %vm8936_vm5, %v7269_v61, %v7273_v53 }
 0x52c   : > { %6861 = vst.msk [vmem:[#allocation3 + $0x40] sm:$0xf] %vm2905_vm15, %v6782_v32  ;;  %6862 = vst.msk [vmem:[#allocation3 + $0x44] sm:$0xf] %vm2905_vm15, %v6784_v51  ;;  %v6921_v32 = vld [vmem:[#allocation2 + $0xc8] sm:$0x1]  ;;  %v7292_v51 = vor.u32 %v7291_v42, %v7288_v41 }
 0x52d   : > { %5723 = vrot.lane.b32.xlu1 %v5628_v56, %s8863_s26  ;;  %6277 = vrot.lane.b32.xlu0 %v6186_v57, %s8864_s27  ;;  %v7301_v56 = vrot.slane %v7299_v45, 4  ;;  %v7281_v63 = vshll.u32 %v6921_v32, 16 }
 0x52f   : > { %v6786_v0 = vpop.permute.xlu1 %6785  ;;  %v6788_v2 = vpop.permute.xlu0 %6787  ;;  %v7302_v3 = vor.u32 %v7301_v56, %v7297_v49  ;;  %v7283_v11 = vrot.slane %v7281_v63, 5 }
 0x530   : > { %6863 = vst.msk [vmem:[#allocation3 + $0x48] sm:$0xf] %vm2905_vm15, %v6786_v0  ;;  %6864 = vst.msk [vmem:[#allocation3 + $0x4c] sm:$0xf] %vm2905_vm15, %v6788_v2  ;;  %v6716_v0 = vld [vmem:[#allocation2 + $0xd0] sm:$0xf] }
 0x531   : > { %6279 = vrot.lane.b32.xlu1 %v6196_v6, %s8864_s27  ;;  %6281 = vrot.lane.b32.xlu0 %v6210_v7, %s8864_s27  ;;  %v7293_v2 = vrot.slane %v7292_v51, 4  ;;  %v7284_v19 = vsel %vm8936_vm5, %v7279_v10, %v7283_v11  ;;  %v8822_v10 = vld [vmem:[%s8921_s23 + $0x18] sm:$0xff] }
 0x533   : > { %v7342_v13 = vpop.permute.xlu1 %7341  ;;  %v7344_v21 = vpop.permute.xlu0 %7343  ;;  %v7298_v12 = vsel %vm8936_vm5, %v7293_v2, %v7297_v49 }
 0x534   : > { %7421 = vst.msk [vmem:[#allocation3 + $0x40] sm:$0xf] %vm3466_vm2, %v7342_v13  ;;  %7422 = vst.msk [vmem:[#allocation3 + $0x44] sm:$0xf] %vm3466_vm2, %v7344_v21  ;;  %v7303_v13 = vrot.slane %v7302_v3, 4  ;;  %v7307_v21 = vrot.slane %v7305_v4, 5 }
 0x535   : > { %6283 = vrot.lane.b32.xlu1 %v6220_v17, %s8864_s27  ;;  %6613 = vrot.lane.b32.xlu0 %v6546_v18, %s8865_s28 }
 0x536   : > { %v7308_v1 = vsel %vm8936_vm5, %v7303_v13, %v7307_v21 }
 0x537   : > { %v7346_v24 = vpop.permute.xlu1 %7345  ;;  %v7348_v28 = vpop.permute.xlu0 %7347 }
 0x538   : > { %7423 = vst.msk [vmem:[#allocation3 + $0x48] sm:$0xf] %vm3466_vm2, %v7346_v24  ;;  %7424 = vst.msk [vmem:[#allocation3 + $0x4c] sm:$0xf] %vm3466_vm2, %v7348_v28  ;;  %v7481_v24 = vld [vmem:[#allocation2 + $0xc8] sm:$0x1] }
 0x539   : > { %6615 = vrot.lane.b32.xlu1 %v6549_v29, %s8865_s28  ;;  %6617 = vrot.lane.b32.xlu0 %v6553_v31, %s8865_s28  ;;  %v7484_v28 = vld [vmem:[#allocation2 + $0xd4] sm:$0x1]  ;;  %v7634_v29 = vsel %vm9195_vm8, %v8511_v23, %v7633_v20  ;;  %v7635_v31 = vrot.slane %v7633_v20, 4  ;;  %v7636_v34 = vrot.slane %v7481_v24, 5 }
 0x53a   : > { %v7643_v40 = vrot.slane %v7484_v28, 5 }
 0x53b   : > { %v7678_v46 = vpop.permute.xlu1 %7677  ;;  %v7680_v47 = vpop.permute.xlu0 %7679  ;;  %v7637_v36 = vsel %vm9195_vm8, %v7635_v31, %v7636_v34 }
 0x53c   : > { %7757 = vst.msk [vmem:[#allocation3 + $0x40] sm:$0xf] %vm3803_vm3, %v7678_v46  ;;  %7758 = vst.msk [vmem:[#allocation3 + $0x44] sm:$0xf] %vm3803_vm3, %v7680_v47  ;;  %v7644_v39 = vsel %vm9195_vm8, %v7642_v33, %v7643_v40 }
 0x53d   : > { %6619 = vrot.lane.b32.xlu1 %v6556_v48, %s8865_s28  ;;  %6805 = vrot.lane.b32.xlu0 %v6713_v50, %s8866_s29 }
 0x53f   : > { %v7682_v57 = vpop.permute.xlu1 %7681  ;;  %v7684_v55 = vpop.permute.xlu0 %7683 }
 0x540   : > { %7759 = vst.msk [vmem:[#allocation3 + $0x48] sm:$0xf] %vm3803_vm3, %v7682_v57  ;;  %7760 = vst.msk [vmem:[#allocation3 + $0x4c] sm:$0xf] %vm3803_vm3, %v7684_v55 }
 0x541   : > { %6807 = vrot.lane.b32.xlu1 %v6714_v59, %s8866_s29  ;;  %6809 = vrot.lane.b32.xlu0 %v6715_v54, %s8866_s29  ;;  %v11214_v54 = vld [vmem:[%s11411_s4] ss:$0 sm:$0xff] }
 0x543   : > { %v6262_v6 = vpop.permute.xlu1 %6261  ;;  %v6264_v7 = vpop.permute.xlu0 %6263  ;;  %v8811_v8 = vld [vmem:[#allocation3 + $0x40] sm:$0xff]  }
 0x544   : > { %6337 = vst.msk [vmem:[#allocation3 + $0x50] sm:$0xf] %vm2374_vm12, %v6262_v6  ;;  %6338 = vst.msk [vmem:[#allocation3 + $0x54] sm:$0xf] %vm2374_vm12, %v6264_v7  ;;  %8747 = vmatprep.mubr.msk.bf16.mxu1 %vm3975_vm6, %v8811_v8 }
 0x545   : > { %6811 = vrot.lane.b32.xlu1 %v6716_v0, %s8866_s29  ;;  %7365 = vrot.lane.b32.xlu0 %v7274_v9, %s8867_s7  ;;  %v8821_v0 = vld [vmem:[%s8921_s23] sm:$0xff] }
 0x547   : > { %v6266_v15 = vpop.permute.xlu1 %6265  ;;  %v6268_v17 = vpop.permute.xlu0 %6267  ;;  %v8812_v18 = vld [vmem:[#allocation3 + $0x48] sm:$0xff]  }
 0x548   : > { %6339 = vst.msk [vmem:[#allocation3 + $0x58] sm:$0xf] %vm2374_vm12, %v6266_v15  ;;  %6340 = vst.msk [vmem:[#allocation3 + $0x5c] sm:$0xf] %vm2374_vm12, %v6268_v17  ;;  %8748 = vmatmul.mubr.msk.bf16.gmra.mxu1 %vm3975_vm6, %v8812_v18 }
 0x549   : > { %7367 = vrot.lane.b32.xlu1 %v7284_v19, %s8867_s7  ;;  %7369 = vrot.lane.b32.xlu0 %v7298_v12, %s8867_s7  ;;  %v8823_v12 = vld [vmem:[%s8921_s23 + $0x8] sm:$0xff] }
 0x54b   : > { %v6598_v38 = vpop.permute.xlu1 %6597  ;;  %v6600_v27 = vpop.permute.xlu0 %6599 }
 0x54c   : > { %6673 = vst.msk [vmem:[#allocation3 + $0x50] sm:$0xf] %vm2711_vm13, %v6598_v38  ;;  %6674 = vst.msk [vmem:[#allocation3 + $0x54] sm:$0xf] %vm2711_vm13, %v6600_v27 }
 0x54d   : > { %7371 = vrot.lane.b32.xlu1 %v7308_v1, %s8867_s7  ;;  %7701 = vrot.lane.b32.xlu0 %v7634_v29, %s8868_s12 }
 0x54f   : > { %v6602_v35 = vpop.permute.xlu1 %6601  ;;  %v6604_v30 = vpop.permute.xlu0 %6603 }
 0x550   : > { %6675 = vst.msk [vmem:[#allocation3 + $0x58] sm:$0xf] %vm2711_vm13, %v6602_v35  ;;  %6676 = vst.msk [vmem:[#allocation3 + $0x5c] sm:$0xf] %vm2711_vm13, %v6604_v30  ;;  %v8824_v35 = vld [vmem:[%s8921_s23 + $0x30] sm:$0xff] }
 0x551   : > { %7703 = vrot.lane.b32.xlu1 %v7637_v36, %s8868_s12  ;;  %7705 = vrot.lane.b32.xlu0 %v7641_v25, %s8868_s12 }
 0x553   : > { %v6790_v41 = vpop.permute.xlu1 %6789  ;;  %v6792_v42 = vpop.permute.xlu0 %6791 }
 0x554   : > { %6865 = vst.msk [vmem:[#allocation3 + $0x50] sm:$0xf] %vm2905_vm15, %v6790_v41  ;;  %6866 = vst.msk [vmem:[#allocation3 + $0x54] sm:$0xf] %vm2905_vm15, %v6792_v42  ;;  %v8825_v42 = vld [vmem:[%s8921_s23 + $0x20] sm:$0xff] }
 0x555   : > { %7707 = vrot.lane.b32.xlu1 %v7644_v39, %s8868_s12 }
 0x557   : > { %v6794_v44 = vpop.permute.xlu1 %6793  ;;  %v6796_v45 = vpop.permute.xlu0 %6795 }
 0x558   : > { %6867 = vst.msk [vmem:[#allocation3 + $0x58] sm:$0xf] %vm2905_vm15, %v6794_v44  ;;  %6868 = vst.msk [vmem:[#allocation3 + $0x5c] sm:$0xf] %vm2905_vm15, %v6796_v45 }
 0x55b   : > { %v7350_v46 = vpop.permute.xlu1 %7349  ;;  %v7352_v47 = vpop.permute.xlu0 %7351 }
 0x55c   : > { %7425 = vst.msk [vmem:[#allocation3 + $0x50] sm:$0xf] %vm3466_vm2, %v7350_v46  ;;  %7426 = vst.msk [vmem:[#allocation3 + $0x54] sm:$0xf] %vm3466_vm2, %v7352_v47 }
 0x55f   : > { %v7354_v43 = vpop.permute.xlu1 %7353  ;;  %v7356_v48 = vpop.permute.xlu0 %7355 }
 0x560   : > { %7427 = vst.msk [vmem:[#allocation3 + $0x58] sm:$0xf] %vm3466_vm2, %v7354_v43  ;;  %7428 = vst.msk [vmem:[#allocation3 + $0x5c] sm:$0xf] %vm3466_vm2, %v7356_v48 }
 0x563   : > { %v7686_v50 = vpop.permute.xlu1 %7685  ;;  %v7688_v52 = vpop.permute.xlu0 %7687 }
 0x564   : > { %7761 = vst.msk [vmem:[#allocation3 + $0x50] sm:$0xf] %vm3803_vm3, %v7686_v50  ;;  %7762 = vst.msk [vmem:[#allocation3 + $0x54] sm:$0xf] %vm3803_vm3, %v7688_v52  ;;  %v8826_v50 = vld [vmem:[%s8921_s23 + $0x38] sm:$0xff] }
 0x567   : > { %v7690_v53 = vpop.permute.xlu1 %7689  ;;  %v7692_v16 = vpop.permute.xlu0 %7691 }
 0x568   : > { %7763 = vst.msk [vmem:[#allocation3 + $0x58] sm:$0xf] %vm3803_vm3, %v7690_v53  ;;  %7764 = vst.msk [vmem:[#allocation3 + $0x5c] sm:$0xf] %vm3803_vm3, %v7692_v16  ;;  %v8733_v32 = vpop.f32.mrf.mxu1 }
 0x569   : > { %v8006_v51 = vadd.f32 %v8733_v32, %v11214_v54  ;;  %v8827_v32 = vld [vmem:[%s8921_s23 + $0x28] sm:$0xff] }
 0x56a   : > { %v7997_v55 = vpop.f32.mrf.mxu1 }
 0x56b   : > { %v5712_v49 = vpop.permute.xlu1 %5711  ;;  %v5714_v56 = vpop.permute.xlu0 %5713  ;;  %v8813_v57 = vld [vmem:[#allocation3 + $0x50] sm:$0xff]   ;;  %v8126_v59 = vadd.f32 %v8820_v58, %v8006_v51  ;;  %v7998_v61 = vadd.f32 %v11214_v54, %v7997_v55 }
 0x56c   : > { %5782 = vst.msk [vmem:[#allocation3 + $0x64] sm:$0xf] %vm1813_vm11, %v5712_v49  ;;  %5783 = vst.msk [vmem:[#allocation3 + $0x68] sm:$0xf] %vm1813_vm11, %v5714_v56  ;;  %8751 = vmatprep.mubr.msk.bf16.mxu1 %vm3975_vm6, %v8813_v57  ;;  %v8734_v62 = vpop.f32.mrf.mxu1 }
 0x56d   : > { %v8158_v63 = vmax.f32 %v8126_v59, 0.0  ;;  %v8124_v2 = vadd.f32 %v8821_v0, %v7998_v61  ;;  %v8009_v3 = vadd.f32 %v8734_v62, %v11214_v54 }
 0x56e   : > { %v8000_v8 = vpop.f32.mrf.mxu1 }
 0x56f   : > { %v5716_v4 = vpop.permute.xlu1 %5715  ;;  %v6270_v6 = vpop.permute.xlu0 %6269  ;;  %v8814_v7 = vld [vmem:[#allocation3 + $0x58] sm:$0xff]   ;;  %8191 = vst.msk [vmem:[%s11227_s6 + $0x10] sm:$0xff] %vm8188_vm0, %v8158_v63  ;;  %v8156_v9 = vmax.f32 %v8124_v2, 0.0  ;;  %v8127_v11 = vadd.f32 %v8822_v10, %v8009_v3  ;;  %v8001_v5 = vadd.f32 %v11214_v54, %v8000_v8 }
 0x570   : > { %5784 = vst.msk [vmem:[#allocation3 + $0x6c] sm:$0xf] %vm1813_vm11, %v5716_v4  ;;  %8752 = vmatmul.mubr.msk.bf16.gmra.mxu1 %vm3975_vm6, %v8814_v7 }
 0x571   : > { %6341 = vst.msk [vmem:[#allocation3 + $0x60] sm:$0xf] %vm2374_vm12, %v6270_v6  ;;  %v8159_v60 = vmax.f32 %v8127_v11, 0.0  ;;  %v8125_v13 = vadd.f32 %v8823_v12, %v8001_v5 }
 0x572   : > { %8189 = vst.msk [vmem:[%s11227_s6] sm:$0xff] %vm8188_vm0, %v8156_v9 }
 0x573   : > { %v6272_v21 = vpop.permute.xlu1 %6271  ;;  %v6274_v37 = vpop.permute.xlu0 %6273  ;;  %8192 = vst.msk [vmem:[%s11227_s6 + $0x18] sm:$0xff] %vm8188_vm0, %v8159_v60  ;;  %v8157_v14 = vmax.f32 %v8125_v13, 0.0 }
 0x574   : > { %6342 = vst.msk [vmem:[#allocation3 + $0x64] sm:$0xf] %vm2374_vm12, %v6272_v21  ;;  %6343 = vst.msk [vmem:[#allocation3 + $0x68] sm:$0xf] %vm2374_vm12, %v6274_v37  ;;  %v8828_v37 = vld [vmem:[%s8921_s23 + $0x50] sm:$0xff] }
 0x575   : > { %8190 = vst.msk [vmem:[%s11227_s6 + $0x8] sm:$0xff] %vm8188_vm0, %v8157_v14 }
 0x577   : > { %v6276_v15 = vpop.permute.xlu1 %6275  ;;  %v6606_v17 = vpop.permute.xlu0 %6605 }
 0x578   : > { %6344 = vst.msk [vmem:[#allocation3 + $0x6c] sm:$0xf] %vm2374_vm12, %v6276_v15 }
 0x579   : > { %6677 = vst.msk [vmem:[#allocation3 + $0x60] sm:$0xf] %vm2711_vm13, %v6606_v17 }
 0x57b   : > { %v6608_v18 = vpop.permute.xlu1 %6607  ;;  %v6610_v19 = vpop.permute.xlu0 %6609 }
 0x57c   : > { %6678 = vst.msk [vmem:[#allocation3 + $0x64] sm:$0xf] %vm2711_vm13, %v6608_v18  ;;  %6679 = vst.msk [vmem:[#allocation3 + $0x68] sm:$0xf] %vm2711_vm13, %v6610_v19  ;;  %v8829_v19 = vld [vmem:[%s8921_s23 + $0x40] sm:$0xff] }
 0x57f   : > { %v6612_v20 = vpop.permute.xlu1 %6611  ;;  %v6798_v1 = vpop.permute.xlu0 %6797 }
 0x580   : > { %6680 = vst.msk [vmem:[#allocation3 + $0x6c] sm:$0xf] %vm2711_vm13, %v6612_v20 }
 0x581   : > { %6869 = vst.msk [vmem:[#allocation3 + $0x60] sm:$0xf] %vm2905_vm15, %v6798_v1 }
 0x583   : > { %v6800_v23 = vpop.permute.xlu1 %6799  ;;  %v6802_v26 = vpop.permute.xlu0 %6801 }
 0x584   : > { %6870 = vst.msk [vmem:[#allocation3 + $0x64] sm:$0xf] %vm2905_vm15, %v6800_v23  ;;  %6871 = vst.msk [vmem:[#allocation3 + $0x68] sm:$0xf] %vm2905_vm15, %v6802_v26 }
 0x587   : > { %v6804_v22 = vpop.permute.xlu1 %6803  ;;  %v7358_v38 = vpop.permute.xlu0 %7357 }
 0x588   : > { %6872 = vst.msk [vmem:[#allocation3 + $0x6c] sm:$0xf] %vm2905_vm15, %v6804_v22 }
 0x589   : > { %7429 = vst.msk [vmem:[#allocation3 + $0x60] sm:$0xf] %vm3466_vm2, %v7358_v38 }
 0x58b   : > { %v7360_v27 = vpop.permute.xlu1 %7359  ;;  %v7362_v24 = vpop.permute.xlu0 %7361 }
 0x58c   : > { %7430 = vst.msk [vmem:[#allocation3 + $0x64] sm:$0xf] %vm3466_vm2, %v7360_v27  ;;  %7431 = vst.msk [vmem:[#allocation3 + $0x68] sm:$0xf] %vm3466_vm2, %v7362_v24  ;;  %v8830_v27 = vld [vmem:[%s8921_s23 + $0x58] sm:$0xff] }
 0x58f   : > { %v7364_v28 = vpop.permute.xlu1 %7363  ;;  %v7694_v29 = vpop.permute.xlu0 %7693 }
 0x590   : > { %7432 = vst.msk [vmem:[#allocation3 + $0x6c] sm:$0xf] %vm3466_vm2, %v7364_v28  ;;  %v8737_v31 = vpop.f32.mrf.mxu1 }
 0x591   : > { %7765 = vst.msk [vmem:[#allocation3 + $0x60] sm:$0xf] %vm3803_vm3, %v7694_v29  ;;  %v8022_v34 = vadd.f32 %v8737_v31, %v11214_v54  ;;  %v8831_v31 = vld [vmem:[%s8921_s23 + $0x48] sm:$0xff] }
 0x592   : > { %v8013_v25 = vpop.f32.mrf.mxu1 }
 0x593   : > { %v7696_v33 = vpop.permute.xlu1 %7695  ;;  %v7698_v40 = vpop.permute.xlu0 %7697  ;;  %v8130_v30 = vadd.f32 %v8824_v35, %v8022_v34  ;;  %v8014_v36 = vadd.f32 %v11214_v54, %v8013_v25 }
 0x594   : > { %7766 = vst.msk [vmem:[#allocation3 + $0x64] sm:$0xf] %vm3803_vm3, %v7696_v33  ;;  %7767 = vst.msk [vmem:[#allocation3 + $0x68] sm:$0xf] %vm3803_vm3, %v7698_v40  ;;  %v8738_v39 = vpop.f32.mrf.mxu1 }
 0x595   : > { %v8162_v41 = vmax.f32 %v8130_v30, 0.0  ;;  %v8128_v44 = vadd.f32 %v8825_v42, %v8014_v36  ;;  %v8025_v45 = vadd.f32 %v8738_v39, %v11214_v54 }
 0x596   : > { %v8016_v43 = vpop.f32.mrf.mxu1 }
 0x597   : > { %v7700_v46 = vpop.permute.xlu1 %7699  ;;  %v5718_v47 = vpop.permute.xlu0 %5717  ;;  %8195 = vst.msk [vmem:[%s11227_s6 + $0x30] sm:$0xff] %vm8188_vm0, %v8162_v41  ;;  %v8160_v48 = vmax.f32 %v8128_v44, 0.0  ;;  %v8131_v52 = vadd.f32 %v8826_v50, %v8025_v45  ;;  %v8017_v53 = vadd.f32 %v11214_v54, %v8016_v43  ;;  %v8832_v44 = vld [vmem:[%s8921_s23 + $0x70] sm:$0xff] }
 0x598   : > { %7768 = vst.msk [vmem:[#allocation3 + $0x6c] sm:$0xf] %vm3803_vm3, %v7700_v46 }
 0x599   : > { %5785 = vst.msk [vmem:[#allocation3 + $0x70] sm:$0xf] %vm1813_vm11, %v5718_v47  ;;  %v8163_v16 = vmax.f32 %v8131_v52, 0.0  ;;  %v8129_v51 = vadd.f32 %v8827_v32, %v8017_v53  ;;  %v8834_v32 = vld [vmem:[%s8921_s23 + $0x78] sm:$0xff] }
 0x59a   : > { %8193 = vst.msk [vmem:[%s11227_s6 + $0x20] sm:$0xff] %vm8188_vm0, %v8160_v48  ;;  %v8833_v48 = vld [vmem:[%s8921_s23 + $0x60] sm:$0xff] }
 0x59b   : > { %v5720_v49 = vpop.permute.xlu1 %5719  ;;  %v5722_v56 = vpop.permute.xlu0 %5721  ;;  %v8815_v57 = vld [vmem:[#allocation3 + $0x60] sm:$0xff]   ;;  %8196 = vst.msk [vmem:[%s11227_s6 + $0x38] sm:$0xff] %vm8188_vm0, %v8163_v16  ;;  %v8161_v55 = vmax.f32 %v8129_v51, 0.0 }
 0x59c   : > { %5786 = vst.msk [vmem:[#allocation3 + $0x74] sm:$0xf] %vm1813_vm11, %v5720_v49  ;;  %5787 = vst.msk [vmem:[#allocation3 + $0x78] sm:$0xf] %vm1813_vm11, %v5722_v56  ;;  %8755 = vmatprep.mubr.msk.bf16.mxu1 %vm3975_vm6, %v8815_v57  ;;  %v8835_v57 = vld [vmem:[%s8921_s23 + $0x68] sm:$0xff] }
 0x59d   : > { %8194 = vst.msk [vmem:[%s11227_s6 + $0x28] sm:$0xff] %vm8188_vm0, %v8161_v55 }
 0x59f   : > { %v5724_v58 = vpop.permute.xlu1 %5723  ;;  %v6278_v59 = vpop.permute.xlu0 %6277  ;;  %v8816_v61 = vld [vmem:[#allocation3 + $0x68] sm:$0xff]  }
 0x5a0   : > { %5788 = vst.msk [vmem:[#allocation3 + $0x7c] sm:$0xf] %vm1813_vm11, %v5724_v58  ;;  %8756 = vmatmul.mubr.msk.bf16.gmra.mxu1 %vm3975_vm6, %v8816_v61 }
 0x5a1   : > { %6345 = vst.msk [vmem:[#allocation3 + $0x70] sm:$0xf] %vm2374_vm12, %v6278_v59 }
 0x5a3   : > { %v6280_v62 = vpop.permute.xlu1 %6279  ;;  %v6282_v63 = vpop.permute.xlu0 %6281 }
 0x5a4   : > { %6346 = vst.msk [vmem:[#allocation3 + $0x74] sm:$0xf] %vm2374_vm12, %v6280_v62  ;;  %6347 = vst.msk [vmem:[#allocation3 + $0x78] sm:$0xf] %vm2374_vm12, %v6282_v63  ;;  %v8836_v63 = vld [vmem:[%s8921_s23 + $0x90] sm:$0xff] }
 0x5a7   : > { %v6284_v0 = vpop.permute.xlu1 %6283  ;;  %v6614_v2 = vpop.permute.xlu0 %6613 }
 0x5a8   : > { %6348 = vst.msk [vmem:[#allocation3 + $0x7c] sm:$0xf] %vm2374_vm12, %v6284_v0 }
 0x5a9   : > { %6681 = vst.msk [vmem:[#allocation3 + $0x70] sm:$0xf] %vm2711_vm13, %v6614_v2 }
 0x5ab   : > { %v6616_v3 = vpop.permute.xlu1 %6615  ;;  %v6618_v4 = vpop.permute.xlu0 %6617 }
 0x5ac   : > { %6682 = vst.msk [vmem:[#allocation3 + $0x74] sm:$0xf] %vm2711_vm13, %v6616_v3  ;;  %6683 = vst.msk [vmem:[#allocation3 + $0x78] sm:$0xf] %vm2711_vm13, %v6618_v4 }
 0x5af   : > { %v6620_v6 = vpop.permute.xlu1 %6619  ;;  %v6806_v7 = vpop.permute.xlu0 %6805 }
 0x5b0   : > { %6684 = vst.msk [vmem:[#allocation3 + $0x7c] sm:$0xf] %vm2711_vm13, %v6620_v6  ;;  %v8837_v6 = vld [vmem:[%s8921_s23 + $0x80] sm:$0xff] }
 0x5b1   : > { %6873 = vst.msk [vmem:[#allocation3 + $0x70] sm:$0xf] %vm2905_vm15, %v6806_v7 }
 0x5b3   : > { %v6808_v8 = vpop.permute.xlu1 %6807  ;;  %v6810_v9 = vpop.permute.xlu0 %6809 }
 0x5b4   : > { %6874 = vst.msk [vmem:[#allocation3 + $0x74] sm:$0xf] %vm2905_vm15, %v6808_v8  ;;  %6875 = vst.msk [vmem:[#allocation3 + $0x78] sm:$0xf] %vm2905_vm15, %v6810_v9 }
 0x5b7   : > { %v6812_v10 = vpop.permute.xlu1 %6811  ;;  %v7366_v11 = vpop.permute.xlu0 %7365 }
 0x5b8   : > { %6876 = vst.msk [vmem:[#allocation3 + $0x7c] sm:$0xf] %vm2905_vm15, %v6812_v10  ;;  %v8741_v5 = vpop.f32.mrf.mxu1 }
 0x5b9   : > { %7433 = vst.msk [vmem:[#allocation3 + $0x70] sm:$0xf] %vm3466_vm2, %v7366_v11  ;;  %v8038_v60 = vadd.f32 %v8741_v5, %v11214_v54  ;;  %v8838_v11 = vld [vmem:[%s8921_s23 + $0x98] sm:$0xff] }
 0x5ba   : > { %v8029_v21 = vpop.f32.mrf.mxu1 }
 0x5bb   : > { %v7368_v12 = vpop.permute.xlu1 %7367  ;;  %v7370_v13 = vpop.permute.xlu0 %7369  ;;  %v8134_v14 = vadd.f32 %v8828_v37, %v8038_v60  ;;  %v8030_v15 = vadd.f32 %v11214_v54, %v8029_v21 }
 0x5bc   : > { %7434 = vst.msk [vmem:[#allocation3 + $0x74] sm:$0xf] %vm3466_vm2, %v7368_v12  ;;  %7435 = vst.msk [vmem:[#allocation3 + $0x78] sm:$0xf] %vm3466_vm2, %v7370_v13  ;;  %v8742_v17 = vpop.f32.mrf.mxu1  ;;  %v8839_v13 = vld [vmem:[%s8921_s23 + $0x88] sm:$0xff] }
 0x5bd   : > { %v8166_v18 = vmax.f32 %v8134_v14, 0.0  ;;  %v8132_v20 = vadd.f32 %v8829_v19, %v8030_v15  ;;  %v8041_v1 = vadd.f32 %v8742_v17, %v11214_v54 }
 0x5be   : > { %v8032_v22 = vpop.f32.mrf.mxu1 }
 0x5bf   : > { %v7372_v23 = vpop.permute.xlu1 %7371  ;;  %v7702_v26 = vpop.permute.xlu0 %7701  ;;  %8199 = vst.msk [vmem:[%s11227_s6 + $0x50] sm:$0xff] %vm8188_vm0, %v8166_v18  ;;  %v8164_v38 = vmax.f32 %v8132_v20, 0.0  ;;  %v8135_v24 = vadd.f32 %v8830_v27, %v8041_v1  ;;  %v8033_v28 = vadd.f32 %v11214_v54, %v8032_v22  ;;  %v8840_v18 = vld [vmem:[%s8921_s23 + $0xb0] sm:$0xff] }
 0x5c0   : > { %7436 = vst.msk [vmem:[#allocation3 + $0x7c] sm:$0xf] %vm3466_vm2, %v7372_v23 }
 0x5c1   : > { %7769 = vst.msk [vmem:[#allocation3 + $0x70] sm:$0xf] %vm3803_vm3, %v7702_v26  ;;  %v8167_v29 = vmax.f32 %v8135_v24, 0.0  ;;  %v8133_v34 = vadd.f32 %v8831_v31, %v8033_v28  ;;  %v8841_v26 = vld [vmem:[%s8921_s23 + $0xa0] sm:$0xff]  ;;  %v8842_v28 = vld [vmem:[%s8921_s23 + $0xb8] sm:$0xff] }
 0x5c2   : > { %8197 = vst.msk [vmem:[%s11227_s6 + $0x40] sm:$0xff] %vm8188_vm0, %v8164_v38 }
 0x5c3   : > { %v7704_v33 = vpop.permute.xlu1 %7703  ;;  %v7706_v40 = vpop.permute.xlu0 %7705  ;;  %8200 = vst.msk [vmem:[%s11227_s6 + $0x58] sm:$0xff] %vm8188_vm0, %v8167_v29  ;;  %v8165_v25 = vmax.f32 %v8133_v34, 0.0 }
 0x5c4   : > { %7770 = vst.msk [vmem:[#allocation3 + $0x74] sm:$0xf] %vm3803_vm3, %v7704_v33  ;;  %7771 = vst.msk [vmem:[#allocation3 + $0x78] sm:$0xf] %vm3803_vm3, %v7706_v40  ;;  %v8843_v33 = vld [vmem:[%s8921_s23 + $0xa8] sm:$0xff] }
 0x5c5   : > { %8198 = vst.msk [vmem:[%s11227_s6 + $0x48] sm:$0xff] %vm8188_vm0, %v8165_v25 }
 0x5c7   : > { %v7708_v35 = vpop.permute.xlu1 %7707 }
 0x5c8   : > { %7772 = vst.msk [vmem:[#allocation3 + $0x7c] sm:$0xf] %vm3803_vm3, %v7708_v35 }
 0x5cb   : > { %v8817_v30 = vld [vmem:[#allocation3 + $0x70] sm:$0xff]  }
 0x5cc   : > { %8759 = vmatprep.mubr.msk.bf16.mxu1 %vm3975_vm6, %v8817_v30 }
 0x5cf   : > { %v8818_v36 = vld [vmem:[#allocation3 + $0x78] sm:$0xff]  }
 0x5d0   : > { %8760 = vmatmul.mubr.msk.bf16.gmra.mxu1 %vm3975_vm6, %v8818_v36 }
 0x5e0   : > { %v8745_v39 = vpop.f32.mrf.mxu1 }
 0x5e1   : > { %v8054_v41 = vadd.f32 %v8745_v39, %v11214_v54  ;;  %v8844_v39 = vld [vmem:[%s8921_s23 + $0xd0] sm:$0xff] }
 0x5e2   : > { %v8045_v42 = vpop.f32.mrf.mxu1 }
 0x5e3   : > { %v8138_v45 = vadd.f32 %v8832_v44, %v8054_v41  ;;  %v8046_v46 = vadd.f32 %v11214_v54, %v8045_v42 }
 0x5e4   : > { %v8746_v47 = vpop.f32.mrf.mxu1 }
 0x5e5   : > { %v8170_v43 = vmax.f32 %v8138_v45, 0.0  ;;  %v8136_v50 = vadd.f32 %v8833_v48, %v8046_v46  ;;  %v8057_v52 = vadd.f32 %v8746_v47, %v11214_v54  ;;  %v8845_v46 = vld [vmem:[%s8921_s23 + $0xc0] sm:$0xff] }
 0x5e6   : > { %v8048_v53 = vpop.f32.mrf.mxu1 }
 0x5e7   : > { %8203 = vst.msk [vmem:[%s11227_s6 + $0x70] sm:$0xff] %vm8188_vm0, %v8170_v43  ;;  %v8168_v16 = vmax.f32 %v8136_v50, 0.0  ;;  %v8139_v51 = vadd.f32 %v8834_v32, %v8057_v52  ;;  %v8049_v49 = vadd.f32 %v11214_v54, %v8048_v53  ;;  %v8846_v52 = vld [vmem:[%s8921_s23 + $0xd8] sm:$0xff] }
 0x5e9   : > { %8201 = vst.msk [vmem:[%s11227_s6 + $0x60] sm:$0xff] %vm8188_vm0, %v8168_v16  ;;  %v8171_v56 = vmax.f32 %v8139_v51, 0.0  ;;  %v8137_v55 = vadd.f32 %v8835_v57, %v8049_v49  ;;  %v8847_v51 = vld [vmem:[%s8921_s23 + $0xc8] sm:$0xff] }
 0x5eb   : > { %8204 = vst.msk [vmem:[%s11227_s6 + $0x78] sm:$0xff] %vm8188_vm0, %v8171_v56  ;;  %v8169_v58 = vmax.f32 %v8137_v55, 0.0 }
 0x5ed   : > { %8202 = vst.msk [vmem:[%s11227_s6 + $0x68] sm:$0xff] %vm8188_vm0, %v8169_v58 }
 0x608   : > { %v8749_v59 = vpop.f32.mrf.mxu1 }
 0x609   : > { %v8070_v61 = vadd.f32 %v8749_v59, %v11214_v54  ;;  %v8848_v59 = vld [vmem:[%s8921_s23 + $0xf0] sm:$0xff] }
 0x60a   : > { %v8061_v62 = vpop.f32.mrf.mxu1 }
 0x60b   : > { %v8142_v0 = vadd.f32 %v8836_v63, %v8070_v61  ;;  %v8062_v2 = vadd.f32 %v11214_v54, %v8061_v62 }
 0x60c   : > { %v8750_v3 = vpop.f32.mrf.mxu1 }
 0x60d   : > { %v8174_v4 = vmax.f32 %v8142_v0, 0.0  ;;  %v8140_v7 = vadd.f32 %v8837_v6, %v8062_v2  ;;  %v8073_v8 = vadd.f32 %v8750_v3, %v11214_v54  ;;  %v8849_v2 = vld [vmem:[%s8921_s23 + $0xe0] sm:$0xff] }
 0x60e   : > { %v8064_v9 = vpop.f32.mrf.mxu1 }
 0x60f   : > { %8207 = vst.msk [vmem:[%s11227_s6 + $0x90] sm:$0xff] %vm8188_vm0, %v8174_v4  ;;  %v8172_v10 = vmax.f32 %v8140_v7, 0.0  ;;  %v8143_v5 = vadd.f32 %v8838_v11, %v8073_v8  ;;  %v8065_v60 = vadd.f32 %v11214_v54, %v8064_v9  ;;  %v8850_v8 = vld [vmem:[%s8921_s23 + $0xf8] sm:$0xff] }
 0x611   : > { %8205 = vst.msk [vmem:[%s11227_s6 + $0x80] sm:$0xff] %vm8188_vm0, %v8172_v10  ;;  %v8175_v12 = vmax.f32 %v8143_v5, 0.0  ;;  %v8141_v21 = vadd.f32 %v8839_v13, %v8065_v60  ;;  %v8851_v5 = vld [vmem:[%s8921_s23 + $0xe8] sm:$0xff] }
 0x613   : > { %8208 = vst.msk [vmem:[%s11227_s6 + $0x98] sm:$0xff] %vm8188_vm0, %v8175_v12  ;;  %v8173_v37 = vmax.f32 %v8141_v21, 0.0 }
 0x615   : > { %8206 = vst.msk [vmem:[%s11227_s6 + $0x88] sm:$0xff] %vm8188_vm0, %v8173_v37 }
 0x630   : > { %v8753_v14 = vpop.f32.mrf.mxu1 }
 0x631   : > { %v8086_v15 = vadd.f32 %v8753_v14, %v11214_v54 }
 0x632   : > { %v8077_v17 = vpop.f32.mrf.mxu1 }
 0x633   : > { %v8146_v19 = vadd.f32 %v8840_v18, %v8086_v15  ;;  %v8078_v20 = vadd.f32 %v11214_v54, %v8077_v17 }
 0x634   : > { %v8754_v1 = vpop.f32.mrf.mxu1 }
 0x635   : > { %v8178_v23 = vmax.f32 %v8146_v19, 0.0  ;;  %v8144_v22 = vadd.f32 %v8841_v26, %v8078_v20  ;;  %v8089_v38 = vadd.f32 %v8754_v1, %v11214_v54 }
 0x636   : > { %v8080_v27 = vpop.f32.mrf.mxu1 }
 0x637   : > { %8211 = vst.msk [vmem:[%s11227_s6 + $0xb0] sm:$0xff] %vm8188_vm0, %v8178_v23  ;;  %v8176_v24 = vmax.f32 %v8144_v22, 0.0  ;;  %v8147_v29 = vadd.f32 %v8842_v28, %v8089_v38  ;;  %v8081_v31 = vadd.f32 %v11214_v54, %v8080_v27 }
 0x639   : > { %8209 = vst.msk [vmem:[%s11227_s6 + $0xa0] sm:$0xff] %vm8188_vm0, %v8176_v24  ;;  %v8179_v34 = vmax.f32 %v8147_v29, 0.0  ;;  %v8145_v40 = vadd.f32 %v8843_v33, %v8081_v31 }
 0x63b   : > { %8212 = vst.msk [vmem:[%s11227_s6 + $0xb8] sm:$0xff] %vm8188_vm0, %v8179_v34  ;;  %v8177_v25 = vmax.f32 %v8145_v40, 0.0 }
 0x63d   : > { %8210 = vst.msk [vmem:[%s11227_s6 + $0xa8] sm:$0xff] %vm8188_vm0, %v8177_v25 }
 0x660   : > { %v8757_v35 = vpop.f32.mrf.mxu1 }
 0x661   : > { %v8102_v30 = vadd.f32 %v8757_v35, %v11214_v54 }
 0x662   : > { %v8093_v36 = vpop.f32.mrf.mxu1 }
 0x663   : > { %v8150_v41 = vadd.f32 %v8844_v39, %v8102_v30  ;;  %v8094_v42 = vadd.f32 %v11214_v54, %v8093_v36 }
 0x664   : > { %v8758_v44 = vpop.f32.mrf.mxu1 }
 0x665   : > { %v8182_v45 = vmax.f32 %v8150_v41, 0.0  ;;  %v8148_v47 = vadd.f32 %v8845_v46, %v8094_v42  ;;  %v8105_v43 = vadd.f32 %v8758_v44, %v11214_v54 }
 0x666   : > { %v8096_v48 = vpop.f32.mrf.mxu1 }
 0x667   : > { %8215 = vst.msk [vmem:[%s11227_s6 + $0xd0] sm:$0xff] %vm8188_vm0, %v8182_v45  ;;  %v8180_v50 = vmax.f32 %v8148_v47, 0.0  ;;  %v8151_v53 = vadd.f32 %v8846_v52, %v8105_v43  ;;  %v8097_v16 = vadd.f32 %v11214_v54, %v8096_v48 }
 0x669   : > { %8213 = vst.msk [vmem:[%s11227_s6 + $0xc0] sm:$0xff] %vm8188_vm0, %v8180_v50  ;;  %v8183_v32 = vmax.f32 %v8151_v53, 0.0  ;;  %v8149_v49 = vadd.f32 %v8847_v51, %v8097_v16 }
 0x66b   : > { %8216 = vst.msk [vmem:[%s11227_s6 + $0xd8] sm:$0xff] %vm8188_vm0, %v8183_v32  ;;  %v8181_v56 = vmax.f32 %v8149_v49, 0.0 }
 0x66d   : > { %8214 = vst.msk [vmem:[%s11227_s6 + $0xc8] sm:$0xff] %vm8188_vm0, %v8181_v56 }
 0x690   : > { %v8761_v57 = vpop.f32.mrf.mxu1 }
 0x691   : > { %v8118_v55 = vadd.f32 %v8761_v57, %v11214_v54 }
 0x692   : > { %v8109_v58 = vpop.f32.mrf.mxu1 }
 0x693   : > { %v8154_v61 = vadd.f32 %v8848_v59, %v8118_v55  ;;  %v8110_v62 = vadd.f32 %v11214_v54, %v8109_v58 }
 0x694   : > { %v8762_v63 = vpop.f32.mrf.mxu1 }
 0x695   : > { %v8186_v0 = vmax.f32 %v8154_v61, 0.0  ;;  %v8152_v3 = vadd.f32 %v8849_v2, %v8110_v62  ;;  %v8121_v4 = vadd.f32 %v8762_v63, %v11214_v54 }
 0x696   : > { %v8112_v6 = vpop.f32.mrf.mxu1 }
 0x697   : > { %8219 = vst.msk [vmem:[%s11227_s6 + $0xf0] sm:$0xff] %vm8188_vm0, %v8186_v0  ;;  %v8184_v7 = vmax.f32 %v8152_v3, 0.0  ;;  %v8155_v9 = vadd.f32 %v8850_v8, %v8121_v4  ;;  %v8113_v10 = vadd.f32 %v11214_v54, %v8112_v6 }
 0x699   : > { %8217 = vst.msk [vmem:[%s11227_s6 + $0xe0] sm:$0xff] %vm8188_vm0, %v8184_v7  ;;  %v8187_v11 = vmax.f32 %v8155_v9, 0.0  ;;  %v8153_v60 = vadd.f32 %v8851_v5, %v8113_v10 }
 0x69b   : > { %8220 = vst.msk [vmem:[%s11227_s6 + $0xf8] sm:$0xff] %vm8188_vm0, %v8187_v11  ;;  %v8185_v12 = vmax.f32 %v8153_v60, 0.0 }
 0x69d   : > { %8218 = vst.msk [vmem:[%s11227_s6 + $0xe8] sm:$0xff] %vm8188_vm0, %v8185_v12 }
 0x69e PF: > { %s15_s18 = sadd.s32 1, %s8858_s18  }
 0x69f   : > { %p12_p4 = scmp.ge.s32.totalorder %s15_s18, 4  }
 0x6a1   :  { %14 = sbr.rel (!%p12_p4) target bundleno = 1 (0x1), region = 73 }

</bundles_post_ra>
